<compile_context>
chip_gen: v7x
topology: tpu7x:2x2x1
jax: 0.10.0
libtpu: 0.0.40
codegen_flags: <defaults>
</compile_context>

<pallas_src>
import functools

import jax
import jax.numpy as jnp
import numpy as np
from jax import lax
from jax.experimental import pallas as pl
from jax.experimental.pallas import tpu as pltpu

# ----- module constants (match the PyTorch spec) ------------------------------
IN_PLANES = 2048
NUM_DECONV_FILTERS = (256, 512)
NUM_DECONV_KERNELS = (4, 4)          # k=4 -> padding=1, output_padding=0
FINAL_CONV_KERNEL = 1                # -> padding 0
DECONV_WITH_BIAS = False
EPS = 1e-5                           # BatchNorm2d default eps


# ===================== Kernel 1: ConvTranspose(4,2,1) + BN + ReLU ============
def _deconv_bn_relu_kernel(xv_ref, w_ref, b_ref, o_ref):
    # xv_ref: (1, 9, H*W, Cin)  bf16 -- 9 shifted windows of the zero-padded input
    # w_ref : (1, 1, 4, Cin, Cout) bf16 -- the 4 taps of output phase (r, c), BN scale folded
    # b_ref : (1, Cout) f32 -- folded BN shift
    # o_ref : (1, 1, 1, H*W, Cout) f32
    r = pl.program_id(0)
    c = pl.program_id(1)
    acc = jnp.zeros(o_ref.shape[3:], jnp.float32)
    for dh in range(2):
        for dw in range(2):
            a = xv_ref[0, (r + dh) * 3 + (c + dw)]          # (H*W, Cin) bf16
            acc = acc + jnp.dot(a, w_ref[0, 0, 2 * dh + dw],
                                preferred_element_type=jnp.float32)
    o_ref[0, 0, 0] = jnp.maximum(acc + b_ref[...], 0.0)      # fused BN shift + ReLU


def deconv4x4_s2_bn_relu(x_nhwc, taps, bias):
    """ConvTranspose2d(k=4, s=2, p=1, bias=False) + folded BN + ReLU, NHWC -> NHWC."""
    N, H, W, Cin = x_nhwc.shape
    Cout = taps.shape[-1]
    # zero-pad once, build the 9 shifted (H, W) windows, flattened to (H*W, Cin).
    xpad = jnp.pad(x_nhwc.astype(jnp.bfloat16), ((0, 0), (1, 1), (1, 1), (0, 0)))
    views = jnp.stack([xpad[:, u:u + H, v:v + W, :].reshape(N, H * W, Cin)
                       for u in range(3) for v in range(3)], axis=1)   # (N, 9, H*W, Cin)

    out_ph = pl.pallas_call(
        _deconv_bn_relu_kernel,
        out_shape=jax.ShapeDtypeStruct((2, 2, N, H * W, Cout), jnp.float32),
        grid=(2, 2, N),
        in_specs=[
            pl.BlockSpec((1, 9, H * W, Cin), lambda r, c, n: (n, 0, 0, 0)),
            pl.BlockSpec((1, 1, 4, Cin, Cout), lambda r, c, n: (r, c, 0, 0, 0)),
            pl.BlockSpec((1, Cout), lambda r, c, n: (0, 0)),
        ],
        out_specs=pl.BlockSpec((1, 1, 1, H * W, Cout), lambda r, c, n: (r, c, n, 0, 0)),
        compiler_params=pltpu.CompilerParams(
            dimension_semantics=("parallel", "parallel", "parallel")),
    )(views, taps, bias.reshape(1, Cout))

    # out_ph[r, c, n, m*W + w, co] == out[n, 2m + r, 2w + c, co]
    out = out_ph.reshape(2, 2, N, H, W, Cout)
    out = jnp.transpose(out, (2, 3, 0, 4, 1, 5)).reshape(N, 2 * H, 2 * W, Cout)
    return out


# ===================== Kernel 2: final 1x1 conv + bias =======================
def _conv1x1_bias_kernel(x_ref, w_ref, b_ref, o_ref):
    o_ref[...] = jnp.dot(x_ref[...], w_ref[...],
                         preferred_element_type=jnp.float32) + b_ref[...]


def conv1x1_bias(x_nhwc, w_mat, bias, tm=256):
    N, H, W, C = x_nhwc.shape
    P = w_mat.shape[-1]
    M = N * H * W
    x2 = x_nhwc.reshape(M, C).astype(jnp.bfloat16)
    tm = min(tm, M)
    out = pl.pallas_call(
        _conv1x1_bias_kernel,
        out_shape=jax.ShapeDtypeStruct((M, P), jnp.float32),
        grid=(pl.cdiv(M, tm),),
        in_specs=[
            pl.BlockSpec((tm, C), lambda i: (i, 0)),
            pl.BlockSpec((C, P), lambda i: (0, 0)),
            pl.BlockSpec((1, P), lambda i: (0, 0)),
        ],
        out_specs=pl.BlockSpec((tm, P), lambda i: (i, 0)),
        compiler_params=pltpu.CompilerParams(dimension_semantics=("parallel",)),
    )(x2, w_mat, bias.reshape(1, P))
    return out.reshape(N, H, W, P)


# ===================== parameter preparation (host side) =====================
def _build_phase_taps(w_iohw):
    """(Cin, Cout, 4, 4) folded weight -> (2, 2, 4, Cin, Cout) phase/tap weights.

    For output pixel (2m+r, 2w+c):  out = sum_{dh,dw in {0,1}}
        x_pad[m + r + dh, w + c + dw] @ W[:, :, 3 - 2*dh - r, 3 - 2*dw - c]
    """
    cin, cout = w_iohw.shape[:2]
    taps = []
    for r in range(2):
        for c in range(2):
            for dh in range(2):
                for dw in range(2):
                    taps.append(w_iohw[:, :, 3 - 2 * dh - r, 3 - 2 * dw - c])
    return jnp.stack(taps, 0).reshape(2, 2, 4, cin, cout)


def init_params(key, npoints):
    params = {"deconv": []}
    cin = IN_PLANES
    for planes in NUM_DECONV_FILTERS:
        key, kw, kg, kb, km, kv = jax.random.split(key, 6)
        params["deconv"].append(dict(
            w_iohw=jax.random.normal(kw, (cin, planes, 4, 4), jnp.float32)
                   / np.sqrt(4.0 * cin),
            gamma=jax.random.uniform(kg, (planes,), jnp.float32, 0.5, 1.5),
            beta=0.1 * jax.random.normal(kb, (planes,), jnp.float32),
            mean=0.1 * jax.random.normal(km, (planes,), jnp.float32),
            var=jax.random.uniform(kv, (planes,), jnp.float32, 0.5, 1.5),
        ))
        cin = planes
    key, kw, kb = jax.random.split(key, 3)
    params["final_w"] = (jax.random.normal(kw, (npoints, cin, 1, 1), jnp.float32)
                         / np.sqrt(cin))
    params["final_b"] = 0.1 * jax.random.normal(kb, (npoints,), jnp.float32)
    return params


def prepare_params(params):
    """One-time precompute: fold inference BN into weights/bias, build bf16 taps."""
    prep = {"deconv": []}
    for layer in params["deconv"]:
        s = layer["gamma"] / jnp.sqrt(layer["var"] + EPS)
        b = layer["beta"] - layer["mean"] * s
        w_folded = (layer["w_iohw"] * s[None, :, None, None]).astype(jnp.bfloat16)
        prep["deconv"].append(dict(
            w_bf16_iohw=w_folded,                 # for the pure-JAX reference
            taps=_build_phase_taps(w_folded),     # (2, 2, 4, Cin, Cout) bf16
            bias=b,                               # f32
        ))
    wf = params["final_w"].astype(jnp.bfloat16)   # (P, C, 1, 1)
    prep["final_w_bf16_oihw"] = wf
    prep["final_w_mat"] = jnp.transpose(wf[:, :, 0, 0], (1, 0))   # (C, P) bf16
    prep["final_b"] = params["final_b"]
    return prep


# ===================== module forward (Pallas path) ==========================
def pose_resnet_forward(x_nchw, prep):
    feat = jnp.transpose(x_nchw, (0, 2, 3, 1))            # NCHW -> NHWC
    for layer in prep["deconv"]:
        feat = deconv4x4_s2_bn_relu(feat, layer["taps"], layer["bias"])
    x_fea = feat                                          # NHWC, f32
    heat = conv1x1_bias(x_fea, prep["final_w_mat"], prep["final_b"])
    return (jnp.transpose(heat, (0, 3, 1, 2)),            # (N, npoints, 4H, 4W)
            jnp.transpose(x_fea, (0, 3, 1, 2)))           # (N, 512, 4H, 4W)


# ===================== pure-JAX reference =====================================
def reference_forward(x_nchw, prep):
    h = x_nchw
    for layer in prep["deconv"]:
        # ConvTranspose2d(k=4, s=2, p=1)  ==  lhs-dilated conv with flipped kernel
        w_conv = jnp.transpose(layer["w_bf16_iohw"], (1, 0, 2, 3))[:, :, ::-1, ::-1]
        y = lax.conv_general_dilated(
            h.astype(jnp.bfloat16), w_conv, (1, 1), ((2, 2), (2, 2)),
            lhs_dilation=(2, 2),
            dimension_numbers=("NCHW", "OIHW", "NCHW"),
            preferred_element_type=jnp.float32,
            precision=lax.Precision.HIGHEST)
        h = jnp.maximum(y + layer["bias"].reshape(1, -1, 1, 1), 0.0)
    x_fea = h
    heat = lax.conv_general_dilated(
        x_fea.astype(jnp.bfloat16), prep["final_w_bf16_oihw"], (1, 1), "VALID",
        dimension_numbers=("NCHW", "OIHW", "NCHW"),
        preferred_element_type=jnp.float32,
        precision=lax.Precision.HIGHEST)
    heat = heat + prep["final_b"].reshape(1, -1, 1, 1)
    return heat, x_fea


if __name__ == "__main__":
    npoints = 17
    N, H, W = 2, 4, 4                                     # small spatial, real channel widths

    key = jax.random.PRNGKey(0)
    kx, kp = jax.random.split(key)
    x = jax.random.normal(kx, (N, IN_PLANES, H, W), jnp.float32)   # NCHW like PyTorch
    params = init_params(kp, npoints)
    prep = prepare_params(params)

    heat, x_fea = jax.jit(pose_resnet_forward)(x, prep)
    heat, x_fea = jax.block_until_ready((heat, x_fea))

    assert heat.shape == (N, npoints, 4 * H, 4 * W)
    assert x_fea.shape == (N, NUM_DECONV_FILTERS[-1], 4 * H, 4 * W)

    heat_ref, x_fea_ref = reference_forward(x, prep)
    np.testing.assert_allclose(np.asarray(x_fea), np.asarray(x_fea_ref),
                               rtol=2e-2, atol=2e-3)
    np.testing.assert_allclose(np.asarray(heat), np.asarray(heat_ref),
                               rtol=2e-2, atol=2e-3)

    print("KERNEL_OK")
</pallas_src>

<mosaic_0001>
module attributes {stable_mosaic.version = 11 : i64} {
  func.func @_deconv_bn_relu_kernel(%arg0: i32, %arg1: i32, %arg2: i32, %arg3: memref<1x9x16x2048xbf16, #tpu.memory_space<vmem>>, %arg4: memref<1x1x4x2048x256xbf16, #tpu.memory_space<vmem>>, %arg5: memref<1x256xf32, #tpu.memory_space<vmem>>, %arg6: memref<1x1x1x16x256xf32, #tpu.memory_space<vmem>>) attributes {dimension_semantics = [#tpu.dimension_semantics<parallel>, #tpu.dimension_semantics<parallel>, #tpu.dimension_semantics<parallel>], iteration_bounds = array<i64: 2, 2, 2>, scalar_prefetch = 0 : i64, scratch_operands = 0 : i64, tpu.core_type = #tpu.core_type<tc>, window_params = [{transform_indices = @transform_0, window_bounds = array<i64: 1, 9, 16, 2048>}, {transform_indices = @transform_1, window_bounds = array<i64: 1, 1, 4, 2048, 256>}, {pipeline_mode = #tpu.pipeline_mode<synchronous>, transform_indices = @transform_2, window_bounds = array<i64: 1, 256>}, {transform_indices = @transform_3, window_bounds = array<i64: 1, 1, 1, 16, 256>}]} {
    %cst = arith.constant 0.000000e+00 : f32
    %0 = vector.broadcast %cst : f32 to vector<16x256xf32>
    %c0_i32 = arith.constant 0 : i32
    %1 = arith.addi %arg0, %c0_i32 : i32
    %c3_i32 = arith.constant 3 : i32
    %2 = arith.muli %1, %c3_i32 : i32
    %c0_i32_0 = arith.constant 0 : i32
    %3 = arith.addi %arg1, %c0_i32_0 : i32
    %4 = arith.addi %2, %3 : i32
    %c0 = arith.constant 0 : index
    %5 = arith.index_cast %4 : i32 to index
    %c0_1 = arith.constant 0 : index
    %c0_2 = arith.constant 0 : index
    %6 = vector.load %arg3[%c0, %5, %c0_1, %c0_2] : memref<1x9x16x2048xbf16, #tpu.memory_space<vmem>>, vector<1x1x16x2048xbf16>
    %7 = vector.shape_cast %6 : vector<1x1x16x2048xbf16> to vector<16x2048xbf16>
    %c0_3 = arith.constant 0 : index
    %c0_4 = arith.constant 0 : index
    %c0_5 = arith.constant 0 : index
    %c0_6 = arith.constant 0 : index
    %c0_7 = arith.constant 0 : index
    %8 = vector.load %arg4[%c0_3, %c0_4, %c0_5, %c0_6, %c0_7] : memref<1x1x4x2048x256xbf16, #tpu.memory_space<vmem>>, vector<1x1x1x2048x256xbf16>
    %9 = vector.shape_cast %8 : vector<1x1x1x2048x256xbf16> to vector<2048x256xbf16>
    %cst_8 = arith.constant dense<0.000000e+00> : vector<16x256xf32>
    %10 = tpu.matmul %7, %9, %cst_8 {dimension_numbers = #tpu.dot_dimension_numbers<[1], [0], [0], [1], [0, 0, 1, 1], [], []>} : vector<16x2048xbf16>, vector<2048x256xbf16>, vector<16x256xf32> -> vector<16x256xf32>
    %11 = arith.addf %0, %10 : vector<16x256xf32>
    %c0_i32_9 = arith.constant 0 : i32
    %12 = arith.addi %arg0, %c0_i32_9 : i32
    %c3_i32_10 = arith.constant 3 : i32
    %13 = arith.muli %12, %c3_i32_10 : i32
    %c1_i32 = arith.constant 1 : i32
    %14 = arith.addi %arg1, %c1_i32 : i32
    %15 = arith.addi %13, %14 : i32
    %c0_11 = arith.constant 0 : index
    %16 = arith.index_cast %15 : i32 to index
    %c0_12 = arith.constant 0 : index
    %c0_13 = arith.constant 0 : index
    %17 = vector.load %arg3[%c0_11, %16, %c0_12, %c0_13] : memref<1x9x16x2048xbf16, #tpu.memory_space<vmem>>, vector<1x1x16x2048xbf16>
    %18 = vector.shape_cast %17 : vector<1x1x16x2048xbf16> to vector<16x2048xbf16>
    %c0_14 = arith.constant 0 : index
    %c0_15 = arith.constant 0 : index
    %c1 = arith.constant 1 : index
    %c0_16 = arith.constant 0 : index
    %c0_17 = arith.constant 0 : index
    %19 = vector.load %arg4[%c0_14, %c0_15, %c1, %c0_16, %c0_17] : memref<1x1x4x2048x256xbf16, #tpu.memory_space<vmem>>, vector<1x1x1x2048x256xbf16>
    %20 = vector.shape_cast %19 : vector<1x1x1x2048x256xbf16> to vector<2048x256xbf16>
    %cst_18 = arith.constant dense<0.000000e+00> : vector<16x256xf32>
    %21 = tpu.matmul %18, %20, %cst_18 {dimension_numbers = #tpu.dot_dimension_numbers<[1], [0], [0], [1], [0, 0, 1, 1], [], []>} : vector<16x2048xbf16>, vector<2048x256xbf16>, vector<16x256xf32> -> vector<16x256xf32>
    %22 = arith.addf %11, %21 : vector<16x256xf32>
    %c1_i32_19 = arith.constant 1 : i32
    %23 = arith.addi %arg0, %c1_i32_19 : i32
    %c3_i32_20 = arith.constant 3 : i32
    %24 = arith.muli %23, %c3_i32_20 : i32
    %c0_i32_21 = arith.constant 0 : i32
    %25 = arith.addi %arg1, %c0_i32_21 : i32
    %26 = arith.addi %24, %25 : i32
    %c0_22 = arith.constant 0 : index
    %27 = arith.index_cast %26 : i32 to index
    %c0_23 = arith.constant 0 : index
    %c0_24 = arith.constant 0 : index
    %28 = vector.load %arg3[%c0_22, %27, %c0_23, %c0_24] : memref<1x9x16x2048xbf16, #tpu.memory_space<vmem>>, vector<1x1x16x2048xbf16>
    %29 = vector.shape_cast %28 : vector<1x1x16x2048xbf16> to vector<16x2048xbf16>
    %c0_25 = arith.constant 0 : index
    %c0_26 = arith.constant 0 : index
    %c2 = arith.constant 2 : index
    %c0_27 = arith.constant 0 : index
    %c0_28 = arith.constant 0 : index
    %30 = vector.load %arg4[%c0_25, %c0_26, %c2, %c0_27, %c0_28] : memref<1x1x4x2048x256xbf16, #tpu.memory_space<vmem>>, vector<1x1x1x2048x256xbf16>
    %31 = vector.shape_cast %30 : vector<1x1x1x2048x256xbf16> to vector<2048x256xbf16>
    %cst_29 = arith.constant dense<0.000000e+00> : vector<16x256xf32>
    %32 = tpu.matmul %29, %31, %cst_29 {dimension_numbers = #tpu.dot_dimension_numbers<[1], [0], [0], [1], [0, 0, 1, 1], [], []>} : vector<16x2048xbf16>, vector<2048x256xbf16>, vector<16x256xf32> -> vector<16x256xf32>
    %33 = arith.addf %22, %32 : vector<16x256xf32>
    %c1_i32_30 = arith.constant 1 : i32
    %34 = arith.addi %arg0, %c1_i32_30 : i32
    %c3_i32_31 = arith.constant 3 : i32
    %35 = arith.muli %34, %c3_i32_31 : i32
    %c1_i32_32 = arith.constant 1 : i32
    %36 = arith.addi %arg1, %c1_i32_32 : i32
    %37 = arith.addi %35, %36 : i32
    %c0_33 = arith.constant 0 : index
    %38 = arith.index_cast %37 : i32 to index
    %c0_34 = arith.constant 0 : index
    %c0_35 = arith.constant 0 : index
    %39 = vector.load %arg3[%c0_33, %38, %c0_34, %c0_35] : memref<1x9x16x2048xbf16, #tpu.memory_space<vmem>>, vector<1x1x16x2048xbf16>
    %40 = vector.shape_cast %39 : vector<1x1x16x2048xbf16> to vector<16x2048xbf16>
    %c0_36 = arith.constant 0 : index
    %c0_37 = arith.constant 0 : index
    %c3 = arith.constant 3 : index
    %c0_38 = arith.constant 0 : index
    %c0_39 = arith.constant 0 : index
    %41 = vector.load %arg4[%c0_36, %c0_37, %c3, %c0_38, %c0_39] : memref<1x1x4x2048x256xbf16, #tpu.memory_space<vmem>>, vector<1x1x1x2048x256xbf16>
    %42 = vector.shape_cast %41 : vector<1x1x1x2048x256xbf16> to vector<2048x256xbf16>
    %cst_40 = arith.constant dense<0.000000e+00> : vector<16x256xf32>
    %43 = tpu.matmul %40, %42, %cst_40 {dimension_numbers = #tpu.dot_dimension_numbers<[1], [0], [0], [1], [0, 0, 1, 1], [], []>} : vector<16x2048xbf16>, vector<2048x256xbf16>, vector<16x256xf32> -> vector<16x256xf32>
    %44 = arith.addf %33, %43 : vector<16x256xf32>
    %c0_41 = arith.constant 0 : index
    %c0_42 = arith.constant 0 : index
    %45 = vector.load %arg5[%c0_41, %c0_42] : memref<1x256xf32, #tpu.memory_space<vmem>>, vector<1x256xf32>
    %46 = vector.broadcast %45 : vector<1x256xf32> to vector<16x256xf32>
    %47 = arith.addf %44, %46 : vector<16x256xf32>
    %cst_43 = arith.constant 0.000000e+00 : f32
    %48 = vector.broadcast %cst_43 : f32 to vector<16x256xf32>
    %49 = arith.maximumf %47, %48 : vector<16x256xf32>
    %c0_44 = arith.constant 0 : index
    %c0_45 = arith.constant 0 : index
    %c0_46 = arith.constant 0 : index
    %c0_47 = arith.constant 0 : index
    %c0_48 = arith.constant 0 : index
    %50 = vector.load %arg6[%c0_44, %c0_45, %c0_46, %c0_47, %c0_48] : memref<1x1x1x16x256xf32, #tpu.memory_space<vmem>>, vector<1x1x1x16x256xf32>
    %51 = vector.shape_cast %50 : vector<1x1x1x16x256xf32> to vector<16x256xf32>
    %52 = vector.shape_cast %49 : vector<16x256xf32> to vector<1x1x1x16x256xf32>
    tpu.vector_store %arg6[%c0_44, %c0_45, %c0_46, %c0_47, %c0_48], %52 {strides = array<i32>} : memref<1x1x1x16x256xf32, #tpu.memory_space<vmem>>, vector<1x1x1x16x256xf32>,
    return
  }
  func.func @transform_0(%arg0: i32, %arg1: i32, %arg2: i32) -> (i32, i32, i32, i32) {
    %c0_i32 = arith.constant 0 : i32
    %c0_i32_0 = arith.constant 0 : i32
    %c0_i32_1 = arith.constant 0 : i32
    %c0_i32_2 = arith.constant 0 : i32
    return %arg2, %c0_i32, %c0_i32_0, %c0_i32_1 : i32, i32, i32, i32
  }
  func.func @transform_1(%arg0: i32, %arg1: i32, %arg2: i32) -> (i32, i32, i32, i32, i32) {
    %c0_i32 = arith.constant 0 : i32
    %c0_i32_0 = arith.constant 0 : i32
    %c0_i32_1 = arith.constant 0 : i32
    %c0_i32_2 = arith.constant 0 : i32
    return %arg0, %arg1, %c0_i32, %c0_i32_0, %c0_i32_1 : i32, i32, i32, i32, i32
  }
  func.func @transform_2(%arg0: i32, %arg1: i32, %arg2: i32) -> (i32, i32) {
    %c0_i32 = arith.constant 0 : i32
    %c0_i32_0 = arith.constant 0 : i32
    %c0_i32_1 = arith.constant 0 : i32
    return %c0_i32, %c0_i32_0 : i32, i32
  }
  func.func @transform_3(%arg0: i32, %arg1: i32, %arg2: i32) -> (i32, i32, i32, i32, i32) {
    %c0_i32 = arith.constant 0 : i32
    %c0_i32_0 = arith.constant 0 : i32
    %c0_i32_1 = arith.constant 0 : i32
    return %arg0, %arg1, %arg2, %c0_i32, %c0_i32_0 : i32, i32, i32, i32, i32
  }
}

module attributes {stable_mosaic.version = 11 : i64} {
  func.func @_deconv_bn_relu_kernel(%arg0: i32, %arg1: i32, %arg2: i32, %arg3: memref<1x9x64x256xbf16, #tpu.memory_space<vmem>>, %arg4: memref<1x1x4x256x512xbf16, #tpu.memory_space<vmem>>, %arg5: memref<1x512xf32, #tpu.memory_space<vmem>>, %arg6: memref<1x1x1x64x512xf32, #tpu.memory_space<vmem>>) attributes {dimension_semantics = [#tpu.dimension_semantics<parallel>, #tpu.dimension_semantics<parallel>, #tpu.dimension_semantics<parallel>], iteration_bounds = array<i64: 2, 2, 2>, scalar_prefetch = 0 : i64, scratch_operands = 0 : i64, tpu.core_type = #tpu.core_type<tc>, window_params = [{transform_indices = @transform_0, window_bounds = array<i64: 1, 9, 64, 256>}, {transform_indices = @transform_1, window_bounds = array<i64: 1, 1, 4, 256, 512>}, {pipeline_mode = #tpu.pipeline_mode<synchronous>, transform_indices = @transform_2, window_bounds = array<i64: 1, 512>}, {transform_indices = @transform_3, window_bounds = array<i64: 1, 1, 1, 64, 512>}]} {
    %cst = arith.constant 0.000000e+00 : f32
    %0 = vector.broadcast %cst : f32 to vector<64x512xf32>
    %c0_i32 = arith.constant 0 : i32
    %1 = arith.addi %arg0, %c0_i32 : i32
    %c3_i32 = arith.constant 3 : i32
    %2 = arith.muli %1, %c3_i32 : i32
    %c0_i32_0 = arith.constant 0 : i32
    %3 = arith.addi %arg1, %c0_i32_0 : i32
    %4 = arith.addi %2, %3 : i32
    %c0 = arith.constant 0 : index
    %5 = arith.index_cast %4 : i32 to index
    %c0_1 = arith.constant 0 : index
    %c0_2 = arith.constant 0 : index
    %6 = vector.load %arg3[%c0, %5, %c0_1, %c0_2] : memref<1x9x64x256xbf16, #tpu.memory_space<vmem>>, vector<1x1x64x256xbf16>
    %7 = vector.shape_cast %6 : vector<1x1x64x256xbf16> to vector<64x256xbf16>
    %c0_3 = arith.constant 0 : index
    %c0_4 = arith.constant 0 : index
    %c0_5 = arith.constant 0 : index
    %c0_6 = arith.constant 0 : index
    %c0_7 = arith.constant 0 : index
    %8 = vector.load %arg4[%c0_3, %c0_4, %c0_5, %c0_6, %c0_7] : memref<1x1x4x256x512xbf16, #tpu.memory_space<vmem>>, vector<1x1x1x256x512xbf16>
    %9 = vector.shape_cast %8 : vector<1x1x1x256x512xbf16> to vector<256x512xbf16>
    %cst_8 = arith.constant dense<0.000000e+00> : vector<64x512xf32>
    %10 = tpu.matmul %7, %9, %cst_8 {dimension_numbers = #tpu.dot_dimension_numbers<[1], [0], [0], [1], [0, 0, 1, 1], [], []>} : vector<64x256xbf16>, vector<256x512xbf16>, vector<64x512xf32> -> vector<64x512xf32>
    %11 = arith.addf %0, %10 : vector<64x512xf32>
    %c0_i32_9 = arith.constant 0 : i32
    %12 = arith.addi %arg0, %c0_i32_9 : i32
    %c3_i32_10 = arith.constant 3 : i32
    %13 = arith.muli %12, %c3_i32_10 : i32
    %c1_i32 = arith.constant 1 : i32
    %14 = arith.addi %arg1, %c1_i32 : i32
    %15 = arith.addi %13, %14 : i32
    %c0_11 = arith.constant 0 : index
    %16 = arith.index_cast %15 : i32 to index
    %c0_12 = arith.constant 0 : index
    %c0_13 = arith.constant 0 : index
    %17 = vector.load %arg3[%c0_11, %16, %c0_12, %c0_13] : memref<1x9x64x256xbf16, #tpu.memory_space<vmem>>, vector<1x1x64x256xbf16>
    %18 = vector.shape_cast %17 : vector<1x1x64x256xbf16> to vector<64x256xbf16>
    %c0_14 = arith.constant 0 : index
    %c0_15 = arith.constant 0 : index
    %c1 = arith.constant 1 : index
    %c0_16 = arith.constant 0 : index
    %c0_17 = arith.constant 0 : index
    %19 = vector.load %arg4[%c0_14, %c0_15, %c1, %c0_16, %c0_17] : memref<1x1x4x256x512xbf16, #tpu.memory_space<vmem>>, vector<1x1x1x256x512xbf16>
    %20 = vector.shape_cast %19 : vector<1x1x1x256x512xbf16> to vector<256x512xbf16>
    %cst_18 = arith.constant dense<0.000000e+00> : vector<64x512xf32>
    %21 = tpu.matmul %18, %20, %cst_18 {dimension_numbers = #tpu.dot_dimension_numbers<[1], [0], [0], [1], [0, 0, 1, 1], [], []>} : vector<64x256xbf16>, vector<256x512xbf16>, vector<64x512xf32> -> vector<64x512xf32>
    %22 = arith.addf %11, %21 : vector<64x512xf32>
    %c1_i32_19 = arith.constant 1 : i32
    %23 = arith.addi %arg0, %c1_i32_19 : i32
    %c3_i32_20 = arith.constant 3 : i32
    %24 = arith.muli %23, %c3_i32_20 : i32
    %c0_i32_21 = arith.constant 0 : i32
    %25 = arith.addi %arg1, %c0_i32_21 : i32
    %26 = arith.addi %24, %25 : i32
    %c0_22 = arith.constant 0 : index
    %27 = arith.index_cast %26 : i32 to index
    %c0_23 = arith.constant 0 : index
    %c0_24 = arith.constant 0 : index
    %28 = vector.load %arg3[%c0_22, %27, %c0_23, %c0_24] : memref<1x9x64x256xbf16, #tpu.memory_space<vmem>>, vector<1x1x64x256xbf16>
    %29 = vector.shape_cast %28 : vector<1x1x64x256xbf16> to vector<64x256xbf16>
    %c0_25 = arith.constant 0 : index
    %c0_26 = arith.constant 0 : index
    %c2 = arith.constant 2 : index
    %c0_27 = arith.constant 0 : index
    %c0_28 = arith.constant 0 : index
    %30 = vector.load %arg4[%c0_25, %c0_26, %c2, %c0_27, %c0_28] : memref<1x1x4x256x512xbf16, #tpu.memory_space<vmem>>, vector<1x1x1x256x512xbf16>
    %31 = vector.shape_cast %30 : vector<1x1x1x256x512xbf16> to vector<256x512xbf16>
    %cst_29 = arith.constant dense<0.000000e+00> : vector<64x512xf32>
    %32 = tpu.matmul %29, %31, %cst_29 {dimension_numbers = #tpu.dot_dimension_numbers<[1], [0], [0], [1], [0, 0, 1, 1], [], []>} : vector<64x256xbf16>, vector<256x512xbf16>, vector<64x512xf32> -> vector<64x512xf32>
    %33 = arith.addf %22, %32 : vector<64x512xf32>
    %c1_i32_30 = arith.constant 1 : i32
    %34 = arith.addi %arg0, %c1_i32_30 : i32
    %c3_i32_31 = arith.constant 3 : i32
    %35 = arith.muli %34, %c3_i32_31 : i32
    %c1_i32_32 = arith.constant 1 : i32
    %36 = arith.addi %arg1, %c1_i32_32 : i32
    %37 = arith.addi %35, %36 : i32
    %c0_33 = arith.constant 0 : index
    %38 = arith.index_cast %37 : i32 to index
    %c0_34 = arith.constant 0 : index
    %c0_35 = arith.constant 0 : index
    %39 = vector.load %arg3[%c0_33, %38, %c0_34, %c0_35] : memref<1x9x64x256xbf16, #tpu.memory_space<vmem>>, vector<1x1x64x256xbf16>
    %40 = vector.shape_cast %39 : vector<1x1x64x256xbf16> to vector<64x256xbf16>
    %c0_36 = arith.constant 0 : index
    %c0_37 = arith.constant 0 : index
    %c3 = arith.constant 3 : index
    %c0_38 = arith.constant 0 : index
    %c0_39 = arith.constant 0 : index
    %41 = vector.load %arg4[%c0_36, %c0_37, %c3, %c0_38, %c0_39] : memref<1x1x4x256x512xbf16, #tpu.memory_space<vmem>>, vector<1x1x1x256x512xbf16>
    %42 = vector.shape_cast %41 : vector<1x1x1x256x512xbf16> to vector<256x512xbf16>
    %cst_40 = arith.constant dense<0.000000e+00> : vector<64x512xf32>
    %43 = tpu.matmul %40, %42, %cst_40 {dimension_numbers = #tpu.dot_dimension_numbers<[1], [0], [0], [1], [0, 0, 1, 1], [], []>} : vector<64x256xbf16>, vector<256x512xbf16>, vector<64x512xf32> -> vector<64x512xf32>
    %44 = arith.addf %33, %43 : vector<64x512xf32>
    %c0_41 = arith.constant 0 : index
    %c0_42 = arith.constant 0 : index
    %45 = vector.load %arg5[%c0_41, %c0_42] : memref<1x512xf32, #tpu.memory_space<vmem>>, vector<1x512xf32>
    %46 = vector.broadcast %45 : vector<1x512xf32> to vector<64x512xf32>
    %47 = arith.addf %44, %46 : vector<64x512xf32>
    %cst_43 = arith.constant 0.000000e+00 : f32
    %48 = vector.broadcast %cst_43 : f32 to vector<64x512xf32>
    %49 = arith.maximumf %47, %48 : vector<64x512xf32>
    %c0_44 = arith.constant 0 : index
    %c0_45 = arith.constant 0 : index
    %c0_46 = arith.constant 0 : index
    %c0_47 = arith.constant 0 : index
    %c0_48 = arith.constant 0 : index
    %50 = vector.load %arg6[%c0_44, %c0_45, %c0_46, %c0_47, %c0_48] : memref<1x1x1x64x512xf32, #tpu.memory_space<vmem>>, vector<1x1x1x64x512xf32>
    %51 = vector.shape_cast %50 : vector<1x1x1x64x512xf32> to vector<64x512xf32>
    %52 = vector.shape_cast %49 : vector<64x512xf32> to vector<1x1x1x64x512xf32>
    tpu.vector_store %arg6[%c0_44, %c0_45, %c0_46, %c0_47, %c0_48], %52 {strides = array<i32>} : memref<1x1x1x64x512xf32, #tpu.memory_space<vmem>>, vector<1x1x1x64x512xf32>,
    return
  }
  func.func @transform_0(%arg0: i32, %arg1: i32, %arg2: i32) -> (i32, i32, i32, i32) {
    %c0_i32 = arith.constant 0 : i32
    %c0_i32_0 = arith.constant 0 : i32
    %c0_i32_1 = arith.constant 0 : i32
    %c0_i32_2 = arith.constant 0 : i32
    return %arg2, %c0_i32, %c0_i32_0, %c0_i32_1 : i32, i32, i32, i32
  }
  func.func @transform_1(%arg0: i32, %arg1: i32, %arg2: i32) -> (i32, i32, i32, i32, i32) {
    %c0_i32 = arith.constant 0 : i32
    %c0_i32_0 = arith.constant 0 : i32
    %c0_i32_1 = arith.constant 0 : i32
    %c0_i32_2 = arith.constant 0 : i32
    return %arg0, %arg1, %c0_i32, %c0_i32_0, %c0_i32_1 : i32, i32, i32, i32, i32
  }
  func.func @transform_2(%arg0: i32, %arg1: i32, %arg2: i32) -> (i32, i32) {
    %c0_i32 = arith.constant 0 : i32
    %c0_i32_0 = arith.constant 0 : i32
    %c0_i32_1 = arith.constant 0 : i32
    return %c0_i32, %c0_i32_0 : i32, i32
  }
  func.func @transform_3(%arg0: i32, %arg1: i32, %arg2: i32) -> (i32, i32, i32, i32, i32) {
    %c0_i32 = arith.constant 0 : i32
    %c0_i32_0 = arith.constant 0 : i32
    %c0_i32_1 = arith.constant 0 : i32
    return %arg0, %arg1, %arg2, %c0_i32, %c0_i32_0 : i32, i32, i32, i32, i32
  }
}

module attributes {stable_mosaic.version = 11 : i64} {
  func.func @_conv1x1_bias_kernel(%arg0: i32, %arg1: memref<256x512xbf16, #tpu.memory_space<vmem>>, %arg2: memref<512x17xbf16, #tpu.memory_space<vmem>>, %arg3: memref<1x17xf32, #tpu.memory_space<vmem>>, %arg4: memref<256x17xf32, #tpu.memory_space<vmem>>) attributes {dimension_semantics = [#tpu.dimension_semantics<parallel>], iteration_bounds = array<i64: 2>, scalar_prefetch = 0 : i64, scratch_operands = 0 : i64, tpu.core_type = #tpu.core_type<tc>, window_params = [{transform_indices = @transform_0, window_bounds = array<i64: 256, 512>}, {pipeline_mode = #tpu.pipeline_mode<synchronous>, transform_indices = @transform_1, window_bounds = array<i64: 512, 17>}, {pipeline_mode = #tpu.pipeline_mode<synchronous>, transform_indices = @transform_2, window_bounds = array<i64: 1, 17>}, {transform_indices = @transform_3, window_bounds = array<i64: 256, 17>}]} {
    %c0 = arith.constant 0 : index
    %c0_0 = arith.constant 0 : index
    %0 = vector.load %arg1[%c0, %c0_0] : memref<256x512xbf16, #tpu.memory_space<vmem>>, vector<256x512xbf16>
    %c0_1 = arith.constant 0 : index
    %c0_2 = arith.constant 0 : index
    %1 = vector.load %arg2[%c0_1, %c0_2] : memref<512x17xbf16, #tpu.memory_space<vmem>>, vector<512x17xbf16>
    %cst = arith.constant dense<0.000000e+00> : vector<256x17xf32>
    %2 = tpu.matmul %0, %1, %cst {dimension_numbers = #tpu.dot_dimension_numbers<[1], [0], [0], [1], [0, 0, 1, 1], [], []>} : vector<256x512xbf16>, vector<512x17xbf16>, vector<256x17xf32> -> vector<256x17xf32>
    %c0_3 = arith.constant 0 : index
    %c0_4 = arith.constant 0 : index
    %3 = vector.load %arg3[%c0_3, %c0_4] : memref<1x17xf32, #tpu.memory_space<vmem>>, vector<1x17xf32>
    %4 = vector.broadcast %3 : vector<1x17xf32> to vector<256x17xf32>
    %5 = arith.addf %2, %4 : vector<256x17xf32>
    %c0_5 = arith.constant 0 : index
    %c0_6 = arith.constant 0 : index
    %6 = vector.load %arg4[%c0_5, %c0_6] : memref<256x17xf32, #tpu.memory_space<vmem>>, vector<256x17xf32>
    tpu.vector_store %arg4[%c0_5, %c0_6], %5 {strides = array<i32>} : memref<256x17xf32, #tpu.memory_space<vmem>>, vector<256x17xf32>,
    return
  }
  func.func @transform_0(%arg0: i32) -> (i32, i32) {
    %c0_i32 = arith.constant 0 : i32
    %c0_i32_0 = arith.constant 0 : i32
    return %arg0, %c0_i32 : i32, i32
  }
  func.func @transform_1(%arg0: i32) -> (i32, i32) {
    %c0_i32 = arith.constant 0 : i32
    %c0_i32_0 = arith.constant 0 : i32
    %c0_i32_1 = arith.constant 0 : i32
    return %c0_i32, %c0_i32_0 : i32, i32
  }
  func.func @transform_2(%arg0: i32) -> (i32, i32) {
    %c0_i32 = arith.constant 0 : i32
    %c0_i32_0 = arith.constant 0 : i32
    %c0_i32_1 = arith.constant 0 : i32
    return %c0_i32, %c0_i32_0 : i32, i32
  }
  func.func @transform_3(%arg0: i32) -> (i32, i32) {
    %c0_i32 = arith.constant 0 : i32
    %c0_i32_0 = arith.constant 0 : i32
    return %arg0, %c0_i32 : i32, i32
  }
}

</mosaic_0001>

<bundles_post_ra>
// kernel: pose_resnet_forward.4
= control target key start
LH: loop header
LB: loop body
LE: loop exit
PB: predicated region body
PF: predicated region fallthrough
CT: control target
= control target key end

     0   :  { %s4095_s12 = smov 0   ;;  %s4097_s13 = smov 0   ;;  %s4562_s0 = inlined_call_operand.vmem [shape: bf16[2,9,64,256], index: 0, kind: input, shape index: {}]   ;;  %s4563_s1 = inlined_call_operand.vmem [shape: bf16[2,2,4,256,512], index: 1, kind: input, shape index: {}]   ;;  %s4564_s2 = inlined_call_operand.vmem [shape: f32[1,512], index: 2, kind: input, shape index: {}]   ;;  %s4565_s3 = inlined_call_operand.vmem [shape: f32[2,2,2,64,512], index: 3, kind: output, shape index: {}]  }
   0x1   :  { %s4099_s14 = smov 0   ;;  %s4101_s15 = smov 0  }
   0x2   :  { %s4103_s16 = smov 0   ;;  %s4105_s17 = smov 0  }
   0x3   :  { %s4107_s18 = smov 0  }
   0x4 LB: > { %s25_s19 = sadd.s32 1, %s4061_s15  ;;  %s28_s20 = sadd.s32 1, %s4065_s16  ;;  %s4073_s18 = sphi %s4107_s18, %s13_s18   ;;  %s4069_s17 = sphi %s4105_s17, %s4571_s17   ;;  %s4065_s16 = sphi %s4103_s16, %s4570_s16   ;;  %s4061_s15 = sphi %s4101_s15, %s4569_s15   ;;  %s4057_s14 = sphi %s4099_s14, %s4568_s14   ;;  %s4053_s13 = sphi %s4097_s13, %s4567_s13   ;;  %s4049_s12 = sphi %s4095_s12, %s4566_s12  }
   0x5   : > { %p26_p0 = scmp.ge.s32.totalorder %s25_s19, 2  ;;  %p2913_p1 = scmp.ge.s32.totalorder %s4073_s18, 1 }
   0x6   : > { %p176_p2 = scmp.lt.s32.totalorder %s4073_s18, 9  ;;  %s32_s21 = sadd.s32 1, %s4069_s17 }
   0x7   : > { %s4573_s19 = smov (%p26_p0, %s25_s19), 0  ;;  %s4575_s20 = smov (!%p26_p0, %s28_s20), %s4065_s16 }
   0x8   : > { %p177_p3 = pnand %p2913_p1, %p176_p2  ;;  %p30_p4 = scmp.ge.s32.totalorder %s4575_s20, 2 }
   0x9   : > { %p222_p6 = scmp.lt.s32.totalorder (!%p177_p3), %s4057_s14, 1  ;;  %p224_p7 = scmp.lt.s32.totalorder (!%p177_p3), %s4053_s13, 1 }
   0xa   : > { %s4577_s20 = smov (%p30_p4, %s4575_s20), 0  ;;  %s4579_s21 = smov (!%p30_p4, %s32_s21), %s4069_s17 }
   0xb   : > { %p34_p5 = scmp.ge.s32.totalorder %s4579_s21, 2  ;;  %180 = sbr.rel (%p177_p3) target bundleno = 526 (0x20e), region = 32 }
   0xc   : > { %p217_p8 = scmp.lt.s32.totalorder (!%p177_p3), %s4049_s12, 1  ;;  %s244_s4 = smul.u32 (!%p177_p3), 3, %s4057_s14 }
   0xd   : > { %s4581_s21 = smov (%p34_p5, %s4579_s21), 0 }
   0xe   : > { %s245_s6 = sadd.s32 (!%p177_p3), %s4053_s13, %s244_s4 }
   0xf   : > { %s3433_s10 = sshll.u32 (!%p177_p3), %s245_s6, 6 }
  0x12   : > { %s4146_s22 = scalar_select %p222_p6, %s4057_s14, 1 }
  0x13   : > { %s4149_s23 = scalar_select %p224_p7, %s4053_s13, 1 }
  0x14   : > { %s2916_s24 = sshll.u32 %s4146_s22, 10  ;;  %s4583_s12 = smov (!%p217_p8, %s4049_s12), 1 }
  0x15   : > { %s2915_s25 = sshll.u32 %s4149_s23, 9  ;;  %s3530_s5 = smul.u32 576, %s4583_s12 }
  0x16   : > { %s228_s26 = sadd.s32 %s2916_s24, %s2915_s25  ;;  %s2918_s13 = sshll.u32 %s4583_s12, 5 }
  0x17   : > { %s2917_s27 = sshll.u32 %s228_s26, 2  ;;  %s221_s9 = scalar_lea.vmem %s4562_s0, %s3530_s5 }
  0x18   : > { %s4156_s30 = scalar_lea.vmem %s4563_s1, %s2917_s27  ;;  %s4213_s11 = scalar_lea.vmem %s221_s9, %s3433_s10 }
  0x19   : > { %v3587_v0 = vld [vmem:[%s4156_s30 + $0x204] ss:$16 sps:$4 sm:$0xff]   ;;  %v3589_v1 = vld [vmem:[%s4156_s30 + $0x20c] ss:$16 sps:$4 sm:$0xff]   ;;  %v3591_v2 = vld [vmem:[%s4156_s30 + $0x200] ss:$16 sps:$4 sm:$0xff]  }
  0x1a   : > { %759 = vmatprep.subr.bf16.mxu0 %v3587_v0  ;;  %v3592_v3 = vld [vmem:[%s4156_s30 + $0x208] ss:$16 sps:$4 sm:$0xff]   ;;  %832 = vmatprep.subr.bf16.mxu1 %v3589_v1  ;;  %v3593_v4 = vld [vmem:[%s4156_s30 + $0x224] ss:$16 sps:$4 sm:$0xff]   ;;  %v3595_v5 = vld [vmem:[%s4156_s30 + $0x22c] ss:$16 sps:$4 sm:$0xff]  }
  0x1b   : > { %760 = vmatpush1.bf16.msra.mxu0 %v3591_v2  ;;  %833 = vmatpush1.bf16.msra.mxu1 %v3592_v3  ;;  %v3597_v6 = vld [vmem:[%s4156_s30 + $0x220] ss:$16 sps:$4 sm:$0xff]   ;;  %v3598_v7 = vld [vmem:[%s4156_s30 + $0x228] ss:$16 sps:$4 sm:$0xff]   ;;  %v3599_v8 = vld [vmem:[%s4156_s30 + $0x244] ss:$16 sps:$4 sm:$0xff]  }
  0x1c   : > { %761 = vmatprep.subr.bf16.mxu0 %v3593_v4  ;;  %834 = vmatprep.subr.bf16.mxu1 %v3595_v5  ;;  %v3601_v9 = vld [vmem:[%s4156_s30 + $0x24c] ss:$16 sps:$4 sm:$0xff]   ;;  %v3603_v10 = vld [vmem:[%s4156_s30 + $0x240] ss:$16 sps:$4 sm:$0xff]   ;;  %v3604_v11 = vld [vmem:[%s4156_s30 + $0x248] ss:$16 sps:$4 sm:$0xff]  }
  0x1d   : > { %v3605_v12 = vld [vmem:[%s4156_s30 + $0x264] ss:$16 sps:$4 sm:$0xff]   ;;  %v3607_v13 = vld [vmem:[%s4156_s30 + $0x26c] ss:$16 sps:$4 sm:$0xff]   ;;  %v3609_v14 = vld [vmem:[%s4156_s30 + $0x260] ss:$16 sps:$4 sm:$0xff]  }
  0x1e   : > { %v3610_v15 = vld [vmem:[%s4156_s30 + $0x268] ss:$16 sps:$4 sm:$0xff]   ;;  %v3611_v16 = vld [vmem:[%s4156_s30 + $0x284] ss:$16 sps:$4 sm:$0xff]   ;;  %v3613_v17 = vld [vmem:[%s4156_s30 + $0x28c] ss:$16 sps:$4 sm:$0xff]  }
  0x1f   : > { %762 = vmatpush1.bf16.msra.mxu0 %v3597_v6  ;;  %835 = vmatpush1.bf16.msra.mxu1 %v3598_v7  ;;  %v3615_v18 = vld [vmem:[%s4156_s30 + $0x280] ss:$16 sps:$4 sm:$0xff]   ;;  %v3616_v19 = vld [vmem:[%s4156_s30 + $0x288] ss:$16 sps:$4 sm:$0xff]   ;;  %v3617_v20 = vld [vmem:[%s4156_s30 + $0x2a4] ss:$16 sps:$4 sm:$0xff]  }
  0x20   : > { %763 = vmatprep.subr.bf16.mxu0 %v3599_v8  ;;  %836 = vmatprep.subr.bf16.mxu1 %v3601_v9  ;;  %v3619_v21 = vld [vmem:[%s4156_s30 + $0x2ac] ss:$16 sps:$4 sm:$0xff]   ;;  %v3621_v22 = vld [vmem:[%s4156_s30 + $0x2a0] ss:$16 sps:$4 sm:$0xff]   ;;  %v3622_v23 = vld [vmem:[%s4156_s30 + $0x2a8] ss:$16 sps:$4 sm:$0xff]  }
  0x21   : > { %v3623_v24 = vld [vmem:[%s4156_s30 + $0x2c4] ss:$16 sps:$4 sm:$0xff]   ;;  %v3625_v25 = vld [vmem:[%s4156_s30 + $0x2cc] ss:$16 sps:$4 sm:$0xff]   ;;  %v3627_v26 = vld [vmem:[%s4156_s30 + $0x2c0] ss:$16 sps:$4 sm:$0xff]  }
  0x22   : > { %v3628_v27 = vld [vmem:[%s4156_s30 + $0x2c8] ss:$16 sps:$4 sm:$0xff]   ;;  %v3629_v28 = vld [vmem:[%s4156_s30 + $0x2e4] ss:$16 sps:$4 sm:$0xff]   ;;  %v3631_v29 = vld [vmem:[%s4156_s30 + $0x2ec] ss:$16 sps:$4 sm:$0xff]  }
  0x23   : > { %764 = vmatpush1.bf16.msra.mxu0 %v3603_v10  ;;  %837 = vmatpush1.bf16.msra.mxu1 %v3604_v11  ;;  %v3633_v30 = vld [vmem:[%s4156_s30 + $0x2e0] ss:$16 sps:$4 sm:$0xff]   ;;  %v3634_v31 = vld [vmem:[%s4156_s30 + $0x2e8] ss:$16 sps:$4 sm:$0xff]   ;;  %v3635_v32 = vld [vmem:[%s4156_s30 + $0x304] ss:$16 sps:$4 sm:$0xff]  }
  0x24   : > { %765 = vmatprep.subr.bf16.mxu0 %v3605_v12  ;;  %838 = vmatprep.subr.bf16.mxu1 %v3607_v13  ;;  %v3637_v33 = vld [vmem:[%s4156_s30 + $0x30c] ss:$16 sps:$4 sm:$0xff]   ;;  %v3639_v34 = vld [vmem:[%s4156_s30 + $0x300] ss:$16 sps:$4 sm:$0xff]   ;;  %v3640_v35 = vld [vmem:[%s4156_s30 + $0x308] ss:$16 sps:$4 sm:$0xff]  }
  0x25   : > { %v3641_v36 = vld [vmem:[%s4156_s30 + $0x324] ss:$16 sps:$4 sm:$0xff]   ;;  %v3643_v37 = vld [vmem:[%s4156_s30 + $0x32c] ss:$16 sps:$4 sm:$0xff]   ;;  %v3645_v38 = vld [vmem:[%s4156_s30 + $0x320] ss:$16 sps:$4 sm:$0xff]  }
  0x26   : > { %v3646_v39 = vld [vmem:[%s4156_s30 + $0x328] ss:$16 sps:$4 sm:$0xff]   ;;  %v3647_v40 = vld [vmem:[%s4156_s30 + $0x344] ss:$16 sps:$4 sm:$0xff]   ;;  %v3649_v41 = vld [vmem:[%s4156_s30 + $0x34c] ss:$16 sps:$4 sm:$0xff]  }
  0x27   : > { %766 = vmatpush1.bf16.msra.mxu0 %v3609_v14  ;;  %839 = vmatpush1.bf16.msra.mxu1 %v3610_v15  ;;  %v3651_v42 = vld [vmem:[%s4156_s30 + $0x340] ss:$16 sps:$4 sm:$0xff]   ;;  %v3652_v43 = vld [vmem:[%s4156_s30 + $0x348] ss:$16 sps:$4 sm:$0xff]   ;;  %v3653_v44 = vld [vmem:[%s4156_s30 + $0x364] ss:$16 sps:$4 sm:$0xff]  }
  0x28   : > { %767 = vmatprep.subr.bf16.mxu0 %v3611_v16  ;;  %840 = vmatprep.subr.bf16.mxu1 %v3613_v17  ;;  %v3655_v45 = vld [vmem:[%s4156_s30 + $0x36c] ss:$16 sps:$4 sm:$0xff]   ;;  %v3657_v46 = vld [vmem:[%s4156_s30 + $0x360] ss:$16 sps:$4 sm:$0xff]   ;;  %v3658_v47 = vld [vmem:[%s4156_s30 + $0x368] ss:$16 sps:$4 sm:$0xff]  }
  0x29   : > { %v3685_v48 = vld [vmem:[%s4213_s11 + $0x44] ss:$8 sps:$4 sm:$0xff]   ;;  %v3663_v51 = vld [vmem:[%s4156_s30 + $0x380] ss:$16 sps:$4 sm:$0xff]   ;;  %v3664_v52 = vld [vmem:[%s4156_s30 + $0x388] ss:$16 sps:$4 sm:$0xff]  }
  0x2a   : > { %v3659_v49 = vld [vmem:[%s4156_s30 + $0x384] ss:$16 sps:$4 sm:$0xff]   ;;  %v3661_v50 = vld [vmem:[%s4156_s30 + $0x38c] ss:$16 sps:$4 sm:$0xff]   ;;  %791 = vmatprep.mubr.bf16.mxu0 %v3685_v48  ;;  %864 = vmatprep.mubr.bf16.mxu1 %v3685_v48  ;;  %v3669_v55 = vld [vmem:[%s4156_s30 + $0x3a0] ss:$16 sps:$4 sm:$0xff]  }
  0x2b   : > { %768 = vmatpush1.bf16.msra.mxu0 %v3615_v18  ;;  %841 = vmatpush1.bf16.msra.mxu1 %v3616_v19  ;;  %v3665_v53 = vld [vmem:[%s4156_s30 + $0x3a4] ss:$16 sps:$4 sm:$0xff]   ;;  %v3667_v54 = vld [vmem:[%s4156_s30 + $0x3ac] ss:$16 sps:$4 sm:$0xff]   ;;  %v3670_v56 = vld [vmem:[%s4156_s30 + $0x3a8] ss:$16 sps:$4 sm:$0xff]  }
  0x2c   : > { %769 = vmatprep.subr.bf16.mxu0 %v3617_v20  ;;  %842 = vmatprep.subr.bf16.mxu1 %v3619_v21  ;;  %v3671_v57 = vld [vmem:[%s4156_s30 + $0x3c4] ss:$16 sps:$4 sm:$0xff]   ;;  %v3673_v58 = vld [vmem:[%s4156_s30 + $0x3cc] ss:$16 sps:$4 sm:$0xff]   ;;  %v3675_v59 = vld [vmem:[%s4156_s30 + $0x3c0] ss:$16 sps:$4 sm:$0xff]  }
  0x2d   : > { %v3676_v60 = vld [vmem:[%s4156_s30 + $0x3c8] ss:$16 sps:$4 sm:$0xff]   ;;  %v3677_v61 = vld [vmem:[%s4156_s30 + $0x3e4] ss:$16 sps:$4 sm:$0xff]   ;;  %v3679_v62 = vld [vmem:[%s4156_s30 + $0x3ec] ss:$16 sps:$4 sm:$0xff]  }
  0x2e   : > { %v3681_v63 = vld [vmem:[%s4156_s30 + $0x3e0] ss:$16 sps:$4 sm:$0xff]   ;;  %v3682_v0 = vld [vmem:[%s4156_s30 + $0x3e8] ss:$16 sps:$4 sm:$0xff]   ;;  %v3688_v1 = vld [vmem:[%s4156_s30 + $0x4] ss:$16 sps:$4 sm:$0xff]  }
  0x2f   : > { %770 = vmatpush1.bf16.msra.mxu0 %v3621_v22  ;;  %843 = vmatpush1.bf16.msra.mxu1 %v3622_v23  ;;  %v3691_v2 = vld [vmem:[%s4156_s30 + $0xc] ss:$16 sps:$4 sm:$0xff]   ;;  %v3683_v3 = vld [vmem:[%s4213_s11 + $0x40] ss:$8 sps:$4 sm:$0xff]   ;;  %v3694_v6 = vld [vmem:[%s4156_s30 + $0x24] ss:$16 sps:$4 sm:$0xff]  }
  0x30   : > { %771 = vmatprep.subr.bf16.mxu0 %v3623_v24  ;;  %844 = vmatprep.subr.bf16.mxu1 %v3625_v25  ;;  %v3686_v4 = vld [vmem:[%s4156_s30] ss:$16 sps:$4 sm:$0xff]   ;;  %v3689_v5 = vld [vmem:[%s4156_s30 + $0x8] ss:$16 sps:$4 sm:$0xff]   ;;  %v3697_v7 = vld [vmem:[%s4156_s30 + $0x2c] ss:$16 sps:$4 sm:$0xff]  }
  0x31   : > { %v3692_v8 = vld [vmem:[%s4156_s30 + $0x20] ss:$16 sps:$4 sm:$0xff]   ;;  %v3695_v9 = vld [vmem:[%s4156_s30 + $0x28] ss:$16 sps:$4 sm:$0xff]   ;;  %v3700_v10 = vld [vmem:[%s4156_s30 + $0x44] ss:$16 sps:$4 sm:$0xff]  }
  0x32   : > { %v3703_v11 = vld [vmem:[%s4156_s30 + $0x4c] ss:$16 sps:$4 sm:$0xff]   ;;  %v3698_v12 = vld [vmem:[%s4156_s30 + $0x40] ss:$16 sps:$4 sm:$0xff]   ;;  %v3701_v14 = vld [vmem:[%s4156_s30 + $0x48] ss:$16 sps:$4 sm:$0xff]  }
  0x33   : > { %772 = vmatpush1.bf16.msra.mxu0 %v3627_v26  ;;  %845 = vmatpush1.bf16.msra.mxu1 %v3628_v27  ;;  %v3746_v13 = vld [vmem:[%s4213_s11 + $0x54] ss:$8 sps:$4 sm:$0xff]   ;;  %v3754_v17 = vld [vmem:[%s4213_s11 + $0x50] ss:$8 sps:$4 sm:$0xff]   ;;  %v3761_v22 = vld [vmem:[%s4213_s11 + $0x64] ss:$8 sps:$4 sm:$0xff]  }
  0x34   : > { %773 = vmatprep.subr.bf16.mxu0 %v3629_v28  ;;  %846 = vmatprep.subr.bf16.mxu1 %v3631_v29  ;;  %v3706_v15 = vld [vmem:[%s4156_s30 + $0x64] ss:$16 sps:$4 sm:$0xff]   ;;  %v3709_v16 = vld [vmem:[%s4156_s30 + $0x6c] ss:$16 sps:$4 sm:$0xff]   ;;  %v3704_v18 = vld [vmem:[%s4156_s30 + $0x60] ss:$16 sps:$4 sm:$0xff]  }
  0x35   : > { %v3707_v19 = vld [vmem:[%s4156_s30 + $0x68] ss:$16 sps:$4 sm:$0xff]   ;;  %v3712_v20 = vld [vmem:[%s4156_s30 + $0x84] ss:$16 sps:$4 sm:$0xff]   ;;  %v3715_v21 = vld [vmem:[%s4156_s30 + $0x8c] ss:$16 sps:$4 sm:$0xff]  }
  0x36   : > { %v3710_v23 = vld [vmem:[%s4156_s30 + $0x80] ss:$16 sps:$4 sm:$0xff]   ;;  %v3713_v24 = vld [vmem:[%s4156_s30 + $0x88] ss:$16 sps:$4 sm:$0xff]   ;;  %v3718_v25 = vld [vmem:[%s4156_s30 + $0xa4] ss:$16 sps:$4 sm:$0xff]  }
  0x37   : > { %774 = vmatpush1.bf16.msra.mxu0 %v3633_v30  ;;  %847 = vmatpush1.bf16.msra.mxu1 %v3634_v31  ;;  %v3721_v26 = vld [vmem:[%s4156_s30 + $0xac] ss:$16 sps:$4 sm:$0xff]   ;;  %v3716_v27 = vld [vmem:[%s4156_s30 + $0xa0] ss:$16 sps:$4 sm:$0xff]   ;;  %v3719_v29 = vld [vmem:[%s4156_s30 + $0xa8] ss:$16 sps:$4 sm:$0xff]  }
  0x38   : > { %775 = vmatprep.subr.bf16.mxu0 %v3635_v32  ;;  %848 = vmatprep.subr.bf16.mxu1 %v3637_v33  ;;  %v3769_v28 = vld [vmem:[%s4213_s11 + $0x60] ss:$8 sps:$4 sm:$0xff]   ;;  %v3724_v30 = vld [vmem:[%s4156_s30 + $0xc4] ss:$16 sps:$4 sm:$0xff]   ;;  %v3727_v32 = vld [vmem:[%s4156_s30 + $0xcc] ss:$16 sps:$4 sm:$0xff]  }
  0x39   : > { %v3776_v31 = vld [vmem:[%s4213_s11 + $0x74] ss:$8 sps:$4 sm:$0xff]   ;;  %v3722_v33 = vld [vmem:[%s4156_s30 + $0xc0] ss:$16 sps:$4 sm:$0xff]   ;;  %v3743_v48 = vld [vmem:[%s4156_s30 + $0x128] ss:$16 sps:$4 sm:$0xff]  }
  0x3a   : > { %s2919_s14 = sshll.u32 %s4149_s23, 6  ;;  %s2920_s25 = sshll.u32 %s4146_s22, 7 }
  0x3b   : > { %776 = vmatpush1.bf16.msra.mxu0 %v3639_v34  ;;  %849 = vmatpush1.bf16.msra.mxu1 %v3640_v35  ;;  %v3725_v34 = vld [vmem:[%s4156_s30 + $0xc8] ss:$16 sps:$4 sm:$0xff]   ;;  %v3730_v35 = vld [vmem:[%s4156_s30 + $0xe4] ss:$16 sps:$4 sm:$0xff]   ;;  %s239_s24 = sadd.s32 %s2919_s14, %s2918_s13 }
  0x3c   : > { %777 = vmatprep.subr.bf16.mxu0 %v3641_v36  ;;  %850 = vmatprep.subr.bf16.mxu1 %v3643_v37  ;;  %v3733_v36 = vld [vmem:[%s4156_s30 + $0xec] ss:$16 sps:$4 sm:$0xff]   ;;  %v3728_v37 = vld [vmem:[%s4156_s30 + $0xe0] ss:$16 sps:$4 sm:$0xff]   ;;  %s241_s28 = sadd.s32 %s2920_s25, %s239_s24 }
  0x3d   : > { %s2921_s12 = sshll.u32 %s241_s28, 3 }
  0x3e   : > { %s4477_s29 = scalar_lea.vmem %s4565_s3, %s2921_s12 }
  0x3f   : > { %778 = vmatpush1.bf16.msra.mxu0 %v3645_v38  ;;  %851 = vmatpush1.bf16.msra.mxu1 %v3646_v39  ;;  %v3784_v38 = vld [vmem:[%s4213_s11 + $0x70] ss:$8 sps:$4 sm:$0xff]  }
  0x40   : > { %779 = vmatprep.subr.bf16.mxu0 %v3647_v40  ;;  %852 = vmatprep.subr.bf16.mxu1 %v3649_v41  ;;  %v3731_v39 = vld [vmem:[%s4156_s30 + $0xe8] ss:$16 sps:$4 sm:$0xff]   ;;  %v3793_v40 = vld [vmem:[%s4213_s11 + $0x4] ss:$8 sps:$4 sm:$0xff]  }
  0x41   : > { %v3736_v41 = vld [vmem:[%s4156_s30 + $0x104] ss:$16 sps:$4 sm:$0xff]  }
  0x43   : > { %780 = vmatpush1.bf16.msra.mxu0 %v3651_v42  ;;  %853 = vmatpush1.bf16.msra.mxu1 %v3652_v43  ;;  %v3739_v42 = vld [vmem:[%s4156_s30 + $0x10c] ss:$16 sps:$4 sm:$0xff]   ;;  %v3734_v43 = vld [vmem:[%s4156_s30 + $0x100] ss:$16 sps:$4 sm:$0xff]  }
  0x44   : > { %781 = vmatprep.subr.bf16.mxu0 %v3653_v44  ;;  %854 = vmatprep.subr.bf16.mxu1 %v3655_v45  ;;  %v3737_v44 = vld [vmem:[%s4156_s30 + $0x108] ss:$16 sps:$4 sm:$0xff]   ;;  %v3742_v45 = vld [vmem:[%s4156_s30 + $0x124] ss:$16 sps:$4 sm:$0xff]  }
  0x47   : > { %782 = vmatpush1.bf16.msra.mxu0 %v3657_v46  ;;  %855 = vmatpush1.bf16.msra.mxu1 %v3658_v47  ;;  %v3745_v46 = vld [vmem:[%s4156_s30 + $0x12c] ss:$16 sps:$4 sm:$0xff]   ;;  %v3740_v47 = vld [vmem:[%s4156_s30 + $0x120] ss:$16 sps:$4 sm:$0xff]  }
  0x48   : > { %783 = vmatprep.subr.bf16.mxu0 %v3659_v49  ;;  %856 = vmatprep.subr.bf16.mxu1 %v3661_v50  ;;  %v3750_v49 = vld [vmem:[%s4156_s30 + $0x144] ss:$16 sps:$4 sm:$0xff]   ;;  %v3753_v50 = vld [vmem:[%s4156_s30 + $0x14c] ss:$16 sps:$4 sm:$0xff]  }
  0x4b   : > { %784 = vmatpush1.bf16.msra.mxu0 %v3663_v51  ;;  %857 = vmatpush1.bf16.msra.mxu1 %v3664_v52  ;;  %v3748_v51 = vld [vmem:[%s4156_s30 + $0x140] ss:$16 sps:$4 sm:$0xff]   ;;  %v3751_v52 = vld [vmem:[%s4156_s30 + $0x148] ss:$16 sps:$4 sm:$0xff]  }
  0x4c   : > { %785 = vmatprep.subr.bf16.mxu0 %v3665_v53  ;;  %858 = vmatprep.subr.bf16.mxu1 %v3667_v54  ;;  %v3757_v53 = vld [vmem:[%s4156_s30 + $0x164] ss:$16 sps:$4 sm:$0xff]   ;;  %v3760_v54 = vld [vmem:[%s4156_s30 + $0x16c] ss:$16 sps:$4 sm:$0xff]  }
  0x4f   : > { %786 = vmatpush1.bf16.msra.mxu0 %v3669_v55  ;;  %859 = vmatpush1.bf16.msra.mxu1 %v3670_v56  ;;  %v3755_v55 = vld [vmem:[%s4156_s30 + $0x160] ss:$16 sps:$4 sm:$0xff]   ;;  %v3758_v56 = vld [vmem:[%s4156_s30 + $0x168] ss:$16 sps:$4 sm:$0xff]  }
  0x50   : > { %787 = vmatprep.subr.bf16.mxu0 %v3671_v57  ;;  %860 = vmatprep.subr.bf16.mxu1 %v3673_v58  ;;  %v3765_v57 = vld [vmem:[%s4156_s30 + $0x184] ss:$16 sps:$4 sm:$0xff]   ;;  %v3768_v58 = vld [vmem:[%s4156_s30 + $0x18c] ss:$16 sps:$4 sm:$0xff]  }
  0x53   : > { %788 = vmatpush1.bf16.msra.mxu0 %v3675_v59  ;;  %861 = vmatpush1.bf16.msra.mxu1 %v3676_v60  ;;  %v3763_v59 = vld [vmem:[%s4156_s30 + $0x180] ss:$16 sps:$4 sm:$0xff]   ;;  %v3766_v60 = vld [vmem:[%s4156_s30 + $0x188] ss:$16 sps:$4 sm:$0xff]  }
  0x54   : > { %789 = vmatprep.subr.bf16.mxu0 %v3677_v61  ;;  %862 = vmatprep.subr.bf16.mxu1 %v3679_v62  ;;  %v3772_v61 = vld [vmem:[%s4156_s30 + $0x1a4] ss:$16 sps:$4 sm:$0xff]   ;;  %v3775_v62 = vld [vmem:[%s4156_s30 + $0x1ac] ss:$16 sps:$4 sm:$0xff]  }
  0x57   : > { %790 = vmatpush1.bf16.msra.mxu0 %v3681_v63  ;;  %863 = vmatpush1.bf16.msra.mxu1 %v3682_v0  ;;  %v3770_v63 = vld [vmem:[%s4156_s30 + $0x1a0] ss:$16 sps:$4 sm:$0xff]   ;;  %v3773_v0 = vld [vmem:[%s4156_s30 + $0x1a8] ss:$16 sps:$4 sm:$0xff]  }
  0x58   : > { %1265 = vmatprep.subr.bf16.mxu0 %v3688_v1  ;;  %1338 = vmatprep.subr.bf16.mxu1 %v3691_v2  ;;  %v3780_v1 = vld [vmem:[%s4156_s30 + $0x1c4] ss:$16 sps:$4 sm:$0xff]   ;;  %v3783_v2 = vld [vmem:[%s4156_s30 + $0x1cc] ss:$16 sps:$4 sm:$0xff]  }
  0x5a   : > { %792 = vmatmul.mubr.bf16.vlgmr.msra.gmra.mrb[0].mxu0 %v3683_v3  ;;  %865 = vmatmul.mubr.bf16.vlgmr.msra.gmra.mrb[0].mxu1 %v3683_v3  ;;  %v3778_v3 = vld [vmem:[%s4156_s30 + $0x1c0] ss:$16 sps:$4 sm:$0xff]  }
  0x5b   : > { %1266 = vmatpush1.bf16.msra.mxu0 %v3686_v4  ;;  %1339 = vmatpush1.bf16.msra.mxu1 %v3689_v5  ;;  %v3781_v4 = vld [vmem:[%s4156_s30 + $0x1c8] ss:$16 sps:$4 sm:$0xff]   ;;  %v3787_v5 = vld [vmem:[%s4156_s30 + $0x1e4] ss:$16 sps:$4 sm:$0xff]  }
  0x5c   : > { %1267 = vmatprep.subr.bf16.mxu0 %v3694_v6  ;;  %1340 = vmatprep.subr.bf16.mxu1 %v3697_v7  ;;  %v3790_v6 = vld [vmem:[%s4156_s30 + $0x1ec] ss:$16 sps:$4 sm:$0xff]   ;;  %v3785_v7 = vld [vmem:[%s4156_s30 + $0x1e0] ss:$16 sps:$4 sm:$0xff]  }
  0x5d   : > { %801 = vmatprep.mubr.bf16.mxu0 %v3746_v13  ;;  %874 = vmatprep.mubr.bf16.mxu1 %v3746_v13  ;;  %v3797_v13 = vld [vmem:[%s4156_s30 + $0x408] ss:$16 sps:$4 sm:$0xff]  }
  0x5f   : > { %1268 = vmatpush1.bf16.msra.mxu0 %v3692_v8  ;;  %1341 = vmatpush1.bf16.msra.mxu1 %v3695_v9  ;;  %v3788_v8 = vld [vmem:[%s4156_s30 + $0x1e8] ss:$16 sps:$4 sm:$0xff]   ;;  %v3796_v9 = vld [vmem:[%s4156_s30 + $0x404] ss:$16 sps:$4 sm:$0xff]  }
  0x60   : > { %1269 = vmatprep.subr.bf16.mxu0 %v3700_v10  ;;  %1342 = vmatprep.subr.bf16.mxu1 %v3703_v11  ;;  %v3799_v10 = vld [vmem:[%s4156_s30 + $0x40c] ss:$16 sps:$4 sm:$0xff]   ;;  %v3791_v11 = vld [vmem:[%s4213_s11] ss:$8 sps:$4 sm:$0xff]  }
  0x62   : > { %802 = vmatmul.mubr.bf16.gmra.mrb[4].mxu0 %v3754_v17  ;;  %875 = vmatmul.mubr.bf16.gmra.mrb[4].mxu1 %v3754_v17  ;;  %v3800_v17 = vld [vmem:[%s4156_s30 + $0x420] ss:$16 sps:$4 sm:$0xff]  }
  0x63   : > { %1270 = vmatpush1.bf16.msra.mxu0 %v3698_v12  ;;  %1343 = vmatpush1.bf16.msra.mxu1 %v3701_v14  ;;  %v3794_v12 = vld [vmem:[%s4156_s30 + $0x400] ss:$16 sps:$4 sm:$0xff]   ;;  %v3802_v14 = vld [vmem:[%s4156_s30 + $0x424] ss:$16 sps:$4 sm:$0xff]  }
  0x64   : > { %1271 = vmatprep.subr.bf16.mxu0 %v3706_v15  ;;  %1344 = vmatprep.subr.bf16.mxu1 %v3709_v16  ;;  %v3805_v15 = vld [vmem:[%s4156_s30 + $0x42c] ss:$16 sps:$4 sm:$0xff]  }
  0x65   : > { %811 = vmatprep.mubr.bf16.mxu0 %v3761_v22  ;;  %884 = vmatprep.mubr.bf16.mxu1 %v3761_v22  ;;  %v3854_v16 = vld [vmem:[%s4213_s11 + $0x14] ss:$8 sps:$4 sm:$0xff]   ;;  %v3809_v22 = vld [vmem:[%s4156_s30 + $0x448] ss:$16 sps:$4 sm:$0xff]  }
  0x67   : > { %1272 = vmatpush1.bf16.msra.mxu0 %v3704_v18  ;;  %1345 = vmatpush1.bf16.msra.mxu1 %v3707_v19  ;;  %v3803_v18 = vld [vmem:[%s4156_s30 + $0x428] ss:$16 sps:$4 sm:$0xff]   ;;  %v3808_v19 = vld [vmem:[%s4156_s30 + $0x444] ss:$16 sps:$4 sm:$0xff]  }
  0x68   : > { %1273 = vmatprep.subr.bf16.mxu0 %v3712_v20  ;;  %1346 = vmatprep.subr.bf16.mxu1 %v3715_v21  ;;  %v3811_v20 = vld [vmem:[%s4156_s30 + $0x44c] ss:$16 sps:$4 sm:$0xff]   ;;  %v3806_v21 = vld [vmem:[%s4156_s30 + $0x440] ss:$16 sps:$4 sm:$0xff]  }
  0x6a   : > { %812 = vmatmul.mubr.bf16.gmra.mrb[8].mxu0 %v3769_v28  ;;  %885 = vmatmul.mubr.bf16.gmra.mrb[8].mxu1 %v3769_v28  ;;  %v3815_v28 = vld [vmem:[%s4156_s30 + $0x468] ss:$16 sps:$4 sm:$0xff]  }
  0x6b   : > { %1274 = vmatpush1.bf16.msra.mxu0 %v3710_v23  ;;  %1347 = vmatpush1.bf16.msra.mxu1 %v3713_v24  ;;  %v3862_v23 = vld [vmem:[%s4213_s11 + $0x10] ss:$8 sps:$4 sm:$0xff]   ;;  %v3814_v24 = vld [vmem:[%s4156_s30 + $0x464] ss:$16 sps:$4 sm:$0xff]  }
  0x6c   : > { %1275 = vmatprep.subr.bf16.mxu0 %v3718_v25  ;;  %1348 = vmatprep.subr.bf16.mxu1 %v3721_v26  ;;  %v3817_v25 = vld [vmem:[%s4156_s30 + $0x46c] ss:$16 sps:$4 sm:$0xff]  }
  0x6d   : > { %821 = vmatprep.mubr.bf16.mxu0 %v3776_v31  ;;  %894 = vmatprep.mubr.bf16.mxu1 %v3776_v31  ;;  %v3869_v26 = vld [vmem:[%s4213_s11 + $0x24] ss:$8 sps:$4 sm:$0xff]   ;;  %v3818_v31 = vld [vmem:[%s4156_s30 + $0x480] ss:$16 sps:$4 sm:$0xff]  }
  0x6f   : > { %1276 = vmatpush1.bf16.msra.mxu0 %v3716_v27  ;;  %1349 = vmatpush1.bf16.msra.mxu1 %v3719_v29  ;;  %v3812_v27 = vld [vmem:[%s4156_s30 + $0x460] ss:$16 sps:$4 sm:$0xff]   ;;  %v3820_v29 = vld [vmem:[%s4156_s30 + $0x484] ss:$16 sps:$4 sm:$0xff]  }
  0x70   : > { %1277 = vmatprep.subr.bf16.mxu0 %v3724_v30  ;;  %1350 = vmatprep.subr.bf16.mxu1 %v3727_v32  ;;  %v3823_v30 = vld [vmem:[%s4156_s30 + $0x48c] ss:$16 sps:$4 sm:$0xff]   ;;  %v3821_v32 = vld [vmem:[%s4156_s30 + $0x488] ss:$16 sps:$4 sm:$0xff]  }
  0x72   : > { %822 = vmatmul.mubr.bf16.gmra.mrb[12].mxu0 %v3784_v38  ;;  %895 = vmatmul.mubr.bf16.gmra.mrb[12].mxu1 %v3784_v38  ;;  %v3827_v38 = vld [vmem:[%s4156_s30 + $0x4a8] ss:$16 sps:$4 sm:$0xff]  }
  0x73   : > { %1278 = vmatpush1.bf16.msra.mxu0 %v3722_v33  ;;  %1351 = vmatpush1.bf16.msra.mxu1 %v3725_v34  ;;  %v3877_v33 = vld [vmem:[%s4213_s11 + $0x20] ss:$8 sps:$4 sm:$0xff]   ;;  %v3826_v34 = vld [vmem:[%s4156_s30 + $0x4a4] ss:$16 sps:$4 sm:$0xff]  }
  0x74   : > { %1279 = vmatprep.subr.bf16.mxu0 %v3730_v35  ;;  %1352 = vmatprep.subr.bf16.mxu1 %v3733_v36  ;;  %v3829_v35 = vld [vmem:[%s4156_s30 + $0x4ac] ss:$16 sps:$4 sm:$0xff]  }
  0x75   : > { %1297 = vmatprep.mubr.bf16.mxu0 %v3793_v40  ;;  %1370 = vmatprep.mubr.bf16.mxu1 %v3793_v40  ;;  %v3884_v36 = vld [vmem:[%s4213_s11 + $0x34] ss:$8 sps:$4 sm:$0xff]  }
  0x76   : > { %v3835_v40 = vld [vmem:[%s4156_s30 + $0x4cc] ss:$16 sps:$4 sm:$0xff]  }
  0x77   : > { %1280 = vmatpush1.bf16.msra.mxu0 %v3728_v37  ;;  %1353 = vmatpush1.bf16.msra.mxu1 %v3731_v39  ;;  %v3824_v37 = vld [vmem:[%s4156_s30 + $0x4a0] ss:$16 sps:$4 sm:$0xff]   ;;  %v3832_v39 = vld [vmem:[%s4156_s30 + $0x4c4] ss:$16 sps:$4 sm:$0xff]  }
  0x78   : > { %1281 = vmatprep.subr.bf16.mxu0 %v3736_v41  ;;  %1354 = vmatprep.subr.bf16.mxu1 %v3739_v42  ;;  %v3830_v41 = vld [vmem:[%s4156_s30 + $0x4c0] ss:$16 sps:$4 sm:$0xff]   ;;  %v3833_v42 = vld [vmem:[%s4156_s30 + $0x4c8] ss:$16 sps:$4 sm:$0xff]  }
  0x7b   : > { %1282 = vmatpush1.bf16.msra.mxu0 %v3734_v43  ;;  %1355 = vmatpush1.bf16.msra.mxu1 %v3737_v44  ;;  %v3892_v43 = vld [vmem:[%s4213_s11 + $0x30] ss:$8 sps:$4 sm:$0xff]   ;;  %v3838_v44 = vld [vmem:[%s4156_s30 + $0x4e4] ss:$16 sps:$4 sm:$0xff]  }
  0x7c   : > { %1283 = vmatprep.subr.bf16.mxu0 %v3742_v45  ;;  %1356 = vmatprep.subr.bf16.mxu1 %v3745_v46  ;;  %v3841_v45 = vld [vmem:[%s4156_s30 + $0x4ec] ss:$16 sps:$4 sm:$0xff]  }
  0x7d   : > { %v3901_v46 = vld [vmem:[%s4213_s11 + $0xc4] ss:$8 sps:$4 sm:$0xff]  }
  0x7f   : > { %1284 = vmatpush1.bf16.msra.mxu0 %v3740_v47  ;;  %1357 = vmatpush1.bf16.msra.mxu1 %v3743_v48  ;;  %v3836_v47 = vld [vmem:[%s4156_s30 + $0x4e0] ss:$16 sps:$4 sm:$0xff]   ;;  %v3839_v48 = vld [vmem:[%s4156_s30 + $0x4e8] ss:$16 sps:$4 sm:$0xff]  }
  0x80   : > { %1285 = vmatprep.subr.bf16.mxu0 %v3750_v49  ;;  %1358 = vmatprep.subr.bf16.mxu1 %v3753_v50  ;;  %v3844_v49 = vld [vmem:[%s4156_s30 + $0x504] ss:$16 sps:$4 sm:$0xff]   ;;  %v3847_v50 = vld [vmem:[%s4156_s30 + $0x50c] ss:$16 sps:$4 sm:$0xff]  }
  0x83   : > { %1286 = vmatpush1.bf16.msra.mxu0 %v3748_v51  ;;  %1359 = vmatpush1.bf16.msra.mxu1 %v3751_v52  ;;  %v3842_v51 = vld [vmem:[%s4156_s30 + $0x500] ss:$16 sps:$4 sm:$0xff]   ;;  %v3845_v52 = vld [vmem:[%s4156_s30 + $0x508] ss:$16 sps:$4 sm:$0xff]  }
  0x84   : > { %1287 = vmatprep.subr.bf16.mxu0 %v3757_v53  ;;  %1360 = vmatprep.subr.bf16.mxu1 %v3760_v54  ;;  %v3850_v53 = vld [vmem:[%s4156_s30 + $0x524] ss:$16 sps:$4 sm:$0xff]   ;;  %v3853_v54 = vld [vmem:[%s4156_s30 + $0x52c] ss:$16 sps:$4 sm:$0xff]  }
  0x87   : > { %1288 = vmatpush1.bf16.msra.mxu0 %v3755_v55  ;;  %1361 = vmatpush1.bf16.msra.mxu1 %v3758_v56  ;;  %v3848_v55 = vld [vmem:[%s4156_s30 + $0x520] ss:$16 sps:$4 sm:$0xff]   ;;  %v3851_v56 = vld [vmem:[%s4156_s30 + $0x528] ss:$16 sps:$4 sm:$0xff]  }
  0x88   : > { %1289 = vmatprep.subr.bf16.mxu0 %v3765_v57  ;;  %1362 = vmatprep.subr.bf16.mxu1 %v3768_v58  ;;  %v3858_v57 = vld [vmem:[%s4156_s30 + $0x544] ss:$16 sps:$4 sm:$0xff]   ;;  %v3861_v58 = vld [vmem:[%s4156_s30 + $0x54c] ss:$16 sps:$4 sm:$0xff]  }
  0x8b   : > { %1290 = vmatpush1.bf16.msra.mxu0 %v3763_v59  ;;  %1363 = vmatpush1.bf16.msra.mxu1 %v3766_v60  ;;  %v3856_v59 = vld [vmem:[%s4156_s30 + $0x540] ss:$16 sps:$4 sm:$0xff]   ;;  %v3859_v60 = vld [vmem:[%s4156_s30 + $0x548] ss:$16 sps:$4 sm:$0xff]  }
  0x8c   : > { %1291 = vmatprep.subr.bf16.mxu0 %v3772_v61  ;;  %1364 = vmatprep.subr.bf16.mxu1 %v3775_v62  ;;  %v3865_v61 = vld [vmem:[%s4156_s30 + $0x564] ss:$16 sps:$4 sm:$0xff]   ;;  %v3868_v62 = vld [vmem:[%s4156_s30 + $0x56c] ss:$16 sps:$4 sm:$0xff]  }
  0x8f   : > { %1292 = vmatpush1.bf16.msra.mxu0 %v3770_v63  ;;  %1365 = vmatpush1.bf16.msra.mxu1 %v3773_v0  ;;  %v3863_v63 = vld [vmem:[%s4156_s30 + $0x560] ss:$16 sps:$4 sm:$0xff]   ;;  %v3866_v0 = vld [vmem:[%s4156_s30 + $0x568] ss:$16 sps:$4 sm:$0xff]  }
  0x90   : > { %1293 = vmatprep.subr.bf16.mxu0 %v3780_v1  ;;  %1366 = vmatprep.subr.bf16.mxu1 %v3783_v2  ;;  %v3873_v1 = vld [vmem:[%s4156_s30 + $0x584] ss:$16 sps:$4 sm:$0xff]   ;;  %v3876_v2 = vld [vmem:[%s4156_s30 + $0x58c] ss:$16 sps:$4 sm:$0xff]  }
  0x93   : > { %1294 = vmatpush1.bf16.msra.mxu0 %v3778_v3  ;;  %1367 = vmatpush1.bf16.msra.mxu1 %v3781_v4  ;;  %v3871_v3 = vld [vmem:[%s4156_s30 + $0x580] ss:$16 sps:$4 sm:$0xff]   ;;  %v3874_v4 = vld [vmem:[%s4156_s30 + $0x588] ss:$16 sps:$4 sm:$0xff]  }
  0x94   : > { %1295 = vmatprep.subr.bf16.mxu0 %v3787_v5  ;;  %1368 = vmatprep.subr.bf16.mxu1 %v3790_v6  ;;  %v3880_v5 = vld [vmem:[%s4156_s30 + $0x5a4] ss:$16 sps:$4 sm:$0xff]   ;;  %v3883_v6 = vld [vmem:[%s4156_s30 + $0x5ac] ss:$16 sps:$4 sm:$0xff]  }
  0x97   : > { %1296 = vmatpush1.bf16.msra.mxu0 %v3785_v7  ;;  %1369 = vmatpush1.bf16.msra.mxu1 %v3788_v8  ;;  %v3878_v7 = vld [vmem:[%s4156_s30 + $0x5a0] ss:$16 sps:$4 sm:$0xff]   ;;  %v3881_v8 = vld [vmem:[%s4156_s30 + $0x5a8] ss:$16 sps:$4 sm:$0xff]  }
  0x98   : > { %1850 = vmatprep.subr.bf16.mxu0 %v3796_v9  ;;  %1923 = vmatprep.subr.bf16.mxu1 %v3799_v10  ;;  %v3888_v9 = vld [vmem:[%s4156_s30 + $0x5c4] ss:$16 sps:$4 sm:$0xff]   ;;  %v3891_v10 = vld [vmem:[%s4156_s30 + $0x5cc] ss:$16 sps:$4 sm:$0xff]  }
  0x9a   : > { %1298 = vmatmul.mubr.bf16.vlgmr.msra.gmra.mrb[0].mxu0 %v3791_v11  ;;  %1371 = vmatmul.mubr.bf16.vlgmr.msra.gmra.mrb[0].mxu1 %v3791_v11  ;;  %v3886_v11 = vld [vmem:[%s4156_s30 + $0x5c0] ss:$16 sps:$4 sm:$0xff]  }
  0x9b   : > { %1851 = vmatpush1.bf16.msra.mxu0 %v3794_v12  ;;  %1924 = vmatpush1.bf16.msra.mxu1 %v3797_v13  ;;  %v3889_v12 = vld [vmem:[%s4156_s30 + $0x5c8] ss:$16 sps:$4 sm:$0xff]   ;;  %v3895_v13 = vld [vmem:[%s4156_s30 + $0x5e4] ss:$16 sps:$4 sm:$0xff]  }
  0x9c   : > { %1852 = vmatprep.subr.bf16.mxu0 %v3802_v14  ;;  %1925 = vmatprep.subr.bf16.mxu1 %v3805_v15  ;;  %v3898_v14 = vld [vmem:[%s4156_s30 + $0x5ec] ss:$16 sps:$4 sm:$0xff]   ;;  %v3893_v15 = vld [vmem:[%s4156_s30 + $0x5e0] ss:$16 sps:$4 sm:$0xff]  }
  0x9d   : > { %1307 = vmatprep.mubr.bf16.mxu0 %v3854_v16  ;;  %1380 = vmatprep.mubr.bf16.mxu1 %v3854_v16  ;;  %v3896_v16 = vld [vmem:[%s4156_s30 + $0x5e8] ss:$16 sps:$4 sm:$0xff]  }
  0x9f   : > { %1853 = vmatpush1.bf16.msra.mxu0 %v3800_v17  ;;  %1926 = vmatpush1.bf16.msra.mxu1 %v3803_v18  ;;  %v3904_v17 = vld [vmem:[%s4156_s30 + $0x604] ss:$16 sps:$4 sm:$0xff]   ;;  %v3907_v18 = vld [vmem:[%s4156_s30 + $0x60c] ss:$16 sps:$4 sm:$0xff]  }
  0xa0   : > { %1854 = vmatprep.subr.bf16.mxu0 %v3808_v19  ;;  %1927 = vmatprep.subr.bf16.mxu1 %v3811_v20  ;;  %v3899_v19 = vld [vmem:[%s4213_s11 + $0xc0] ss:$8 sps:$4 sm:$0xff]  }
  0xa1   : > { %v3902_v20 = vld [vmem:[%s4156_s30 + $0x600] ss:$16 sps:$4 sm:$0xff]  }
  0xa2   : > { %1308 = vmatmul.mubr.bf16.gmra.mrb[4].mxu0 %v3862_v23  ;;  %1381 = vmatmul.mubr.bf16.gmra.mrb[4].mxu1 %v3862_v23  ;;  %v3913_v23 = vld [vmem:[%s4156_s30 + $0x62c] ss:$16 sps:$4 sm:$0xff]  }
  0xa3   : > { %1855 = vmatpush1.bf16.msra.mxu0 %v3806_v21  ;;  %1928 = vmatpush1.bf16.msra.mxu1 %v3809_v22  ;;  %v3905_v21 = vld [vmem:[%s4156_s30 + $0x608] ss:$16 sps:$4 sm:$0xff]   ;;  %v3910_v22 = vld [vmem:[%s4156_s30 + $0x624] ss:$16 sps:$4 sm:$0xff]  }
  0xa4   : > { %1856 = vmatprep.subr.bf16.mxu0 %v3814_v24  ;;  %1929 = vmatprep.subr.bf16.mxu1 %v3817_v25  ;;  %v3962_v24 = vld [vmem:[%s4213_s11 + $0xd4] ss:$8 sps:$4 sm:$0xff]   ;;  %v3908_v25 = vld [vmem:[%s4156_s30 + $0x620] ss:$16 sps:$4 sm:$0xff]  }
  0xa5   : > { %1317 = vmatprep.mubr.bf16.mxu0 %v3869_v26  ;;  %1390 = vmatprep.mubr.bf16.mxu1 %v3869_v26  ;;  %v3911_v26 = vld [vmem:[%s4156_s30 + $0x628] ss:$16 sps:$4 sm:$0xff]  }
  0xa7   : > { %1857 = vmatpush1.bf16.msra.mxu0 %v3812_v27  ;;  %1930 = vmatpush1.bf16.msra.mxu1 %v3815_v28  ;;  %v3916_v27 = vld [vmem:[%s4156_s30 + $0x644] ss:$16 sps:$4 sm:$0xff]   ;;  %v3919_v28 = vld [vmem:[%s4156_s30 + $0x64c] ss:$16 sps:$4 sm:$0xff]  }
  0xa8   : > { %1858 = vmatprep.subr.bf16.mxu0 %v3820_v29  ;;  %1931 = vmatprep.subr.bf16.mxu1 %v3823_v30  ;;  %v3964_v29 = vld [vmem:[%s4213_s11 + $0xd0] ss:$8 sps:$4 sm:$0xff]  }
  0xa9   : > { %v3914_v30 = vld [vmem:[%s4156_s30 + $0x640] ss:$16 sps:$4 sm:$0xff]  }
  0xaa   : > { %1318 = vmatmul.mubr.bf16.gmra.mrb[8].mxu0 %v3877_v33  ;;  %1391 = vmatmul.mubr.bf16.gmra.mrb[8].mxu1 %v3877_v33  ;;  %v3925_v33 = vld [vmem:[%s4156_s30 + $0x66c] ss:$16 sps:$4 sm:$0xff]  }
  0xab   : > { %1859 = vmatpush1.bf16.msra.mxu0 %v3818_v31  ;;  %1932 = vmatpush1.bf16.msra.mxu1 %v3821_v32  ;;  %v3917_v31 = vld [vmem:[%s4156_s30 + $0x648] ss:$16 sps:$4 sm:$0xff]   ;;  %v3922_v32 = vld [vmem:[%s4156_s30 + $0x664] ss:$16 sps:$4 sm:$0xff]  }
  0xac   : > { %1860 = vmatprep.subr.bf16.mxu0 %v3826_v34  ;;  %1933 = vmatprep.subr.bf16.mxu1 %v3829_v35  ;;  %v3977_v34 = vld [vmem:[%s4213_s11 + $0xe4] ss:$8 sps:$4 sm:$0xff]   ;;  %v3920_v35 = vld [vmem:[%s4156_s30 + $0x660] ss:$16 sps:$4 sm:$0xff]  }
  0xad   : > { %1327 = vmatprep.mubr.bf16.mxu0 %v3884_v36  ;;  %1400 = vmatprep.mubr.bf16.mxu1 %v3884_v36  ;;  %v3923_v36 = vld [vmem:[%s4156_s30 + $0x668] ss:$16 sps:$4 sm:$0xff]  }
  0xaf   : > { %1861 = vmatpush1.bf16.msra.mxu0 %v3824_v37  ;;  %1934 = vmatpush1.bf16.msra.mxu1 %v3827_v38  ;;  %v3928_v37 = vld [vmem:[%s4156_s30 + $0x684] ss:$16 sps:$4 sm:$0xff]   ;;  %v3931_v38 = vld [vmem:[%s4156_s30 + $0x68c] ss:$16 sps:$4 sm:$0xff]  }
  0xb0   : > { %1862 = vmatprep.subr.bf16.mxu0 %v3832_v39  ;;  %1935 = vmatprep.subr.bf16.mxu1 %v3835_v40  ;;  %v3979_v39 = vld [vmem:[%s4213_s11 + $0xe0] ss:$8 sps:$4 sm:$0xff]  }
  0xb1   : > { %v3926_v40 = vld [vmem:[%s4156_s30 + $0x680] ss:$16 sps:$4 sm:$0xff]  }
  0xb2   : > { %1328 = vmatmul.mubr.bf16.gmra.mrb[12].mxu0 %v3892_v43  ;;  %1401 = vmatmul.mubr.bf16.gmra.mrb[12].mxu1 %v3892_v43  ;;  %v3937_v43 = vld [vmem:[%s4156_s30 + $0x6ac] ss:$16 sps:$4 sm:$0xff]  }
  0xb3   : > { %1863 = vmatpush1.bf16.msra.mxu0 %v3830_v41  ;;  %1936 = vmatpush1.bf16.msra.mxu1 %v3833_v42  ;;  %v3929_v41 = vld [vmem:[%s4156_s30 + $0x688] ss:$16 sps:$4 sm:$0xff]   ;;  %v3934_v42 = vld [vmem:[%s4156_s30 + $0x6a4] ss:$16 sps:$4 sm:$0xff]  }
  0xb4   : > { %1864 = vmatprep.subr.bf16.mxu0 %v3838_v44  ;;  %1937 = vmatprep.subr.bf16.mxu1 %v3841_v45  ;;  %v3992_v44 = vld [vmem:[%s4213_s11 + $0xf4] ss:$8 sps:$4 sm:$0xff]   ;;  %v3932_v45 = vld [vmem:[%s4156_s30 + $0x6a0] ss:$16 sps:$4 sm:$0xff]  }
  0xb5   : > { %1882 = vmatprep.mubr.bf16.mxu0 %v3901_v46  ;;  %1955 = vmatprep.mubr.bf16.mxu1 %v3901_v46  ;;  %v3935_v46 = vld [vmem:[%s4156_s30 + $0x6a8] ss:$16 sps:$4 sm:$0xff]  }
  0xb7   : > { %1865 = vmatpush1.bf16.msra.mxu0 %v3836_v47  ;;  %1938 = vmatpush1.bf16.msra.mxu1 %v3839_v48  ;;  %v3940_v47 = vld [vmem:[%s4156_s30 + $0x6c4] ss:$16 sps:$4 sm:$0xff]   ;;  %v3943_v48 = vld [vmem:[%s4156_s30 + $0x6cc] ss:$16 sps:$4 sm:$0xff]  }
  0xb8   : > { %1866 = vmatprep.subr.bf16.mxu0 %v3844_v49  ;;  %1939 = vmatprep.subr.bf16.mxu1 %v3847_v50  ;;  %v3994_v49 = vld [vmem:[%s4213_s11 + $0xf0] ss:$8 sps:$4 sm:$0xff]  }
  0xb9   : > { %v3938_v50 = vld [vmem:[%s4156_s30 + $0x6c0] ss:$16 sps:$4 sm:$0xff]  }
  0xbb   : > { %1867 = vmatpush1.bf16.msra.mxu0 %v3842_v51  ;;  %1940 = vmatpush1.bf16.msra.mxu1 %v3845_v52  ;;  %v3941_v51 = vld [vmem:[%s4156_s30 + $0x6c8] ss:$16 sps:$4 sm:$0xff]   ;;  %v3946_v52 = vld [vmem:[%s4156_s30 + $0x6e4] ss:$16 sps:$4 sm:$0xff]  }
  0xbc   : > { %1868 = vmatprep.subr.bf16.mxu0 %v3850_v53  ;;  %1941 = vmatprep.subr.bf16.mxu1 %v3853_v54  ;;  %v3949_v53 = vld [vmem:[%s4156_s30 + $0x6ec] ss:$16 sps:$4 sm:$0xff]  }
  0xbd   : > { %v4009_v54 = vld [vmem:[%s4213_s11 + $0x104] ss:$8 sps:$4 sm:$0xff]  }
  0xbf   : > { %1869 = vmatpush1.bf16.msra.mxu0 %v3848_v55  ;;  %1942 = vmatpush1.bf16.msra.mxu1 %v3851_v56  ;;  %v3944_v55 = vld [vmem:[%s4156_s30 + $0x6e0] ss:$16 sps:$4 sm:$0xff]   ;;  %v3947_v56 = vld [vmem:[%s4156_s30 + $0x6e8] ss:$16 sps:$4 sm:$0xff]  }
  0xc0   : > { %1870 = vmatprep.subr.bf16.mxu0 %v3858_v57  ;;  %1943 = vmatprep.subr.bf16.mxu1 %v3861_v58  ;;  %v3952_v57 = vld [vmem:[%s4156_s30 + $0x704] ss:$16 sps:$4 sm:$0xff]   ;;  %v3955_v58 = vld [vmem:[%s4156_s30 + $0x70c] ss:$16 sps:$4 sm:$0xff]  }
  0xc3   : > { %1871 = vmatpush1.bf16.msra.mxu0 %v3856_v59  ;;  %1944 = vmatpush1.bf16.msra.mxu1 %v3859_v60  ;;  %v3950_v59 = vld [vmem:[%s4156_s30 + $0x700] ss:$16 sps:$4 sm:$0xff]   ;;  %v3953_v60 = vld [vmem:[%s4156_s30 + $0x708] ss:$16 sps:$4 sm:$0xff]  }
  0xc4   : > { %1872 = vmatprep.subr.bf16.mxu0 %v3865_v61  ;;  %1945 = vmatprep.subr.bf16.mxu1 %v3868_v62  ;;  %v3958_v61 = vld [vmem:[%s4156_s30 + $0x724] ss:$16 sps:$4 sm:$0xff]   ;;  %v3961_v62 = vld [vmem:[%s4156_s30 + $0x72c] ss:$16 sps:$4 sm:$0xff]  }
  0xc7   : > { %1873 = vmatpush1.bf16.msra.mxu0 %v3863_v63  ;;  %1946 = vmatpush1.bf16.msra.mxu1 %v3866_v0  ;;  %v3956_v63 = vld [vmem:[%s4156_s30 + $0x720] ss:$16 sps:$4 sm:$0xff]   ;;  %v3959_v0 = vld [vmem:[%s4156_s30 + $0x728] ss:$16 sps:$4 sm:$0xff]  }
  0xc8   : > { %1874 = vmatprep.subr.bf16.mxu0 %v3873_v1  ;;  %1947 = vmatprep.subr.bf16.mxu1 %v3876_v2  ;;  %v3967_v1 = vld [vmem:[%s4156_s30 + $0x744] ss:$16 sps:$4 sm:$0xff]   ;;  %v3970_v2 = vld [vmem:[%s4156_s30 + $0x74c] ss:$16 sps:$4 sm:$0xff]  }
  0xcb   : > { %1875 = vmatpush1.bf16.msra.mxu0 %v3871_v3  ;;  %1948 = vmatpush1.bf16.msra.mxu1 %v3874_v4  ;;  %v3965_v3 = vld [vmem:[%s4156_s30 + $0x740] ss:$16 sps:$4 sm:$0xff]   ;;  %v3968_v4 = vld [vmem:[%s4156_s30 + $0x748] ss:$16 sps:$4 sm:$0xff]  }
  0xcc   : > { %1876 = vmatprep.subr.bf16.mxu0 %v3880_v5  ;;  %1949 = vmatprep.subr.bf16.mxu1 %v3883_v6  ;;  %v3973_v5 = vld [vmem:[%s4156_s30 + $0x764] ss:$16 sps:$4 sm:$0xff]   ;;  %v3976_v6 = vld [vmem:[%s4156_s30 + $0x76c] ss:$16 sps:$4 sm:$0xff]  }
  0xcf   : > { %1877 = vmatpush1.bf16.msra.mxu0 %v3878_v7  ;;  %1950 = vmatpush1.bf16.msra.mxu1 %v3881_v8  ;;  %v3971_v7 = vld [vmem:[%s4156_s30 + $0x760] ss:$16 sps:$4 sm:$0xff]   ;;  %v3974_v8 = vld [vmem:[%s4156_s30 + $0x768] ss:$16 sps:$4 sm:$0xff]  }
  0xd0   : > { %1878 = vmatprep.subr.bf16.mxu0 %v3888_v9  ;;  %1951 = vmatprep.subr.bf16.mxu1 %v3891_v10  ;;  %v3982_v9 = vld [vmem:[%s4156_s30 + $0x784] ss:$16 sps:$4 sm:$0xff]   ;;  %v3985_v10 = vld [vmem:[%s4156_s30 + $0x78c] ss:$16 sps:$4 sm:$0xff]  }
  0xd3   : > { %1879 = vmatpush1.bf16.msra.mxu0 %v3886_v11  ;;  %1952 = vmatpush1.bf16.msra.mxu1 %v3889_v12  ;;  %v3980_v11 = vld [vmem:[%s4156_s30 + $0x780] ss:$16 sps:$4 sm:$0xff]   ;;  %v3983_v12 = vld [vmem:[%s4156_s30 + $0x788] ss:$16 sps:$4 sm:$0xff]  }
  0xd4   : > { %1880 = vmatprep.subr.bf16.mxu0 %v3895_v13  ;;  %1953 = vmatprep.subr.bf16.mxu1 %v3898_v14  ;;  %v3988_v13 = vld [vmem:[%s4156_s30 + $0x7a4] ss:$16 sps:$4 sm:$0xff]   ;;  %v3991_v14 = vld [vmem:[%s4156_s30 + $0x7ac] ss:$16 sps:$4 sm:$0xff]  }
  0xd7   : > { %1881 = vmatpush1.bf16.msra.mxu0 %v3893_v15  ;;  %1954 = vmatpush1.bf16.msra.mxu1 %v3896_v16  ;;  %v3986_v15 = vld [vmem:[%s4156_s30 + $0x7a0] ss:$16 sps:$4 sm:$0xff]   ;;  %v3989_v16 = vld [vmem:[%s4156_s30 + $0x7a8] ss:$16 sps:$4 sm:$0xff]  }
  0xd8   : > { %2465 = vmatprep.subr.bf16.mxu0 %v3904_v17  ;;  %2538 = vmatprep.subr.bf16.mxu1 %v3907_v18  ;;  %v3997_v17 = vld [vmem:[%s4156_s30 + $0x7c4] ss:$16 sps:$4 sm:$0xff]   ;;  %v4000_v18 = vld [vmem:[%s4156_s30 + $0x7cc] ss:$16 sps:$4 sm:$0xff]  }
  0xda   : > { %1883 = vmatmul.mubr.bf16.vlgmr.msra.gmra.mrb[0].mxu0 %v3899_v19  ;;  %1956 = vmatmul.mubr.bf16.vlgmr.msra.gmra.mrb[0].mxu1 %v3899_v19  ;;  %v3995_v19 = vld [vmem:[%s4156_s30 + $0x7c0] ss:$16 sps:$4 sm:$0xff]  }
  0xdb   : > { %2466 = vmatpush1.bf16.msra.mxu0 %v3902_v20  ;;  %2539 = vmatpush1.bf16.msra.mxu1 %v3905_v21  ;;  %v3998_v20 = vld [vmem:[%s4156_s30 + $0x7c8] ss:$16 sps:$4 sm:$0xff]   ;;  %v4003_v21 = vld [vmem:[%s4156_s30 + $0x7e4] ss:$16 sps:$4 sm:$0xff]  }
  0xdc   : > { %2467 = vmatprep.subr.bf16.mxu0 %v3910_v22  ;;  %2540 = vmatprep.subr.bf16.mxu1 %v3913_v23  ;;  %v4006_v22 = vld [vmem:[%s4156_s30 + $0x7ec] ss:$16 sps:$4 sm:$0xff]   ;;  %v4001_v23 = vld [vmem:[%s4156_s30 + $0x7e0] ss:$16 sps:$4 sm:$0xff]  }
  0xdd   : > { %1892 = vmatprep.mubr.bf16.mxu0 %v3962_v24  ;;  %1965 = vmatprep.mubr.bf16.mxu1 %v3962_v24  ;;  %v4004_v24 = vld [vmem:[%s4156_s30 + $0x7e8] ss:$16 sps:$4 sm:$0xff]  }
  0xdf   : > { %2468 = vmatpush1.bf16.msra.mxu0 %v3908_v25  ;;  %2541 = vmatpush1.bf16.msra.mxu1 %v3911_v26  ;;  %v4007_v25 = vld [vmem:[%s4213_s11 + $0x100] ss:$8 sps:$4 sm:$0xff]   ;;  %v4010_v26 = vld [vmem:[%s4213_s11 + $0x114] ss:$8 sps:$4 sm:$0xff]  }
  0xe0   : > { %2469 = vmatprep.subr.bf16.mxu0 %v3916_v27  ;;  %2542 = vmatprep.subr.bf16.mxu1 %v3919_v28  ;;  %v4012_v27 = vld [vmem:[%s4213_s11 + $0x110] ss:$8 sps:$4 sm:$0xff]   ;;  %v4013_v28 = vld [vmem:[%s4213_s11 + $0x124] ss:$8 sps:$4 sm:$0xff]  }
  0xe2   : > { %1893 = vmatmul.mubr.bf16.gmra.mrb[4].mxu0 %v3964_v29  ;;  %1966 = vmatmul.mubr.bf16.gmra.mrb[4].mxu1 %v3964_v29  ;;  %v4015_v29 = vld [vmem:[%s4213_s11 + $0x120] ss:$8 sps:$4 sm:$0xff]  }
  0xe3   : > { %2470 = vmatpush1.bf16.msra.mxu0 %v3914_v30  ;;  %2543 = vmatpush1.bf16.msra.mxu1 %v3917_v31  ;;  %v4016_v30 = vld [vmem:[%s4213_s11 + $0x134] ss:$8 sps:$4 sm:$0xff]   ;;  %v4018_v31 = vld [vmem:[%s4213_s11 + $0x130] ss:$8 sps:$4 sm:$0xff]  }
  0xe4   : > { %2471 = vmatprep.subr.bf16.mxu0 %v3922_v32  ;;  %2544 = vmatprep.subr.bf16.mxu1 %v3925_v33  ;;  %v2645_v32 = vlaneseq }
  0xe5   : > { %1902 = vmatprep.mubr.bf16.mxu0 %v3977_v34  ;;  %1975 = vmatprep.mubr.bf16.mxu1 %v3977_v34 }
  0xe6   : > { %v2646_v33 = vshrl.u32 %v2645_v32, 7 }
  0xe7   : > { %2472 = vmatpush1.bf16.msra.mxu0 %v3920_v35  ;;  %2545 = vmatpush1.bf16.msra.mxu1 %v3923_v36  ;;  %v2643_v36 = vld [vmem:[%s4564_s2] sm:$0xf] }
  0xe8   : > { %2473 = vmatprep.subr.bf16.mxu0 %v3928_v37  ;;  %2546 = vmatprep.subr.bf16.mxu1 %v3931_v38  ;;  %v2647_v34 = vsub.s32 0, %v2646_v33  ;;  %v2655_v35 = vsub.s32 2, %v2646_v33  ;;  %v2651_v37 = vsub.s32 1, %v2646_v33  ;;  %v2659_v38 = vsub.s32 3, %v2646_v33 }
  0xea   : > { %1903 = vmatmul.mubr.bf16.gmra.mrb[8].mxu0 %v3979_v39  ;;  %1976 = vmatmul.mubr.bf16.gmra.mrb[8].mxu1 %v3979_v39  ;;  %v4464_v39 = vrot.slane %v2643_v36, %v2647_v34 }
  0xeb   : > { %2474 = vmatpush1.bf16.msra.mxu0 %v3926_v40  ;;  %2547 = vmatpush1.bf16.msra.mxu1 %v3929_v41  ;;  %v4466_v40 = vrot.slane %v2643_v36, %v2655_v35  ;;  %v4468_v41 = vrot.slane %v2643_v36, %v2651_v37 }
  0xec   : > { %2475 = vmatprep.subr.bf16.mxu0 %v3934_v42  ;;  %2548 = vmatprep.subr.bf16.mxu1 %v3937_v43  ;;  %v4470_v42 = vrot.slane %v2643_v36, %v2659_v38 }
  0xed   : > { %1912 = vmatprep.mubr.bf16.mxu0 %v3992_v44  ;;  %1985 = vmatprep.mubr.bf16.mxu1 %v3992_v44 }
  0xef   : > { %2476 = vmatpush1.bf16.msra.mxu0 %v3932_v45  ;;  %2549 = vmatpush1.bf16.msra.mxu1 %v3935_v46 }
  0xf0   : > { %2477 = vmatprep.subr.bf16.mxu0 %v3940_v47  ;;  %2550 = vmatprep.subr.bf16.mxu1 %v3943_v48 }
  0xf2   : > { %1913 = vmatmul.mubr.bf16.gmra.mrb[12].mxu0 %v3994_v49  ;;  %1986 = vmatmul.mubr.bf16.gmra.mrb[12].mxu1 %v3994_v49 }
  0xf3   : > { %2478 = vmatpush1.bf16.msra.mxu0 %v3938_v50  ;;  %2551 = vmatpush1.bf16.msra.mxu1 %v3941_v51 }
  0xf4   : > { %2479 = vmatprep.subr.bf16.mxu0 %v3946_v52  ;;  %2552 = vmatprep.subr.bf16.mxu1 %v3949_v53 }
  0xf5   : > { %2497 = vmatprep.mubr.bf16.mxu0 %v4009_v54  ;;  %2570 = vmatprep.mubr.bf16.mxu1 %v4009_v54 }
  0xf7   : > { %2480 = vmatpush1.bf16.msra.mxu0 %v3944_v55  ;;  %2553 = vmatpush1.bf16.msra.mxu1 %v3947_v56 }
  0xf8   : > { %2481 = vmatprep.subr.bf16.mxu0 %v3952_v57  ;;  %2554 = vmatprep.subr.bf16.mxu1 %v3955_v58 }
  0xfb   : > { %2482 = vmatpush1.bf16.msra.mxu0 %v3950_v59  ;;  %2555 = vmatpush1.bf16.msra.mxu1 %v3953_v60 }
  0xfc   : > { %2483 = vmatprep.subr.bf16.mxu0 %v3958_v61  ;;  %2556 = vmatprep.subr.bf16.mxu1 %v3961_v62 }
  0xff   : > { %2484 = vmatpush1.bf16.msra.mxu0 %v3956_v63  ;;  %2557 = vmatpush1.bf16.msra.mxu1 %v3959_v0 }
 0x100   : > { %2485 = vmatprep.subr.bf16.mxu0 %v3967_v1  ;;  %2558 = vmatprep.subr.bf16.mxu1 %v3970_v2 }
 0x103   : > { %2486 = vmatpush1.bf16.msra.mxu0 %v3965_v3  ;;  %2559 = vmatpush1.bf16.msra.mxu1 %v3968_v4 }
 0x104   : > { %2487 = vmatprep.subr.bf16.mxu0 %v3973_v5  ;;  %2560 = vmatprep.subr.bf16.mxu1 %v3976_v6 }
 0x107   : > { %2488 = vmatpush1.bf16.msra.mxu0 %v3971_v7  ;;  %2561 = vmatpush1.bf16.msra.mxu1 %v3974_v8 }
 0x108   : > { %2489 = vmatprep.subr.bf16.mxu0 %v3982_v9  ;;  %2562 = vmatprep.subr.bf16.mxu1 %v3985_v10 }
 0x10b   : > { %2490 = vmatpush1.bf16.msra.mxu0 %v3980_v11  ;;  %2563 = vmatpush1.bf16.msra.mxu1 %v3983_v12 }
 0x10c   : > { %2491 = vmatprep.subr.bf16.mxu0 %v3988_v13  ;;  %2564 = vmatprep.subr.bf16.mxu1 %v3991_v14 }
 0x10f   : > { %2492 = vmatpush1.bf16.msra.mxu0 %v3986_v15  ;;  %2565 = vmatpush1.bf16.msra.mxu1 %v3989_v16 }
 0x110   : > { %2493 = vmatprep.subr.bf16.mxu0 %v3997_v17  ;;  %2566 = vmatprep.subr.bf16.mxu1 %v4000_v18 }
 0x113   : > { %2494 = vmatpush1.bf16.msra.mxu0 %v3995_v19  ;;  %2567 = vmatpush1.bf16.msra.mxu1 %v3998_v20 }
 0x114   : > { %2495 = vmatprep.subr.bf16.mxu0 %v4003_v21  ;;  %2568 = vmatprep.subr.bf16.mxu1 %v4006_v22 }
 0x117   : > { %2496 = vmatpush1.bf16.msra.mxu0 %v4001_v23  ;;  %2569 = vmatpush1.bf16.msra.mxu1 %v4004_v24 }
 0x11a   : > { %2498 = vmatmul.mubr.bf16.vlgmr.msra.gmra.mrb[0].mxu0 %v4007_v25  ;;  %2571 = vmatmul.mubr.bf16.vlgmr.msra.gmra.mrb[0].mxu1 %v4007_v25 }
 0x11b   : > { %2507 = vmatprep.mubr.bf16.mxu0 %v4010_v26  ;;  %2580 = vmatprep.mubr.bf16.mxu1 %v4010_v26 }
 0x122   : > { %2508 = vmatmul.mubr.bf16.gmra.mrb[4].mxu0 %v4012_v27  ;;  %2581 = vmatmul.mubr.bf16.gmra.mrb[4].mxu1 %v4012_v27 }
 0x123   : > { %2517 = vmatprep.mubr.bf16.mxu0 %v4013_v28  ;;  %2590 = vmatprep.mubr.bf16.mxu1 %v4013_v28 }
 0x12a   : > { %2518 = vmatmul.mubr.bf16.gmra.mrb[8].mxu0 %v4015_v29  ;;  %2591 = vmatmul.mubr.bf16.gmra.mrb[8].mxu1 %v4015_v29 }
 0x12b   : > { %2527 = vmatprep.mubr.bf16.mxu0 %v4016_v30  ;;  %2600 = vmatprep.mubr.bf16.mxu1 %v4016_v30 }
 0x132   : > { %2528 = vmatmul.mubr.bf16.gmra.mrb[12].mxu0 %v4018_v31  ;;  %2601 = vmatmul.mubr.bf16.gmra.mrb[12].mxu1 %v4018_v31 }
 0x1ed   : > { %v2499_v43 = vpop.f32.mrb[0].mxu0  ;;  %v2572_v44 = vpop.f32.mrb[0].mxu1 }
 0x1ee   : > { %v2665_v45 = vadd.f32 %v4464_v39, %v2499_v43  ;;  %v2667_v46 = vadd.f32 %v4466_v40, %v2572_v44  ;;  %v2501_v47 = vpop.f32.mrb[1].mxu0  ;;  %v2574_v48 = vpop.f32.mrb[1].mxu1 }
 0x1ef   : > { %v2666_v49 = vadd.f32 %v4468_v41, %v2501_v47  ;;  %v2668_v50 = vadd.f32 %v4470_v42, %v2574_v48  ;;  %v2503_v51 = vpop.f32.mrb[2].mxu0  ;;  %v2576_v52 = vpop.f32.mrb[2].mxu1 }
 0x1f0   : > { %v2697_v53 = vmax.f32 %v2665_v45, 0.0  ;;  %v2699_v54 = vmax.f32 %v2667_v46, 0.0  ;;  %v2669_v55 = vadd.f32 %v4464_v39, %v2503_v51  ;;  %v2671_v56 = vadd.f32 %v4466_v40, %v2576_v52  ;;  %v2505_v57 = vpop.f32.mrb[3].mxu0  ;;  %v2578_v58 = vpop.f32.mrb[3].mxu1 }
 0x1f1   : > { %v2698_v59 = vmax.f32 %v2666_v49, 0.0  ;;  %v2700_v60 = vmax.f32 %v2668_v50, 0.0  ;;  %v2670_v61 = vadd.f32 %v4468_v41, %v2505_v57  ;;  %v2672_v62 = vadd.f32 %v4470_v42, %v2578_v58 }
 0x1f2   : > { %2729 = vst [vmem:[%s4477_s29] sm:$0xff] %v2697_v53  ;;  %2731 = vst [vmem:[%s4477_s29 + $0x10] sm:$0xff] %v2699_v54  ;;  %v2701_v63 = vmax.f32 %v2669_v55, 0.0  ;;  %v2703_v0 = vmax.f32 %v2671_v56, 0.0 }
 0x1f3   : > { %2730 = vst [vmem:[%s4477_s29 + $0x8] sm:$0xff] %v2698_v59  ;;  %2732 = vst [vmem:[%s4477_s29 + $0x18] sm:$0xff] %v2700_v60  ;;  %v2702_v1 = vmax.f32 %v2670_v61, 0.0  ;;  %v2704_v2 = vmax.f32 %v2672_v62, 0.0 }
 0x1f4   : > { %2733 = vst [vmem:[%s4477_s29 + $0x20] sm:$0xff] %v2701_v63  ;;  %2735 = vst [vmem:[%s4477_s29 + $0x30] sm:$0xff] %v2703_v0 }
 0x1f5   : > { %2734 = vst [vmem:[%s4477_s29 + $0x28] sm:$0xff] %v2702_v1  ;;  %2736 = vst [vmem:[%s4477_s29 + $0x38] sm:$0xff] %v2704_v2  ;;  %v2509_v3 = vpop.f32.mrb[4].mxu0  ;;  %v2582_v4 = vpop.f32.mrb[4].mxu1 }
 0x1f6   : > { %v2673_v5 = vadd.f32 %v4464_v39, %v2509_v3  ;;  %v2675_v6 = vadd.f32 %v4466_v40, %v2582_v4  ;;  %v2511_v7 = vpop.f32.mrb[5].mxu0  ;;  %v2584_v8 = vpop.f32.mrb[5].mxu1 }
 0x1f7   : > { %v2674_v9 = vadd.f32 %v4468_v41, %v2511_v7  ;;  %v2676_v10 = vadd.f32 %v4470_v42, %v2584_v8  ;;  %v2513_v11 = vpop.f32.mrb[6].mxu0  ;;  %v2586_v12 = vpop.f32.mrb[6].mxu1 }
 0x1f8   : > { %v2705_v13 = vmax.f32 %v2673_v5, 0.0  ;;  %v2707_v14 = vmax.f32 %v2675_v6, 0.0  ;;  %v2677_v15 = vadd.f32 %v4464_v39, %v2513_v11  ;;  %v2679_v16 = vadd.f32 %v4466_v40, %v2586_v12  ;;  %v2515_v17 = vpop.f32.mrb[7].mxu0  ;;  %v2588_v18 = vpop.f32.mrb[7].mxu1 }
 0x1f9   : > { %v2706_v19 = vmax.f32 %v2674_v9, 0.0  ;;  %v2708_v20 = vmax.f32 %v2676_v10, 0.0  ;;  %v2678_v21 = vadd.f32 %v4468_v41, %v2515_v17  ;;  %v2680_v22 = vadd.f32 %v4470_v42, %v2588_v18 }
 0x1fa   : > { %2737 = vst [vmem:[%s4477_s29 + $0x40] sm:$0xff] %v2705_v13  ;;  %2739 = vst [vmem:[%s4477_s29 + $0x50] sm:$0xff] %v2707_v14  ;;  %v2709_v23 = vmax.f32 %v2677_v15, 0.0  ;;  %v2711_v24 = vmax.f32 %v2679_v16, 0.0 }
 0x1fb   : > { %2738 = vst [vmem:[%s4477_s29 + $0x48] sm:$0xff] %v2706_v19  ;;  %2740 = vst [vmem:[%s4477_s29 + $0x58] sm:$0xff] %v2708_v20  ;;  %v2710_v25 = vmax.f32 %v2678_v21, 0.0  ;;  %v2712_v26 = vmax.f32 %v2680_v22, 0.0 }
 0x1fc   : > { %2741 = vst [vmem:[%s4477_s29 + $0x60] sm:$0xff] %v2709_v23  ;;  %2743 = vst [vmem:[%s4477_s29 + $0x70] sm:$0xff] %v2711_v24 }
 0x1fd   : > { %2742 = vst [vmem:[%s4477_s29 + $0x68] sm:$0xff] %v2710_v25  ;;  %2744 = vst [vmem:[%s4477_s29 + $0x78] sm:$0xff] %v2712_v26  ;;  %v2519_v27 = vpop.f32.mrb[8].mxu0  ;;  %v2592_v28 = vpop.f32.mrb[8].mxu1 }
 0x1fe   : > { %v2681_v29 = vadd.f32 %v4464_v39, %v2519_v27  ;;  %v2683_v30 = vadd.f32 %v4466_v40, %v2592_v28  ;;  %v2521_v31 = vpop.f32.mrb[9].mxu0  ;;  %v2594_v32 = vpop.f32.mrb[9].mxu1 }
 0x1ff   : > { %v2682_v33 = vadd.f32 %v4468_v41, %v2521_v31  ;;  %v2684_v34 = vadd.f32 %v4470_v42, %v2594_v32  ;;  %v2523_v35 = vpop.f32.mrb[10].mxu0  ;;  %v2596_v36 = vpop.f32.mrb[10].mxu1 }
 0x200   : > { %v2713_v37 = vmax.f32 %v2681_v29, 0.0  ;;  %v2715_v38 = vmax.f32 %v2683_v30, 0.0  ;;  %v2685_v43 = vadd.f32 %v4464_v39, %v2523_v35  ;;  %v2687_v44 = vadd.f32 %v4466_v40, %v2596_v36  ;;  %v2525_v45 = vpop.f32.mrb[11].mxu0  ;;  %v2598_v46 = vpop.f32.mrb[11].mxu1 }
 0x201   : > { %v2714_v47 = vmax.f32 %v2682_v33, 0.0  ;;  %v2716_v48 = vmax.f32 %v2684_v34, 0.0  ;;  %v2686_v49 = vadd.f32 %v4468_v41, %v2525_v45  ;;  %v2688_v50 = vadd.f32 %v4470_v42, %v2598_v46 }
 0x202   : > { %2745 = vst [vmem:[%s4477_s29 + $0x80] sm:$0xff] %v2713_v37  ;;  %2747 = vst [vmem:[%s4477_s29 + $0x90] sm:$0xff] %v2715_v38  ;;  %v2717_v51 = vmax.f32 %v2685_v43, 0.0  ;;  %v2719_v52 = vmax.f32 %v2687_v44, 0.0 }
 0x203   : > { %2746 = vst [vmem:[%s4477_s29 + $0x88] sm:$0xff] %v2714_v47  ;;  %2748 = vst [vmem:[%s4477_s29 + $0x98] sm:$0xff] %v2716_v48  ;;  %v2718_v53 = vmax.f32 %v2686_v49, 0.0  ;;  %v2720_v54 = vmax.f32 %v2688_v50, 0.0 }
 0x204   : > { %2749 = vst [vmem:[%s4477_s29 + $0xa0] sm:$0xff] %v2717_v51  ;;  %2751 = vst [vmem:[%s4477_s29 + $0xb0] sm:$0xff] %v2719_v52 }
 0x205   : > { %2750 = vst [vmem:[%s4477_s29 + $0xa8] sm:$0xff] %v2718_v53  ;;  %2752 = vst [vmem:[%s4477_s29 + $0xb8] sm:$0xff] %v2720_v54  ;;  %v2529_v55 = vpop.f32.mrb[12].mxu0  ;;  %v2602_v56 = vpop.f32.mrb[12].mxu1 }
 0x206   : > { %v2689_v57 = vadd.f32 %v4464_v39, %v2529_v55  ;;  %v2691_v58 = vadd.f32 %v4466_v40, %v2602_v56  ;;  %v2531_v59 = vpop.f32.mrb[13].mxu0  ;;  %v2604_v60 = vpop.f32.mrb[13].mxu1 }
 0x207   : > { %v2690_v61 = vadd.f32 %v4468_v41, %v2531_v59  ;;  %v2692_v62 = vadd.f32 %v4470_v42, %v2604_v60  ;;  %v2533_v63 = vpop.f32.mrb[14].mxu0  ;;  %v2606_v0 = vpop.f32.mrb[14].mxu1 }
 0x208   : > { %v2721_v1 = vmax.f32 %v2689_v57, 0.0  ;;  %v2723_v2 = vmax.f32 %v2691_v58, 0.0  ;;  %v2693_v3 = vadd.f32 %v4464_v39, %v2533_v63  ;;  %v2695_v4 = vadd.f32 %v4466_v40, %v2606_v0  ;;  %v2535_v5 = vpop.f32.mrb[15].mxu0  ;;  %v2608_v6 = vpop.f32.mrb[15].mxu1 }
 0x209   : > { %v2722_v7 = vmax.f32 %v2690_v61, 0.0  ;;  %v2724_v8 = vmax.f32 %v2692_v62, 0.0  ;;  %v2694_v9 = vadd.f32 %v4468_v41, %v2535_v5  ;;  %v2696_v10 = vadd.f32 %v4470_v42, %v2608_v6 }
 0x20a   : > { %2753 = vst [vmem:[%s4477_s29 + $0xc0] sm:$0xff] %v2721_v1  ;;  %2755 = vst [vmem:[%s4477_s29 + $0xd0] sm:$0xff] %v2723_v2  ;;  %v2725_v11 = vmax.f32 %v2693_v3, 0.0  ;;  %v2727_v12 = vmax.f32 %v2695_v4, 0.0 }
 0x20b   : > { %2754 = vst [vmem:[%s4477_s29 + $0xc8] sm:$0xff] %v2722_v7  ;;  %2756 = vst [vmem:[%s4477_s29 + $0xd8] sm:$0xff] %v2724_v8  ;;  %v2726_v39 = vmax.f32 %v2694_v9, 0.0  ;;  %v2728_v13 = vmax.f32 %v2696_v10, 0.0 }
 0x20c   : > { %2757 = vst [vmem:[%s4477_s29 + $0xe0] sm:$0xff] %v2725_v11  ;;  %2759 = vst [vmem:[%s4477_s29 + $0xf0] sm:$0xff] %v2727_v12 }
 0x20d   : > { %2758 = vst [vmem:[%s4477_s29 + $0xe8] sm:$0xff] %v2726_v39  ;;  %2760 = vst [vmem:[%s4477_s29 + $0xf8] sm:$0xff] %v2728_v13 }
 0x20e PF: > { %s13_s18 = sadd.s32 1, %s4073_s18   ;;  %s4566_s12 = smov %s4061_s15 }
 0x20f   : > { %p10_p9 = scmp.ge.s32.totalorder %s13_s18, 10   ;;  %s4567_s13 = smov %s4065_s16 }
 0x210   : > { %s4568_s14 = smov %s4069_s17  ;;  %s4569_s15 = smov %s4573_s19 }
 0x211   : > { %s4570_s16 = smov %s4577_s20  ;;  %s4571_s17 = smov %s4581_s21 }
 0x212   :  { %12 = sbr.rel (!%p10_p9) target bundleno = 4 (0x4), region = 72 }

// kernel: pose_resnet_forward.3
= control target key start
LH: loop header
LB: loop body
LE: loop exit
PB: predicated region body
PF: predicated region fallthrough
CT: control target
= control target key end

     0   :  { %8 = vsyncpa [#allocation3], 0  ;;  %s13700_s0 = inlined_call_operand.vmem [shape: bf16[2,9,16,2048], index: 0, kind: input, shape index: {}]   ;;  %s13701_s1 = inlined_call_operand.hbm [shape: bf16[2,2,4,2048,256], index: 1, kind: input, shape index: {}]   ;;  %s13702_s2 = inlined_call_operand.vmem [shape: f32[1,256], index: 2, kind: input, shape index: {}]   ;;  %s13703_s3 = inlined_call_operand.vmem [shape: f32[2,2,2,16,256], index: 3, kind: output, shape index: {}]  }
   0x1   :  { %10 = vsyncpa [#allocation3 + $0x1], 0  ;;  %s12181_s12 = smov 0   ;;  %s12183_s13 = smov 0  }
   0x2   :  { %s12185_s14 = smov 0   ;;  %s12187_s15 = smov 0  }
   0x3   :  { %s12189_s16 = smov 0   ;;  %s12191_s17 = smov 0  }
   0x4   :  { %s12193_s18 = smov 0   ;;  %s12195_s19 = smov 0  }
   0x5   :  { %s12197_s20 = smov 0   ;;  %s12199_s21 = smov 0  }
   0x6 LB: > { %13706 = sst [smem:[#allocation5_spill]] %s12144_s18  ;;  %s8367_s22 = sadd.s32 4294967295, %s12156_s21   ;;  %s12156_s21 = sphi %s12199_s21, %s16_s21   ;;  %s12152_s20 = sphi %s12197_s20, %s13723_s20   ;;  %s12148_s19 = sphi %s12195_s19, %s13722_s19   ;;  %s12144_s18 = sphi %s12193_s18, %s13715_s18   ;;  %s12140_s17 = sphi %s12191_s17, %s13721_s17   ;;  %s12136_s16 = sphi %s12189_s16, %s13720_s16   ;;  %s12132_s15 = sphi %s12187_s15, %s13714_s15   ;;  %s12128_s14 = sphi %s12185_s14, %s13719_s14   ;;  %s12124_s13 = sphi %s12183_s13, %s13718_s13   ;;  %s12120_s12 = sphi %s12181_s12, %s13717_s12  }
   0x7   : > { %s28_s23 = sadd.s32 1, %s12144_s18  ;;  %s31_s24 = sadd.s32 1, %s12148_s19 }
   0x8   : > { %p29_p0 = scmp.ge.s32.totalorder %s28_s23, 2  ;;  %s35_s25 = sadd.s32 1, %s12152_s20 }
   0x9   : > { %s70_s26 = sadd.s32 1, %s12128_s14  ;;  %p77_p1 = scmp.ne.s32.totalorder %s12128_s14, %s12124_s13 }
   0xa   : > { %s13725_s23 = smov (%p29_p0, %s28_s23), 0  ;;  %s13727_s24 = smov (!%p29_p0, %s31_s24), %s12148_s19 }
   0xb   : > { %13707 = sst [smem:[#allocation6_spill]] %s13725_s23  ;;  %p78_p2 = scmp.eq.s32.totalorder %s12156_s21, 0 }
   0xc   : > { %p33_p3 = scmp.ge.s32.totalorder %s13727_s24, 2  ;;  %p83_p4 = scmp.ne.s32.totalorder %s12124_s13, %s12120_s12 }
   0xd   : > { %p12241_p5 = por %p78_p2, %p77_p1  ;;  %p84_p6 = scmp.eq.s32.totalorder %s8367_s22, 0 }
   0xe   : > { %s13729_s24 = smov (%p33_p3, %s13727_s24), 0  ;;  %s13731_s25 = smov (!%p33_p3, %s35_s25), %s12152_s20 }
   0xf   : > { %13709 = sst [smem:[#allocation7_spill]] %s13729_s24  ;;  %s66_s28 = ssub.s32 %s12148_s19, %s13729_s24 }
  0x10   : > { %p12250_p7 = por %p84_p6, %p83_p4  ;;  %p37_p8 = scmp.ge.s32.totalorder %s13731_s25, 2 }
  0x11   : > { %p10425_p9 = scmp.lt.s32.totalorder %s12156_s21, 8  ;;  %s169_s30 = sand.u32 1, %s12128_s14  }
  0x12   : > { %s13733_s25 = smov (%p37_p8, %s13731_s25), 0  ;;  %s8371_s4 = sshll.u32 %s169_s30, 13 }
  0x13   : > { %s65_s5 = ssub.s32 %s12152_s20, %s13733_s25  ;;  %s8372_s7 = sshll.u32 %s12148_s19, 11 }
  0x14   : > { %s67_s6 = sor.u32 %s66_s28, %s65_s5  ;;  %s8373_s8 = sshll.u32 %s12152_s20, 12 }
  0x15   : > { %p68_p10 = scmp.eq.s32.totalorder %s67_s6, 0  ;;  %s179_s9 = sadd.s32 %s8373_s8, %s8372_s7 }
  0x16   : > { %s173_s10 = scalar_lea.vmem [#allocation2], %s8371_s4  ;;  %s8374_s22 = sshll.u32 %s179_s9, 6 }
  0x17   : > { %s182_s11 = sshll.u32 %s173_s10, 4  ;;  %s12270_s18 = scalar_lea.hbm %s13701_s1, %s8374_s22  ;;  %s12265_s11 = int_to_ptr.vmem [resolvable:$true] %s182_s11 }
  0x18   : > { %s12263_s12 = scalar_select %p68_p10, %s12128_s14, %s70_s26  }
  0x19   : > { %p12276_p11 = pnand %p10425_p9, %p12241_p5  ;;  %s12281_s26 = scalar_lea.sflag [#allocation3], %s169_s30 }
  0x1a   : > { %s12044_s4 = scalar_lea.hbm %s12270_s18, 131072  ;;  %s12049_s27 = scalar_lea.hbm %s13701_s1, 524288 }
  0x1b   : > { %p12045_p13 = scmp.ne.s32.totalorder %s12270_s18, %s12044_s4  ;;  %p12046_p0 = pneg %p12276_p11 }
  0x1c   : > { %p12050_p3 = scmp.lt.u32.totalorder %s12270_s18, %s13701_s1  ;;  %p12051_p4 = scmp.lt.u32.totalorder %s12049_s27, %s12044_s4 }
  0x1d   : > { %p12047_p1 = pnand %p12046_p0, %p12045_p13  ;;  %p12053_p6 = scmp.lt.u32.totalorder %s12044_s4, %s12270_s18 }
  0x1e   : > { %p12052_p5 = por %p12051_p4, %p12050_p3 }
  0x1f   : > { %p12048_p2 = pneg %p12047_p1 }
  0x20   : > { %p12054_p8 = por %p12053_p6, %p12052_p5 }
  0x22   : > { %p12055_p9 = pnand %p12054_p8, %p12048_p2 }
  0x24   : > { %12058 = shalt.err (!%p12055_p9)
}
  0x25   : > { %s12059_s30 = scalar_lea.vmem %s12265_s11, 131072  ;;  %s12158_s7 = smov [#allocation2]  }
  0x26   : > { %p12060_p10 = scmp.ne.s32.totalorder %s12265_s11, %s12059_s30  ;;  %s12064_s8 = sshll.u32 %s12158_s7, 4  ;;  %s12065_s8 = int_to_ptr.vmem [resolvable:$false] %s12064_s8 }
  0x27   : > { %s12066_s9 = scalar_lea.vmem %s12065_s8, 262144  ;;  %p12067_p12 = scmp.lt.s32.totalorder %s12265_s11, %s12065_s8 }
  0x28   : > { %p12062_p13 = pnand %p12060_p10, %p12046_p0  ;;  %p12068_p3 = scmp.lt.s32.totalorder %s12066_s9, %s12059_s30 }
  0x2a   : > { %p12063_p1 = pneg %p12062_p13  ;;  %p12069_p4 = por %p12068_p3, %p12067_p12 }
  0x2c   : > { %p12070_p5 = pnand %p12069_p4, %p12063_p1 }
  0x2e   : > { %12073 = shalt.err (!%p12070_p5)
}
  0x2f   : > { %s12159_s10 = smov 128   ;;  %s12160_s22 = smov 8  }
  0x30   : > { %10424 = dma.hbm_to_vmem [thread:$0]  (!%p12276_p11), %s12270_s18, 131072, %s12265_s11, %s12281_s26, %s12159_s10, %s12159_s10, %s12160_s22  }
  0x31   : > { %p190_p0 = scmp.lt.s32.totalorder %s12156_s21, 9  ;;  %p13712_p2 = scmp.ge.s32.totalorder %s12156_s21, 1 }
  0x33   : > { %p191_p6 = pnand %p13712_p2, %p190_p0 }
  0x34   : > { %s196_s4 = sand.u32 (!%p191_p6), 1, %s12124_s13  }
  0x35   : > { %194 = sbr.rel (%p191_p6) target bundleno = 1309 (0x51d), region = 32  ;;  %s8376_s23 = sshll.u32 (!%p191_p6), %s196_s4, 13 }
  0x36   : > { %s197_s24 = scalar_lea.sflag (!%p191_p6), [#allocation3], %s196_s4  ;;  %s12313_s27 = scalar_lea.vmem (!%p191_p6), [#allocation2], %s8376_s23 }
  0x3c   : > { %12115 = dma.done.wait (%p12250_p7), %s197_s24, 131072  }
  0x3d   : > { %12117 = vsyncadd (%p12250_p7), %s197_s24, 4294836224  ;;  %v10508_v0 = vld [vmem:[%s12313_s27 + $0x804] ss:$8 sps:$4 sm:$0xff]   ;;  %v10512_v2 = vld [vmem:[%s12313_s27 + $0x800] ss:$8 sps:$4 sm:$0xff]   ;;  %p236_p7 = scmp.lt.s32.totalorder %s12132_s15, 1 }
  0x3e   : > { %v10510_v1 = vld [vmem:[%s12313_s27 + $0x1004] ss:$8 sps:$4 sm:$0xff]   ;;  %2169 = vmatprep.subr.bf16.mxu1 %v10508_v0  ;;  %v10513_v3 = vld [vmem:[%s12313_s27 + $0x1000] ss:$8 sps:$4 sm:$0xff]   ;;  %v10514_v4 = vld [vmem:[%s12313_s27 + $0x814] ss:$8 sps:$4 sm:$0xff]  }
  0x3f   : > { %5856 = vmatprep.subr.bf16.mxu0 %v10510_v1  ;;  %2170 = vmatpush1.bf16.msra.mxu1 %v10512_v2  ;;  %v10516_v5 = vld [vmem:[%s12313_s27 + $0x1014] ss:$8 sps:$4 sm:$0xff]   ;;  %v10518_v6 = vld [vmem:[%s12313_s27 + $0x810] ss:$8 sps:$4 sm:$0xff]   ;;  %v10520_v8 = vld [vmem:[%s12313_s27 + $0x824] ss:$8 sps:$4 sm:$0xff]  }
  0x40   : > { %5857 = vmatpush1.bf16.msra.mxu0 %v10513_v3  ;;  %2171 = vmatprep.subr.bf16.mxu1 %v10514_v4  ;;  %v10519_v7 = vld [vmem:[%s12313_s27 + $0x1010] ss:$8 sps:$4 sm:$0xff]   ;;  %v10522_v9 = vld [vmem:[%s12313_s27 + $0x1024] ss:$8 sps:$4 sm:$0xff]   ;;  %v10524_v10 = vld [vmem:[%s12313_s27 + $0x820] ss:$8 sps:$4 sm:$0xff]  }
  0x41   : > { %5858 = vmatprep.subr.bf16.mxu0 %v10516_v5  ;;  %v10525_v11 = vld [vmem:[%s12313_s27 + $0x1020] ss:$8 sps:$4 sm:$0xff]   ;;  %v10526_v12 = vld [vmem:[%s12313_s27 + $0x834] ss:$8 sps:$4 sm:$0xff]   ;;  %v10530_v14 = vld [vmem:[%s12313_s27 + $0x830] ss:$8 sps:$4 sm:$0xff]  }
  0x42   : > { %v10528_v13 = vld [vmem:[%s12313_s27 + $0x1034] ss:$8 sps:$4 sm:$0xff]   ;;  %v10531_v15 = vld [vmem:[%s12313_s27 + $0x1030] ss:$8 sps:$4 sm:$0xff]   ;;  %v10532_v16 = vld [vmem:[%s12313_s27 + $0x844] ss:$8 sps:$4 sm:$0xff]  }
  0x43   : > { %2172 = vmatpush1.bf16.msra.mxu1 %v10518_v6  ;;  %v10534_v17 = vld [vmem:[%s12313_s27 + $0x1044] ss:$8 sps:$4 sm:$0xff]   ;;  %v10536_v18 = vld [vmem:[%s12313_s27 + $0x840] ss:$8 sps:$4 sm:$0xff]   ;;  %v10538_v20 = vld [vmem:[%s12313_s27 + $0x854] ss:$8 sps:$4 sm:$0xff]  }
  0x44   : > { %5859 = vmatpush1.bf16.msra.mxu0 %v10519_v7  ;;  %2173 = vmatprep.subr.bf16.mxu1 %v10520_v8  ;;  %v10537_v19 = vld [vmem:[%s12313_s27 + $0x1040] ss:$8 sps:$4 sm:$0xff]   ;;  %v10540_v21 = vld [vmem:[%s12313_s27 + $0x1054] ss:$8 sps:$4 sm:$0xff]   ;;  %v10542_v22 = vld [vmem:[%s12313_s27 + $0x850] ss:$8 sps:$4 sm:$0xff]  }
  0x45   : > { %5860 = vmatprep.subr.bf16.mxu0 %v10522_v9  ;;  %v10543_v23 = vld [vmem:[%s12313_s27 + $0x1050] ss:$8 sps:$4 sm:$0xff]   ;;  %v10544_v24 = vld [vmem:[%s12313_s27 + $0x864] ss:$8 sps:$4 sm:$0xff]   ;;  %v10548_v26 = vld [vmem:[%s12313_s27 + $0x860] ss:$8 sps:$4 sm:$0xff]  }
  0x46   : > { %v10546_v25 = vld [vmem:[%s12313_s27 + $0x1064] ss:$8 sps:$4 sm:$0xff]   ;;  %v10549_v27 = vld [vmem:[%s12313_s27 + $0x1060] ss:$8 sps:$4 sm:$0xff]   ;;  %v10550_v28 = vld [vmem:[%s12313_s27 + $0x874] ss:$8 sps:$4 sm:$0xff]  }
  0x47   : > { %2174 = vmatpush1.bf16.msra.mxu1 %v10524_v10  ;;  %v10552_v29 = vld [vmem:[%s12313_s27 + $0x1074] ss:$8 sps:$4 sm:$0xff]   ;;  %v10554_v30 = vld [vmem:[%s12313_s27 + $0x870] ss:$8 sps:$4 sm:$0xff]   ;;  %v10556_v32 = vld [vmem:[%s12313_s27 + $0x884] ss:$8 sps:$4 sm:$0xff]  }
  0x48   : > { %5861 = vmatpush1.bf16.msra.mxu0 %v10525_v11  ;;  %2175 = vmatprep.subr.bf16.mxu1 %v10526_v12  ;;  %v10555_v31 = vld [vmem:[%s12313_s27 + $0x1070] ss:$8 sps:$4 sm:$0xff]   ;;  %s13735_s15 = smov (!%p236_p7, %s12132_s15), 1  ;;  %v10558_v33 = vld [vmem:[%s12313_s27 + $0x1084] ss:$8 sps:$4 sm:$0xff]   ;;  %s254_s18 = smul.u32 3, %s12140_s17 }
  0x49   : > { %5862 = vmatprep.subr.bf16.mxu0 %v10528_v13  ;;  %v10560_v34 = vld [vmem:[%s12313_s27 + $0x880] ss:$8 sps:$4 sm:$0xff]   ;;  %v10562_v36 = vld [vmem:[%s12313_s27 + $0x894] ss:$8 sps:$4 sm:$0xff]   ;;  %s10418_s29 = smul.u32 1152, %s13735_s15  ;;  %p243_p11 = scmp.lt.s32.totalorder %s12136_s16, 1 }
  0x4a   : > { %v10561_v35 = vld [vmem:[%s12313_s27 + $0x1080] ss:$8 sps:$4 sm:$0xff]   ;;  %v10564_v37 = vld [vmem:[%s12313_s27 + $0x1094] ss:$8 sps:$4 sm:$0xff]   ;;  %s255_s11 = sadd.s32 %s12136_s16, %s254_s18  ;;  %v10566_v38 = vld [vmem:[%s12313_s27 + $0x890] ss:$8 sps:$4 sm:$0xff]  }
  0x4b   : > { %2176 = vmatpush1.bf16.msra.mxu1 %v10530_v14  ;;  %v10567_v39 = vld [vmem:[%s12313_s27 + $0x1090] ss:$8 sps:$4 sm:$0xff]   ;;  %v10568_v40 = vld [vmem:[%s12313_s27 + $0x8a4] ss:$8 sps:$4 sm:$0xff]   ;;  %s240_s5 = scalar_lea.vmem %s13700_s0, %s10418_s29  ;;  %s10293_s6 = sshll.u32 %s255_s11, 7 }
  0x4c   : > { %5863 = vmatpush1.bf16.msra.mxu0 %v10531_v15  ;;  %2177 = vmatprep.subr.bf16.mxu1 %v10532_v16  ;;  %v10570_v41 = vld [vmem:[%s12313_s27 + $0x10a4] ss:$8 sps:$4 sm:$0xff]   ;;  %v10572_v42 = vld [vmem:[%s12313_s27 + $0x8a0] ss:$8 sps:$4 sm:$0xff]   ;;  %s12373_s30 = scalar_lea.vmem %s240_s5, %s10293_s6  ;;  %v10574_v44 = vld [vmem:[%s12313_s27 + $0x8b4] ss:$8 sps:$4 sm:$0xff]  }
  0x4d   : > { %5864 = vmatprep.subr.bf16.mxu0 %v10534_v17  ;;  %v10573_v43 = vld [vmem:[%s12313_s27 + $0x10a0] ss:$8 sps:$4 sm:$0xff]   ;;  %v10576_v45 = vld [vmem:[%s12313_s27 + $0x10b4] ss:$8 sps:$4 sm:$0xff]   ;;  %v10578_v46 = vld [vmem:[%s12313_s27 + $0x8b0] ss:$8 sps:$4 sm:$0xff]  }
  0x4e   : > { %v10579_v47 = vld [vmem:[%s12313_s27 + $0x10b0] ss:$8 sps:$4 sm:$0xff]   ;;  %v8385_v48 = vld [vmem:[%s12373_s30 + $0x80] sm:$0xff]  ;;  %v10586_v58 = vld [vmem:[%s12313_s27 + $0x8d4] ss:$8 sps:$4 sm:$0xff]   ;;  %p241_p12 = scmp.lt.s32.totalorder %s12140_s17, 1 }
  0x4f   : > { %2178 = vmatpush1.bf16.msra.mxu1 %v10536_v18  ;;  %v8393_v49 = vld [vmem:[%s12373_s30 + $0xc0] sm:$0xff]  ;;  %v10588_v59 = vld [vmem:[%s12313_s27 + $0x10d4] ss:$8 sps:$4 sm:$0xff]   ;;  %v10590_v60 = vld [vmem:[%s12313_s27 + $0x8d0] ss:$8 sps:$4 sm:$0xff]   ;;  %s13737_s16 = smov (!%p243_p11, %s12136_s16), 1 }
  0x50   : > { %5865 = vmatpush1.bf16.msra.mxu0 %v10537_v19  ;;  %2179 = vmatprep.subr.bf16.mxu1 %v10538_v20  ;;  %v10580_v50 = vld [vmem:[%s12313_s27 + $0x8c4] ss:$8 sps:$4 sm:$0xff]   ;;  %v8658_v52 = vcombine.high %v8385_v48, %v8393_v49  ;;  %v10584_v56 = vld [vmem:[%s12313_s27 + $0x8c0] ss:$8 sps:$4 sm:$0xff]   ;;  %v10591_v61 = vld [vmem:[%s12313_s27 + $0x10d0] ss:$8 sps:$4 sm:$0xff]   ;;  %v8657_v8 = vcombine.low %v8385_v48, %v8393_v49 }
  0x51   : > { %5866 = vmatprep.subr.bf16.mxu0 %v10540_v21  ;;  %v10582_v51 = vld [vmem:[%s12313_s27 + $0x10c4] ss:$8 sps:$4 sm:$0xff]   ;;  %v10585_v57 = vld [vmem:[%s12313_s27 + $0x10c0] ss:$8 sps:$4 sm:$0xff]   ;;  %v10598_v2 = vld [vmem:[%s12313_s27 + $0x8f4] ss:$8 sps:$4 sm:$0xff]  }
  0x52   : > { %v9202_v53 = vld [vmem:[%s12373_s30 + $0x180] sm:$0xff]  ;;  %2201 = vmatprep.mubr.bf16.mxu1 %v8658_v52  ;;  %v10600_v3 = vld [vmem:[%s12313_s27 + $0x10f4] ss:$8 sps:$4 sm:$0xff]   ;;  %v10602_v4 = vld [vmem:[%s12313_s27 + $0x8f0] ss:$8 sps:$4 sm:$0xff]   ;;  %s13739_s17 = smov (!%p241_p12, %s12140_s17), 1 }
  0x53   : > { %2180 = vmatpush1.bf16.msra.mxu1 %v10542_v22  ;;  %v9210_v54 = vld [vmem:[%s12373_s30 + $0x1c0] sm:$0xff]  ;;  %v10603_v5 = vld [vmem:[%s12313_s27 + $0x10f0] ss:$8 sps:$4 sm:$0xff]   ;;  %v10612_v12 = vld [vmem:[%s12313_s27 + $0x914] ss:$8 sps:$4 sm:$0xff]   ;;  %s8378_s7 = sshll.u32 %s13735_s15, 2 }
  0x54   : > { %5867 = vmatpush1.bf16.msra.mxu0 %v10543_v23  ;;  %2181 = vmatprep.subr.bf16.mxu1 %v10544_v24  ;;  %v9475_v55 = vcombine.high %v9202_v53, %v9210_v54  ;;  %v10592_v62 = vld [vmem:[%s12313_s27 + $0x8e4] ss:$8 sps:$4 sm:$0xff]   ;;  %v10596_v0 = vld [vmem:[%s12313_s27 + $0x8e0] ss:$8 sps:$4 sm:$0xff]   ;;  %v9474_v10 = vcombine.low %v9202_v53, %v9210_v54  ;;  %v10615_v13 = vld [vmem:[%s12313_s27 + $0x1114] ss:$8 sps:$4 sm:$0xff]  }
  0x55   : > { %5868 = vmatprep.subr.bf16.mxu0 %v10546_v25  ;;  %v10594_v63 = vld [vmem:[%s12313_s27 + $0x10e4] ss:$8 sps:$4 sm:$0xff]   ;;  %v10597_v1 = vld [vmem:[%s12313_s27 + $0x10e0] ss:$8 sps:$4 sm:$0xff]   ;;  %v10610_v14 = vld [vmem:[%s12313_s27 + $0x910] ss:$8 sps:$4 sm:$0xff]  }
  0x56   : > { %5888 = vmatprep.mubr.bf16.mxu0 %v9475_v55  ;;  %v10606_v6 = vld [vmem:[%s12313_s27 + $0x904] ss:$8 sps:$4 sm:$0xff]   ;;  %v10604_v9 = vld [vmem:[%s12313_s27 + $0x900] ss:$8 sps:$4 sm:$0xff]   ;;  %v10613_v15 = vld [vmem:[%s12313_s27 + $0x1110] ss:$8 sps:$4 sm:$0xff]  }
  0x57   : > { %2182 = vmatpush1.bf16.msra.mxu1 %v10548_v26  ;;  %v10609_v7 = vld [vmem:[%s12313_s27 + $0x1104] ss:$8 sps:$4 sm:$0xff]   ;;  %v10607_v11 = vld [vmem:[%s12313_s27 + $0x1100] ss:$8 sps:$4 sm:$0xff]   ;;  %v10624_v20 = vld [vmem:[%s12313_s27 + $0x934] ss:$8 sps:$4 sm:$0xff]  }
  0x58   : > { %5869 = vmatpush1.bf16.msra.mxu0 %v10549_v27  ;;  %2183 = vmatprep.subr.bf16.mxu1 %v10550_v28  ;;  %v10618_v16 = vld [vmem:[%s12313_s27 + $0x924] ss:$8 sps:$4 sm:$0xff]   ;;  %v10616_v18 = vld [vmem:[%s12313_s27 + $0x920] ss:$8 sps:$4 sm:$0xff]   ;;  %v10627_v21 = vld [vmem:[%s12313_s27 + $0x1134] ss:$8 sps:$4 sm:$0xff]  }
  0x59   : > { %5870 = vmatprep.subr.bf16.mxu0 %v10552_v29  ;;  %v10621_v17 = vld [vmem:[%s12313_s27 + $0x1124] ss:$8 sps:$4 sm:$0xff]   ;;  %v10619_v19 = vld [vmem:[%s12313_s27 + $0x1120] ss:$8 sps:$4 sm:$0xff]   ;;  %v10622_v22 = vld [vmem:[%s12313_s27 + $0x930] ss:$8 sps:$4 sm:$0xff]  }
  0x5a   : > { %v10625_v23 = vld [vmem:[%s12313_s27 + $0x1130] ss:$8 sps:$4 sm:$0xff]   ;;  %v10630_v24 = vld [vmem:[%s12313_s27 + $0x944] ss:$8 sps:$4 sm:$0xff]   ;;  %v10628_v26 = vld [vmem:[%s12313_s27 + $0x940] ss:$8 sps:$4 sm:$0xff]  }
  0x5b   : > { %2184 = vmatpush1.bf16.msra.mxu1 %v10554_v30  ;;  %v10633_v25 = vld [vmem:[%s12313_s27 + $0x1144] ss:$8 sps:$4 sm:$0xff]   ;;  %v10631_v27 = vld [vmem:[%s12313_s27 + $0x1140] ss:$8 sps:$4 sm:$0xff]   ;;  %v10636_v28 = vld [vmem:[%s12313_s27 + $0x954] ss:$8 sps:$4 sm:$0xff]  }
  0x5c   : > { %5871 = vmatpush1.bf16.msra.mxu0 %v10555_v31  ;;  %2185 = vmatprep.subr.bf16.mxu1 %v10556_v32  ;;  %v10639_v29 = vld [vmem:[%s12313_s27 + $0x1154] ss:$8 sps:$4 sm:$0xff]   ;;  %v10634_v30 = vld [vmem:[%s12313_s27 + $0x950] ss:$8 sps:$4 sm:$0xff]   ;;  %v10642_v32 = vld [vmem:[%s12313_s27 + $0x964] ss:$8 sps:$4 sm:$0xff]  }
  0x5d   : > { %5872 = vmatprep.subr.bf16.mxu0 %v10558_v33  ;;  %v10637_v31 = vld [vmem:[%s12313_s27 + $0x1150] ss:$8 sps:$4 sm:$0xff]   ;;  %v10645_v33 = vld [vmem:[%s12313_s27 + $0x1164] ss:$8 sps:$4 sm:$0xff]   ;;  %v10652_v48 = vld [vmem:[%s12313_s27 + $0x980] ss:$8 sps:$4 sm:$0xff]  }
  0x5e   : > { %v10655_v49 = vld [vmem:[%s12313_s27 + $0x1180] ss:$8 sps:$4 sm:$0xff]   ;;  %v10658_v52 = vld [vmem:[%s12313_s27 + $0x990] ss:$8 sps:$4 sm:$0xff]   ;;  %v10666_v54 = vld [vmem:[%s12313_s27 + $0x9a4] ss:$8 sps:$4 sm:$0xff]  }
  0x5f   : > { %2186 = vmatpush1.bf16.msra.mxu1 %v10560_v34  ;;  %v10640_v34 = vld [vmem:[%s12313_s27 + $0x960] ss:$8 sps:$4 sm:$0xff]   ;;  %v10661_v53 = vld [vmem:[%s12313_s27 + $0x1190] ss:$8 sps:$4 sm:$0xff]   ;;  %v10669_v55 = vld [vmem:[%s12313_s27 + $0x11a4] ss:$8 sps:$4 sm:$0xff]  }
  0x60   : > { %5873 = vmatpush1.bf16.msra.mxu0 %v10561_v35  ;;  %2187 = vmatprep.subr.bf16.mxu1 %v10562_v36  ;;  %v10643_v35 = vld [vmem:[%s12313_s27 + $0x1160] ss:$8 sps:$4 sm:$0xff]   ;;  %s8379_s8 = sshll.u32 %s13737_s16, 3  ;;  %s8380_s10 = sshll.u32 %s13739_s17, 4 }
  0x61   : > { %5874 = vmatprep.subr.bf16.mxu0 %v10564_v37  ;;  %v12428_v36 = vld [vmem:[%s12373_s30 + $0x88] sm:$0xff]  ;;  %s249_s9 = sadd.s32 %s8379_s8, %s8378_s7 }
  0x62   : > { %v12431_v37 = vld [vmem:[%s12373_s30 + $0xc8] sm:$0xff]  ;;  %s251_s23 = sadd.s32 %s8380_s10, %s249_s9 }
  0x63   : > { %2188 = vmatpush1.bf16.msra.mxu1 %v10566_v38  ;;  %v10648_v38 = vld [vmem:[%s12313_s27 + $0x974] ss:$8 sps:$4 sm:$0xff]   ;;  %s8381_s24 = sshll.u32 %s251_s23, 3 }
  0x64   : > { %5875 = vmatpush1.bf16.msra.mxu0 %v10567_v39  ;;  %2189 = vmatprep.subr.bf16.mxu1 %v10568_v40  ;;  %v10651_v39 = vld [vmem:[%s12313_s27 + $0x1174] ss:$8 sps:$4 sm:$0xff]   ;;  %v8660_v40 = vcombine.high %v12428_v36, %v12431_v37  ;;  %s253_s17 = scalar_lea.vmem %s13703_s3, %s8381_s24 }
  0x65   : > { %5876 = vmatprep.subr.bf16.mxu0 %v10570_v41  ;;  %v12438_v41 = vld [vmem:[%s12373_s30 + $0x188] sm:$0xff] }
  0x67   : > { %2190 = vmatpush1.bf16.msra.mxu1 %v10572_v42  ;;  %v12441_v42 = vld [vmem:[%s12373_s30 + $0x1c8] sm:$0xff] }
  0x68   : > { %5877 = vmatpush1.bf16.msra.mxu0 %v10573_v43  ;;  %2191 = vmatprep.subr.bf16.mxu1 %v10574_v44  ;;  %v9477_v43 = vcombine.high %v12438_v41, %v12441_v42  ;;  %v10646_v44 = vld [vmem:[%s12313_s27 + $0x970] ss:$8 sps:$4 sm:$0xff]  }
  0x69   : > { %5878 = vmatprep.subr.bf16.mxu0 %v10576_v45  ;;  %v10649_v45 = vld [vmem:[%s12313_s27 + $0x1170] ss:$8 sps:$4 sm:$0xff]  }
  0x6b   : > { %2192 = vmatpush1.bf16.msra.mxu1 %v10578_v46  ;;  %v10654_v46 = vld [vmem:[%s12313_s27 + $0x984] ss:$8 sps:$4 sm:$0xff]  }
  0x6c   : > { %5879 = vmatpush1.bf16.msra.mxu0 %v10579_v47  ;;  %2193 = vmatprep.subr.bf16.mxu1 %v10580_v50  ;;  %v10657_v47 = vld [vmem:[%s12313_s27 + $0x1184] ss:$8 sps:$4 sm:$0xff]   ;;  %v10660_v50 = vld [vmem:[%s12313_s27 + $0x994] ss:$8 sps:$4 sm:$0xff]  }
  0x6d   : > { %5880 = vmatprep.subr.bf16.mxu0 %v10582_v51  ;;  %v10663_v51 = vld [vmem:[%s12313_s27 + $0x1194] ss:$8 sps:$4 sm:$0xff]  }
  0x6f   : > { %2194 = vmatpush1.bf16.msra.mxu1 %v10584_v56  ;;  %v10664_v56 = vld [vmem:[%s12313_s27 + $0x9a0] ss:$8 sps:$4 sm:$0xff]  }
  0x70   : > { %5881 = vmatpush1.bf16.msra.mxu0 %v10585_v57  ;;  %2195 = vmatprep.subr.bf16.mxu1 %v10586_v58  ;;  %v10667_v57 = vld [vmem:[%s12313_s27 + $0x11a0] ss:$8 sps:$4 sm:$0xff]   ;;  %v10672_v58 = vld [vmem:[%s12313_s27 + $0x9b4] ss:$8 sps:$4 sm:$0xff]  }
  0x71   : > { %5882 = vmatprep.subr.bf16.mxu0 %v10588_v59  ;;  %v10675_v59 = vld [vmem:[%s12313_s27 + $0x11b4] ss:$8 sps:$4 sm:$0xff]  }
  0x73   : > { %2196 = vmatpush1.bf16.msra.mxu1 %v10590_v60  ;;  %v10670_v60 = vld [vmem:[%s12313_s27 + $0x9b0] ss:$8 sps:$4 sm:$0xff]  }
  0x74   : > { %5883 = vmatpush1.bf16.msra.mxu0 %v10591_v61  ;;  %2197 = vmatprep.subr.bf16.mxu1 %v10592_v62  ;;  %v10673_v61 = vld [vmem:[%s12313_s27 + $0x11b0] ss:$8 sps:$4 sm:$0xff]   ;;  %v10678_v62 = vld [vmem:[%s12313_s27 + $0x9c4] ss:$8 sps:$4 sm:$0xff]  }
  0x75   : > { %5884 = vmatprep.subr.bf16.mxu0 %v10594_v63  ;;  %v10681_v63 = vld [vmem:[%s12313_s27 + $0x11c4] ss:$8 sps:$4 sm:$0xff]  }
  0x77   : > { %2198 = vmatpush1.bf16.msra.mxu1 %v10596_v0  ;;  %v10676_v0 = vld [vmem:[%s12313_s27 + $0x9c0] ss:$8 sps:$4 sm:$0xff]  }
  0x78   : > { %5885 = vmatpush1.bf16.msra.mxu0 %v10597_v1  ;;  %2199 = vmatprep.subr.bf16.mxu1 %v10598_v2  ;;  %v10679_v1 = vld [vmem:[%s12313_s27 + $0x11c0] ss:$8 sps:$4 sm:$0xff]   ;;  %v10684_v2 = vld [vmem:[%s12313_s27 + $0x9d4] ss:$8 sps:$4 sm:$0xff]  }
  0x79   : > { %5886 = vmatprep.subr.bf16.mxu0 %v10600_v3  ;;  %v10687_v3 = vld [vmem:[%s12313_s27 + $0x11d4] ss:$8 sps:$4 sm:$0xff]  }
  0x7b   : > { %2200 = vmatpush1.bf16.msra.mxu1 %v10602_v4  ;;  %v10682_v4 = vld [vmem:[%s12313_s27 + $0x9d0] ss:$8 sps:$4 sm:$0xff]  }
  0x7c   : > { %5887 = vmatpush1.bf16.msra.mxu0 %v10603_v5  ;;  %2212 = vmatprep.subr.bf16.mxu1 %v10606_v6  ;;  %v10685_v5 = vld [vmem:[%s12313_s27 + $0x11d0] ss:$8 sps:$4 sm:$0xff]   ;;  %v10690_v6 = vld [vmem:[%s12313_s27 + $0x9e4] ss:$8 sps:$4 sm:$0xff]  }
  0x7d   : > { %5899 = vmatprep.subr.bf16.mxu0 %v10609_v7  ;;  %v10693_v7 = vld [vmem:[%s12313_s27 + $0x11e4] ss:$8 sps:$4 sm:$0xff]  }
  0x7e   : > { %2202 = vmatmul.mubr.bf16.vlgmr.msra.gmra.mrb[0].mxu1 %v8657_v8  ;;  %v10688_v8 = vld [vmem:[%s12313_s27 + $0x9e0] ss:$8 sps:$4 sm:$0xff]  }
  0x7f   : > { %5889 = vmatmul.mubr.bf16.vlgmr.msra.gmra.mrb[0].mxu0 %v9474_v10  ;;  %2213 = vmatpush1.bf16.msra.mxu1 %v10604_v9  ;;  %v10691_v9 = vld [vmem:[%s12313_s27 + $0x11e0] ss:$8 sps:$4 sm:$0xff]   ;;  %v10696_v10 = vld [vmem:[%s12313_s27 + $0x9f4] ss:$8 sps:$4 sm:$0xff]  }
  0x80   : > { %5900 = vmatpush1.bf16.msra.mxu0 %v10607_v11  ;;  %2214 = vmatprep.subr.bf16.mxu1 %v10612_v12  ;;  %v10699_v11 = vld [vmem:[%s12313_s27 + $0x11f4] ss:$8 sps:$4 sm:$0xff]   ;;  %v10694_v12 = vld [vmem:[%s12313_s27 + $0x9f0] ss:$8 sps:$4 sm:$0xff]  }
  0x81   : > { %5901 = vmatprep.subr.bf16.mxu0 %v10615_v13  ;;  %2244 = vmatprep.mubr.bf16.mxu1 %v8660_v40  ;;  %v10697_v13 = vld [vmem:[%s12313_s27 + $0x11f0] ss:$8 sps:$4 sm:$0xff]   ;;  %v10724_v40 = vld [vmem:[%s12313_s27 + $0xa40] ss:$8 sps:$4 sm:$0xff]  }
  0x82   : > { %5931 = vmatprep.mubr.bf16.mxu0 %v9477_v43  ;;  %v10735_v43 = vld [vmem:[%s12313_s27 + $0x1254] ss:$8 sps:$4 sm:$0xff]  }
  0x83   : > { %2215 = vmatpush1.bf16.msra.mxu1 %v10610_v14  ;;  %v10702_v14 = vld [vmem:[%s12313_s27 + $0xa04] ss:$8 sps:$4 sm:$0xff]  }
  0x84   : > { %5902 = vmatpush1.bf16.msra.mxu0 %v10613_v15  ;;  %2216 = vmatprep.subr.bf16.mxu1 %v10618_v16  ;;  %v10705_v15 = vld [vmem:[%s12313_s27 + $0x1204] ss:$8 sps:$4 sm:$0xff]   ;;  %v8659_v16 = vcombine.low %v12428_v36, %v12431_v37  ;;  %v10718_v36 = vld [vmem:[%s12313_s27 + $0xa30] ss:$8 sps:$4 sm:$0xff]  }
  0x85   : > { %5903 = vmatprep.subr.bf16.mxu0 %v10621_v17  ;;  %v10700_v17 = vld [vmem:[%s12313_s27 + $0xa00] ss:$8 sps:$4 sm:$0xff]   ;;  %v10721_v37 = vld [vmem:[%s12313_s27 + $0x1230] ss:$8 sps:$4 sm:$0xff]  }
  0x87   : > { %2217 = vmatpush1.bf16.msra.mxu1 %v10616_v18  ;;  %v9476_v18 = vcombine.low %v12438_v41, %v12441_v42  ;;  %v10727_v41 = vld [vmem:[%s12313_s27 + $0x1240] ss:$8 sps:$4 sm:$0xff]   ;;  %v10732_v42 = vld [vmem:[%s12313_s27 + $0xa54] ss:$8 sps:$4 sm:$0xff]  }
  0x88   : > { %5904 = vmatpush1.bf16.msra.mxu0 %v10619_v19  ;;  %2218 = vmatprep.subr.bf16.mxu1 %v10624_v20  ;;  %v10703_v19 = vld [vmem:[%s12313_s27 + $0x1200] ss:$8 sps:$4 sm:$0xff]   ;;  %v10708_v20 = vld [vmem:[%s12313_s27 + $0xa14] ss:$8 sps:$4 sm:$0xff]  }
  0x89   : > { %5905 = vmatprep.subr.bf16.mxu0 %v10627_v21  ;;  %v10711_v21 = vld [vmem:[%s12313_s27 + $0x1214] ss:$8 sps:$4 sm:$0xff]  }
  0x8b   : > { %2219 = vmatpush1.bf16.msra.mxu1 %v10622_v22  ;;  %v10706_v22 = vld [vmem:[%s12313_s27 + $0xa10] ss:$8 sps:$4 sm:$0xff]  }
  0x8c   : > { %5906 = vmatpush1.bf16.msra.mxu0 %v10625_v23  ;;  %2220 = vmatprep.subr.bf16.mxu1 %v10630_v24  ;;  %v10709_v23 = vld [vmem:[%s12313_s27 + $0x1210] ss:$8 sps:$4 sm:$0xff]  }
  0x8d   : > { %5907 = vmatprep.subr.bf16.mxu0 %v10633_v25  ;;  %v12492_v24 = vld [vmem:[%s12373_s30 + $0x90] sm:$0xff] }
  0x8e   : > { %v12495_v25 = vld [vmem:[%s12373_s30 + $0xd0] sm:$0xff] }
  0x8f   : > { %2221 = vmatpush1.bf16.msra.mxu1 %v10628_v26  ;;  %v10714_v26 = vld [vmem:[%s12313_s27 + $0xa24] ss:$8 sps:$4 sm:$0xff]  }
  0x90   : > { %5908 = vmatpush1.bf16.msra.mxu0 %v10631_v27  ;;  %2222 = vmatprep.subr.bf16.mxu1 %v10636_v28  ;;  %v10717_v27 = vld [vmem:[%s12313_s27 + $0x1224] ss:$8 sps:$4 sm:$0xff]   ;;  %v8662_v28 = vcombine.high %v12492_v24, %v12495_v25 }
  0x91   : > { %5909 = vmatprep.subr.bf16.mxu0 %v10639_v29  ;;  %v12502_v29 = vld [vmem:[%s12373_s30 + $0x190] sm:$0xff] }
  0x93   : > { %2223 = vmatpush1.bf16.msra.mxu1 %v10634_v30  ;;  %v12505_v30 = vld [vmem:[%s12373_s30 + $0x1d0] sm:$0xff] }
  0x94   : > { %5910 = vmatpush1.bf16.msra.mxu0 %v10637_v31  ;;  %2224 = vmatprep.subr.bf16.mxu1 %v10642_v32  ;;  %v9479_v31 = vcombine.high %v12502_v29, %v12505_v30  ;;  %v10712_v32 = vld [vmem:[%s12313_s27 + $0xa20] ss:$8 sps:$4 sm:$0xff]  }
  0x95   : > { %5911 = vmatprep.subr.bf16.mxu0 %v10645_v33  ;;  %v10715_v33 = vld [vmem:[%s12313_s27 + $0x1220] ss:$8 sps:$4 sm:$0xff]  }
  0x97   : > { %2225 = vmatpush1.bf16.msra.mxu1 %v10640_v34  ;;  %v10720_v34 = vld [vmem:[%s12313_s27 + $0xa34] ss:$8 sps:$4 sm:$0xff]  }
  0x98   : > { %5912 = vmatpush1.bf16.msra.mxu0 %v10643_v35  ;;  %2226 = vmatprep.subr.bf16.mxu1 %v10648_v38  ;;  %v10723_v35 = vld [vmem:[%s12313_s27 + $0x1234] ss:$8 sps:$4 sm:$0xff]   ;;  %v10726_v38 = vld [vmem:[%s12313_s27 + $0xa44] ss:$8 sps:$4 sm:$0xff]  }
  0x99   : > { %5913 = vmatprep.subr.bf16.mxu0 %v10651_v39  ;;  %v10729_v39 = vld [vmem:[%s12313_s27 + $0x1244] ss:$8 sps:$4 sm:$0xff]  }
  0x9b   : > { %2227 = vmatpush1.bf16.msra.mxu1 %v10646_v44  ;;  %v10730_v44 = vld [vmem:[%s12313_s27 + $0xa50] ss:$8 sps:$4 sm:$0xff]  }
  0x9c   : > { %5914 = vmatpush1.bf16.msra.mxu0 %v10649_v45  ;;  %2228 = vmatprep.subr.bf16.mxu1 %v10654_v46  ;;  %v10733_v45 = vld [vmem:[%s12313_s27 + $0x1250] ss:$8 sps:$4 sm:$0xff]   ;;  %v10738_v46 = vld [vmem:[%s12313_s27 + $0xa64] ss:$8 sps:$4 sm:$0xff]  }
  0x9d   : > { %5915 = vmatprep.subr.bf16.mxu0 %v10657_v47  ;;  %v10741_v47 = vld [vmem:[%s12313_s27 + $0x1264] ss:$8 sps:$4 sm:$0xff]  }
  0x9f   : > { %2229 = vmatpush1.bf16.msra.mxu1 %v10652_v48  ;;  %v10736_v48 = vld [vmem:[%s12313_s27 + $0xa60] ss:$8 sps:$4 sm:$0xff]  }
  0xa0   : > { %5916 = vmatpush1.bf16.msra.mxu0 %v10655_v49  ;;  %2230 = vmatprep.subr.bf16.mxu1 %v10660_v50  ;;  %v10739_v49 = vld [vmem:[%s12313_s27 + $0x1260] ss:$8 sps:$4 sm:$0xff]   ;;  %v10744_v50 = vld [vmem:[%s12313_s27 + $0xa74] ss:$8 sps:$4 sm:$0xff]  }
  0xa1   : > { %5917 = vmatprep.subr.bf16.mxu0 %v10663_v51  ;;  %v10747_v51 = vld [vmem:[%s12313_s27 + $0x1274] ss:$8 sps:$4 sm:$0xff]  }
  0xa3   : > { %2231 = vmatpush1.bf16.msra.mxu1 %v10658_v52  ;;  %v10742_v52 = vld [vmem:[%s12313_s27 + $0xa70] ss:$8 sps:$4 sm:$0xff]  }
  0xa4   : > { %5918 = vmatpush1.bf16.msra.mxu0 %v10661_v53  ;;  %2232 = vmatprep.subr.bf16.mxu1 %v10666_v54  ;;  %v10745_v53 = vld [vmem:[%s12313_s27 + $0x1270] ss:$8 sps:$4 sm:$0xff]   ;;  %v10750_v54 = vld [vmem:[%s12313_s27 + $0xa84] ss:$8 sps:$4 sm:$0xff]  }
  0xa5   : > { %5919 = vmatprep.subr.bf16.mxu0 %v10669_v55  ;;  %v10753_v55 = vld [vmem:[%s12313_s27 + $0x1284] ss:$8 sps:$4 sm:$0xff]  }
  0xa7   : > { %2233 = vmatpush1.bf16.msra.mxu1 %v10664_v56  ;;  %v10748_v56 = vld [vmem:[%s12313_s27 + $0xa80] ss:$8 sps:$4 sm:$0xff]  }
  0xa8   : > { %5920 = vmatpush1.bf16.msra.mxu0 %v10667_v57  ;;  %2234 = vmatprep.subr.bf16.mxu1 %v10672_v58  ;;  %v10751_v57 = vld [vmem:[%s12313_s27 + $0x1280] ss:$8 sps:$4 sm:$0xff]   ;;  %v10756_v58 = vld [vmem:[%s12313_s27 + $0xa94] ss:$8 sps:$4 sm:$0xff]  }
  0xa9   : > { %5921 = vmatprep.subr.bf16.mxu0 %v10675_v59  ;;  %v10759_v59 = vld [vmem:[%s12313_s27 + $0x1294] ss:$8 sps:$4 sm:$0xff]  }
  0xab   : > { %2235 = vmatpush1.bf16.msra.mxu1 %v10670_v60  ;;  %v10754_v60 = vld [vmem:[%s12313_s27 + $0xa90] ss:$8 sps:$4 sm:$0xff]  }
  0xac   : > { %5922 = vmatpush1.bf16.msra.mxu0 %v10673_v61  ;;  %2236 = vmatprep.subr.bf16.mxu1 %v10678_v62  ;;  %v10757_v61 = vld [vmem:[%s12313_s27 + $0x1290] ss:$8 sps:$4 sm:$0xff]   ;;  %v10762_v62 = vld [vmem:[%s12313_s27 + $0xaa4] ss:$8 sps:$4 sm:$0xff]  }
  0xad   : > { %5923 = vmatprep.subr.bf16.mxu0 %v10681_v63  ;;  %v10765_v63 = vld [vmem:[%s12313_s27 + $0x12a4] ss:$8 sps:$4 sm:$0xff]  }
  0xaf   : > { %2237 = vmatpush1.bf16.msra.mxu1 %v10676_v0  ;;  %v10760_v0 = vld [vmem:[%s12313_s27 + $0xaa0] ss:$8 sps:$4 sm:$0xff]  }
  0xb0   : > { %5924 = vmatpush1.bf16.msra.mxu0 %v10679_v1  ;;  %2238 = vmatprep.subr.bf16.mxu1 %v10684_v2  ;;  %v10763_v1 = vld [vmem:[%s12313_s27 + $0x12a0] ss:$8 sps:$4 sm:$0xff]   ;;  %v10768_v2 = vld [vmem:[%s12313_s27 + $0xab4] ss:$8 sps:$4 sm:$0xff]  }
  0xb1   : > { %5925 = vmatprep.subr.bf16.mxu0 %v10687_v3  ;;  %v10771_v3 = vld [vmem:[%s12313_s27 + $0x12b4] ss:$8 sps:$4 sm:$0xff]  }
  0xb3   : > { %2239 = vmatpush1.bf16.msra.mxu1 %v10682_v4  ;;  %v10766_v4 = vld [vmem:[%s12313_s27 + $0xab0] ss:$8 sps:$4 sm:$0xff]  }
  0xb4   : > { %5926 = vmatpush1.bf16.msra.mxu0 %v10685_v5  ;;  %2240 = vmatprep.subr.bf16.mxu1 %v10690_v6  ;;  %v10769_v5 = vld [vmem:[%s12313_s27 + $0x12b0] ss:$8 sps:$4 sm:$0xff]   ;;  %v10774_v6 = vld [vmem:[%s12313_s27 + $0xac4] ss:$8 sps:$4 sm:$0xff]  }
  0xb5   : > { %5927 = vmatprep.subr.bf16.mxu0 %v10693_v7  ;;  %v10777_v7 = vld [vmem:[%s12313_s27 + $0x12c4] ss:$8 sps:$4 sm:$0xff]  }
  0xb7   : > { %2241 = vmatpush1.bf16.msra.mxu1 %v10688_v8  ;;  %v10772_v8 = vld [vmem:[%s12313_s27 + $0xac0] ss:$8 sps:$4 sm:$0xff]  }
  0xb8   : > { %5928 = vmatpush1.bf16.msra.mxu0 %v10691_v9  ;;  %2242 = vmatprep.subr.bf16.mxu1 %v10696_v10  ;;  %v10775_v9 = vld [vmem:[%s12313_s27 + $0x12c0] ss:$8 sps:$4 sm:$0xff]   ;;  %v10780_v10 = vld [vmem:[%s12313_s27 + $0xad4] ss:$8 sps:$4 sm:$0xff]  }
  0xb9   : > { %5929 = vmatprep.subr.bf16.mxu0 %v10699_v11  ;;  %v10783_v11 = vld [vmem:[%s12313_s27 + $0x12d4] ss:$8 sps:$4 sm:$0xff]  }
  0xbb   : > { %2243 = vmatpush1.bf16.msra.mxu1 %v10694_v12  ;;  %v10778_v12 = vld [vmem:[%s12313_s27 + $0xad0] ss:$8 sps:$4 sm:$0xff]  }
  0xbc   : > { %5930 = vmatpush1.bf16.msra.mxu0 %v10697_v13  ;;  %2255 = vmatprep.subr.bf16.mxu1 %v10702_v14  ;;  %v10781_v13 = vld [vmem:[%s12313_s27 + $0x12d0] ss:$8 sps:$4 sm:$0xff]   ;;  %v10786_v14 = vld [vmem:[%s12313_s27 + $0xae4] ss:$8 sps:$4 sm:$0xff]  }
  0xbd   : > { %5942 = vmatprep.subr.bf16.mxu0 %v10705_v15  ;;  %v10789_v15 = vld [vmem:[%s12313_s27 + $0x12e4] ss:$8 sps:$4 sm:$0xff]  }
  0xbe   : > { %2245 = vmatmul.mubr.bf16.vlgmr.msra.gmra.mrb[0].mxu1 %v8659_v16  ;;  %v10784_v16 = vld [vmem:[%s12313_s27 + $0xae0] ss:$8 sps:$4 sm:$0xff]  }
  0xbf   : > { %5932 = vmatmul.mubr.bf16.vlgmr.msra.gmra.mrb[0].mxu0 %v9476_v18  ;;  %2256 = vmatpush1.bf16.msra.mxu1 %v10700_v17  ;;  %v10787_v17 = vld [vmem:[%s12313_s27 + $0x12e0] ss:$8 sps:$4 sm:$0xff]   ;;  %v10792_v18 = vld [vmem:[%s12313_s27 + $0xaf4] ss:$8 sps:$4 sm:$0xff]  }
  0xc0   : > { %5943 = vmatpush1.bf16.msra.mxu0 %v10703_v19  ;;  %2257 = vmatprep.subr.bf16.mxu1 %v10708_v20  ;;  %v10795_v19 = vld [vmem:[%s12313_s27 + $0x12f4] ss:$8 sps:$4 sm:$0xff]   ;;  %v10790_v20 = vld [vmem:[%s12313_s27 + $0xaf0] ss:$8 sps:$4 sm:$0xff]  }
  0xc1   : > { %5944 = vmatprep.subr.bf16.mxu0 %v10711_v21  ;;  %2287 = vmatprep.mubr.bf16.mxu1 %v8662_v28  ;;  %v10793_v21 = vld [vmem:[%s12313_s27 + $0x12f0] ss:$8 sps:$4 sm:$0xff]  }
  0xc2   : > { %5974 = vmatprep.mubr.bf16.mxu0 %v9479_v31  ;;  %v12568_v28 = vld [vmem:[%s12373_s30 + $0x98] sm:$0xff] }
  0xc3   : > { %2258 = vmatpush1.bf16.msra.mxu1 %v10706_v22  ;;  %v10798_v22 = vld [vmem:[%s12313_s27 + $0xb04] ss:$8 sps:$4 sm:$0xff]   ;;  %v12571_v31 = vld [vmem:[%s12373_s30 + $0xd8] sm:$0xff] }
  0xc4   : > { %5945 = vmatpush1.bf16.msra.mxu0 %v10709_v23  ;;  %2259 = vmatprep.subr.bf16.mxu1 %v10714_v26  ;;  %v10801_v23 = vld [vmem:[%s12313_s27 + $0x1304] ss:$8 sps:$4 sm:$0xff]   ;;  %v10796_v26 = vld [vmem:[%s12313_s27 + $0xb00] ss:$8 sps:$4 sm:$0xff]  }
  0xc5   : > { %5946 = vmatprep.subr.bf16.mxu0 %v10717_v27  ;;  %v10799_v27 = vld [vmem:[%s12313_s27 + $0x1300] ss:$8 sps:$4 sm:$0xff]  }
  0xc7   : > { %2260 = vmatpush1.bf16.msra.mxu1 %v10712_v32  ;;  %v8661_v32 = vcombine.low %v12492_v24, %v12495_v25  ;;  %v8664_v24 = vcombine.high %v12568_v28, %v12571_v31 }
  0xc8   : > { %5947 = vmatpush1.bf16.msra.mxu0 %v10715_v33  ;;  %2261 = vmatprep.subr.bf16.mxu1 %v10720_v34  ;;  %v9478_v33 = vcombine.low %v12502_v29, %v12505_v30  ;;  %v12578_v34 = vld [vmem:[%s12373_s30 + $0x198] sm:$0xff] }
  0xc9   : > { %5948 = vmatprep.subr.bf16.mxu0 %v10723_v35  ;;  %v12581_v35 = vld [vmem:[%s12373_s30 + $0x1d8] sm:$0xff] }
  0xca   : > { %v9481_v25 = vcombine.high %v12578_v34, %v12581_v35  ;;  %v10802_v29 = vld [vmem:[%s12313_s27 + $0xb10] ss:$8 sps:$4 sm:$0xff]  }
  0xcb   : > { %2262 = vmatpush1.bf16.msra.mxu1 %v10718_v36  ;;  %v10804_v36 = vld [vmem:[%s12313_s27 + $0xb14] ss:$8 sps:$4 sm:$0xff]   ;;  %v10805_v30 = vld [vmem:[%s12313_s27 + $0x1310] ss:$8 sps:$4 sm:$0xff]  }
  0xcc   : > { %5949 = vmatpush1.bf16.msra.mxu0 %v10721_v37  ;;  %2263 = vmatprep.subr.bf16.mxu1 %v10726_v38  ;;  %v10807_v37 = vld [vmem:[%s12313_s27 + $0x1314] ss:$8 sps:$4 sm:$0xff]   ;;  %v10810_v38 = vld [vmem:[%s12313_s27 + $0xb24] ss:$8 sps:$4 sm:$0xff]  }
  0xcd   : > { %5950 = vmatprep.subr.bf16.mxu0 %v10729_v39  ;;  %v10813_v39 = vld [vmem:[%s12313_s27 + $0x1324] ss:$8 sps:$4 sm:$0xff]  }
  0xcf   : > { %2264 = vmatpush1.bf16.msra.mxu1 %v10724_v40  ;;  %v10808_v40 = vld [vmem:[%s12313_s27 + $0xb20] ss:$8 sps:$4 sm:$0xff]  }
  0xd0   : > { %5951 = vmatpush1.bf16.msra.mxu0 %v10727_v41  ;;  %2265 = vmatprep.subr.bf16.mxu1 %v10732_v42  ;;  %v10811_v41 = vld [vmem:[%s12313_s27 + $0x1320] ss:$8 sps:$4 sm:$0xff]   ;;  %v10816_v42 = vld [vmem:[%s12313_s27 + $0xb34] ss:$8 sps:$4 sm:$0xff]  }
  0xd1   : > { %5952 = vmatprep.subr.bf16.mxu0 %v10735_v43  ;;  %v10819_v43 = vld [vmem:[%s12313_s27 + $0x1334] ss:$8 sps:$4 sm:$0xff]  }
  0xd3   : > { %2266 = vmatpush1.bf16.msra.mxu1 %v10730_v44  ;;  %v10814_v44 = vld [vmem:[%s12313_s27 + $0xb30] ss:$8 sps:$4 sm:$0xff]  }
  0xd4   : > { %5953 = vmatpush1.bf16.msra.mxu0 %v10733_v45  ;;  %2267 = vmatprep.subr.bf16.mxu1 %v10738_v46  ;;  %v10817_v45 = vld [vmem:[%s12313_s27 + $0x1330] ss:$8 sps:$4 sm:$0xff]   ;;  %v10822_v46 = vld [vmem:[%s12313_s27 + $0xb44] ss:$8 sps:$4 sm:$0xff]  }
  0xd5   : > { %5954 = vmatprep.subr.bf16.mxu0 %v10741_v47  ;;  %v10825_v47 = vld [vmem:[%s12313_s27 + $0x1344] ss:$8 sps:$4 sm:$0xff]  }
  0xd7   : > { %2268 = vmatpush1.bf16.msra.mxu1 %v10736_v48  ;;  %v10820_v48 = vld [vmem:[%s12313_s27 + $0xb40] ss:$8 sps:$4 sm:$0xff]  }
  0xd8   : > { %5955 = vmatpush1.bf16.msra.mxu0 %v10739_v49  ;;  %2269 = vmatprep.subr.bf16.mxu1 %v10744_v50  ;;  %v10823_v49 = vld [vmem:[%s12313_s27 + $0x1340] ss:$8 sps:$4 sm:$0xff]   ;;  %v10828_v50 = vld [vmem:[%s12313_s27 + $0xb54] ss:$8 sps:$4 sm:$0xff]  }
  0xd9   : > { %5956 = vmatprep.subr.bf16.mxu0 %v10747_v51  ;;  %v10831_v51 = vld [vmem:[%s12313_s27 + $0x1354] ss:$8 sps:$4 sm:$0xff]  }
  0xdb   : > { %2270 = vmatpush1.bf16.msra.mxu1 %v10742_v52  ;;  %v10826_v52 = vld [vmem:[%s12313_s27 + $0xb50] ss:$8 sps:$4 sm:$0xff]  }
  0xdc   : > { %5957 = vmatpush1.bf16.msra.mxu0 %v10745_v53  ;;  %2271 = vmatprep.subr.bf16.mxu1 %v10750_v54  ;;  %v10829_v53 = vld [vmem:[%s12313_s27 + $0x1350] ss:$8 sps:$4 sm:$0xff]   ;;  %v10834_v54 = vld [vmem:[%s12313_s27 + $0xb64] ss:$8 sps:$4 sm:$0xff]  }
  0xdd   : > { %5958 = vmatprep.subr.bf16.mxu0 %v10753_v55  ;;  %v10837_v55 = vld [vmem:[%s12313_s27 + $0x1364] ss:$8 sps:$4 sm:$0xff]  }
  0xdf   : > { %2272 = vmatpush1.bf16.msra.mxu1 %v10748_v56  ;;  %v10832_v56 = vld [vmem:[%s12313_s27 + $0xb60] ss:$8 sps:$4 sm:$0xff]  }
  0xe0   : > { %5959 = vmatpush1.bf16.msra.mxu0 %v10751_v57  ;;  %2273 = vmatprep.subr.bf16.mxu1 %v10756_v58  ;;  %v10835_v57 = vld [vmem:[%s12313_s27 + $0x1360] ss:$8 sps:$4 sm:$0xff]   ;;  %v10840_v58 = vld [vmem:[%s12313_s27 + $0xb74] ss:$8 sps:$4 sm:$0xff]  }
  0xe1   : > { %5960 = vmatprep.subr.bf16.mxu0 %v10759_v59  ;;  %v10843_v59 = vld [vmem:[%s12313_s27 + $0x1374] ss:$8 sps:$4 sm:$0xff]  }
  0xe3   : > { %2274 = vmatpush1.bf16.msra.mxu1 %v10754_v60  ;;  %v10838_v60 = vld [vmem:[%s12313_s27 + $0xb70] ss:$8 sps:$4 sm:$0xff]  }
  0xe4   : > { %5961 = vmatpush1.bf16.msra.mxu0 %v10757_v61  ;;  %2275 = vmatprep.subr.bf16.mxu1 %v10762_v62  ;;  %v10841_v61 = vld [vmem:[%s12313_s27 + $0x1370] ss:$8 sps:$4 sm:$0xff]   ;;  %v10846_v62 = vld [vmem:[%s12313_s27 + $0xb84] ss:$8 sps:$4 sm:$0xff]  }
  0xe5   : > { %5962 = vmatprep.subr.bf16.mxu0 %v10765_v63  ;;  %v10849_v63 = vld [vmem:[%s12313_s27 + $0x1384] ss:$8 sps:$4 sm:$0xff]  }
  0xe7   : > { %2276 = vmatpush1.bf16.msra.mxu1 %v10760_v0  ;;  %v10844_v0 = vld [vmem:[%s12313_s27 + $0xb80] ss:$8 sps:$4 sm:$0xff]  }
  0xe8   : > { %5963 = vmatpush1.bf16.msra.mxu0 %v10763_v1  ;;  %2277 = vmatprep.subr.bf16.mxu1 %v10768_v2  ;;  %v10847_v1 = vld [vmem:[%s12313_s27 + $0x1380] ss:$8 sps:$4 sm:$0xff]   ;;  %v10852_v2 = vld [vmem:[%s12313_s27 + $0xb94] ss:$8 sps:$4 sm:$0xff]  }
  0xe9   : > { %5964 = vmatprep.subr.bf16.mxu0 %v10771_v3  ;;  %v10855_v3 = vld [vmem:[%s12313_s27 + $0x1394] ss:$8 sps:$4 sm:$0xff]  }
  0xeb   : > { %2278 = vmatpush1.bf16.msra.mxu1 %v10766_v4  ;;  %v10850_v4 = vld [vmem:[%s12313_s27 + $0xb90] ss:$8 sps:$4 sm:$0xff]  }
  0xec   : > { %5965 = vmatpush1.bf16.msra.mxu0 %v10769_v5  ;;  %2279 = vmatprep.subr.bf16.mxu1 %v10774_v6  ;;  %v10853_v5 = vld [vmem:[%s12313_s27 + $0x1390] ss:$8 sps:$4 sm:$0xff]   ;;  %v10858_v6 = vld [vmem:[%s12313_s27 + $0xba4] ss:$8 sps:$4 sm:$0xff]  }
  0xed   : > { %5966 = vmatprep.subr.bf16.mxu0 %v10777_v7  ;;  %v10861_v7 = vld [vmem:[%s12313_s27 + $0x13a4] ss:$8 sps:$4 sm:$0xff]  }
  0xef   : > { %2280 = vmatpush1.bf16.msra.mxu1 %v10772_v8  ;;  %v10856_v8 = vld [vmem:[%s12313_s27 + $0xba0] ss:$8 sps:$4 sm:$0xff]  }
  0xf0   : > { %5967 = vmatpush1.bf16.msra.mxu0 %v10775_v9  ;;  %2281 = vmatprep.subr.bf16.mxu1 %v10780_v10  ;;  %v10859_v9 = vld [vmem:[%s12313_s27 + $0x13a0] ss:$8 sps:$4 sm:$0xff]   ;;  %v10864_v10 = vld [vmem:[%s12313_s27 + $0xbb4] ss:$8 sps:$4 sm:$0xff]  }
  0xf1   : > { %5968 = vmatprep.subr.bf16.mxu0 %v10783_v11  ;;  %v10867_v11 = vld [vmem:[%s12313_s27 + $0x13b4] ss:$8 sps:$4 sm:$0xff]  }
  0xf3   : > { %2282 = vmatpush1.bf16.msra.mxu1 %v10778_v12  ;;  %v10862_v12 = vld [vmem:[%s12313_s27 + $0xbb0] ss:$8 sps:$4 sm:$0xff]  }
  0xf4   : > { %5969 = vmatpush1.bf16.msra.mxu0 %v10781_v13  ;;  %2283 = vmatprep.subr.bf16.mxu1 %v10786_v14  ;;  %v10865_v13 = vld [vmem:[%s12313_s27 + $0x13b0] ss:$8 sps:$4 sm:$0xff]   ;;  %v10870_v14 = vld [vmem:[%s12313_s27 + $0xbc4] ss:$8 sps:$4 sm:$0xff]  }
  0xf5   : > { %5970 = vmatprep.subr.bf16.mxu0 %v10789_v15  ;;  %v10873_v15 = vld [vmem:[%s12313_s27 + $0x13c4] ss:$8 sps:$4 sm:$0xff]  }
  0xf7   : > { %2284 = vmatpush1.bf16.msra.mxu1 %v10784_v16  ;;  %v10868_v16 = vld [vmem:[%s12313_s27 + $0xbc0] ss:$8 sps:$4 sm:$0xff]  }
  0xf8   : > { %5971 = vmatpush1.bf16.msra.mxu0 %v10787_v17  ;;  %2285 = vmatprep.subr.bf16.mxu1 %v10792_v18  ;;  %v10871_v17 = vld [vmem:[%s12313_s27 + $0x13c0] ss:$8 sps:$4 sm:$0xff]   ;;  %v10876_v18 = vld [vmem:[%s12313_s27 + $0xbd4] ss:$8 sps:$4 sm:$0xff]  }
  0xf9   : > { %5972 = vmatprep.subr.bf16.mxu0 %v10795_v19  ;;  %v10879_v19 = vld [vmem:[%s12313_s27 + $0x13d4] ss:$8 sps:$4 sm:$0xff]  }
  0xfb   : > { %2286 = vmatpush1.bf16.msra.mxu1 %v10790_v20  ;;  %v10874_v20 = vld [vmem:[%s12313_s27 + $0xbd0] ss:$8 sps:$4 sm:$0xff]  }
  0xfc   : > { %5973 = vmatpush1.bf16.msra.mxu0 %v10793_v21  ;;  %2298 = vmatprep.subr.bf16.mxu1 %v10798_v22  ;;  %v10877_v21 = vld [vmem:[%s12313_s27 + $0x13d0] ss:$8 sps:$4 sm:$0xff]   ;;  %v10882_v22 = vld [vmem:[%s12313_s27 + $0xbe4] ss:$8 sps:$4 sm:$0xff]  }
  0xfd   : > { %5985 = vmatprep.subr.bf16.mxu0 %v10801_v23  ;;  %v10885_v23 = vld [vmem:[%s12313_s27 + $0x13e4] ss:$8 sps:$4 sm:$0xff]  }
  0xfe   : > { %2288 = vmatmul.mubr.bf16.vlgmr.msra.gmra.mrb[0].mxu1 %v8661_v32  ;;  %v10888_v32 = vld [vmem:[%s12313_s27 + $0xbf4] ss:$8 sps:$4 sm:$0xff]  }
  0xff   : > { %5975 = vmatmul.mubr.bf16.vlgmr.msra.gmra.mrb[0].mxu0 %v9478_v33  ;;  %2299 = vmatpush1.bf16.msra.mxu1 %v10796_v26  ;;  %v10880_v26 = vld [vmem:[%s12313_s27 + $0xbe0] ss:$8 sps:$4 sm:$0xff]   ;;  %v10891_v33 = vld [vmem:[%s12313_s27 + $0x13f4] ss:$8 sps:$4 sm:$0xff]  }
 0x100   : > { %5986 = vmatpush1.bf16.msra.mxu0 %v10799_v27  ;;  %2300 = vmatprep.subr.bf16.mxu1 %v10804_v36  ;;  %v10883_v27 = vld [vmem:[%s12313_s27 + $0x13e0] ss:$8 sps:$4 sm:$0xff]   ;;  %v10886_v36 = vld [vmem:[%s12313_s27 + $0xbf0] ss:$8 sps:$4 sm:$0xff]  }
 0x101   : > { %5987 = vmatprep.subr.bf16.mxu0 %v10807_v37  ;;  %2330 = vmatprep.mubr.bf16.mxu1 %v8664_v24  ;;  %v10889_v37 = vld [vmem:[%s12313_s27 + $0x13f0] ss:$8 sps:$4 sm:$0xff]   ;;  %v10894_v24 = vld [vmem:[%s12313_s27 + $0xc04] ss:$8 sps:$4 sm:$0xff]  }
 0x102   : > { %6017 = vmatprep.mubr.bf16.mxu0 %v9481_v25  ;;  %v10897_v25 = vld [vmem:[%s12313_s27 + $0x1404] ss:$8 sps:$4 sm:$0xff]  }
 0x103   : > { %2301 = vmatpush1.bf16.msra.mxu1 %v10802_v29  ;;  %v10892_v29 = vld [vmem:[%s12313_s27 + $0xc00] ss:$8 sps:$4 sm:$0xff]  }
 0x104   : > { %5988 = vmatpush1.bf16.msra.mxu0 %v10805_v30  ;;  %2302 = vmatprep.subr.bf16.mxu1 %v10810_v38  ;;  %v10895_v30 = vld [vmem:[%s12313_s27 + $0x1400] ss:$8 sps:$4 sm:$0xff]  }
 0x105   : > { %5989 = vmatprep.subr.bf16.mxu0 %v10813_v39  ;;  %v12652_v38 = vld [vmem:[%s12373_s30 + $0xa0] sm:$0xff] }
 0x106   : > { %v12655_v39 = vld [vmem:[%s12373_s30 + $0xe0] sm:$0xff] }
 0x107   : > { %2303 = vmatpush1.bf16.msra.mxu1 %v10808_v40  ;;  %v8663_v40 = vcombine.low %v12568_v28, %v12571_v31  ;;  %v10898_v31 = vld [vmem:[%s12313_s27 + $0xc10] ss:$8 sps:$4 sm:$0xff]  }
 0x108   : > { %5990 = vmatpush1.bf16.msra.mxu0 %v10811_v41  ;;  %2304 = vmatprep.subr.bf16.mxu1 %v10816_v42  ;;  %v9480_v41 = vcombine.low %v12578_v34, %v12581_v35  ;;  %v12662_v42 = vld [vmem:[%s12373_s30 + $0x1a0] sm:$0xff]  ;;  %v10901_v34 = vld [vmem:[%s12313_s27 + $0x1410] ss:$8 sps:$4 sm:$0xff]  }
 0x109   : > { %5991 = vmatprep.subr.bf16.mxu0 %v10819_v43  ;;  %v12665_v43 = vld [vmem:[%s12373_s30 + $0x1e0] sm:$0xff] }
 0x10a   : > { %v9483_v28 = vcombine.high %v12662_v42, %v12665_v43  ;;  %v10906_v35 = vld [vmem:[%s12313_s27 + $0xc24] ss:$8 sps:$4 sm:$0xff]  }
 0x10b   : > { %2305 = vmatpush1.bf16.msra.mxu1 %v10814_v44  ;;  %v10900_v44 = vld [vmem:[%s12313_s27 + $0xc14] ss:$8 sps:$4 sm:$0xff]  }
 0x10c   : > { %5992 = vmatpush1.bf16.msra.mxu0 %v10817_v45  ;;  %2306 = vmatprep.subr.bf16.mxu1 %v10822_v46  ;;  %v10903_v45 = vld [vmem:[%s12313_s27 + $0x1414] ss:$8 sps:$4 sm:$0xff]   ;;  %v8666_v46 = vcombine.high %v12652_v38, %v12655_v39 }
 0x10d   : > { %5993 = vmatprep.subr.bf16.mxu0 %v10825_v47  ;;  %v10909_v47 = vld [vmem:[%s12313_s27 + $0x1424] ss:$8 sps:$4 sm:$0xff]  }
 0x10f   : > { %2307 = vmatpush1.bf16.msra.mxu1 %v10820_v48  ;;  %v10904_v48 = vld [vmem:[%s12313_s27 + $0xc20] ss:$8 sps:$4 sm:$0xff]  }
 0x110   : > { %5994 = vmatpush1.bf16.msra.mxu0 %v10823_v49  ;;  %2308 = vmatprep.subr.bf16.mxu1 %v10828_v50  ;;  %v10907_v49 = vld [vmem:[%s12313_s27 + $0x1420] ss:$8 sps:$4 sm:$0xff]   ;;  %v10912_v50 = vld [vmem:[%s12313_s27 + $0xc34] ss:$8 sps:$4 sm:$0xff]  }
 0x111   : > { %5995 = vmatprep.subr.bf16.mxu0 %v10831_v51  ;;  %v10915_v51 = vld [vmem:[%s12313_s27 + $0x1434] ss:$8 sps:$4 sm:$0xff]  }
 0x113   : > { %2309 = vmatpush1.bf16.msra.mxu1 %v10826_v52  ;;  %v10910_v52 = vld [vmem:[%s12313_s27 + $0xc30] ss:$8 sps:$4 sm:$0xff]  }
 0x114   : > { %5996 = vmatpush1.bf16.msra.mxu0 %v10829_v53  ;;  %2310 = vmatprep.subr.bf16.mxu1 %v10834_v54  ;;  %v10913_v53 = vld [vmem:[%s12313_s27 + $0x1430] ss:$8 sps:$4 sm:$0xff]   ;;  %v10918_v54 = vld [vmem:[%s12313_s27 + $0xc44] ss:$8 sps:$4 sm:$0xff]  }
 0x115   : > { %5997 = vmatprep.subr.bf16.mxu0 %v10837_v55  ;;  %v10921_v55 = vld [vmem:[%s12313_s27 + $0x1444] ss:$8 sps:$4 sm:$0xff]  }
 0x117   : > { %2311 = vmatpush1.bf16.msra.mxu1 %v10832_v56  ;;  %v10916_v56 = vld [vmem:[%s12313_s27 + $0xc40] ss:$8 sps:$4 sm:$0xff]  }
 0x118   : > { %5998 = vmatpush1.bf16.msra.mxu0 %v10835_v57  ;;  %2312 = vmatprep.subr.bf16.mxu1 %v10840_v58  ;;  %v10919_v57 = vld [vmem:[%s12313_s27 + $0x1440] ss:$8 sps:$4 sm:$0xff]   ;;  %v10924_v58 = vld [vmem:[%s12313_s27 + $0xc54] ss:$8 sps:$4 sm:$0xff]  }
 0x119   : > { %5999 = vmatprep.subr.bf16.mxu0 %v10843_v59  ;;  %v10927_v59 = vld [vmem:[%s12313_s27 + $0x1454] ss:$8 sps:$4 sm:$0xff]  }
 0x11b   : > { %2313 = vmatpush1.bf16.msra.mxu1 %v10838_v60  ;;  %v10922_v60 = vld [vmem:[%s12313_s27 + $0xc50] ss:$8 sps:$4 sm:$0xff]  }
 0x11c   : > { %6000 = vmatpush1.bf16.msra.mxu0 %v10841_v61  ;;  %2314 = vmatprep.subr.bf16.mxu1 %v10846_v62  ;;  %v10925_v61 = vld [vmem:[%s12313_s27 + $0x1450] ss:$8 sps:$4 sm:$0xff]   ;;  %v10930_v62 = vld [vmem:[%s12313_s27 + $0xc64] ss:$8 sps:$4 sm:$0xff]  }
 0x11d   : > { %6001 = vmatprep.subr.bf16.mxu0 %v10849_v63  ;;  %v10933_v63 = vld [vmem:[%s12313_s27 + $0x1464] ss:$8 sps:$4 sm:$0xff]  }
 0x11f   : > { %2315 = vmatpush1.bf16.msra.mxu1 %v10844_v0  ;;  %v10928_v0 = vld [vmem:[%s12313_s27 + $0xc60] ss:$8 sps:$4 sm:$0xff]  }
 0x120   : > { %6002 = vmatpush1.bf16.msra.mxu0 %v10847_v1  ;;  %2316 = vmatprep.subr.bf16.mxu1 %v10852_v2  ;;  %v10931_v1 = vld [vmem:[%s12313_s27 + $0x1460] ss:$8 sps:$4 sm:$0xff]   ;;  %v10936_v2 = vld [vmem:[%s12313_s27 + $0xc74] ss:$8 sps:$4 sm:$0xff]  }
 0x121   : > { %6003 = vmatprep.subr.bf16.mxu0 %v10855_v3  ;;  %v10939_v3 = vld [vmem:[%s12313_s27 + $0x1474] ss:$8 sps:$4 sm:$0xff]  }
 0x123   : > { %2317 = vmatpush1.bf16.msra.mxu1 %v10850_v4  ;;  %v10934_v4 = vld [vmem:[%s12313_s27 + $0xc70] ss:$8 sps:$4 sm:$0xff]  }
 0x124   : > { %6004 = vmatpush1.bf16.msra.mxu0 %v10853_v5  ;;  %2318 = vmatprep.subr.bf16.mxu1 %v10858_v6  ;;  %v10937_v5 = vld [vmem:[%s12313_s27 + $0x1470] ss:$8 sps:$4 sm:$0xff]   ;;  %v10942_v6 = vld [vmem:[%s12313_s27 + $0xc84] ss:$8 sps:$4 sm:$0xff]  }
 0x125   : > { %6005 = vmatprep.subr.bf16.mxu0 %v10861_v7  ;;  %v10945_v7 = vld [vmem:[%s12313_s27 + $0x1484] ss:$8 sps:$4 sm:$0xff]  }
 0x127   : > { %2319 = vmatpush1.bf16.msra.mxu1 %v10856_v8  ;;  %v10940_v8 = vld [vmem:[%s12313_s27 + $0xc80] ss:$8 sps:$4 sm:$0xff]  }
 0x128   : > { %6006 = vmatpush1.bf16.msra.mxu0 %v10859_v9  ;;  %2320 = vmatprep.subr.bf16.mxu1 %v10864_v10  ;;  %v10943_v9 = vld [vmem:[%s12313_s27 + $0x1480] ss:$8 sps:$4 sm:$0xff]   ;;  %v10948_v10 = vld [vmem:[%s12313_s27 + $0xc94] ss:$8 sps:$4 sm:$0xff]  }
 0x129   : > { %6007 = vmatprep.subr.bf16.mxu0 %v10867_v11  ;;  %v10951_v11 = vld [vmem:[%s12313_s27 + $0x1494] ss:$8 sps:$4 sm:$0xff]  }
 0x12b   : > { %2321 = vmatpush1.bf16.msra.mxu1 %v10862_v12  ;;  %v10946_v12 = vld [vmem:[%s12313_s27 + $0xc90] ss:$8 sps:$4 sm:$0xff]  }
 0x12c   : > { %6008 = vmatpush1.bf16.msra.mxu0 %v10865_v13  ;;  %2322 = vmatprep.subr.bf16.mxu1 %v10870_v14  ;;  %v10949_v13 = vld [vmem:[%s12313_s27 + $0x1490] ss:$8 sps:$4 sm:$0xff]   ;;  %v10954_v14 = vld [vmem:[%s12313_s27 + $0xca4] ss:$8 sps:$4 sm:$0xff]  }
 0x12d   : > { %6009 = vmatprep.subr.bf16.mxu0 %v10873_v15  ;;  %v10957_v15 = vld [vmem:[%s12313_s27 + $0x14a4] ss:$8 sps:$4 sm:$0xff]  }
 0x12f   : > { %2323 = vmatpush1.bf16.msra.mxu1 %v10868_v16  ;;  %v10952_v16 = vld [vmem:[%s12313_s27 + $0xca0] ss:$8 sps:$4 sm:$0xff]  }
 0x130   : > { %6010 = vmatpush1.bf16.msra.mxu0 %v10871_v17  ;;  %2324 = vmatprep.subr.bf16.mxu1 %v10876_v18  ;;  %v10955_v17 = vld [vmem:[%s12313_s27 + $0x14a0] ss:$8 sps:$4 sm:$0xff]   ;;  %v10960_v18 = vld [vmem:[%s12313_s27 + $0xcb4] ss:$8 sps:$4 sm:$0xff]  }
 0x131   : > { %6011 = vmatprep.subr.bf16.mxu0 %v10879_v19  ;;  %v10963_v19 = vld [vmem:[%s12313_s27 + $0x14b4] ss:$8 sps:$4 sm:$0xff]  }
 0x133   : > { %2325 = vmatpush1.bf16.msra.mxu1 %v10874_v20  ;;  %v10958_v20 = vld [vmem:[%s12313_s27 + $0xcb0] ss:$8 sps:$4 sm:$0xff]  }
 0x134   : > { %6012 = vmatpush1.bf16.msra.mxu0 %v10877_v21  ;;  %2326 = vmatprep.subr.bf16.mxu1 %v10882_v22  ;;  %v10961_v21 = vld [vmem:[%s12313_s27 + $0x14b0] ss:$8 sps:$4 sm:$0xff]   ;;  %v10966_v22 = vld [vmem:[%s12313_s27 + $0xcc4] ss:$8 sps:$4 sm:$0xff]  }
 0x135   : > { %6013 = vmatprep.subr.bf16.mxu0 %v10885_v23  ;;  %v10969_v23 = vld [vmem:[%s12313_s27 + $0x14c4] ss:$8 sps:$4 sm:$0xff]  }
 0x137   : > { %2327 = vmatpush1.bf16.msra.mxu1 %v10880_v26  ;;  %v10964_v26 = vld [vmem:[%s12313_s27 + $0xcc0] ss:$8 sps:$4 sm:$0xff]  }
 0x138   : > { %6014 = vmatpush1.bf16.msra.mxu0 %v10883_v27  ;;  %2328 = vmatprep.subr.bf16.mxu1 %v10888_v32  ;;  %v10967_v27 = vld [vmem:[%s12313_s27 + $0x14c0] ss:$8 sps:$4 sm:$0xff]   ;;  %v10972_v32 = vld [vmem:[%s12313_s27 + $0xcd4] ss:$8 sps:$4 sm:$0xff]  }
 0x139   : > { %6015 = vmatprep.subr.bf16.mxu0 %v10891_v33  ;;  %v10975_v33 = vld [vmem:[%s12313_s27 + $0x14d4] ss:$8 sps:$4 sm:$0xff]  }
 0x13b   : > { %2329 = vmatpush1.bf16.msra.mxu1 %v10886_v36  ;;  %v10970_v36 = vld [vmem:[%s12313_s27 + $0xcd0] ss:$8 sps:$4 sm:$0xff]  }
 0x13c   : > { %6016 = vmatpush1.bf16.msra.mxu0 %v10889_v37  ;;  %2341 = vmatprep.subr.bf16.mxu1 %v10894_v24  ;;  %v10973_v37 = vld [vmem:[%s12313_s27 + $0x14d0] ss:$8 sps:$4 sm:$0xff]   ;;  %v10978_v24 = vld [vmem:[%s12313_s27 + $0xce4] ss:$8 sps:$4 sm:$0xff]  }
 0x13d   : > { %6028 = vmatprep.subr.bf16.mxu0 %v10897_v25  ;;  %v10981_v25 = vld [vmem:[%s12313_s27 + $0x14e4] ss:$8 sps:$4 sm:$0xff]  }
 0x13e   : > { %2331 = vmatmul.mubr.bf16.vlgmr.msra.gmra.mrb[0].mxu1 %v8663_v40  ;;  %v10984_v40 = vld [vmem:[%s12313_s27 + $0xcf4] ss:$8 sps:$4 sm:$0xff]  }
 0x13f   : > { %6018 = vmatmul.mubr.bf16.vlgmr.msra.gmra.mrb[0].mxu0 %v9480_v41  ;;  %2342 = vmatpush1.bf16.msra.mxu1 %v10892_v29  ;;  %v10976_v29 = vld [vmem:[%s12313_s27 + $0xce0] ss:$8 sps:$4 sm:$0xff]   ;;  %v10987_v41 = vld [vmem:[%s12313_s27 + $0x14f4] ss:$8 sps:$4 sm:$0xff]  }
 0x140   : > { %6029 = vmatpush1.bf16.msra.mxu0 %v10895_v30  ;;  %2343 = vmatprep.subr.bf16.mxu1 %v10900_v44  ;;  %v10979_v30 = vld [vmem:[%s12313_s27 + $0x14e0] ss:$8 sps:$4 sm:$0xff]   ;;  %v10982_v44 = vld [vmem:[%s12313_s27 + $0xcf0] ss:$8 sps:$4 sm:$0xff]  }
 0x141   : > { %6030 = vmatprep.subr.bf16.mxu0 %v10903_v45  ;;  %2373 = vmatprep.mubr.bf16.mxu1 %v8666_v46  ;;  %v10985_v45 = vld [vmem:[%s12313_s27 + $0x14f0] ss:$8 sps:$4 sm:$0xff]   ;;  %v10990_v46 = vld [vmem:[%s12313_s27 + $0xd04] ss:$8 sps:$4 sm:$0xff]  }
 0x142   : > { %6060 = vmatprep.mubr.bf16.mxu0 %v9483_v28  ;;  %v10993_v28 = vld [vmem:[%s12313_s27 + $0x1504] ss:$8 sps:$4 sm:$0xff]  }
 0x143   : > { %2344 = vmatpush1.bf16.msra.mxu1 %v10898_v31  ;;  %v12734_v31 = vld [vmem:[%s12373_s30 + $0xa8] sm:$0xff] }
 0x144   : > { %6031 = vmatpush1.bf16.msra.mxu0 %v10901_v34  ;;  %2345 = vmatprep.subr.bf16.mxu1 %v10906_v35  ;;  %v12737_v34 = vld [vmem:[%s12373_s30 + $0xe8] sm:$0xff] }
 0x145   : > { %6032 = vmatprep.subr.bf16.mxu0 %v10909_v47  ;;  %v12740_v35 = vld [vmem:[%s12373_s30 + $0x1a8] sm:$0xff] }
 0x146   : > { %v12743_v47 = vld [vmem:[%s12373_s30 + $0x1e8] sm:$0xff] }
 0x147   : > { %2346 = vmatpush1.bf16.msra.mxu1 %v10904_v48  ;;  %v8665_v48 = vcombine.low %v12652_v38, %v12655_v39  ;;  %v9485_v38 = vcombine.high %v12740_v35, %v12743_v47  ;;  %v10994_v39 = vld [vmem:[%s12313_s27 + $0xd10] ss:$8 sps:$4 sm:$0xff]  }
 0x148   : > { %6033 = vmatpush1.bf16.msra.mxu0 %v10907_v49  ;;  %2347 = vmatprep.subr.bf16.mxu1 %v10912_v50  ;;  %v9482_v49 = vcombine.low %v12662_v42, %v12665_v43  ;;  %v10988_v50 = vld [vmem:[%s12313_s27 + $0xd00] ss:$8 sps:$4 sm:$0xff]   ;;  %v10997_v42 = vld [vmem:[%s12313_s27 + $0x1510] ss:$8 sps:$4 sm:$0xff]   ;;  %v11002_v43 = vld [vmem:[%s12313_s27 + $0xd24] ss:$8 sps:$4 sm:$0xff]  }
 0x149   : > { %6034 = vmatprep.subr.bf16.mxu0 %v10915_v51  ;;  %v10991_v51 = vld [vmem:[%s12313_s27 + $0x1500] ss:$8 sps:$4 sm:$0xff]  }
 0x14b   : > { %2348 = vmatpush1.bf16.msra.mxu1 %v10910_v52  ;;  %v10996_v52 = vld [vmem:[%s12313_s27 + $0xd14] ss:$8 sps:$4 sm:$0xff]  }
 0x14c   : > { %6035 = vmatpush1.bf16.msra.mxu0 %v10913_v53  ;;  %2349 = vmatprep.subr.bf16.mxu1 %v10918_v54  ;;  %v10999_v53 = vld [vmem:[%s12313_s27 + $0x1514] ss:$8 sps:$4 sm:$0xff]   ;;  %v8668_v54 = vcombine.high %v12734_v31, %v12737_v34 }
 0x14d   : > { %6036 = vmatprep.subr.bf16.mxu0 %v10921_v55  ;;  %v11005_v55 = vld [vmem:[%s12313_s27 + $0x1524] ss:$8 sps:$4 sm:$0xff]  }
 0x14f   : > { %2350 = vmatpush1.bf16.msra.mxu1 %v10916_v56  ;;  %v11000_v56 = vld [vmem:[%s12313_s27 + $0xd20] ss:$8 sps:$4 sm:$0xff]  }
 0x150   : > { %6037 = vmatpush1.bf16.msra.mxu0 %v10919_v57  ;;  %2351 = vmatprep.subr.bf16.mxu1 %v10924_v58  ;;  %v11003_v57 = vld [vmem:[%s12313_s27 + $0x1520] ss:$8 sps:$4 sm:$0xff]   ;;  %v11008_v58 = vld [vmem:[%s12313_s27 + $0xd34] ss:$8 sps:$4 sm:$0xff]  }
 0x151   : > { %6038 = vmatprep.subr.bf16.mxu0 %v10927_v59  ;;  %v11011_v59 = vld [vmem:[%s12313_s27 + $0x1534] ss:$8 sps:$4 sm:$0xff]  }
 0x153   : > { %2352 = vmatpush1.bf16.msra.mxu1 %v10922_v60  ;;  %v11006_v60 = vld [vmem:[%s12313_s27 + $0xd30] ss:$8 sps:$4 sm:$0xff]  }
 0x154   : > { %6039 = vmatpush1.bf16.msra.mxu0 %v10925_v61  ;;  %2353 = vmatprep.subr.bf16.mxu1 %v10930_v62  ;;  %v11009_v61 = vld [vmem:[%s12313_s27 + $0x1530] ss:$8 sps:$4 sm:$0xff]   ;;  %v11014_v62 = vld [vmem:[%s12313_s27 + $0xd44] ss:$8 sps:$4 sm:$0xff]  }
 0x155   : > { %6040 = vmatprep.subr.bf16.mxu0 %v10933_v63  ;;  %v11017_v63 = vld [vmem:[%s12313_s27 + $0x1544] ss:$8 sps:$4 sm:$0xff]  }
 0x157   : > { %2354 = vmatpush1.bf16.msra.mxu1 %v10928_v0  ;;  %v11012_v0 = vld [vmem:[%s12313_s27 + $0xd40] ss:$8 sps:$4 sm:$0xff]  }
 0x158   : > { %6041 = vmatpush1.bf16.msra.mxu0 %v10931_v1  ;;  %2355 = vmatprep.subr.bf16.mxu1 %v10936_v2  ;;  %v11015_v1 = vld [vmem:[%s12313_s27 + $0x1540] ss:$8 sps:$4 sm:$0xff]   ;;  %v11020_v2 = vld [vmem:[%s12313_s27 + $0xd54] ss:$8 sps:$4 sm:$0xff]  }
 0x159   : > { %6042 = vmatprep.subr.bf16.mxu0 %v10939_v3  ;;  %v11023_v3 = vld [vmem:[%s12313_s27 + $0x1554] ss:$8 sps:$4 sm:$0xff]  }
 0x15b   : > { %2356 = vmatpush1.bf16.msra.mxu1 %v10934_v4  ;;  %v11018_v4 = vld [vmem:[%s12313_s27 + $0xd50] ss:$8 sps:$4 sm:$0xff]  }
 0x15c   : > { %6043 = vmatpush1.bf16.msra.mxu0 %v10937_v5  ;;  %2357 = vmatprep.subr.bf16.mxu1 %v10942_v6  ;;  %v11021_v5 = vld [vmem:[%s12313_s27 + $0x1550] ss:$8 sps:$4 sm:$0xff]   ;;  %v11026_v6 = vld [vmem:[%s12313_s27 + $0xd64] ss:$8 sps:$4 sm:$0xff]  }
 0x15d   : > { %6044 = vmatprep.subr.bf16.mxu0 %v10945_v7  ;;  %v11029_v7 = vld [vmem:[%s12313_s27 + $0x1564] ss:$8 sps:$4 sm:$0xff]  }
 0x15f   : > { %2358 = vmatpush1.bf16.msra.mxu1 %v10940_v8  ;;  %v11024_v8 = vld [vmem:[%s12313_s27 + $0xd60] ss:$8 sps:$4 sm:$0xff]  }
 0x160   : > { %6045 = vmatpush1.bf16.msra.mxu0 %v10943_v9  ;;  %2359 = vmatprep.subr.bf16.mxu1 %v10948_v10  ;;  %v11027_v9 = vld [vmem:[%s12313_s27 + $0x1560] ss:$8 sps:$4 sm:$0xff]   ;;  %v11032_v10 = vld [vmem:[%s12313_s27 + $0xd74] ss:$8 sps:$4 sm:$0xff]  }
 0x161   : > { %6046 = vmatprep.subr.bf16.mxu0 %v10951_v11  ;;  %v11035_v11 = vld [vmem:[%s12313_s27 + $0x1574] ss:$8 sps:$4 sm:$0xff]  }
 0x163   : > { %2360 = vmatpush1.bf16.msra.mxu1 %v10946_v12  ;;  %v11030_v12 = vld [vmem:[%s12313_s27 + $0xd70] ss:$8 sps:$4 sm:$0xff]  }
 0x164   : > { %6047 = vmatpush1.bf16.msra.mxu0 %v10949_v13  ;;  %2361 = vmatprep.subr.bf16.mxu1 %v10954_v14  ;;  %v11033_v13 = vld [vmem:[%s12313_s27 + $0x1570] ss:$8 sps:$4 sm:$0xff]   ;;  %v11038_v14 = vld [vmem:[%s12313_s27 + $0xd84] ss:$8 sps:$4 sm:$0xff]  }
 0x165   : > { %6048 = vmatprep.subr.bf16.mxu0 %v10957_v15  ;;  %v11041_v15 = vld [vmem:[%s12313_s27 + $0x1584] ss:$8 sps:$4 sm:$0xff]  }
 0x167   : > { %2362 = vmatpush1.bf16.msra.mxu1 %v10952_v16  ;;  %v11036_v16 = vld [vmem:[%s12313_s27 + $0xd80] ss:$8 sps:$4 sm:$0xff]  }
 0x168   : > { %6049 = vmatpush1.bf16.msra.mxu0 %v10955_v17  ;;  %2363 = vmatprep.subr.bf16.mxu1 %v10960_v18  ;;  %v11039_v17 = vld [vmem:[%s12313_s27 + $0x1580] ss:$8 sps:$4 sm:$0xff]   ;;  %v11044_v18 = vld [vmem:[%s12313_s27 + $0xd94] ss:$8 sps:$4 sm:$0xff]  }
 0x169   : > { %6050 = vmatprep.subr.bf16.mxu0 %v10963_v19  ;;  %v11047_v19 = vld [vmem:[%s12313_s27 + $0x1594] ss:$8 sps:$4 sm:$0xff]  }
 0x16b   : > { %2364 = vmatpush1.bf16.msra.mxu1 %v10958_v20  ;;  %v11042_v20 = vld [vmem:[%s12313_s27 + $0xd90] ss:$8 sps:$4 sm:$0xff]  }
 0x16c   : > { %6051 = vmatpush1.bf16.msra.mxu0 %v10961_v21  ;;  %2365 = vmatprep.subr.bf16.mxu1 %v10966_v22  ;;  %v11045_v21 = vld [vmem:[%s12313_s27 + $0x1590] ss:$8 sps:$4 sm:$0xff]   ;;  %v11050_v22 = vld [vmem:[%s12313_s27 + $0xda4] ss:$8 sps:$4 sm:$0xff]  }
 0x16d   : > { %6052 = vmatprep.subr.bf16.mxu0 %v10969_v23  ;;  %v11053_v23 = vld [vmem:[%s12313_s27 + $0x15a4] ss:$8 sps:$4 sm:$0xff]  }
 0x16f   : > { %2366 = vmatpush1.bf16.msra.mxu1 %v10964_v26  ;;  %v11048_v26 = vld [vmem:[%s12313_s27 + $0xda0] ss:$8 sps:$4 sm:$0xff]  }
 0x170   : > { %6053 = vmatpush1.bf16.msra.mxu0 %v10967_v27  ;;  %2367 = vmatprep.subr.bf16.mxu1 %v10972_v32  ;;  %v11051_v27 = vld [vmem:[%s12313_s27 + $0x15a0] ss:$8 sps:$4 sm:$0xff]   ;;  %v11056_v32 = vld [vmem:[%s12313_s27 + $0xdb4] ss:$8 sps:$4 sm:$0xff]  }
 0x171   : > { %6054 = vmatprep.subr.bf16.mxu0 %v10975_v33  ;;  %v11059_v33 = vld [vmem:[%s12313_s27 + $0x15b4] ss:$8 sps:$4 sm:$0xff]  }
 0x173   : > { %2368 = vmatpush1.bf16.msra.mxu1 %v10970_v36  ;;  %v11054_v36 = vld [vmem:[%s12313_s27 + $0xdb0] ss:$8 sps:$4 sm:$0xff]  }
 0x174   : > { %6055 = vmatpush1.bf16.msra.mxu0 %v10973_v37  ;;  %2369 = vmatprep.subr.bf16.mxu1 %v10978_v24  ;;  %v11057_v37 = vld [vmem:[%s12313_s27 + $0x15b0] ss:$8 sps:$4 sm:$0xff]   ;;  %v11062_v24 = vld [vmem:[%s12313_s27 + $0xdc4] ss:$8 sps:$4 sm:$0xff]  }
 0x175   : > { %6056 = vmatprep.subr.bf16.mxu0 %v10981_v25  ;;  %v11065_v25 = vld [vmem:[%s12313_s27 + $0x15c4] ss:$8 sps:$4 sm:$0xff]  }
 0x177   : > { %2370 = vmatpush1.bf16.msra.mxu1 %v10976_v29  ;;  %v11060_v29 = vld [vmem:[%s12313_s27 + $0xdc0] ss:$8 sps:$4 sm:$0xff]  }
 0x178   : > { %6057 = vmatpush1.bf16.msra.mxu0 %v10979_v30  ;;  %2371 = vmatprep.subr.bf16.mxu1 %v10984_v40  ;;  %v11063_v30 = vld [vmem:[%s12313_s27 + $0x15c0] ss:$8 sps:$4 sm:$0xff]   ;;  %v11068_v40 = vld [vmem:[%s12313_s27 + $0xdd4] ss:$8 sps:$4 sm:$0xff]  }
 0x179   : > { %6058 = vmatprep.subr.bf16.mxu0 %v10987_v41  ;;  %v11071_v41 = vld [vmem:[%s12313_s27 + $0x15d4] ss:$8 sps:$4 sm:$0xff]  }
 0x17b   : > { %2372 = vmatpush1.bf16.msra.mxu1 %v10982_v44  ;;  %v11066_v44 = vld [vmem:[%s12313_s27 + $0xdd0] ss:$8 sps:$4 sm:$0xff]  }
 0x17c   : > { %6059 = vmatpush1.bf16.msra.mxu0 %v10985_v45  ;;  %2384 = vmatprep.subr.bf16.mxu1 %v10990_v46  ;;  %v11069_v45 = vld [vmem:[%s12313_s27 + $0x15d0] ss:$8 sps:$4 sm:$0xff]   ;;  %v11074_v46 = vld [vmem:[%s12313_s27 + $0xde4] ss:$8 sps:$4 sm:$0xff]  }
 0x17d   : > { %6071 = vmatprep.subr.bf16.mxu0 %v10993_v28  ;;  %v11077_v28 = vld [vmem:[%s12313_s27 + $0x15e4] ss:$8 sps:$4 sm:$0xff]  }
 0x17e   : > { %2374 = vmatmul.mubr.bf16.vlgmr.msra.gmra.mrb[0].mxu1 %v8665_v48  ;;  %v11072_v48 = vld [vmem:[%s12313_s27 + $0xde0] ss:$8 sps:$4 sm:$0xff]  }
 0x17f   : > { %6061 = vmatmul.mubr.bf16.vlgmr.msra.gmra.mrb[0].mxu0 %v9482_v49  ;;  %2385 = vmatpush1.bf16.msra.mxu1 %v10988_v50  ;;  %v11075_v49 = vld [vmem:[%s12313_s27 + $0x15e0] ss:$8 sps:$4 sm:$0xff]   ;;  %v11080_v50 = vld [vmem:[%s12313_s27 + $0xdf4] ss:$8 sps:$4 sm:$0xff]  }
 0x180   : > { %6072 = vmatpush1.bf16.msra.mxu0 %v10991_v51  ;;  %2386 = vmatprep.subr.bf16.mxu1 %v10996_v52  ;;  %v11083_v51 = vld [vmem:[%s12313_s27 + $0x15f4] ss:$8 sps:$4 sm:$0xff]   ;;  %v11078_v52 = vld [vmem:[%s12313_s27 + $0xdf0] ss:$8 sps:$4 sm:$0xff]  }
 0x181   : > { %6073 = vmatprep.subr.bf16.mxu0 %v10999_v53  ;;  %2416 = vmatprep.mubr.bf16.mxu1 %v8668_v54  ;;  %v11081_v53 = vld [vmem:[%s12313_s27 + $0x15f0] ss:$8 sps:$4 sm:$0xff]   ;;  %v11086_v54 = vld [vmem:[%s12313_s27 + $0xe04] ss:$8 sps:$4 sm:$0xff]  }
 0x182   : > { %6103 = vmatprep.mubr.bf16.mxu0 %v9485_v38  ;;  %v11089_v38 = vld [vmem:[%s12313_s27 + $0x1604] ss:$8 sps:$4 sm:$0xff]  }
 0x183   : > { %2387 = vmatpush1.bf16.msra.mxu1 %v10994_v39  ;;  %v12818_v39 = vld [vmem:[%s12373_s30 + $0xb0] sm:$0xff] }
 0x184   : > { %6074 = vmatpush1.bf16.msra.mxu0 %v10997_v42  ;;  %2388 = vmatprep.subr.bf16.mxu1 %v11002_v43  ;;  %v12821_v42 = vld [vmem:[%s12373_s30 + $0xf0] sm:$0xff] }
 0x185   : > { %6075 = vmatprep.subr.bf16.mxu0 %v11005_v55  ;;  %v12824_v43 = vld [vmem:[%s12373_s30 + $0x1b0] sm:$0xff] }
 0x186   : > { %v12827_v55 = vld [vmem:[%s12373_s30 + $0x1f0] sm:$0xff] }
 0x187   : > { %2389 = vmatpush1.bf16.msra.mxu1 %v11000_v56  ;;  %v8667_v56 = vcombine.low %v12734_v31, %v12737_v34  ;;  %v9487_v31 = vcombine.high %v12824_v43, %v12827_v55  ;;  %v11090_v34 = vld [vmem:[%s12313_s27 + $0xe10] ss:$8 sps:$4 sm:$0xff]  }
 0x188   : > { %6076 = vmatpush1.bf16.msra.mxu0 %v11003_v57  ;;  %2390 = vmatprep.subr.bf16.mxu1 %v11008_v58  ;;  %v9484_v57 = vcombine.low %v12740_v35, %v12743_v47  ;;  %v11084_v58 = vld [vmem:[%s12313_s27 + $0xe00] ss:$8 sps:$4 sm:$0xff]   ;;  %v11093_v35 = vld [vmem:[%s12313_s27 + $0x1610] ss:$8 sps:$4 sm:$0xff]   ;;  %v11098_v47 = vld [vmem:[%s12313_s27 + $0xe24] ss:$8 sps:$4 sm:$0xff]  }
 0x189   : > { %6077 = vmatprep.subr.bf16.mxu0 %v11011_v59  ;;  %v11087_v59 = vld [vmem:[%s12313_s27 + $0x1600] ss:$8 sps:$4 sm:$0xff]  }
 0x18b   : > { %2391 = vmatpush1.bf16.msra.mxu1 %v11006_v60  ;;  %v11092_v60 = vld [vmem:[%s12313_s27 + $0xe14] ss:$8 sps:$4 sm:$0xff]  }
 0x18c   : > { %6078 = vmatpush1.bf16.msra.mxu0 %v11009_v61  ;;  %2392 = vmatprep.subr.bf16.mxu1 %v11014_v62  ;;  %v11095_v61 = vld [vmem:[%s12313_s27 + $0x1614] ss:$8 sps:$4 sm:$0xff]   ;;  %v8670_v62 = vcombine.high %v12818_v39, %v12821_v42 }
 0x18d   : > { %6079 = vmatprep.subr.bf16.mxu0 %v11017_v63  ;;  %v11101_v63 = vld [vmem:[%s12313_s27 + $0x1624] ss:$8 sps:$4 sm:$0xff]  }
 0x18f   : > { %2393 = vmatpush1.bf16.msra.mxu1 %v11012_v0  ;;  %v11096_v0 = vld [vmem:[%s12313_s27 + $0xe20] ss:$8 sps:$4 sm:$0xff]  }
 0x190   : > { %6080 = vmatpush1.bf16.msra.mxu0 %v11015_v1  ;;  %2394 = vmatprep.subr.bf16.mxu1 %v11020_v2  ;;  %v11099_v1 = vld [vmem:[%s12313_s27 + $0x1620] ss:$8 sps:$4 sm:$0xff]   ;;  %v11104_v2 = vld [vmem:[%s12313_s27 + $0xe34] ss:$8 sps:$4 sm:$0xff]  }
 0x191   : > { %6081 = vmatprep.subr.bf16.mxu0 %v11023_v3  ;;  %v11107_v3 = vld [vmem:[%s12313_s27 + $0x1634] ss:$8 sps:$4 sm:$0xff]  }
 0x193   : > { %2395 = vmatpush1.bf16.msra.mxu1 %v11018_v4  ;;  %v11102_v4 = vld [vmem:[%s12313_s27 + $0xe30] ss:$8 sps:$4 sm:$0xff]  }
 0x194   : > { %6082 = vmatpush1.bf16.msra.mxu0 %v11021_v5  ;;  %2396 = vmatprep.subr.bf16.mxu1 %v11026_v6  ;;  %v11105_v5 = vld [vmem:[%s12313_s27 + $0x1630] ss:$8 sps:$4 sm:$0xff]   ;;  %v11110_v6 = vld [vmem:[%s12313_s27 + $0xe44] ss:$8 sps:$4 sm:$0xff]  }
 0x195   : > { %6083 = vmatprep.subr.bf16.mxu0 %v11029_v7  ;;  %v11113_v7 = vld [vmem:[%s12313_s27 + $0x1644] ss:$8 sps:$4 sm:$0xff]  }
 0x197   : > { %2397 = vmatpush1.bf16.msra.mxu1 %v11024_v8  ;;  %v11108_v8 = vld [vmem:[%s12313_s27 + $0xe40] ss:$8 sps:$4 sm:$0xff]  }
 0x198   : > { %6084 = vmatpush1.bf16.msra.mxu0 %v11027_v9  ;;  %2398 = vmatprep.subr.bf16.mxu1 %v11032_v10  ;;  %v11111_v9 = vld [vmem:[%s12313_s27 + $0x1640] ss:$8 sps:$4 sm:$0xff]   ;;  %v11116_v10 = vld [vmem:[%s12313_s27 + $0xe54] ss:$8 sps:$4 sm:$0xff]  }
 0x199   : > { %6085 = vmatprep.subr.bf16.mxu0 %v11035_v11  ;;  %v11119_v11 = vld [vmem:[%s12313_s27 + $0x1654] ss:$8 sps:$4 sm:$0xff]  }
 0x19b   : > { %2399 = vmatpush1.bf16.msra.mxu1 %v11030_v12  ;;  %v11114_v12 = vld [vmem:[%s12313_s27 + $0xe50] ss:$8 sps:$4 sm:$0xff]  }
 0x19c   : > { %6086 = vmatpush1.bf16.msra.mxu0 %v11033_v13  ;;  %2400 = vmatprep.subr.bf16.mxu1 %v11038_v14  ;;  %v11117_v13 = vld [vmem:[%s12313_s27 + $0x1650] ss:$8 sps:$4 sm:$0xff]   ;;  %v11122_v14 = vld [vmem:[%s12313_s27 + $0xe64] ss:$8 sps:$4 sm:$0xff]  }
 0x19d   : > { %6087 = vmatprep.subr.bf16.mxu0 %v11041_v15  ;;  %v11125_v15 = vld [vmem:[%s12313_s27 + $0x1664] ss:$8 sps:$4 sm:$0xff]  }
 0x19f   : > { %2401 = vmatpush1.bf16.msra.mxu1 %v11036_v16  ;;  %v11120_v16 = vld [vmem:[%s12313_s27 + $0xe60] ss:$8 sps:$4 sm:$0xff]  }
 0x1a0   : > { %6088 = vmatpush1.bf16.msra.mxu0 %v11039_v17  ;;  %2402 = vmatprep.subr.bf16.mxu1 %v11044_v18  ;;  %v11123_v17 = vld [vmem:[%s12313_s27 + $0x1660] ss:$8 sps:$4 sm:$0xff]   ;;  %v11128_v18 = vld [vmem:[%s12313_s27 + $0xe74] ss:$8 sps:$4 sm:$0xff]  }
 0x1a1   : > { %6089 = vmatprep.subr.bf16.mxu0 %v11047_v19  ;;  %v11131_v19 = vld [vmem:[%s12313_s27 + $0x1674] ss:$8 sps:$4 sm:$0xff]  }
 0x1a3   : > { %2403 = vmatpush1.bf16.msra.mxu1 %v11042_v20  ;;  %v11126_v20 = vld [vmem:[%s12313_s27 + $0xe70] ss:$8 sps:$4 sm:$0xff]  }
 0x1a4   : > { %6090 = vmatpush1.bf16.msra.mxu0 %v11045_v21  ;;  %2404 = vmatprep.subr.bf16.mxu1 %v11050_v22  ;;  %v11129_v21 = vld [vmem:[%s12313_s27 + $0x1670] ss:$8 sps:$4 sm:$0xff]   ;;  %v11134_v22 = vld [vmem:[%s12313_s27 + $0xe84] ss:$8 sps:$4 sm:$0xff]  }
 0x1a5   : > { %6091 = vmatprep.subr.bf16.mxu0 %v11053_v23  ;;  %v11137_v23 = vld [vmem:[%s12313_s27 + $0x1684] ss:$8 sps:$4 sm:$0xff]  }
 0x1a7   : > { %2405 = vmatpush1.bf16.msra.mxu1 %v11048_v26  ;;  %v11132_v26 = vld [vmem:[%s12313_s27 + $0xe80] ss:$8 sps:$4 sm:$0xff]  }
 0x1a8   : > { %6092 = vmatpush1.bf16.msra.mxu0 %v11051_v27  ;;  %2406 = vmatprep.subr.bf16.mxu1 %v11056_v32  ;;  %v11135_v27 = vld [vmem:[%s12313_s27 + $0x1680] ss:$8 sps:$4 sm:$0xff]   ;;  %v11140_v32 = vld [vmem:[%s12313_s27 + $0xe94] ss:$8 sps:$4 sm:$0xff]  }
 0x1a9   : > { %6093 = vmatprep.subr.bf16.mxu0 %v11059_v33  ;;  %v11143_v33 = vld [vmem:[%s12313_s27 + $0x1694] ss:$8 sps:$4 sm:$0xff]  }
 0x1ab   : > { %2407 = vmatpush1.bf16.msra.mxu1 %v11054_v36  ;;  %v11138_v36 = vld [vmem:[%s12313_s27 + $0xe90] ss:$8 sps:$4 sm:$0xff]  }
 0x1ac   : > { %6094 = vmatpush1.bf16.msra.mxu0 %v11057_v37  ;;  %2408 = vmatprep.subr.bf16.mxu1 %v11062_v24  ;;  %v11141_v37 = vld [vmem:[%s12313_s27 + $0x1690] ss:$8 sps:$4 sm:$0xff]   ;;  %v11146_v24 = vld [vmem:[%s12313_s27 + $0xea4] ss:$8 sps:$4 sm:$0xff]  }
 0x1ad   : > { %6095 = vmatprep.subr.bf16.mxu0 %v11065_v25  ;;  %v11149_v25 = vld [vmem:[%s12313_s27 + $0x16a4] ss:$8 sps:$4 sm:$0xff]  }
 0x1af   : > { %2409 = vmatpush1.bf16.msra.mxu1 %v11060_v29  ;;  %v11144_v29 = vld [vmem:[%s12313_s27 + $0xea0] ss:$8 sps:$4 sm:$0xff]  }
 0x1b0   : > { %6096 = vmatpush1.bf16.msra.mxu0 %v11063_v30  ;;  %2410 = vmatprep.subr.bf16.mxu1 %v11068_v40  ;;  %v11147_v30 = vld [vmem:[%s12313_s27 + $0x16a0] ss:$8 sps:$4 sm:$0xff]   ;;  %v11152_v40 = vld [vmem:[%s12313_s27 + $0xeb4] ss:$8 sps:$4 sm:$0xff]  }
 0x1b1   : > { %6097 = vmatprep.subr.bf16.mxu0 %v11071_v41  ;;  %v11155_v41 = vld [vmem:[%s12313_s27 + $0x16b4] ss:$8 sps:$4 sm:$0xff]  }
 0x1b3   : > { %2411 = vmatpush1.bf16.msra.mxu1 %v11066_v44  ;;  %v11150_v44 = vld [vmem:[%s12313_s27 + $0xeb0] ss:$8 sps:$4 sm:$0xff]  }
 0x1b4   : > { %6098 = vmatpush1.bf16.msra.mxu0 %v11069_v45  ;;  %2412 = vmatprep.subr.bf16.mxu1 %v11074_v46  ;;  %v11153_v45 = vld [vmem:[%s12313_s27 + $0x16b0] ss:$8 sps:$4 sm:$0xff]   ;;  %v11158_v46 = vld [vmem:[%s12313_s27 + $0xec4] ss:$8 sps:$4 sm:$0xff]  }
 0x1b5   : > { %6099 = vmatprep.subr.bf16.mxu0 %v11077_v28  ;;  %v11161_v28 = vld [vmem:[%s12313_s27 + $0x16c4] ss:$8 sps:$4 sm:$0xff]  }
 0x1b7   : > { %2413 = vmatpush1.bf16.msra.mxu1 %v11072_v48  ;;  %v11156_v48 = vld [vmem:[%s12313_s27 + $0xec0] ss:$8 sps:$4 sm:$0xff]  }
 0x1b8   : > { %6100 = vmatpush1.bf16.msra.mxu0 %v11075_v49  ;;  %2414 = vmatprep.subr.bf16.mxu1 %v11080_v50  ;;  %v11159_v49 = vld [vmem:[%s12313_s27 + $0x16c0] ss:$8 sps:$4 sm:$0xff]   ;;  %v11164_v50 = vld [vmem:[%s12313_s27 + $0xed4] ss:$8 sps:$4 sm:$0xff]  }
 0x1b9   : > { %6101 = vmatprep.subr.bf16.mxu0 %v11083_v51  ;;  %v11167_v51 = vld [vmem:[%s12313_s27 + $0x16d4] ss:$8 sps:$4 sm:$0xff]  }
 0x1bb   : > { %2415 = vmatpush1.bf16.msra.mxu1 %v11078_v52  ;;  %v11162_v52 = vld [vmem:[%s12313_s27 + $0xed0] ss:$8 sps:$4 sm:$0xff]  }
 0x1bc   : > { %6102 = vmatpush1.bf16.msra.mxu0 %v11081_v53  ;;  %2427 = vmatprep.subr.bf16.mxu1 %v11086_v54  ;;  %v11165_v53 = vld [vmem:[%s12313_s27 + $0x16d0] ss:$8 sps:$4 sm:$0xff]   ;;  %v11170_v54 = vld [vmem:[%s12313_s27 + $0xee4] ss:$8 sps:$4 sm:$0xff]  }
 0x1bd   : > { %6114 = vmatprep.subr.bf16.mxu0 %v11089_v38  ;;  %v11173_v38 = vld [vmem:[%s12313_s27 + $0x16e4] ss:$8 sps:$4 sm:$0xff]  }
 0x1be   : > { %2417 = vmatmul.mubr.bf16.vlgmr.msra.gmra.mrb[0].mxu1 %v8667_v56  ;;  %v11168_v56 = vld [vmem:[%s12313_s27 + $0xee0] ss:$8 sps:$4 sm:$0xff]  }
 0x1bf   : > { %6104 = vmatmul.mubr.bf16.vlgmr.msra.gmra.mrb[0].mxu0 %v9484_v57  ;;  %2428 = vmatpush1.bf16.msra.mxu1 %v11084_v58  ;;  %v11171_v57 = vld [vmem:[%s12313_s27 + $0x16e0] ss:$8 sps:$4 sm:$0xff]   ;;  %v11176_v58 = vld [vmem:[%s12313_s27 + $0xef4] ss:$8 sps:$4 sm:$0xff]  }
 0x1c0   : > { %6115 = vmatpush1.bf16.msra.mxu0 %v11087_v59  ;;  %2429 = vmatprep.subr.bf16.mxu1 %v11092_v60  ;;  %v11179_v59 = vld [vmem:[%s12313_s27 + $0x16f4] ss:$8 sps:$4 sm:$0xff]   ;;  %v11174_v60 = vld [vmem:[%s12313_s27 + $0xef0] ss:$8 sps:$4 sm:$0xff]  }
 0x1c1   : > { %6116 = vmatprep.subr.bf16.mxu0 %v11095_v61  ;;  %2459 = vmatprep.mubr.bf16.mxu1 %v8670_v62  ;;  %v11177_v61 = vld [vmem:[%s12313_s27 + $0x16f0] ss:$8 sps:$4 sm:$0xff]   ;;  %v11182_v62 = vld [vmem:[%s12313_s27 + $0xf04] ss:$8 sps:$4 sm:$0xff]  }
 0x1c2   : > { %6146 = vmatprep.mubr.bf16.mxu0 %v9487_v31  ;;  %v11185_v31 = vld [vmem:[%s12313_s27 + $0x1704] ss:$8 sps:$4 sm:$0xff]  }
 0x1c3   : > { %2430 = vmatpush1.bf16.msra.mxu1 %v11090_v34  ;;  %v12902_v34 = vld [vmem:[%s12373_s30 + $0xb8] sm:$0xff] }
 0x1c4   : > { %6117 = vmatpush1.bf16.msra.mxu0 %v11093_v35  ;;  %2431 = vmatprep.subr.bf16.mxu1 %v11098_v47  ;;  %v12905_v35 = vld [vmem:[%s12373_s30 + $0xf8] sm:$0xff] }
 0x1c5   : > { %6118 = vmatprep.subr.bf16.mxu0 %v11101_v63  ;;  %v12908_v47 = vld [vmem:[%s12373_s30 + $0x1b8] sm:$0xff] }
 0x1c6   : > { %v12911_v63 = vld [vmem:[%s12373_s30 + $0x1f8] sm:$0xff] }
 0x1c7   : > { %2432 = vmatpush1.bf16.msra.mxu1 %v11096_v0  ;;  %v8669_v0 = vcombine.low %v12818_v39, %v12821_v42  ;;  %v9489_v39 = vcombine.high %v12908_v47, %v12911_v63  ;;  %v11186_v42 = vld [vmem:[%s12313_s27 + $0xf10] ss:$8 sps:$4 sm:$0xff]  }
 0x1c8   : > { %6119 = vmatpush1.bf16.msra.mxu0 %v11099_v1  ;;  %2433 = vmatprep.subr.bf16.mxu1 %v11104_v2  ;;  %v9486_v1 = vcombine.low %v12824_v43, %v12827_v55  ;;  %v11180_v2 = vld [vmem:[%s12313_s27 + $0xf00] ss:$8 sps:$4 sm:$0xff]   ;;  %v11189_v43 = vld [vmem:[%s12313_s27 + $0x1710] ss:$8 sps:$4 sm:$0xff]   ;;  %v11194_v55 = vld [vmem:[%s12313_s27 + $0xf24] ss:$8 sps:$4 sm:$0xff]  }
 0x1c9   : > { %6120 = vmatprep.subr.bf16.mxu0 %v11107_v3  ;;  %v11183_v3 = vld [vmem:[%s12313_s27 + $0x1700] ss:$8 sps:$4 sm:$0xff]  }
 0x1cb   : > { %2434 = vmatpush1.bf16.msra.mxu1 %v11102_v4  ;;  %v11188_v4 = vld [vmem:[%s12313_s27 + $0xf14] ss:$8 sps:$4 sm:$0xff]  }
 0x1cc   : > { %6121 = vmatpush1.bf16.msra.mxu0 %v11105_v5  ;;  %2435 = vmatprep.subr.bf16.mxu1 %v11110_v6  ;;  %v11191_v5 = vld [vmem:[%s12313_s27 + $0x1714] ss:$8 sps:$4 sm:$0xff]   ;;  %v8672_v6 = vcombine.high %v12902_v34, %v12905_v35 }
 0x1cd   : > { %6122 = vmatprep.subr.bf16.mxu0 %v11113_v7  ;;  %v11197_v7 = vld [vmem:[%s12313_s27 + $0x1724] ss:$8 sps:$4 sm:$0xff]  }
 0x1cf   : > { %2436 = vmatpush1.bf16.msra.mxu1 %v11108_v8  ;;  %v11192_v8 = vld [vmem:[%s12313_s27 + $0xf20] ss:$8 sps:$4 sm:$0xff]  }
 0x1d0   : > { %6123 = vmatpush1.bf16.msra.mxu0 %v11111_v9  ;;  %2437 = vmatprep.subr.bf16.mxu1 %v11116_v10  ;;  %v11195_v9 = vld [vmem:[%s12313_s27 + $0x1720] ss:$8 sps:$4 sm:$0xff]   ;;  %v11200_v10 = vld [vmem:[%s12313_s27 + $0xf34] ss:$8 sps:$4 sm:$0xff]  }
 0x1d1   : > { %6124 = vmatprep.subr.bf16.mxu0 %v11119_v11  ;;  %v11203_v11 = vld [vmem:[%s12313_s27 + $0x1734] ss:$8 sps:$4 sm:$0xff]  }
 0x1d3   : > { %2438 = vmatpush1.bf16.msra.mxu1 %v11114_v12  ;;  %v11198_v12 = vld [vmem:[%s12313_s27 + $0xf30] ss:$8 sps:$4 sm:$0xff]  }
 0x1d4   : > { %6125 = vmatpush1.bf16.msra.mxu0 %v11117_v13  ;;  %2439 = vmatprep.subr.bf16.mxu1 %v11122_v14  ;;  %v11201_v13 = vld [vmem:[%s12313_s27 + $0x1730] ss:$8 sps:$4 sm:$0xff]   ;;  %v11206_v14 = vld [vmem:[%s12313_s27 + $0xf44] ss:$8 sps:$4 sm:$0xff]  }
 0x1d5   : > { %6126 = vmatprep.subr.bf16.mxu0 %v11125_v15  ;;  %v11209_v15 = vld [vmem:[%s12313_s27 + $0x1744] ss:$8 sps:$4 sm:$0xff]  }
 0x1d7   : > { %2440 = vmatpush1.bf16.msra.mxu1 %v11120_v16  ;;  %v11204_v16 = vld [vmem:[%s12313_s27 + $0xf40] ss:$8 sps:$4 sm:$0xff]  }
 0x1d8   : > { %6127 = vmatpush1.bf16.msra.mxu0 %v11123_v17  ;;  %2441 = vmatprep.subr.bf16.mxu1 %v11128_v18  ;;  %v11207_v17 = vld [vmem:[%s12313_s27 + $0x1740] ss:$8 sps:$4 sm:$0xff]   ;;  %v11212_v18 = vld [vmem:[%s12313_s27 + $0xf54] ss:$8 sps:$4 sm:$0xff]  }
 0x1d9   : > { %6128 = vmatprep.subr.bf16.mxu0 %v11131_v19  ;;  %v11215_v19 = vld [vmem:[%s12313_s27 + $0x1754] ss:$8 sps:$4 sm:$0xff]  }
 0x1db   : > { %2442 = vmatpush1.bf16.msra.mxu1 %v11126_v20  ;;  %v11210_v20 = vld [vmem:[%s12313_s27 + $0xf50] ss:$8 sps:$4 sm:$0xff]  }
 0x1dc   : > { %6129 = vmatpush1.bf16.msra.mxu0 %v11129_v21  ;;  %2443 = vmatprep.subr.bf16.mxu1 %v11134_v22  ;;  %v11213_v21 = vld [vmem:[%s12313_s27 + $0x1750] ss:$8 sps:$4 sm:$0xff]   ;;  %v11218_v22 = vld [vmem:[%s12313_s27 + $0xf64] ss:$8 sps:$4 sm:$0xff]  }
 0x1dd   : > { %6130 = vmatprep.subr.bf16.mxu0 %v11137_v23  ;;  %v11221_v23 = vld [vmem:[%s12313_s27 + $0x1764] ss:$8 sps:$4 sm:$0xff]  }
 0x1df   : > { %2444 = vmatpush1.bf16.msra.mxu1 %v11132_v26  ;;  %v11216_v26 = vld [vmem:[%s12313_s27 + $0xf60] ss:$8 sps:$4 sm:$0xff]  }
 0x1e0   : > { %6131 = vmatpush1.bf16.msra.mxu0 %v11135_v27  ;;  %2445 = vmatprep.subr.bf16.mxu1 %v11140_v32  ;;  %v11219_v27 = vld [vmem:[%s12313_s27 + $0x1760] ss:$8 sps:$4 sm:$0xff]   ;;  %v11224_v32 = vld [vmem:[%s12313_s27 + $0xf74] ss:$8 sps:$4 sm:$0xff]  }
 0x1e1   : > { %6132 = vmatprep.subr.bf16.mxu0 %v11143_v33  ;;  %v11227_v33 = vld [vmem:[%s12313_s27 + $0x1774] ss:$8 sps:$4 sm:$0xff]  }
 0x1e3   : > { %2446 = vmatpush1.bf16.msra.mxu1 %v11138_v36  ;;  %v11222_v36 = vld [vmem:[%s12313_s27 + $0xf70] ss:$8 sps:$4 sm:$0xff]  }
 0x1e4   : > { %6133 = vmatpush1.bf16.msra.mxu0 %v11141_v37  ;;  %2447 = vmatprep.subr.bf16.mxu1 %v11146_v24  ;;  %v11225_v37 = vld [vmem:[%s12313_s27 + $0x1770] ss:$8 sps:$4 sm:$0xff]   ;;  %v11230_v24 = vld [vmem:[%s12313_s27 + $0xf84] ss:$8 sps:$4 sm:$0xff]  }
 0x1e5   : > { %6134 = vmatprep.subr.bf16.mxu0 %v11149_v25  ;;  %v11233_v25 = vld [vmem:[%s12313_s27 + $0x1784] ss:$8 sps:$4 sm:$0xff]  }
 0x1e7   : > { %2448 = vmatpush1.bf16.msra.mxu1 %v11144_v29  ;;  %v11228_v29 = vld [vmem:[%s12313_s27 + $0xf80] ss:$8 sps:$4 sm:$0xff]  }
 0x1e8   : > { %6135 = vmatpush1.bf16.msra.mxu0 %v11147_v30  ;;  %2449 = vmatprep.subr.bf16.mxu1 %v11152_v40  ;;  %v11231_v30 = vld [vmem:[%s12313_s27 + $0x1780] ss:$8 sps:$4 sm:$0xff]   ;;  %v11236_v40 = vld [vmem:[%s12313_s27 + $0xf94] ss:$8 sps:$4 sm:$0xff]  }
 0x1e9   : > { %6136 = vmatprep.subr.bf16.mxu0 %v11155_v41  ;;  %v11239_v41 = vld [vmem:[%s12313_s27 + $0x1794] ss:$8 sps:$4 sm:$0xff]  }
 0x1eb   : > { %2450 = vmatpush1.bf16.msra.mxu1 %v11150_v44  ;;  %v11234_v44 = vld [vmem:[%s12313_s27 + $0xf90] ss:$8 sps:$4 sm:$0xff]  }
 0x1ec   : > { %6137 = vmatpush1.bf16.msra.mxu0 %v11153_v45  ;;  %2451 = vmatprep.subr.bf16.mxu1 %v11158_v46  ;;  %v11237_v45 = vld [vmem:[%s12313_s27 + $0x1790] ss:$8 sps:$4 sm:$0xff]   ;;  %v11242_v46 = vld [vmem:[%s12313_s27 + $0xfa4] ss:$8 sps:$4 sm:$0xff]  }
 0x1ed   : > { %6138 = vmatprep.subr.bf16.mxu0 %v11161_v28  ;;  %v11245_v28 = vld [vmem:[%s12313_s27 + $0x17a4] ss:$8 sps:$4 sm:$0xff]  }
 0x1ef   : > { %2452 = vmatpush1.bf16.msra.mxu1 %v11156_v48  ;;  %v11240_v48 = vld [vmem:[%s12313_s27 + $0xfa0] ss:$8 sps:$4 sm:$0xff]  }
 0x1f0   : > { %6139 = vmatpush1.bf16.msra.mxu0 %v11159_v49  ;;  %2453 = vmatprep.subr.bf16.mxu1 %v11164_v50  ;;  %v11243_v49 = vld [vmem:[%s12313_s27 + $0x17a0] ss:$8 sps:$4 sm:$0xff]   ;;  %v11248_v50 = vld [vmem:[%s12313_s27 + $0xfb4] ss:$8 sps:$4 sm:$0xff]  }
 0x1f1   : > { %6140 = vmatprep.subr.bf16.mxu0 %v11167_v51  ;;  %v11251_v51 = vld [vmem:[%s12313_s27 + $0x17b4] ss:$8 sps:$4 sm:$0xff]  }
 0x1f3   : > { %2454 = vmatpush1.bf16.msra.mxu1 %v11162_v52  ;;  %v11246_v52 = vld [vmem:[%s12313_s27 + $0xfb0] ss:$8 sps:$4 sm:$0xff]  }
 0x1f4   : > { %6141 = vmatpush1.bf16.msra.mxu0 %v11165_v53  ;;  %2455 = vmatprep.subr.bf16.mxu1 %v11170_v54  ;;  %v11249_v53 = vld [vmem:[%s12313_s27 + $0x17b0] ss:$8 sps:$4 sm:$0xff]   ;;  %v11254_v54 = vld [vmem:[%s12313_s27 + $0xfc4] ss:$8 sps:$4 sm:$0xff]  }
 0x1f5   : > { %6142 = vmatprep.subr.bf16.mxu0 %v11173_v38  ;;  %v11257_v38 = vld [vmem:[%s12313_s27 + $0x17c4] ss:$8 sps:$4 sm:$0xff]  }
 0x1f7   : > { %2456 = vmatpush1.bf16.msra.mxu1 %v11168_v56  ;;  %v11252_v56 = vld [vmem:[%s12313_s27 + $0xfc0] ss:$8 sps:$4 sm:$0xff]  }
 0x1f8   : > { %6143 = vmatpush1.bf16.msra.mxu0 %v11171_v57  ;;  %2457 = vmatprep.subr.bf16.mxu1 %v11176_v58  ;;  %v11255_v57 = vld [vmem:[%s12313_s27 + $0x17c0] ss:$8 sps:$4 sm:$0xff]   ;;  %v11260_v58 = vld [vmem:[%s12313_s27 + $0xfd4] ss:$8 sps:$4 sm:$0xff]  }
 0x1f9   : > { %6144 = vmatprep.subr.bf16.mxu0 %v11179_v59  ;;  %v11263_v59 = vld [vmem:[%s12313_s27 + $0x17d4] ss:$8 sps:$4 sm:$0xff]  }
 0x1fb   : > { %2458 = vmatpush1.bf16.msra.mxu1 %v11174_v60  ;;  %v11258_v60 = vld [vmem:[%s12313_s27 + $0xfd0] ss:$8 sps:$4 sm:$0xff]  }
 0x1fc   : > { %6145 = vmatpush1.bf16.msra.mxu0 %v11177_v61  ;;  %2470 = vmatprep.subr.bf16.mxu1 %v11182_v62  ;;  %v11261_v61 = vld [vmem:[%s12313_s27 + $0x17d0] ss:$8 sps:$4 sm:$0xff]   ;;  %v11266_v62 = vld [vmem:[%s12313_s27 + $0xfe4] ss:$8 sps:$4 sm:$0xff]  }
 0x1fd   : > { %6157 = vmatprep.subr.bf16.mxu0 %v11185_v31  ;;  %v11269_v31 = vld [vmem:[%s12313_s27 + $0x17e4] ss:$8 sps:$4 sm:$0xff]  }
 0x1fe   : > { %2460 = vmatmul.mubr.bf16.vlgmr.msra.gmra.mrb[0].mxu1 %v8669_v0  ;;  %v11264_v0 = vld [vmem:[%s12313_s27 + $0xfe0] ss:$8 sps:$4 sm:$0xff]  }
 0x1ff   : > { %6147 = vmatmul.mubr.bf16.vlgmr.msra.gmra.mrb[0].mxu0 %v9486_v1  ;;  %2471 = vmatpush1.bf16.msra.mxu1 %v11180_v2  ;;  %v11267_v1 = vld [vmem:[%s12313_s27 + $0x17e0] ss:$8 sps:$4 sm:$0xff]   ;;  %v11272_v2 = vld [vmem:[%s12313_s27 + $0xff4] ss:$8 sps:$4 sm:$0xff]  }
 0x200   : > { %6158 = vmatpush1.bf16.msra.mxu0 %v11183_v3  ;;  %2472 = vmatprep.subr.bf16.mxu1 %v11188_v4  ;;  %v11275_v3 = vld [vmem:[%s12313_s27 + $0x17f4] ss:$8 sps:$4 sm:$0xff]   ;;  %v11270_v4 = vld [vmem:[%s12313_s27 + $0xff0] ss:$8 sps:$4 sm:$0xff]  }
 0x201   : > { %6159 = vmatprep.subr.bf16.mxu0 %v11191_v5  ;;  %2502 = vmatprep.mubr.bf16.mxu1 %v8672_v6  ;;  %v11273_v5 = vld [vmem:[%s12313_s27 + $0x17f0] ss:$8 sps:$4 sm:$0xff]   ;;  %v11278_v6 = vld [vmem:[%s12313_s27 + $0x4] ss:$8 sps:$4 sm:$0xff]  }
 0x202   : > { %6189 = vmatprep.mubr.bf16.mxu0 %v9489_v39  ;;  %v11281_v39 = vld [vmem:[%s12313_s27 + $0x1804] ss:$8 sps:$4 sm:$0xff]  }
 0x203   : > { %2473 = vmatpush1.bf16.msra.mxu1 %v11186_v42  ;;  %v12986_v42 = vld [vmem:[%s12373_s30] sm:$0xff] }
 0x204   : > { %6160 = vmatpush1.bf16.msra.mxu0 %v11189_v43  ;;  %2474 = vmatprep.subr.bf16.mxu1 %v11194_v55  ;;  %v12989_v43 = vld [vmem:[%s12373_s30 + $0x40] sm:$0xff] }
 0x205   : > { %6161 = vmatprep.subr.bf16.mxu0 %v11197_v7  ;;  %v12992_v55 = vld [vmem:[%s12373_s30 + $0x200] sm:$0xff] }
 0x206   : > { %v12995_v7 = vld [vmem:[%s12373_s30 + $0x240] sm:$0xff] }
 0x207   : > { %2475 = vmatpush1.bf16.msra.mxu1 %v11192_v8  ;;  %v8671_v8 = vcombine.low %v12902_v34, %v12905_v35  ;;  %v10020_v34 = vcombine.high %v12992_v55, %v12995_v7  ;;  %v11282_v35 = vld [vmem:[%s12313_s27 + $0x10] ss:$8 sps:$4 sm:$0xff]  }
 0x208   : > { %6162 = vmatpush1.bf16.msra.mxu0 %v11195_v9  ;;  %2476 = vmatprep.subr.bf16.mxu1 %v11200_v10  ;;  %v9488_v9 = vcombine.low %v12908_v47, %v12911_v63  ;;  %v11276_v10 = vld [vmem:[%s12313_s27] ss:$8 sps:$4 sm:$0xff]   ;;  %v11285_v47 = vld [vmem:[%s12313_s27 + $0x1810] ss:$8 sps:$4 sm:$0xff]   ;;  %v11290_v63 = vld [vmem:[%s12313_s27 + $0x24] ss:$8 sps:$4 sm:$0xff]  }
 0x209   : > { %6163 = vmatprep.subr.bf16.mxu0 %v11203_v11  ;;  %v11279_v11 = vld [vmem:[%s12313_s27 + $0x1800] ss:$8 sps:$4 sm:$0xff]  }
 0x20b   : > { %2477 = vmatpush1.bf16.msra.mxu1 %v11198_v12  ;;  %v11284_v12 = vld [vmem:[%s12313_s27 + $0x14] ss:$8 sps:$4 sm:$0xff]  }
 0x20c   : > { %6164 = vmatpush1.bf16.msra.mxu0 %v11201_v13  ;;  %2478 = vmatprep.subr.bf16.mxu1 %v11206_v14  ;;  %v11287_v13 = vld [vmem:[%s12313_s27 + $0x1814] ss:$8 sps:$4 sm:$0xff]   ;;  %v8930_v14 = vcombine.high %v12986_v42, %v12989_v43 }
 0x20d   : > { %6165 = vmatprep.subr.bf16.mxu0 %v11209_v15  ;;  %v11293_v15 = vld [vmem:[%s12313_s27 + $0x1824] ss:$8 sps:$4 sm:$0xff]  }
 0x20f   : > { %2479 = vmatpush1.bf16.msra.mxu1 %v11204_v16  ;;  %v11288_v16 = vld [vmem:[%s12313_s27 + $0x20] ss:$8 sps:$4 sm:$0xff]  }
 0x210   : > { %6166 = vmatpush1.bf16.msra.mxu0 %v11207_v17  ;;  %2480 = vmatprep.subr.bf16.mxu1 %v11212_v18  ;;  %v11291_v17 = vld [vmem:[%s12313_s27 + $0x1820] ss:$8 sps:$4 sm:$0xff]   ;;  %v11296_v18 = vld [vmem:[%s12313_s27 + $0x34] ss:$8 sps:$4 sm:$0xff]  }
 0x211   : > { %6167 = vmatprep.subr.bf16.mxu0 %v11215_v19  ;;  %v11299_v19 = vld [vmem:[%s12313_s27 + $0x1834] ss:$8 sps:$4 sm:$0xff]  }
 0x213   : > { %2481 = vmatpush1.bf16.msra.mxu1 %v11210_v20  ;;  %v11294_v20 = vld [vmem:[%s12313_s27 + $0x30] ss:$8 sps:$4 sm:$0xff]  }
 0x214   : > { %6168 = vmatpush1.bf16.msra.mxu0 %v11213_v21  ;;  %2482 = vmatprep.subr.bf16.mxu1 %v11218_v22  ;;  %v11297_v21 = vld [vmem:[%s12313_s27 + $0x1830] ss:$8 sps:$4 sm:$0xff]   ;;  %v11302_v22 = vld [vmem:[%s12313_s27 + $0x44] ss:$8 sps:$4 sm:$0xff]  }
 0x215   : > { %6169 = vmatprep.subr.bf16.mxu0 %v11221_v23  ;;  %v11305_v23 = vld [vmem:[%s12313_s27 + $0x1844] ss:$8 sps:$4 sm:$0xff]  }
 0x217   : > { %2483 = vmatpush1.bf16.msra.mxu1 %v11216_v26  ;;  %v11300_v26 = vld [vmem:[%s12313_s27 + $0x40] ss:$8 sps:$4 sm:$0xff]  }
 0x218   : > { %6170 = vmatpush1.bf16.msra.mxu0 %v11219_v27  ;;  %2484 = vmatprep.subr.bf16.mxu1 %v11224_v32  ;;  %v11303_v27 = vld [vmem:[%s12313_s27 + $0x1840] ss:$8 sps:$4 sm:$0xff]   ;;  %v11308_v32 = vld [vmem:[%s12313_s27 + $0x54] ss:$8 sps:$4 sm:$0xff]  }
 0x219   : > { %6171 = vmatprep.subr.bf16.mxu0 %v11227_v33  ;;  %v11311_v33 = vld [vmem:[%s12313_s27 + $0x1854] ss:$8 sps:$4 sm:$0xff]  }
 0x21b   : > { %2485 = vmatpush1.bf16.msra.mxu1 %v11222_v36  ;;  %v11306_v36 = vld [vmem:[%s12313_s27 + $0x50] ss:$8 sps:$4 sm:$0xff]  }
 0x21c   : > { %6172 = vmatpush1.bf16.msra.mxu0 %v11225_v37  ;;  %2486 = vmatprep.subr.bf16.mxu1 %v11230_v24  ;;  %v11309_v37 = vld [vmem:[%s12313_s27 + $0x1850] ss:$8 sps:$4 sm:$0xff]   ;;  %v11314_v24 = vld [vmem:[%s12313_s27 + $0x64] ss:$8 sps:$4 sm:$0xff]  }
 0x21d   : > { %6173 = vmatprep.subr.bf16.mxu0 %v11233_v25  ;;  %v11317_v25 = vld [vmem:[%s12313_s27 + $0x1864] ss:$8 sps:$4 sm:$0xff]  }
 0x21f   : > { %2487 = vmatpush1.bf16.msra.mxu1 %v11228_v29  ;;  %v11312_v29 = vld [vmem:[%s12313_s27 + $0x60] ss:$8 sps:$4 sm:$0xff]  }
 0x220   : > { %6174 = vmatpush1.bf16.msra.mxu0 %v11231_v30  ;;  %2488 = vmatprep.subr.bf16.mxu1 %v11236_v40  ;;  %v11315_v30 = vld [vmem:[%s12313_s27 + $0x1860] ss:$8 sps:$4 sm:$0xff]   ;;  %v11320_v40 = vld [vmem:[%s12313_s27 + $0x74] ss:$8 sps:$4 sm:$0xff]  }
 0x221   : > { %6175 = vmatprep.subr.bf16.mxu0 %v11239_v41  ;;  %v11323_v41 = vld [vmem:[%s12313_s27 + $0x1874] ss:$8 sps:$4 sm:$0xff]  }
 0x223   : > { %2489 = vmatpush1.bf16.msra.mxu1 %v11234_v44  ;;  %v11318_v44 = vld [vmem:[%s12313_s27 + $0x70] ss:$8 sps:$4 sm:$0xff]  }
 0x224   : > { %6176 = vmatpush1.bf16.msra.mxu0 %v11237_v45  ;;  %2490 = vmatprep.subr.bf16.mxu1 %v11242_v46  ;;  %v11321_v45 = vld [vmem:[%s12313_s27 + $0x1870] ss:$8 sps:$4 sm:$0xff]   ;;  %v11326_v46 = vld [vmem:[%s12313_s27 + $0x84] ss:$8 sps:$4 sm:$0xff]  }
 0x225   : > { %6177 = vmatprep.subr.bf16.mxu0 %v11245_v28  ;;  %v11329_v28 = vld [vmem:[%s12313_s27 + $0x1884] ss:$8 sps:$4 sm:$0xff]  }
 0x227   : > { %2491 = vmatpush1.bf16.msra.mxu1 %v11240_v48  ;;  %v11324_v48 = vld [vmem:[%s12313_s27 + $0x80] ss:$8 sps:$4 sm:$0xff]  }
 0x228   : > { %6178 = vmatpush1.bf16.msra.mxu0 %v11243_v49  ;;  %2492 = vmatprep.subr.bf16.mxu1 %v11248_v50  ;;  %v11327_v49 = vld [vmem:[%s12313_s27 + $0x1880] ss:$8 sps:$4 sm:$0xff]   ;;  %v11332_v50 = vld [vmem:[%s12313_s27 + $0x94] ss:$8 sps:$4 sm:$0xff]  }
 0x229   : > { %6179 = vmatprep.subr.bf16.mxu0 %v11251_v51  ;;  %v11335_v51 = vld [vmem:[%s12313_s27 + $0x1894] ss:$8 sps:$4 sm:$0xff]  }
 0x22b   : > { %2493 = vmatpush1.bf16.msra.mxu1 %v11246_v52  ;;  %v11330_v52 = vld [vmem:[%s12313_s27 + $0x90] ss:$8 sps:$4 sm:$0xff]  }
 0x22c   : > { %6180 = vmatpush1.bf16.msra.mxu0 %v11249_v53  ;;  %2494 = vmatprep.subr.bf16.mxu1 %v11254_v54  ;;  %v11333_v53 = vld [vmem:[%s12313_s27 + $0x1890] ss:$8 sps:$4 sm:$0xff]   ;;  %v11338_v54 = vld [vmem:[%s12313_s27 + $0xa4] ss:$8 sps:$4 sm:$0xff]  }
 0x22d   : > { %6181 = vmatprep.subr.bf16.mxu0 %v11257_v38  ;;  %v11341_v38 = vld [vmem:[%s12313_s27 + $0x18a4] ss:$8 sps:$4 sm:$0xff]  }
 0x22f   : > { %2495 = vmatpush1.bf16.msra.mxu1 %v11252_v56  ;;  %v11336_v56 = vld [vmem:[%s12313_s27 + $0xa0] ss:$8 sps:$4 sm:$0xff]  }
 0x230   : > { %6182 = vmatpush1.bf16.msra.mxu0 %v11255_v57  ;;  %2496 = vmatprep.subr.bf16.mxu1 %v11260_v58  ;;  %v11339_v57 = vld [vmem:[%s12313_s27 + $0x18a0] ss:$8 sps:$4 sm:$0xff]   ;;  %v11344_v58 = vld [vmem:[%s12313_s27 + $0xb4] ss:$8 sps:$4 sm:$0xff]  }
 0x231   : > { %6183 = vmatprep.subr.bf16.mxu0 %v11263_v59  ;;  %v11347_v59 = vld [vmem:[%s12313_s27 + $0x18b4] ss:$8 sps:$4 sm:$0xff]  }
 0x233   : > { %2497 = vmatpush1.bf16.msra.mxu1 %v11258_v60  ;;  %v11342_v60 = vld [vmem:[%s12313_s27 + $0xb0] ss:$8 sps:$4 sm:$0xff]  }
 0x234   : > { %6184 = vmatpush1.bf16.msra.mxu0 %v11261_v61  ;;  %2498 = vmatprep.subr.bf16.mxu1 %v11266_v62  ;;  %v11345_v61 = vld [vmem:[%s12313_s27 + $0x18b0] ss:$8 sps:$4 sm:$0xff]   ;;  %v11350_v62 = vld [vmem:[%s12313_s27 + $0xc4] ss:$8 sps:$4 sm:$0xff]  }
 0x235   : > { %6185 = vmatprep.subr.bf16.mxu0 %v11269_v31  ;;  %v11353_v31 = vld [vmem:[%s12313_s27 + $0x18c4] ss:$8 sps:$4 sm:$0xff]  }
 0x237   : > { %2499 = vmatpush1.bf16.msra.mxu1 %v11264_v0  ;;  %v11348_v0 = vld [vmem:[%s12313_s27 + $0xc0] ss:$8 sps:$4 sm:$0xff]  }
 0x238   : > { %6186 = vmatpush1.bf16.msra.mxu0 %v11267_v1  ;;  %2500 = vmatprep.subr.bf16.mxu1 %v11272_v2  ;;  %v11351_v1 = vld [vmem:[%s12313_s27 + $0x18c0] ss:$8 sps:$4 sm:$0xff]   ;;  %v11356_v2 = vld [vmem:[%s12313_s27 + $0xd4] ss:$8 sps:$4 sm:$0xff]  }
 0x239   : > { %6187 = vmatprep.subr.bf16.mxu0 %v11275_v3  ;;  %v11359_v3 = vld [vmem:[%s12313_s27 + $0x18d4] ss:$8 sps:$4 sm:$0xff]  }
 0x23b   : > { %2501 = vmatpush1.bf16.msra.mxu1 %v11270_v4  ;;  %v11354_v4 = vld [vmem:[%s12313_s27 + $0xd0] ss:$8 sps:$4 sm:$0xff]  }
 0x23c   : > { %6188 = vmatpush1.bf16.msra.mxu0 %v11273_v5  ;;  %3873 = vmatprep.subr.bf16.mxu1 %v11278_v6  ;;  %v11357_v5 = vld [vmem:[%s12313_s27 + $0x18d0] ss:$8 sps:$4 sm:$0xff]   ;;  %v11362_v6 = vld [vmem:[%s12313_s27 + $0xe4] ss:$8 sps:$4 sm:$0xff]  }
 0x23d   : > { %7841 = vmatprep.subr.bf16.mxu0 %v11281_v39  ;;  %v11365_v39 = vld [vmem:[%s12313_s27 + $0x18e4] ss:$8 sps:$4 sm:$0xff]  }
 0x23e   : > { %2503 = vmatmul.mubr.bf16.vlgmr.msra.gmra.mrb[0].mxu1 %v8671_v8  ;;  %v11360_v8 = vld [vmem:[%s12313_s27 + $0xe0] ss:$8 sps:$4 sm:$0xff]  }
 0x23f   : > { %6190 = vmatmul.mubr.bf16.vlgmr.msra.gmra.mrb[0].mxu0 %v9488_v9  ;;  %3874 = vmatpush1.bf16.msra.mxu1 %v11276_v10  ;;  %v11363_v9 = vld [vmem:[%s12313_s27 + $0x18e0] ss:$8 sps:$4 sm:$0xff]   ;;  %v11368_v10 = vld [vmem:[%s12313_s27 + $0xf4] ss:$8 sps:$4 sm:$0xff]  }
 0x240   : > { %7842 = vmatpush1.bf16.msra.mxu0 %v11279_v11  ;;  %3875 = vmatprep.subr.bf16.mxu1 %v11284_v12  ;;  %v11371_v11 = vld [vmem:[%s12313_s27 + $0x18f4] ss:$8 sps:$4 sm:$0xff]   ;;  %v11366_v12 = vld [vmem:[%s12313_s27 + $0xf0] ss:$8 sps:$4 sm:$0xff]  }
 0x241   : > { %7843 = vmatprep.subr.bf16.mxu0 %v11287_v13  ;;  %3905 = vmatprep.mubr.bf16.mxu1 %v8930_v14  ;;  %v11369_v13 = vld [vmem:[%s12313_s27 + $0x18f0] ss:$8 sps:$4 sm:$0xff]   ;;  %v11374_v14 = vld [vmem:[%s12313_s27 + $0x104] ss:$8 sps:$4 sm:$0xff]  }
 0x242   : > { %7873 = vmatprep.mubr.bf16.mxu0 %v10020_v34  ;;  %v11377_v34 = vld [vmem:[%s12313_s27 + $0x1904] ss:$8 sps:$4 sm:$0xff]  }
 0x243   : > { %3876 = vmatpush1.bf16.msra.mxu1 %v11282_v35  ;;  %v13070_v35 = vld [vmem:[%s12373_s30 + $0x8] sm:$0xff] }
 0x244   : > { %7844 = vmatpush1.bf16.msra.mxu0 %v11285_v47  ;;  %3877 = vmatprep.subr.bf16.mxu1 %v11290_v63  ;;  %v13073_v47 = vld [vmem:[%s12373_s30 + $0x48] sm:$0xff] }
 0x245   : > { %7845 = vmatprep.subr.bf16.mxu0 %v11293_v15  ;;  %v13076_v63 = vld [vmem:[%s12373_s30 + $0x208] sm:$0xff] }
 0x246   : > { %v13079_v15 = vld [vmem:[%s12373_s30 + $0x248] sm:$0xff] }
 0x247   : > { %3878 = vmatpush1.bf16.msra.mxu1 %v11288_v16  ;;  %v8929_v16 = vcombine.low %v12986_v42, %v12989_v43  ;;  %v10022_v42 = vcombine.high %v13076_v63, %v13079_v15  ;;  %v11378_v43 = vld [vmem:[%s12313_s27 + $0x110] ss:$8 sps:$4 sm:$0xff]  }
 0x248   : > { %7846 = vmatpush1.bf16.msra.mxu0 %v11291_v17  ;;  %3879 = vmatprep.subr.bf16.mxu1 %v11296_v18  ;;  %v10019_v17 = vcombine.low %v12992_v55, %v12995_v7  ;;  %v11372_v18 = vld [vmem:[%s12313_s27 + $0x100] ss:$8 sps:$4 sm:$0xff]   ;;  %v11381_v55 = vld [vmem:[%s12313_s27 + $0x1910] ss:$8 sps:$4 sm:$0xff]   ;;  %v11386_v7 = vld [vmem:[%s12313_s27 + $0x124] ss:$8 sps:$4 sm:$0xff]  }
 0x249   : > { %7847 = vmatprep.subr.bf16.mxu0 %v11299_v19  ;;  %v11375_v19 = vld [vmem:[%s12313_s27 + $0x1900] ss:$8 sps:$4 sm:$0xff]  }
 0x24b   : > { %3880 = vmatpush1.bf16.msra.mxu1 %v11294_v20  ;;  %v11380_v20 = vld [vmem:[%s12313_s27 + $0x114] ss:$8 sps:$4 sm:$0xff]  }
 0x24c   : > { %7848 = vmatpush1.bf16.msra.mxu0 %v11297_v21  ;;  %3881 = vmatprep.subr.bf16.mxu1 %v11302_v22  ;;  %v11383_v21 = vld [vmem:[%s12313_s27 + $0x1914] ss:$8 sps:$4 sm:$0xff]   ;;  %v8932_v22 = vcombine.high %v13070_v35, %v13073_v47 }
 0x24d   : > { %7849 = vmatprep.subr.bf16.mxu0 %v11305_v23  ;;  %v11389_v23 = vld [vmem:[%s12313_s27 + $0x1924] ss:$8 sps:$4 sm:$0xff]  }
 0x24f   : > { %3882 = vmatpush1.bf16.msra.mxu1 %v11300_v26  ;;  %v11384_v26 = vld [vmem:[%s12313_s27 + $0x120] ss:$8 sps:$4 sm:$0xff]  }
 0x250   : > { %7850 = vmatpush1.bf16.msra.mxu0 %v11303_v27  ;;  %3883 = vmatprep.subr.bf16.mxu1 %v11308_v32  ;;  %v11387_v27 = vld [vmem:[%s12313_s27 + $0x1920] ss:$8 sps:$4 sm:$0xff]   ;;  %v11392_v32 = vld [vmem:[%s12313_s27 + $0x134] ss:$8 sps:$4 sm:$0xff]  }
 0x251   : > { %7851 = vmatprep.subr.bf16.mxu0 %v11311_v33  ;;  %v11395_v33 = vld [vmem:[%s12313_s27 + $0x1934] ss:$8 sps:$4 sm:$0xff]  }
 0x253   : > { %3884 = vmatpush1.bf16.msra.mxu1 %v11306_v36  ;;  %v11390_v36 = vld [vmem:[%s12313_s27 + $0x130] ss:$8 sps:$4 sm:$0xff]  }
 0x254   : > { %7852 = vmatpush1.bf16.msra.mxu0 %v11309_v37  ;;  %3885 = vmatprep.subr.bf16.mxu1 %v11314_v24  ;;  %v11393_v37 = vld [vmem:[%s12313_s27 + $0x1930] ss:$8 sps:$4 sm:$0xff]   ;;  %v11398_v24 = vld [vmem:[%s12313_s27 + $0x144] ss:$8 sps:$4 sm:$0xff]  }
 0x255   : > { %7853 = vmatprep.subr.bf16.mxu0 %v11317_v25  ;;  %v11401_v25 = vld [vmem:[%s12313_s27 + $0x1944] ss:$8 sps:$4 sm:$0xff]  }
 0x257   : > { %3886 = vmatpush1.bf16.msra.mxu1 %v11312_v29  ;;  %v11396_v29 = vld [vmem:[%s12313_s27 + $0x140] ss:$8 sps:$4 sm:$0xff]  }
 0x258   : > { %7854 = vmatpush1.bf16.msra.mxu0 %v11315_v30  ;;  %3887 = vmatprep.subr.bf16.mxu1 %v11320_v40  ;;  %v11399_v30 = vld [vmem:[%s12313_s27 + $0x1940] ss:$8 sps:$4 sm:$0xff]   ;;  %v11404_v40 = vld [vmem:[%s12313_s27 + $0x154] ss:$8 sps:$4 sm:$0xff]  }
 0x259   : > { %7855 = vmatprep.subr.bf16.mxu0 %v11323_v41  ;;  %v11407_v41 = vld [vmem:[%s12313_s27 + $0x1954] ss:$8 sps:$4 sm:$0xff]  }
 0x25b   : > { %3888 = vmatpush1.bf16.msra.mxu1 %v11318_v44  ;;  %v11402_v44 = vld [vmem:[%s12313_s27 + $0x150] ss:$8 sps:$4 sm:$0xff]  }
 0x25c   : > { %7856 = vmatpush1.bf16.msra.mxu0 %v11321_v45  ;;  %3889 = vmatprep.subr.bf16.mxu1 %v11326_v46  ;;  %v11405_v45 = vld [vmem:[%s12313_s27 + $0x1950] ss:$8 sps:$4 sm:$0xff]   ;;  %v11410_v46 = vld [vmem:[%s12313_s27 + $0x164] ss:$8 sps:$4 sm:$0xff]  }
 0x25d   : > { %7857 = vmatprep.subr.bf16.mxu0 %v11329_v28  ;;  %v11413_v28 = vld [vmem:[%s12313_s27 + $0x1964] ss:$8 sps:$4 sm:$0xff]  }
 0x25f   : > { %3890 = vmatpush1.bf16.msra.mxu1 %v11324_v48  ;;  %v11408_v48 = vld [vmem:[%s12313_s27 + $0x160] ss:$8 sps:$4 sm:$0xff]  }
 0x260   : > { %7858 = vmatpush1.bf16.msra.mxu0 %v11327_v49  ;;  %3891 = vmatprep.subr.bf16.mxu1 %v11332_v50  ;;  %v11411_v49 = vld [vmem:[%s12313_s27 + $0x1960] ss:$8 sps:$4 sm:$0xff]   ;;  %v11416_v50 = vld [vmem:[%s12313_s27 + $0x174] ss:$8 sps:$4 sm:$0xff]  }
 0x261   : > { %7859 = vmatprep.subr.bf16.mxu0 %v11335_v51  ;;  %v11419_v51 = vld [vmem:[%s12313_s27 + $0x1974] ss:$8 sps:$4 sm:$0xff]  }
 0x263   : > { %3892 = vmatpush1.bf16.msra.mxu1 %v11330_v52  ;;  %v11414_v52 = vld [vmem:[%s12313_s27 + $0x170] ss:$8 sps:$4 sm:$0xff]  }
 0x264   : > { %7860 = vmatpush1.bf16.msra.mxu0 %v11333_v53  ;;  %3893 = vmatprep.subr.bf16.mxu1 %v11338_v54  ;;  %v11417_v53 = vld [vmem:[%s12313_s27 + $0x1970] ss:$8 sps:$4 sm:$0xff]   ;;  %v11422_v54 = vld [vmem:[%s12313_s27 + $0x184] ss:$8 sps:$4 sm:$0xff]  }
 0x265   : > { %7861 = vmatprep.subr.bf16.mxu0 %v11341_v38  ;;  %v11425_v38 = vld [vmem:[%s12313_s27 + $0x1984] ss:$8 sps:$4 sm:$0xff]  }
 0x267   : > { %3894 = vmatpush1.bf16.msra.mxu1 %v11336_v56  ;;  %v11420_v56 = vld [vmem:[%s12313_s27 + $0x180] ss:$8 sps:$4 sm:$0xff]  }
 0x268   : > { %7862 = vmatpush1.bf16.msra.mxu0 %v11339_v57  ;;  %3895 = vmatprep.subr.bf16.mxu1 %v11344_v58  ;;  %v11423_v57 = vld [vmem:[%s12313_s27 + $0x1980] ss:$8 sps:$4 sm:$0xff]   ;;  %v11428_v58 = vld [vmem:[%s12313_s27 + $0x194] ss:$8 sps:$4 sm:$0xff]  }
 0x269   : > { %7863 = vmatprep.subr.bf16.mxu0 %v11347_v59  ;;  %v11431_v59 = vld [vmem:[%s12313_s27 + $0x1994] ss:$8 sps:$4 sm:$0xff]  }
 0x26b   : > { %3896 = vmatpush1.bf16.msra.mxu1 %v11342_v60  ;;  %v11426_v60 = vld [vmem:[%s12313_s27 + $0x190] ss:$8 sps:$4 sm:$0xff]  }
 0x26c   : > { %7864 = vmatpush1.bf16.msra.mxu0 %v11345_v61  ;;  %3897 = vmatprep.subr.bf16.mxu1 %v11350_v62  ;;  %v11429_v61 = vld [vmem:[%s12313_s27 + $0x1990] ss:$8 sps:$4 sm:$0xff]   ;;  %v11434_v62 = vld [vmem:[%s12313_s27 + $0x1a4] ss:$8 sps:$4 sm:$0xff]  }
 0x26d   : > { %7865 = vmatprep.subr.bf16.mxu0 %v11353_v31  ;;  %v11437_v31 = vld [vmem:[%s12313_s27 + $0x19a4] ss:$8 sps:$4 sm:$0xff]  }
 0x26f   : > { %3898 = vmatpush1.bf16.msra.mxu1 %v11348_v0  ;;  %v11432_v0 = vld [vmem:[%s12313_s27 + $0x1a0] ss:$8 sps:$4 sm:$0xff]  }
 0x270   : > { %7866 = vmatpush1.bf16.msra.mxu0 %v11351_v1  ;;  %3899 = vmatprep.subr.bf16.mxu1 %v11356_v2  ;;  %v11435_v1 = vld [vmem:[%s12313_s27 + $0x19a0] ss:$8 sps:$4 sm:$0xff]   ;;  %v11440_v2 = vld [vmem:[%s12313_s27 + $0x1b4] ss:$8 sps:$4 sm:$0xff]  }
 0x271   : > { %7867 = vmatprep.subr.bf16.mxu0 %v11359_v3  ;;  %v11443_v3 = vld [vmem:[%s12313_s27 + $0x19b4] ss:$8 sps:$4 sm:$0xff]  }
 0x273   : > { %3900 = vmatpush1.bf16.msra.mxu1 %v11354_v4  ;;  %v11438_v4 = vld [vmem:[%s12313_s27 + $0x1b0] ss:$8 sps:$4 sm:$0xff]  }
 0x274   : > { %7868 = vmatpush1.bf16.msra.mxu0 %v11357_v5  ;;  %3901 = vmatprep.subr.bf16.mxu1 %v11362_v6  ;;  %v11441_v5 = vld [vmem:[%s12313_s27 + $0x19b0] ss:$8 sps:$4 sm:$0xff]   ;;  %v11446_v6 = vld [vmem:[%s12313_s27 + $0x1c4] ss:$8 sps:$4 sm:$0xff]  }
 0x275   : > { %7869 = vmatprep.subr.bf16.mxu0 %v11365_v39  ;;  %v11449_v39 = vld [vmem:[%s12313_s27 + $0x19c4] ss:$8 sps:$4 sm:$0xff]  }
 0x277   : > { %3902 = vmatpush1.bf16.msra.mxu1 %v11360_v8  ;;  %v11444_v8 = vld [vmem:[%s12313_s27 + $0x1c0] ss:$8 sps:$4 sm:$0xff]  }
 0x278   : > { %7870 = vmatpush1.bf16.msra.mxu0 %v11363_v9  ;;  %3903 = vmatprep.subr.bf16.mxu1 %v11368_v10  ;;  %v11447_v9 = vld [vmem:[%s12313_s27 + $0x19c0] ss:$8 sps:$4 sm:$0xff]   ;;  %v11452_v10 = vld [vmem:[%s12313_s27 + $0x1d4] ss:$8 sps:$4 sm:$0xff]  }
 0x279   : > { %7871 = vmatprep.subr.bf16.mxu0 %v11371_v11  ;;  %v11455_v11 = vld [vmem:[%s12313_s27 + $0x19d4] ss:$8 sps:$4 sm:$0xff]  }
 0x27b   : > { %3904 = vmatpush1.bf16.msra.mxu1 %v11366_v12  ;;  %v11450_v12 = vld [vmem:[%s12313_s27 + $0x1d0] ss:$8 sps:$4 sm:$0xff]  }
 0x27c   : > { %7872 = vmatpush1.bf16.msra.mxu0 %v11369_v13  ;;  %3916 = vmatprep.subr.bf16.mxu1 %v11374_v14  ;;  %v11453_v13 = vld [vmem:[%s12313_s27 + $0x19d0] ss:$8 sps:$4 sm:$0xff]   ;;  %v11458_v14 = vld [vmem:[%s12313_s27 + $0x1e4] ss:$8 sps:$4 sm:$0xff]  }
 0x27d   : > { %7884 = vmatprep.subr.bf16.mxu0 %v11377_v34  ;;  %v11461_v34 = vld [vmem:[%s12313_s27 + $0x19e4] ss:$8 sps:$4 sm:$0xff]  }
 0x27e   : > { %3906 = vmatmul.mubr.bf16.vlgmr.msra.gmra.mrb[0].mxu1 %v8929_v16  ;;  %v11456_v16 = vld [vmem:[%s12313_s27 + $0x1e0] ss:$8 sps:$4 sm:$0xff]  }
 0x27f   : > { %7874 = vmatmul.mubr.bf16.vlgmr.msra.gmra.mrb[0].mxu0 %v10019_v17  ;;  %3917 = vmatpush1.bf16.msra.mxu1 %v11372_v18  ;;  %v11459_v17 = vld [vmem:[%s12313_s27 + $0x19e0] ss:$8 sps:$4 sm:$0xff]   ;;  %v11464_v18 = vld [vmem:[%s12313_s27 + $0x1f4] ss:$8 sps:$4 sm:$0xff]  }
 0x280   : > { %7885 = vmatpush1.bf16.msra.mxu0 %v11375_v19  ;;  %3918 = vmatprep.subr.bf16.mxu1 %v11380_v20  ;;  %v11467_v19 = vld [vmem:[%s12313_s27 + $0x19f4] ss:$8 sps:$4 sm:$0xff]   ;;  %v11462_v20 = vld [vmem:[%s12313_s27 + $0x1f0] ss:$8 sps:$4 sm:$0xff]  }
 0x281   : > { %7886 = vmatprep.subr.bf16.mxu0 %v11383_v21  ;;  %3948 = vmatprep.mubr.bf16.mxu1 %v8932_v22  ;;  %v11465_v21 = vld [vmem:[%s12313_s27 + $0x19f0] ss:$8 sps:$4 sm:$0xff]   ;;  %v11470_v22 = vld [vmem:[%s12313_s27 + $0x204] ss:$8 sps:$4 sm:$0xff]  }
 0x282   : > { %7916 = vmatprep.mubr.bf16.mxu0 %v10022_v42  ;;  %v11473_v42 = vld [vmem:[%s12313_s27 + $0x1a04] ss:$8 sps:$4 sm:$0xff]  }
 0x283   : > { %3919 = vmatpush1.bf16.msra.mxu1 %v11378_v43  ;;  %v13154_v43 = vld [vmem:[%s12373_s30 + $0x10] sm:$0xff] }
 0x284   : > { %7887 = vmatpush1.bf16.msra.mxu0 %v11381_v55  ;;  %3920 = vmatprep.subr.bf16.mxu1 %v11386_v7  ;;  %v8931_v55 = vcombine.low %v13070_v35, %v13073_v47  ;;  %v10021_v7 = vcombine.low %v13076_v63, %v13079_v15  ;;  %v11476_v35 = vld [vmem:[%s12313_s27 + $0x214] ss:$8 sps:$4 sm:$0xff]  }
 0x285   : > { %7888 = vmatprep.subr.bf16.mxu0 %v11389_v23  ;;  %v13161_v23 = vld [vmem:[%s12373_s30 + $0x50] sm:$0xff] }
 0x286   : > { %v11479_v47 = vld [vmem:[%s12313_s27 + $0x1a14] ss:$8 sps:$4 sm:$0xff]   ;;  %v8934_v63 = vcombine.high %v13154_v43, %v13161_v23 }
 0x287   : > { %3921 = vmatpush1.bf16.msra.mxu1 %v11384_v26  ;;  %v13164_v26 = vld [vmem:[%s12373_s30 + $0x210] sm:$0xff] }
 0x288   : > { %7889 = vmatpush1.bf16.msra.mxu0 %v11387_v27  ;;  %3922 = vmatprep.subr.bf16.mxu1 %v11392_v32  ;;  %v13167_v27 = vld [vmem:[%s12373_s30 + $0x250] sm:$0xff]  ;;  %v11468_v32 = vld [vmem:[%s12313_s27 + $0x200] ss:$8 sps:$4 sm:$0xff]  }
 0x289   : > { %7890 = vmatprep.subr.bf16.mxu0 %v11395_v33  ;;  %v11471_v33 = vld [vmem:[%s12313_s27 + $0x1a00] ss:$8 sps:$4 sm:$0xff]   ;;  %v10024_v15 = vcombine.high %v13164_v26, %v13167_v27 }
 0x28b   : > { %3923 = vmatpush1.bf16.msra.mxu1 %v11390_v36  ;;  %v11474_v36 = vld [vmem:[%s12313_s27 + $0x210] ss:$8 sps:$4 sm:$0xff]  }
 0x28c   : > { %7891 = vmatpush1.bf16.msra.mxu0 %v11393_v37  ;;  %3924 = vmatprep.subr.bf16.mxu1 %v11398_v24  ;;  %v11477_v37 = vld [vmem:[%s12313_s27 + $0x1a10] ss:$8 sps:$4 sm:$0xff]   ;;  %v11482_v24 = vld [vmem:[%s12313_s27 + $0x224] ss:$8 sps:$4 sm:$0xff]  }
 0x28d   : > { %7892 = vmatprep.subr.bf16.mxu0 %v11401_v25  ;;  %v11485_v25 = vld [vmem:[%s12313_s27 + $0x1a24] ss:$8 sps:$4 sm:$0xff]  }
 0x28f   : > { %3925 = vmatpush1.bf16.msra.mxu1 %v11396_v29  ;;  %v11480_v29 = vld [vmem:[%s12313_s27 + $0x220] ss:$8 sps:$4 sm:$0xff]  }
 0x290   : > { %7893 = vmatpush1.bf16.msra.mxu0 %v11399_v30  ;;  %3926 = vmatprep.subr.bf16.mxu1 %v11404_v40  ;;  %v11483_v30 = vld [vmem:[%s12313_s27 + $0x1a20] ss:$8 sps:$4 sm:$0xff]   ;;  %v11488_v40 = vld [vmem:[%s12313_s27 + $0x234] ss:$8 sps:$4 sm:$0xff]  }
 0x291   : > { %7894 = vmatprep.subr.bf16.mxu0 %v11407_v41  ;;  %v11491_v41 = vld [vmem:[%s12313_s27 + $0x1a34] ss:$8 sps:$4 sm:$0xff]  }
 0x293   : > { %3927 = vmatpush1.bf16.msra.mxu1 %v11402_v44  ;;  %v11486_v44 = vld [vmem:[%s12313_s27 + $0x230] ss:$8 sps:$4 sm:$0xff]  }
 0x294   : > { %7895 = vmatpush1.bf16.msra.mxu0 %v11405_v45  ;;  %3928 = vmatprep.subr.bf16.mxu1 %v11410_v46  ;;  %v11489_v45 = vld [vmem:[%s12313_s27 + $0x1a30] ss:$8 sps:$4 sm:$0xff]   ;;  %v11494_v46 = vld [vmem:[%s12313_s27 + $0x244] ss:$8 sps:$4 sm:$0xff]  }
 0x295   : > { %7896 = vmatprep.subr.bf16.mxu0 %v11413_v28  ;;  %v11497_v28 = vld [vmem:[%s12313_s27 + $0x1a44] ss:$8 sps:$4 sm:$0xff]  }
 0x297   : > { %3929 = vmatpush1.bf16.msra.mxu1 %v11408_v48  ;;  %v11492_v48 = vld [vmem:[%s12313_s27 + $0x240] ss:$8 sps:$4 sm:$0xff]  }
 0x298   : > { %7897 = vmatpush1.bf16.msra.mxu0 %v11411_v49  ;;  %3930 = vmatprep.subr.bf16.mxu1 %v11416_v50  ;;  %v11495_v49 = vld [vmem:[%s12313_s27 + $0x1a40] ss:$8 sps:$4 sm:$0xff]   ;;  %v11500_v50 = vld [vmem:[%s12313_s27 + $0x254] ss:$8 sps:$4 sm:$0xff]  }
 0x299   : > { %7898 = vmatprep.subr.bf16.mxu0 %v11419_v51  ;;  %v11503_v51 = vld [vmem:[%s12313_s27 + $0x1a54] ss:$8 sps:$4 sm:$0xff]  }
 0x29b   : > { %3931 = vmatpush1.bf16.msra.mxu1 %v11414_v52  ;;  %v11498_v52 = vld [vmem:[%s12313_s27 + $0x250] ss:$8 sps:$4 sm:$0xff]  }
 0x29c   : > { %7899 = vmatpush1.bf16.msra.mxu0 %v11417_v53  ;;  %3932 = vmatprep.subr.bf16.mxu1 %v11422_v54  ;;  %v11501_v53 = vld [vmem:[%s12313_s27 + $0x1a50] ss:$8 sps:$4 sm:$0xff]   ;;  %v11506_v54 = vld [vmem:[%s12313_s27 + $0x264] ss:$8 sps:$4 sm:$0xff]  }
 0x29d   : > { %7900 = vmatprep.subr.bf16.mxu0 %v11425_v38  ;;  %v11509_v38 = vld [vmem:[%s12313_s27 + $0x1a64] ss:$8 sps:$4 sm:$0xff]  }
 0x29f   : > { %3933 = vmatpush1.bf16.msra.mxu1 %v11420_v56  ;;  %v11504_v56 = vld [vmem:[%s12313_s27 + $0x260] ss:$8 sps:$4 sm:$0xff]  }
 0x2a0   : > { %7901 = vmatpush1.bf16.msra.mxu0 %v11423_v57  ;;  %3934 = vmatprep.subr.bf16.mxu1 %v11428_v58  ;;  %v11507_v57 = vld [vmem:[%s12313_s27 + $0x1a60] ss:$8 sps:$4 sm:$0xff]   ;;  %v11512_v58 = vld [vmem:[%s12313_s27 + $0x274] ss:$8 sps:$4 sm:$0xff]  }
 0x2a1   : > { %7902 = vmatprep.subr.bf16.mxu0 %v11431_v59  ;;  %v11515_v59 = vld [vmem:[%s12313_s27 + $0x1a74] ss:$8 sps:$4 sm:$0xff]  }
 0x2a3   : > { %3935 = vmatpush1.bf16.msra.mxu1 %v11426_v60  ;;  %v11510_v60 = vld [vmem:[%s12313_s27 + $0x270] ss:$8 sps:$4 sm:$0xff]  }
 0x2a4   : > { %7903 = vmatpush1.bf16.msra.mxu0 %v11429_v61  ;;  %3936 = vmatprep.subr.bf16.mxu1 %v11434_v62  ;;  %v11513_v61 = vld [vmem:[%s12313_s27 + $0x1a70] ss:$8 sps:$4 sm:$0xff]   ;;  %v11518_v62 = vld [vmem:[%s12313_s27 + $0x284] ss:$8 sps:$4 sm:$0xff]  }
 0x2a5   : > { %7904 = vmatprep.subr.bf16.mxu0 %v11437_v31  ;;  %v11521_v31 = vld [vmem:[%s12313_s27 + $0x1a84] ss:$8 sps:$4 sm:$0xff]  }
 0x2a7   : > { %3937 = vmatpush1.bf16.msra.mxu1 %v11432_v0  ;;  %v11516_v0 = vld [vmem:[%s12313_s27 + $0x280] ss:$8 sps:$4 sm:$0xff]  }
 0x2a8   : > { %7905 = vmatpush1.bf16.msra.mxu0 %v11435_v1  ;;  %3938 = vmatprep.subr.bf16.mxu1 %v11440_v2  ;;  %v11519_v1 = vld [vmem:[%s12313_s27 + $0x1a80] ss:$8 sps:$4 sm:$0xff]   ;;  %v11524_v2 = vld [vmem:[%s12313_s27 + $0x294] ss:$8 sps:$4 sm:$0xff]  }
 0x2a9   : > { %7906 = vmatprep.subr.bf16.mxu0 %v11443_v3  ;;  %v11527_v3 = vld [vmem:[%s12313_s27 + $0x1a94] ss:$8 sps:$4 sm:$0xff]  }
 0x2ab   : > { %3939 = vmatpush1.bf16.msra.mxu1 %v11438_v4  ;;  %v11522_v4 = vld [vmem:[%s12313_s27 + $0x290] ss:$8 sps:$4 sm:$0xff]  }
 0x2ac   : > { %7907 = vmatpush1.bf16.msra.mxu0 %v11441_v5  ;;  %3940 = vmatprep.subr.bf16.mxu1 %v11446_v6  ;;  %v11525_v5 = vld [vmem:[%s12313_s27 + $0x1a90] ss:$8 sps:$4 sm:$0xff]   ;;  %v11530_v6 = vld [vmem:[%s12313_s27 + $0x2a4] ss:$8 sps:$4 sm:$0xff]  }
 0x2ad   : > { %7908 = vmatprep.subr.bf16.mxu0 %v11449_v39  ;;  %v11533_v39 = vld [vmem:[%s12313_s27 + $0x1aa4] ss:$8 sps:$4 sm:$0xff]  }
 0x2af   : > { %3941 = vmatpush1.bf16.msra.mxu1 %v11444_v8  ;;  %v11528_v8 = vld [vmem:[%s12313_s27 + $0x2a0] ss:$8 sps:$4 sm:$0xff]  }
 0x2b0   : > { %7909 = vmatpush1.bf16.msra.mxu0 %v11447_v9  ;;  %3942 = vmatprep.subr.bf16.mxu1 %v11452_v10  ;;  %v11531_v9 = vld [vmem:[%s12313_s27 + $0x1aa0] ss:$8 sps:$4 sm:$0xff]   ;;  %v11536_v10 = vld [vmem:[%s12313_s27 + $0x2b4] ss:$8 sps:$4 sm:$0xff]  }
 0x2b1   : > { %7910 = vmatprep.subr.bf16.mxu0 %v11455_v11  ;;  %v11539_v11 = vld [vmem:[%s12313_s27 + $0x1ab4] ss:$8 sps:$4 sm:$0xff]  }
 0x2b3   : > { %3943 = vmatpush1.bf16.msra.mxu1 %v11450_v12  ;;  %v11534_v12 = vld [vmem:[%s12313_s27 + $0x2b0] ss:$8 sps:$4 sm:$0xff]  }
 0x2b4   : > { %7911 = vmatpush1.bf16.msra.mxu0 %v11453_v13  ;;  %3944 = vmatprep.subr.bf16.mxu1 %v11458_v14  ;;  %v11537_v13 = vld [vmem:[%s12313_s27 + $0x1ab0] ss:$8 sps:$4 sm:$0xff]   ;;  %v11542_v14 = vld [vmem:[%s12313_s27 + $0x2c4] ss:$8 sps:$4 sm:$0xff]  }
 0x2b5   : > { %7912 = vmatprep.subr.bf16.mxu0 %v11461_v34  ;;  %v11545_v34 = vld [vmem:[%s12313_s27 + $0x1ac4] ss:$8 sps:$4 sm:$0xff]  }
 0x2b7   : > { %3945 = vmatpush1.bf16.msra.mxu1 %v11456_v16  ;;  %v11540_v16 = vld [vmem:[%s12313_s27 + $0x2c0] ss:$8 sps:$4 sm:$0xff]  }
 0x2b8   : > { %7913 = vmatpush1.bf16.msra.mxu0 %v11459_v17  ;;  %3946 = vmatprep.subr.bf16.mxu1 %v11464_v18  ;;  %v11543_v17 = vld [vmem:[%s12313_s27 + $0x1ac0] ss:$8 sps:$4 sm:$0xff]   ;;  %v11548_v18 = vld [vmem:[%s12313_s27 + $0x2d4] ss:$8 sps:$4 sm:$0xff]  }
 0x2b9   : > { %7914 = vmatprep.subr.bf16.mxu0 %v11467_v19  ;;  %v11551_v19 = vld [vmem:[%s12313_s27 + $0x1ad4] ss:$8 sps:$4 sm:$0xff]  }
 0x2bb   : > { %3947 = vmatpush1.bf16.msra.mxu1 %v11462_v20  ;;  %v11546_v20 = vld [vmem:[%s12313_s27 + $0x2d0] ss:$8 sps:$4 sm:$0xff]  }
 0x2bc   : > { %7915 = vmatpush1.bf16.msra.mxu0 %v11465_v21  ;;  %3959 = vmatprep.subr.bf16.mxu1 %v11470_v22  ;;  %v11549_v21 = vld [vmem:[%s12313_s27 + $0x1ad0] ss:$8 sps:$4 sm:$0xff]   ;;  %v11554_v22 = vld [vmem:[%s12313_s27 + $0x2e4] ss:$8 sps:$4 sm:$0xff]  }
 0x2bd   : > { %7927 = vmatprep.subr.bf16.mxu0 %v11473_v42  ;;  %v11557_v42 = vld [vmem:[%s12313_s27 + $0x1ae4] ss:$8 sps:$4 sm:$0xff]  }
 0x2be   : > { %3949 = vmatmul.mubr.bf16.vlgmr.msra.gmra.mrb[0].mxu1 %v8931_v55  ;;  %v11552_v55 = vld [vmem:[%s12313_s27 + $0x2e0] ss:$8 sps:$4 sm:$0xff]  }
 0x2bf   : > { %7917 = vmatmul.mubr.bf16.vlgmr.msra.gmra.mrb[0].mxu0 %v10021_v7  ;;  %3960 = vmatpush1.bf16.msra.mxu1 %v11468_v32  ;;  %v11555_v7 = vld [vmem:[%s12313_s27 + $0x1ae0] ss:$8 sps:$4 sm:$0xff]   ;;  %v11560_v32 = vld [vmem:[%s12313_s27 + $0x2f4] ss:$8 sps:$4 sm:$0xff]  }
 0x2c0   : > { %7928 = vmatpush1.bf16.msra.mxu0 %v11471_v33  ;;  %3961 = vmatprep.subr.bf16.mxu1 %v11476_v35  ;;  %v11563_v33 = vld [vmem:[%s12313_s27 + $0x1af4] ss:$8 sps:$4 sm:$0xff]   ;;  %v11558_v35 = vld [vmem:[%s12313_s27 + $0x2f0] ss:$8 sps:$4 sm:$0xff]  }
 0x2c1   : > { %7929 = vmatprep.subr.bf16.mxu0 %v11479_v47  ;;  %3991 = vmatprep.mubr.bf16.mxu1 %v8934_v63  ;;  %v11561_v47 = vld [vmem:[%s12313_s27 + $0x1af0] ss:$8 sps:$4 sm:$0xff]   ;;  %v11566_v63 = vld [vmem:[%s12313_s27 + $0x304] ss:$8 sps:$4 sm:$0xff]  }
 0x2c2   : > { %7959 = vmatprep.mubr.bf16.mxu0 %v10024_v15  ;;  %v11569_v15 = vld [vmem:[%s12313_s27 + $0x1b04] ss:$8 sps:$4 sm:$0xff]  }
 0x2c3   : > { %3962 = vmatpush1.bf16.msra.mxu1 %v11474_v36  ;;  %v13238_v36 = vld [vmem:[%s12373_s30 + $0x18] sm:$0xff] }
 0x2c4   : > { %7930 = vmatpush1.bf16.msra.mxu0 %v11477_v37  ;;  %3963 = vmatprep.subr.bf16.mxu1 %v11482_v24  ;;  %v8933_v37 = vcombine.low %v13154_v43, %v13161_v23  ;;  %v10023_v24 = vcombine.low %v13164_v26, %v13167_v27  ;;  %v11572_v43 = vld [vmem:[%s12313_s27 + $0x314] ss:$8 sps:$4 sm:$0xff]  }
 0x2c5   : > { %7931 = vmatprep.subr.bf16.mxu0 %v11485_v25  ;;  %v13245_v25 = vld [vmem:[%s12373_s30 + $0x58] sm:$0xff] }
 0x2c6   : > { %v11575_v23 = vld [vmem:[%s12313_s27 + $0x1b14] ss:$8 sps:$4 sm:$0xff]   ;;  %v8936_v26 = vcombine.high %v13238_v36, %v13245_v25 }
 0x2c7   : > { %3964 = vmatpush1.bf16.msra.mxu1 %v11480_v29  ;;  %v13248_v29 = vld [vmem:[%s12373_s30 + $0x218] sm:$0xff] }
 0x2c8   : > { %7932 = vmatpush1.bf16.msra.mxu0 %v11483_v30  ;;  %3965 = vmatprep.subr.bf16.mxu1 %v11488_v40  ;;  %v13251_v30 = vld [vmem:[%s12373_s30 + $0x258] sm:$0xff]  ;;  %v11564_v40 = vld [vmem:[%s12313_s27 + $0x300] ss:$8 sps:$4 sm:$0xff]  }
 0x2c9   : > { %7933 = vmatprep.subr.bf16.mxu0 %v11491_v41  ;;  %v11567_v41 = vld [vmem:[%s12313_s27 + $0x1b00] ss:$8 sps:$4 sm:$0xff]   ;;  %v10026_v27 = vcombine.high %v13248_v29, %v13251_v30 }
 0x2cb   : > { %3966 = vmatpush1.bf16.msra.mxu1 %v11486_v44  ;;  %v11570_v44 = vld [vmem:[%s12313_s27 + $0x310] ss:$8 sps:$4 sm:$0xff]  }
 0x2cc   : > { %7934 = vmatpush1.bf16.msra.mxu0 %v11489_v45  ;;  %3967 = vmatprep.subr.bf16.mxu1 %v11494_v46  ;;  %v11573_v45 = vld [vmem:[%s12313_s27 + $0x1b10] ss:$8 sps:$4 sm:$0xff]   ;;  %v11578_v46 = vld [vmem:[%s12313_s27 + $0x324] ss:$8 sps:$4 sm:$0xff]  }
 0x2cd   : > { %7935 = vmatprep.subr.bf16.mxu0 %v11497_v28  ;;  %v11581_v28 = vld [vmem:[%s12313_s27 + $0x1b24] ss:$8 sps:$4 sm:$0xff]  }
 0x2cf   : > { %3968 = vmatpush1.bf16.msra.mxu1 %v11492_v48  ;;  %v11576_v48 = vld [vmem:[%s12313_s27 + $0x320] ss:$8 sps:$4 sm:$0xff]  }
 0x2d0   : > { %7936 = vmatpush1.bf16.msra.mxu0 %v11495_v49  ;;  %3969 = vmatprep.subr.bf16.mxu1 %v11500_v50  ;;  %v11579_v49 = vld [vmem:[%s12313_s27 + $0x1b20] ss:$8 sps:$4 sm:$0xff]   ;;  %v11584_v50 = vld [vmem:[%s12313_s27 + $0x334] ss:$8 sps:$4 sm:$0xff]  }
 0x2d1   : > { %7937 = vmatprep.subr.bf16.mxu0 %v11503_v51  ;;  %v11587_v51 = vld [vmem:[%s12313_s27 + $0x1b34] ss:$8 sps:$4 sm:$0xff]  }
 0x2d3   : > { %3970 = vmatpush1.bf16.msra.mxu1 %v11498_v52  ;;  %v11582_v52 = vld [vmem:[%s12313_s27 + $0x330] ss:$8 sps:$4 sm:$0xff]  }
 0x2d4   : > { %7938 = vmatpush1.bf16.msra.mxu0 %v11501_v53  ;;  %3971 = vmatprep.subr.bf16.mxu1 %v11506_v54  ;;  %v11585_v53 = vld [vmem:[%s12313_s27 + $0x1b30] ss:$8 sps:$4 sm:$0xff]   ;;  %v11590_v54 = vld [vmem:[%s12313_s27 + $0x344] ss:$8 sps:$4 sm:$0xff]  }
 0x2d5   : > { %7939 = vmatprep.subr.bf16.mxu0 %v11509_v38  ;;  %v11593_v38 = vld [vmem:[%s12313_s27 + $0x1b44] ss:$8 sps:$4 sm:$0xff]  }
 0x2d7   : > { %3972 = vmatpush1.bf16.msra.mxu1 %v11504_v56  ;;  %v11588_v56 = vld [vmem:[%s12313_s27 + $0x340] ss:$8 sps:$4 sm:$0xff]  }
 0x2d8   : > { %7940 = vmatpush1.bf16.msra.mxu0 %v11507_v57  ;;  %3973 = vmatprep.subr.bf16.mxu1 %v11512_v58  ;;  %v11591_v57 = vld [vmem:[%s12313_s27 + $0x1b40] ss:$8 sps:$4 sm:$0xff]   ;;  %v11596_v58 = vld [vmem:[%s12313_s27 + $0x354] ss:$8 sps:$4 sm:$0xff]  }
 0x2d9   : > { %7941 = vmatprep.subr.bf16.mxu0 %v11515_v59  ;;  %v11599_v59 = vld [vmem:[%s12313_s27 + $0x1b54] ss:$8 sps:$4 sm:$0xff]  }
 0x2db   : > { %3974 = vmatpush1.bf16.msra.mxu1 %v11510_v60  ;;  %v11594_v60 = vld [vmem:[%s12313_s27 + $0x350] ss:$8 sps:$4 sm:$0xff]  }
 0x2dc   : > { %7942 = vmatpush1.bf16.msra.mxu0 %v11513_v61  ;;  %3975 = vmatprep.subr.bf16.mxu1 %v11518_v62  ;;  %v11597_v61 = vld [vmem:[%s12313_s27 + $0x1b50] ss:$8 sps:$4 sm:$0xff]   ;;  %v11602_v62 = vld [vmem:[%s12313_s27 + $0x364] ss:$8 sps:$4 sm:$0xff]  }
 0x2dd   : > { %7943 = vmatprep.subr.bf16.mxu0 %v11521_v31  ;;  %v11605_v31 = vld [vmem:[%s12313_s27 + $0x1b64] ss:$8 sps:$4 sm:$0xff]  }
 0x2df   : > { %3976 = vmatpush1.bf16.msra.mxu1 %v11516_v0  ;;  %v11600_v0 = vld [vmem:[%s12313_s27 + $0x360] ss:$8 sps:$4 sm:$0xff]  }
 0x2e0   : > { %7944 = vmatpush1.bf16.msra.mxu0 %v11519_v1  ;;  %3977 = vmatprep.subr.bf16.mxu1 %v11524_v2  ;;  %v11603_v1 = vld [vmem:[%s12313_s27 + $0x1b60] ss:$8 sps:$4 sm:$0xff]   ;;  %v11608_v2 = vld [vmem:[%s12313_s27 + $0x374] ss:$8 sps:$4 sm:$0xff]  }
 0x2e1   : > { %7945 = vmatprep.subr.bf16.mxu0 %v11527_v3  ;;  %v11611_v3 = vld [vmem:[%s12313_s27 + $0x1b74] ss:$8 sps:$4 sm:$0xff]  }
 0x2e3   : > { %3978 = vmatpush1.bf16.msra.mxu1 %v11522_v4  ;;  %v11606_v4 = vld [vmem:[%s12313_s27 + $0x370] ss:$8 sps:$4 sm:$0xff]  }
 0x2e4   : > { %7946 = vmatpush1.bf16.msra.mxu0 %v11525_v5  ;;  %3979 = vmatprep.subr.bf16.mxu1 %v11530_v6  ;;  %v11609_v5 = vld [vmem:[%s12313_s27 + $0x1b70] ss:$8 sps:$4 sm:$0xff]   ;;  %v11614_v6 = vld [vmem:[%s12313_s27 + $0x384] ss:$8 sps:$4 sm:$0xff]  }
 0x2e5   : > { %7947 = vmatprep.subr.bf16.mxu0 %v11533_v39  ;;  %v11617_v39 = vld [vmem:[%s12313_s27 + $0x1b84] ss:$8 sps:$4 sm:$0xff]  }
 0x2e7   : > { %3980 = vmatpush1.bf16.msra.mxu1 %v11528_v8  ;;  %v11612_v8 = vld [vmem:[%s12313_s27 + $0x380] ss:$8 sps:$4 sm:$0xff]  }
 0x2e8   : > { %7948 = vmatpush1.bf16.msra.mxu0 %v11531_v9  ;;  %3981 = vmatprep.subr.bf16.mxu1 %v11536_v10  ;;  %v11615_v9 = vld [vmem:[%s12313_s27 + $0x1b80] ss:$8 sps:$4 sm:$0xff]   ;;  %v11620_v10 = vld [vmem:[%s12313_s27 + $0x394] ss:$8 sps:$4 sm:$0xff]  }
 0x2e9   : > { %7949 = vmatprep.subr.bf16.mxu0 %v11539_v11  ;;  %v11623_v11 = vld [vmem:[%s12313_s27 + $0x1b94] ss:$8 sps:$4 sm:$0xff]  }
 0x2eb   : > { %3982 = vmatpush1.bf16.msra.mxu1 %v11534_v12  ;;  %v11618_v12 = vld [vmem:[%s12313_s27 + $0x390] ss:$8 sps:$4 sm:$0xff]  }
 0x2ec   : > { %7950 = vmatpush1.bf16.msra.mxu0 %v11537_v13  ;;  %3983 = vmatprep.subr.bf16.mxu1 %v11542_v14  ;;  %v11621_v13 = vld [vmem:[%s12313_s27 + $0x1b90] ss:$8 sps:$4 sm:$0xff]   ;;  %v11626_v14 = vld [vmem:[%s12313_s27 + $0x3a4] ss:$8 sps:$4 sm:$0xff]  }
 0x2ed   : > { %7951 = vmatprep.subr.bf16.mxu0 %v11545_v34  ;;  %v11629_v34 = vld [vmem:[%s12313_s27 + $0x1ba4] ss:$8 sps:$4 sm:$0xff]  }
 0x2ef   : > { %3984 = vmatpush1.bf16.msra.mxu1 %v11540_v16  ;;  %v11624_v16 = vld [vmem:[%s12313_s27 + $0x3a0] ss:$8 sps:$4 sm:$0xff]  }
 0x2f0   : > { %7952 = vmatpush1.bf16.msra.mxu0 %v11543_v17  ;;  %3985 = vmatprep.subr.bf16.mxu1 %v11548_v18  ;;  %v11627_v17 = vld [vmem:[%s12313_s27 + $0x1ba0] ss:$8 sps:$4 sm:$0xff]   ;;  %v11632_v18 = vld [vmem:[%s12313_s27 + $0x3b4] ss:$8 sps:$4 sm:$0xff]  }
 0x2f1   : > { %7953 = vmatprep.subr.bf16.mxu0 %v11551_v19  ;;  %v11635_v19 = vld [vmem:[%s12313_s27 + $0x1bb4] ss:$8 sps:$4 sm:$0xff]  }
 0x2f3   : > { %3986 = vmatpush1.bf16.msra.mxu1 %v11546_v20  ;;  %v11630_v20 = vld [vmem:[%s12313_s27 + $0x3b0] ss:$8 sps:$4 sm:$0xff]  }
 0x2f4   : > { %7954 = vmatpush1.bf16.msra.mxu0 %v11549_v21  ;;  %3987 = vmatprep.subr.bf16.mxu1 %v11554_v22  ;;  %v11633_v21 = vld [vmem:[%s12313_s27 + $0x1bb0] ss:$8 sps:$4 sm:$0xff]   ;;  %v11638_v22 = vld [vmem:[%s12313_s27 + $0x3c4] ss:$8 sps:$4 sm:$0xff]  }
 0x2f5   : > { %7955 = vmatprep.subr.bf16.mxu0 %v11557_v42  ;;  %v11641_v42 = vld [vmem:[%s12313_s27 + $0x1bc4] ss:$8 sps:$4 sm:$0xff]  }
 0x2f7   : > { %3988 = vmatpush1.bf16.msra.mxu1 %v11552_v55  ;;  %v11636_v55 = vld [vmem:[%s12313_s27 + $0x3c0] ss:$8 sps:$4 sm:$0xff]  }
 0x2f8   : > { %7956 = vmatpush1.bf16.msra.mxu0 %v11555_v7  ;;  %3989 = vmatprep.subr.bf16.mxu1 %v11560_v32  ;;  %v11639_v7 = vld [vmem:[%s12313_s27 + $0x1bc0] ss:$8 sps:$4 sm:$0xff]   ;;  %v11644_v32 = vld [vmem:[%s12313_s27 + $0x3d4] ss:$8 sps:$4 sm:$0xff]  }
 0x2f9   : > { %7957 = vmatprep.subr.bf16.mxu0 %v11563_v33  ;;  %v11647_v33 = vld [vmem:[%s12313_s27 + $0x1bd4] ss:$8 sps:$4 sm:$0xff]  }
 0x2fb   : > { %3990 = vmatpush1.bf16.msra.mxu1 %v11558_v35  ;;  %v11642_v35 = vld [vmem:[%s12313_s27 + $0x3d0] ss:$8 sps:$4 sm:$0xff]  }
 0x2fc   : > { %7958 = vmatpush1.bf16.msra.mxu0 %v11561_v47  ;;  %4002 = vmatprep.subr.bf16.mxu1 %v11566_v63  ;;  %v11645_v47 = vld [vmem:[%s12313_s27 + $0x1bd0] ss:$8 sps:$4 sm:$0xff]   ;;  %v11650_v63 = vld [vmem:[%s12313_s27 + $0x3e4] ss:$8 sps:$4 sm:$0xff]  }
 0x2fd   : > { %7970 = vmatprep.subr.bf16.mxu0 %v11569_v15  ;;  %v11653_v15 = vld [vmem:[%s12313_s27 + $0x1be4] ss:$8 sps:$4 sm:$0xff]  }
 0x2fe   : > { %3992 = vmatmul.mubr.bf16.vlgmr.msra.gmra.mrb[0].mxu1 %v8933_v37  ;;  %v11648_v37 = vld [vmem:[%s12313_s27 + $0x3e0] ss:$8 sps:$4 sm:$0xff]  }
 0x2ff   : > { %7960 = vmatmul.mubr.bf16.vlgmr.msra.gmra.mrb[0].mxu0 %v10023_v24  ;;  %4003 = vmatpush1.bf16.msra.mxu1 %v11564_v40  ;;  %v11651_v24 = vld [vmem:[%s12313_s27 + $0x1be0] ss:$8 sps:$4 sm:$0xff]   ;;  %v11656_v40 = vld [vmem:[%s12313_s27 + $0x3f4] ss:$8 sps:$4 sm:$0xff]  }
 0x300   : > { %7971 = vmatpush1.bf16.msra.mxu0 %v11567_v41  ;;  %4004 = vmatprep.subr.bf16.mxu1 %v11572_v43  ;;  %v11659_v41 = vld [vmem:[%s12313_s27 + $0x1bf4] ss:$8 sps:$4 sm:$0xff]   ;;  %v11654_v43 = vld [vmem:[%s12313_s27 + $0x3f0] ss:$8 sps:$4 sm:$0xff]  }
 0x301   : > { %7972 = vmatprep.subr.bf16.mxu0 %v11575_v23  ;;  %4034 = vmatprep.mubr.bf16.mxu1 %v8936_v26  ;;  %v11657_v23 = vld [vmem:[%s12313_s27 + $0x1bf0] ss:$8 sps:$4 sm:$0xff]   ;;  %v11662_v26 = vld [vmem:[%s12313_s27 + $0x404] ss:$8 sps:$4 sm:$0xff]  }
 0x302   : > { %8002 = vmatprep.mubr.bf16.mxu0 %v10026_v27  ;;  %v11665_v27 = vld [vmem:[%s12313_s27 + $0x1c04] ss:$8 sps:$4 sm:$0xff]  }
 0x303   : > { %4005 = vmatpush1.bf16.msra.mxu1 %v11570_v44  ;;  %v13322_v44 = vld [vmem:[%s12373_s30 + $0x20] sm:$0xff] }
 0x304   : > { %7973 = vmatpush1.bf16.msra.mxu0 %v11573_v45  ;;  %4006 = vmatprep.subr.bf16.mxu1 %v11578_v46  ;;  %v8935_v45 = vcombine.low %v13238_v36, %v13245_v25  ;;  %v10025_v46 = vcombine.low %v13248_v29, %v13251_v30  ;;  %v11668_v36 = vld [vmem:[%s12313_s27 + $0x414] ss:$8 sps:$4 sm:$0xff]  }
 0x305   : > { %7974 = vmatprep.subr.bf16.mxu0 %v11581_v28  ;;  %v13329_v28 = vld [vmem:[%s12373_s30 + $0x60] sm:$0xff]  ;;  %v11671_v25 = vld [vmem:[%s12313_s27 + $0x1c14] ss:$8 sps:$4 sm:$0xff]  }
 0x306   : > { %v8938_v29 = vcombine.high %v13322_v44, %v13329_v28 }
 0x307   : > { %4007 = vmatpush1.bf16.msra.mxu1 %v11576_v48  ;;  %v13332_v48 = vld [vmem:[%s12373_s30 + $0x220] sm:$0xff] }
 0x308   : > { %7975 = vmatpush1.bf16.msra.mxu0 %v11579_v49  ;;  %4008 = vmatprep.subr.bf16.mxu1 %v11584_v50  ;;  %v13335_v49 = vld [vmem:[%s12373_s30 + $0x260] sm:$0xff] }
 0x309   : > { %7976 = vmatprep.subr.bf16.mxu0 %v11587_v51  ;;  %v11660_v50 = vld [vmem:[%s12313_s27 + $0x400] ss:$8 sps:$4 sm:$0xff]   ;;  %v10028_v30 = vcombine.high %v13332_v48, %v13335_v49 }
 0x30a   : > { %v11663_v51 = vld [vmem:[%s12313_s27 + $0x1c00] ss:$8 sps:$4 sm:$0xff]  }
 0x30b   : > { %4009 = vmatpush1.bf16.msra.mxu1 %v11582_v52  ;;  %v11666_v52 = vld [vmem:[%s12313_s27 + $0x410] ss:$8 sps:$4 sm:$0xff]  }
 0x30c   : > { %7977 = vmatpush1.bf16.msra.mxu0 %v11585_v53  ;;  %4010 = vmatprep.subr.bf16.mxu1 %v11590_v54  ;;  %v11669_v53 = vld [vmem:[%s12313_s27 + $0x1c10] ss:$8 sps:$4 sm:$0xff]   ;;  %v11674_v54 = vld [vmem:[%s12313_s27 + $0x424] ss:$8 sps:$4 sm:$0xff]  }
 0x30d   : > { %7978 = vmatprep.subr.bf16.mxu0 %v11593_v38  ;;  %v11677_v38 = vld [vmem:[%s12313_s27 + $0x1c24] ss:$8 sps:$4 sm:$0xff]  }
 0x30f   : > { %4011 = vmatpush1.bf16.msra.mxu1 %v11588_v56  ;;  %v11672_v56 = vld [vmem:[%s12313_s27 + $0x420] ss:$8 sps:$4 sm:$0xff]  }
 0x310   : > { %7979 = vmatpush1.bf16.msra.mxu0 %v11591_v57  ;;  %4012 = vmatprep.subr.bf16.mxu1 %v11596_v58  ;;  %v11675_v57 = vld [vmem:[%s12313_s27 + $0x1c20] ss:$8 sps:$4 sm:$0xff]   ;;  %v11680_v58 = vld [vmem:[%s12313_s27 + $0x434] ss:$8 sps:$4 sm:$0xff]  }
 0x311   : > { %7980 = vmatprep.subr.bf16.mxu0 %v11599_v59  ;;  %v11683_v59 = vld [vmem:[%s12313_s27 + $0x1c34] ss:$8 sps:$4 sm:$0xff]  }
 0x313   : > { %4013 = vmatpush1.bf16.msra.mxu1 %v11594_v60  ;;  %v11678_v60 = vld [vmem:[%s12313_s27 + $0x430] ss:$8 sps:$4 sm:$0xff]  }
 0x314   : > { %7981 = vmatpush1.bf16.msra.mxu0 %v11597_v61  ;;  %4014 = vmatprep.subr.bf16.mxu1 %v11602_v62  ;;  %v11681_v61 = vld [vmem:[%s12313_s27 + $0x1c30] ss:$8 sps:$4 sm:$0xff]   ;;  %v11686_v62 = vld [vmem:[%s12313_s27 + $0x444] ss:$8 sps:$4 sm:$0xff]  }
 0x315   : > { %7982 = vmatprep.subr.bf16.mxu0 %v11605_v31  ;;  %v11689_v31 = vld [vmem:[%s12313_s27 + $0x1c44] ss:$8 sps:$4 sm:$0xff]  }
 0x317   : > { %4015 = vmatpush1.bf16.msra.mxu1 %v11600_v0  ;;  %v11684_v0 = vld [vmem:[%s12313_s27 + $0x440] ss:$8 sps:$4 sm:$0xff]  }
 0x318   : > { %7983 = vmatpush1.bf16.msra.mxu0 %v11603_v1  ;;  %4016 = vmatprep.subr.bf16.mxu1 %v11608_v2  ;;  %v11687_v1 = vld [vmem:[%s12313_s27 + $0x1c40] ss:$8 sps:$4 sm:$0xff]   ;;  %v11692_v2 = vld [vmem:[%s12313_s27 + $0x454] ss:$8 sps:$4 sm:$0xff]  }
 0x319   : > { %7984 = vmatprep.subr.bf16.mxu0 %v11611_v3  ;;  %v11695_v3 = vld [vmem:[%s12313_s27 + $0x1c54] ss:$8 sps:$4 sm:$0xff]  }
 0x31b   : > { %4017 = vmatpush1.bf16.msra.mxu1 %v11606_v4  ;;  %v11690_v4 = vld [vmem:[%s12313_s27 + $0x450] ss:$8 sps:$4 sm:$0xff]  }
 0x31c   : > { %7985 = vmatpush1.bf16.msra.mxu0 %v11609_v5  ;;  %4018 = vmatprep.subr.bf16.mxu1 %v11614_v6  ;;  %v11693_v5 = vld [vmem:[%s12313_s27 + $0x1c50] ss:$8 sps:$4 sm:$0xff]   ;;  %v11698_v6 = vld [vmem:[%s12313_s27 + $0x464] ss:$8 sps:$4 sm:$0xff]  }
 0x31d   : > { %7986 = vmatprep.subr.bf16.mxu0 %v11617_v39  ;;  %v11701_v39 = vld [vmem:[%s12313_s27 + $0x1c64] ss:$8 sps:$4 sm:$0xff]  }
 0x31f   : > { %4019 = vmatpush1.bf16.msra.mxu1 %v11612_v8  ;;  %v11696_v8 = vld [vmem:[%s12313_s27 + $0x460] ss:$8 sps:$4 sm:$0xff]  }
 0x320   : > { %7987 = vmatpush1.bf16.msra.mxu0 %v11615_v9  ;;  %4020 = vmatprep.subr.bf16.mxu1 %v11620_v10  ;;  %v11699_v9 = vld [vmem:[%s12313_s27 + $0x1c60] ss:$8 sps:$4 sm:$0xff]   ;;  %v11704_v10 = vld [vmem:[%s12313_s27 + $0x474] ss:$8 sps:$4 sm:$0xff]  }
 0x321   : > { %7988 = vmatprep.subr.bf16.mxu0 %v11623_v11  ;;  %v11707_v11 = vld [vmem:[%s12313_s27 + $0x1c74] ss:$8 sps:$4 sm:$0xff]  }
 0x323   : > { %4021 = vmatpush1.bf16.msra.mxu1 %v11618_v12  ;;  %v11702_v12 = vld [vmem:[%s12313_s27 + $0x470] ss:$8 sps:$4 sm:$0xff]  }
 0x324   : > { %7989 = vmatpush1.bf16.msra.mxu0 %v11621_v13  ;;  %4022 = vmatprep.subr.bf16.mxu1 %v11626_v14  ;;  %v11705_v13 = vld [vmem:[%s12313_s27 + $0x1c70] ss:$8 sps:$4 sm:$0xff]   ;;  %v11710_v14 = vld [vmem:[%s12313_s27 + $0x484] ss:$8 sps:$4 sm:$0xff]  }
 0x325   : > { %7990 = vmatprep.subr.bf16.mxu0 %v11629_v34  ;;  %v11713_v34 = vld [vmem:[%s12313_s27 + $0x1c84] ss:$8 sps:$4 sm:$0xff]  }
 0x327   : > { %4023 = vmatpush1.bf16.msra.mxu1 %v11624_v16  ;;  %v11708_v16 = vld [vmem:[%s12313_s27 + $0x480] ss:$8 sps:$4 sm:$0xff]  }
 0x328   : > { %7991 = vmatpush1.bf16.msra.mxu0 %v11627_v17  ;;  %4024 = vmatprep.subr.bf16.mxu1 %v11632_v18  ;;  %v11711_v17 = vld [vmem:[%s12313_s27 + $0x1c80] ss:$8 sps:$4 sm:$0xff]   ;;  %v11716_v18 = vld [vmem:[%s12313_s27 + $0x494] ss:$8 sps:$4 sm:$0xff]  }
 0x329   : > { %7992 = vmatprep.subr.bf16.mxu0 %v11635_v19  ;;  %v11719_v19 = vld [vmem:[%s12313_s27 + $0x1c94] ss:$8 sps:$4 sm:$0xff]  }
 0x32b   : > { %4025 = vmatpush1.bf16.msra.mxu1 %v11630_v20  ;;  %v11714_v20 = vld [vmem:[%s12313_s27 + $0x490] ss:$8 sps:$4 sm:$0xff]  }
 0x32c   : > { %7993 = vmatpush1.bf16.msra.mxu0 %v11633_v21  ;;  %4026 = vmatprep.subr.bf16.mxu1 %v11638_v22  ;;  %v11717_v21 = vld [vmem:[%s12313_s27 + $0x1c90] ss:$8 sps:$4 sm:$0xff]   ;;  %v11722_v22 = vld [vmem:[%s12313_s27 + $0x4a4] ss:$8 sps:$4 sm:$0xff]  }
 0x32d   : > { %7994 = vmatprep.subr.bf16.mxu0 %v11641_v42  ;;  %v11725_v42 = vld [vmem:[%s12313_s27 + $0x1ca4] ss:$8 sps:$4 sm:$0xff]  }
 0x32f   : > { %4027 = vmatpush1.bf16.msra.mxu1 %v11636_v55  ;;  %v11720_v55 = vld [vmem:[%s12313_s27 + $0x4a0] ss:$8 sps:$4 sm:$0xff]  }
 0x330   : > { %7995 = vmatpush1.bf16.msra.mxu0 %v11639_v7  ;;  %4028 = vmatprep.subr.bf16.mxu1 %v11644_v32  ;;  %v11723_v7 = vld [vmem:[%s12313_s27 + $0x1ca0] ss:$8 sps:$4 sm:$0xff]   ;;  %v11728_v32 = vld [vmem:[%s12313_s27 + $0x4b4] ss:$8 sps:$4 sm:$0xff]  }
 0x331   : > { %7996 = vmatprep.subr.bf16.mxu0 %v11647_v33  ;;  %v11731_v33 = vld [vmem:[%s12313_s27 + $0x1cb4] ss:$8 sps:$4 sm:$0xff]  }
 0x333   : > { %4029 = vmatpush1.bf16.msra.mxu1 %v11642_v35  ;;  %v11726_v35 = vld [vmem:[%s12313_s27 + $0x4b0] ss:$8 sps:$4 sm:$0xff]  }
 0x334   : > { %7997 = vmatpush1.bf16.msra.mxu0 %v11645_v47  ;;  %4030 = vmatprep.subr.bf16.mxu1 %v11650_v63  ;;  %v11729_v47 = vld [vmem:[%s12313_s27 + $0x1cb0] ss:$8 sps:$4 sm:$0xff]   ;;  %v11734_v63 = vld [vmem:[%s12313_s27 + $0x4c4] ss:$8 sps:$4 sm:$0xff]  }
 0x335   : > { %7998 = vmatprep.subr.bf16.mxu0 %v11653_v15  ;;  %v11737_v15 = vld [vmem:[%s12313_s27 + $0x1cc4] ss:$8 sps:$4 sm:$0xff]  }
 0x337   : > { %4031 = vmatpush1.bf16.msra.mxu1 %v11648_v37  ;;  %v11732_v37 = vld [vmem:[%s12313_s27 + $0x4c0] ss:$8 sps:$4 sm:$0xff]  }
 0x338   : > { %7999 = vmatpush1.bf16.msra.mxu0 %v11651_v24  ;;  %4032 = vmatprep.subr.bf16.mxu1 %v11656_v40  ;;  %v11735_v24 = vld [vmem:[%s12313_s27 + $0x1cc0] ss:$8 sps:$4 sm:$0xff]   ;;  %v11740_v40 = vld [vmem:[%s12313_s27 + $0x4d4] ss:$8 sps:$4 sm:$0xff]  }
 0x339   : > { %8000 = vmatprep.subr.bf16.mxu0 %v11659_v41  ;;  %v11743_v41 = vld [vmem:[%s12313_s27 + $0x1cd4] ss:$8 sps:$4 sm:$0xff]  }
 0x33b   : > { %4033 = vmatpush1.bf16.msra.mxu1 %v11654_v43  ;;  %v11738_v43 = vld [vmem:[%s12313_s27 + $0x4d0] ss:$8 sps:$4 sm:$0xff]  }
 0x33c   : > { %8001 = vmatpush1.bf16.msra.mxu0 %v11657_v23  ;;  %4045 = vmatprep.subr.bf16.mxu1 %v11662_v26  ;;  %v11741_v23 = vld [vmem:[%s12313_s27 + $0x1cd0] ss:$8 sps:$4 sm:$0xff]   ;;  %v11746_v26 = vld [vmem:[%s12313_s27 + $0x4e4] ss:$8 sps:$4 sm:$0xff]  }
 0x33d   : > { %8013 = vmatprep.subr.bf16.mxu0 %v11665_v27  ;;  %v11749_v27 = vld [vmem:[%s12313_s27 + $0x1ce4] ss:$8 sps:$4 sm:$0xff]  }
 0x33e   : > { %4035 = vmatmul.mubr.bf16.vlgmr.msra.gmra.mrb[0].mxu1 %v8935_v45  ;;  %v11744_v45 = vld [vmem:[%s12313_s27 + $0x4e0] ss:$8 sps:$4 sm:$0xff]  }
 0x33f   : > { %8003 = vmatmul.mubr.bf16.vlgmr.msra.gmra.mrb[0].mxu0 %v10025_v46  ;;  %4046 = vmatpush1.bf16.msra.mxu1 %v11660_v50  ;;  %v11747_v46 = vld [vmem:[%s12313_s27 + $0x1ce0] ss:$8 sps:$4 sm:$0xff]   ;;  %v11752_v50 = vld [vmem:[%s12313_s27 + $0x4f4] ss:$8 sps:$4 sm:$0xff]  }
 0x340   : > { %8014 = vmatpush1.bf16.msra.mxu0 %v11663_v51  ;;  %4047 = vmatprep.subr.bf16.mxu1 %v11668_v36  ;;  %v11755_v51 = vld [vmem:[%s12313_s27 + $0x1cf4] ss:$8 sps:$4 sm:$0xff]   ;;  %v11750_v36 = vld [vmem:[%s12313_s27 + $0x4f0] ss:$8 sps:$4 sm:$0xff]  }
 0x341   : > { %8015 = vmatprep.subr.bf16.mxu0 %v11671_v25  ;;  %4077 = vmatprep.mubr.bf16.mxu1 %v8938_v29  ;;  %v11753_v25 = vld [vmem:[%s12313_s27 + $0x1cf0] ss:$8 sps:$4 sm:$0xff]   ;;  %v11758_v29 = vld [vmem:[%s12313_s27 + $0x504] ss:$8 sps:$4 sm:$0xff]  }
 0x342   : > { %8045 = vmatprep.mubr.bf16.mxu0 %v10028_v30  ;;  %v11761_v30 = vld [vmem:[%s12313_s27 + $0x1d04] ss:$8 sps:$4 sm:$0xff]  }
 0x343   : > { %4048 = vmatpush1.bf16.msra.mxu1 %v11666_v52  ;;  %v13406_v52 = vld [vmem:[%s12373_s30 + $0x28] sm:$0xff] }
 0x344   : > { %8016 = vmatpush1.bf16.msra.mxu0 %v11669_v53  ;;  %4049 = vmatprep.subr.bf16.mxu1 %v11674_v54  ;;  %v8937_v53 = vcombine.low %v13322_v44, %v13329_v28  ;;  %v10027_v54 = vcombine.low %v13332_v48, %v13335_v49  ;;  %v11764_v44 = vld [vmem:[%s12313_s27 + $0x514] ss:$8 sps:$4 sm:$0xff]  }
 0x345   : > { %8017 = vmatprep.subr.bf16.mxu0 %v11677_v38  ;;  %v13413_v38 = vld [vmem:[%s12373_s30 + $0x68] sm:$0xff]  ;;  %v11767_v28 = vld [vmem:[%s12313_s27 + $0x1d14] ss:$8 sps:$4 sm:$0xff]  }
 0x346   : > { %v8940_v48 = vcombine.high %v13406_v52, %v13413_v38 }
 0x347   : > { %4050 = vmatpush1.bf16.msra.mxu1 %v11672_v56  ;;  %v13416_v56 = vld [vmem:[%s12373_s30 + $0x228] sm:$0xff] }
 0x348   : > { %8018 = vmatpush1.bf16.msra.mxu0 %v11675_v57  ;;  %4051 = vmatprep.subr.bf16.mxu1 %v11680_v58  ;;  %v13419_v57 = vld [vmem:[%s12373_s30 + $0x268] sm:$0xff] }
 0x349   : > { %8019 = vmatprep.subr.bf16.mxu0 %v11683_v59  ;;  %v11756_v58 = vld [vmem:[%s12313_s27 + $0x500] ss:$8 sps:$4 sm:$0xff]   ;;  %v10030_v49 = vcombine.high %v13416_v56, %v13419_v57 }
 0x34a   : > { %v11759_v59 = vld [vmem:[%s12313_s27 + $0x1d00] ss:$8 sps:$4 sm:$0xff]  }
 0x34b   : > { %4052 = vmatpush1.bf16.msra.mxu1 %v11678_v60  ;;  %v11762_v60 = vld [vmem:[%s12313_s27 + $0x510] ss:$8 sps:$4 sm:$0xff]  }
 0x34c   : > { %8020 = vmatpush1.bf16.msra.mxu0 %v11681_v61  ;;  %4053 = vmatprep.subr.bf16.mxu1 %v11686_v62  ;;  %v11765_v61 = vld [vmem:[%s12313_s27 + $0x1d10] ss:$8 sps:$4 sm:$0xff]   ;;  %v11770_v62 = vld [vmem:[%s12313_s27 + $0x524] ss:$8 sps:$4 sm:$0xff]  }
 0x34d   : > { %8021 = vmatprep.subr.bf16.mxu0 %v11689_v31  ;;  %v11773_v31 = vld [vmem:[%s12313_s27 + $0x1d24] ss:$8 sps:$4 sm:$0xff]  }
 0x34f   : > { %4054 = vmatpush1.bf16.msra.mxu1 %v11684_v0  ;;  %v11768_v0 = vld [vmem:[%s12313_s27 + $0x520] ss:$8 sps:$4 sm:$0xff]  }
 0x350   : > { %8022 = vmatpush1.bf16.msra.mxu0 %v11687_v1  ;;  %4055 = vmatprep.subr.bf16.mxu1 %v11692_v2  ;;  %v11771_v1 = vld [vmem:[%s12313_s27 + $0x1d20] ss:$8 sps:$4 sm:$0xff]   ;;  %v11776_v2 = vld [vmem:[%s12313_s27 + $0x534] ss:$8 sps:$4 sm:$0xff]  }
 0x351   : > { %8023 = vmatprep.subr.bf16.mxu0 %v11695_v3  ;;  %v11779_v3 = vld [vmem:[%s12313_s27 + $0x1d34] ss:$8 sps:$4 sm:$0xff]  }
 0x353   : > { %4056 = vmatpush1.bf16.msra.mxu1 %v11690_v4  ;;  %v11774_v4 = vld [vmem:[%s12313_s27 + $0x530] ss:$8 sps:$4 sm:$0xff]  }
 0x354   : > { %8024 = vmatpush1.bf16.msra.mxu0 %v11693_v5  ;;  %4057 = vmatprep.subr.bf16.mxu1 %v11698_v6  ;;  %v11777_v5 = vld [vmem:[%s12313_s27 + $0x1d30] ss:$8 sps:$4 sm:$0xff]   ;;  %v11782_v6 = vld [vmem:[%s12313_s27 + $0x544] ss:$8 sps:$4 sm:$0xff]  }
 0x355   : > { %8025 = vmatprep.subr.bf16.mxu0 %v11701_v39  ;;  %v11785_v39 = vld [vmem:[%s12313_s27 + $0x1d44] ss:$8 sps:$4 sm:$0xff]  }
 0x357   : > { %4058 = vmatpush1.bf16.msra.mxu1 %v11696_v8  ;;  %v11780_v8 = vld [vmem:[%s12313_s27 + $0x540] ss:$8 sps:$4 sm:$0xff]  }
 0x358   : > { %8026 = vmatpush1.bf16.msra.mxu0 %v11699_v9  ;;  %4059 = vmatprep.subr.bf16.mxu1 %v11704_v10  ;;  %v11783_v9 = vld [vmem:[%s12313_s27 + $0x1d40] ss:$8 sps:$4 sm:$0xff]   ;;  %v11788_v10 = vld [vmem:[%s12313_s27 + $0x554] ss:$8 sps:$4 sm:$0xff]  }
 0x359   : > { %8027 = vmatprep.subr.bf16.mxu0 %v11707_v11  ;;  %v11791_v11 = vld [vmem:[%s12313_s27 + $0x1d54] ss:$8 sps:$4 sm:$0xff]  }
 0x35b   : > { %4060 = vmatpush1.bf16.msra.mxu1 %v11702_v12  ;;  %v11786_v12 = vld [vmem:[%s12313_s27 + $0x550] ss:$8 sps:$4 sm:$0xff]  }
 0x35c   : > { %8028 = vmatpush1.bf16.msra.mxu0 %v11705_v13  ;;  %4061 = vmatprep.subr.bf16.mxu1 %v11710_v14  ;;  %v11789_v13 = vld [vmem:[%s12313_s27 + $0x1d50] ss:$8 sps:$4 sm:$0xff]   ;;  %v11794_v14 = vld [vmem:[%s12313_s27 + $0x564] ss:$8 sps:$4 sm:$0xff]  }
 0x35d   : > { %8029 = vmatprep.subr.bf16.mxu0 %v11713_v34  ;;  %v11797_v34 = vld [vmem:[%s12313_s27 + $0x1d64] ss:$8 sps:$4 sm:$0xff]  }
 0x35f   : > { %4062 = vmatpush1.bf16.msra.mxu1 %v11708_v16  ;;  %v11792_v16 = vld [vmem:[%s12313_s27 + $0x560] ss:$8 sps:$4 sm:$0xff]  }
 0x360   : > { %8030 = vmatpush1.bf16.msra.mxu0 %v11711_v17  ;;  %4063 = vmatprep.subr.bf16.mxu1 %v11716_v18  ;;  %v11795_v17 = vld [vmem:[%s12313_s27 + $0x1d60] ss:$8 sps:$4 sm:$0xff]   ;;  %v11800_v18 = vld [vmem:[%s12313_s27 + $0x574] ss:$8 sps:$4 sm:$0xff]  }
 0x361   : > { %8031 = vmatprep.subr.bf16.mxu0 %v11719_v19  ;;  %v11803_v19 = vld [vmem:[%s12313_s27 + $0x1d74] ss:$8 sps:$4 sm:$0xff]  }
 0x363   : > { %4064 = vmatpush1.bf16.msra.mxu1 %v11714_v20  ;;  %v11798_v20 = vld [vmem:[%s12313_s27 + $0x570] ss:$8 sps:$4 sm:$0xff]  }
 0x364   : > { %8032 = vmatpush1.bf16.msra.mxu0 %v11717_v21  ;;  %4065 = vmatprep.subr.bf16.mxu1 %v11722_v22  ;;  %v11801_v21 = vld [vmem:[%s12313_s27 + $0x1d70] ss:$8 sps:$4 sm:$0xff]   ;;  %v11806_v22 = vld [vmem:[%s12313_s27 + $0x584] ss:$8 sps:$4 sm:$0xff]  }
 0x365   : > { %8033 = vmatprep.subr.bf16.mxu0 %v11725_v42  ;;  %v11809_v42 = vld [vmem:[%s12313_s27 + $0x1d84] ss:$8 sps:$4 sm:$0xff]  }
 0x367   : > { %4066 = vmatpush1.bf16.msra.mxu1 %v11720_v55  ;;  %v11804_v55 = vld [vmem:[%s12313_s27 + $0x580] ss:$8 sps:$4 sm:$0xff]  }
 0x368   : > { %8034 = vmatpush1.bf16.msra.mxu0 %v11723_v7  ;;  %4067 = vmatprep.subr.bf16.mxu1 %v11728_v32  ;;  %v11807_v7 = vld [vmem:[%s12313_s27 + $0x1d80] ss:$8 sps:$4 sm:$0xff]   ;;  %v11812_v32 = vld [vmem:[%s12313_s27 + $0x594] ss:$8 sps:$4 sm:$0xff]  }
 0x369   : > { %8035 = vmatprep.subr.bf16.mxu0 %v11731_v33  ;;  %v11815_v33 = vld [vmem:[%s12313_s27 + $0x1d94] ss:$8 sps:$4 sm:$0xff]  }
 0x36b   : > { %4068 = vmatpush1.bf16.msra.mxu1 %v11726_v35  ;;  %v11810_v35 = vld [vmem:[%s12313_s27 + $0x590] ss:$8 sps:$4 sm:$0xff]  }
 0x36c   : > { %8036 = vmatpush1.bf16.msra.mxu0 %v11729_v47  ;;  %4069 = vmatprep.subr.bf16.mxu1 %v11734_v63  ;;  %v11813_v47 = vld [vmem:[%s12313_s27 + $0x1d90] ss:$8 sps:$4 sm:$0xff]   ;;  %v11818_v63 = vld [vmem:[%s12313_s27 + $0x5a4] ss:$8 sps:$4 sm:$0xff]  }
 0x36d   : > { %8037 = vmatprep.subr.bf16.mxu0 %v11737_v15  ;;  %v11821_v15 = vld [vmem:[%s12313_s27 + $0x1da4] ss:$8 sps:$4 sm:$0xff]  }
 0x36f   : > { %4070 = vmatpush1.bf16.msra.mxu1 %v11732_v37  ;;  %v11816_v37 = vld [vmem:[%s12313_s27 + $0x5a0] ss:$8 sps:$4 sm:$0xff]  }
 0x370   : > { %8038 = vmatpush1.bf16.msra.mxu0 %v11735_v24  ;;  %4071 = vmatprep.subr.bf16.mxu1 %v11740_v40  ;;  %v11819_v24 = vld [vmem:[%s12313_s27 + $0x1da0] ss:$8 sps:$4 sm:$0xff]   ;;  %v11824_v40 = vld [vmem:[%s12313_s27 + $0x5b4] ss:$8 sps:$4 sm:$0xff]  }
 0x371   : > { %8039 = vmatprep.subr.bf16.mxu0 %v11743_v41  ;;  %v11827_v41 = vld [vmem:[%s12313_s27 + $0x1db4] ss:$8 sps:$4 sm:$0xff]  }
 0x373   : > { %4072 = vmatpush1.bf16.msra.mxu1 %v11738_v43  ;;  %v11822_v43 = vld [vmem:[%s12313_s27 + $0x5b0] ss:$8 sps:$4 sm:$0xff]  }
 0x374   : > { %8040 = vmatpush1.bf16.msra.mxu0 %v11741_v23  ;;  %4073 = vmatprep.subr.bf16.mxu1 %v11746_v26  ;;  %v11825_v23 = vld [vmem:[%s12313_s27 + $0x1db0] ss:$8 sps:$4 sm:$0xff]   ;;  %v11830_v26 = vld [vmem:[%s12313_s27 + $0x5c4] ss:$8 sps:$4 sm:$0xff]  }
 0x375   : > { %8041 = vmatprep.subr.bf16.mxu0 %v11749_v27  ;;  %v11833_v27 = vld [vmem:[%s12313_s27 + $0x1dc4] ss:$8 sps:$4 sm:$0xff]  }
 0x377   : > { %4074 = vmatpush1.bf16.msra.mxu1 %v11744_v45  ;;  %v11828_v45 = vld [vmem:[%s12313_s27 + $0x5c0] ss:$8 sps:$4 sm:$0xff]  }
 0x378   : > { %8042 = vmatpush1.bf16.msra.mxu0 %v11747_v46  ;;  %4075 = vmatprep.subr.bf16.mxu1 %v11752_v50  ;;  %v11831_v46 = vld [vmem:[%s12313_s27 + $0x1dc0] ss:$8 sps:$4 sm:$0xff]   ;;  %v11836_v50 = vld [vmem:[%s12313_s27 + $0x5d4] ss:$8 sps:$4 sm:$0xff]  }
 0x379   : > { %8043 = vmatprep.subr.bf16.mxu0 %v11755_v51  ;;  %v11839_v51 = vld [vmem:[%s12313_s27 + $0x1dd4] ss:$8 sps:$4 sm:$0xff]  }
 0x37b   : > { %4076 = vmatpush1.bf16.msra.mxu1 %v11750_v36  ;;  %v11834_v36 = vld [vmem:[%s12313_s27 + $0x5d0] ss:$8 sps:$4 sm:$0xff]  }
 0x37c   : > { %8044 = vmatpush1.bf16.msra.mxu0 %v11753_v25  ;;  %4088 = vmatprep.subr.bf16.mxu1 %v11758_v29  ;;  %v11837_v25 = vld [vmem:[%s12313_s27 + $0x1dd0] ss:$8 sps:$4 sm:$0xff]   ;;  %v11842_v29 = vld [vmem:[%s12313_s27 + $0x5e4] ss:$8 sps:$4 sm:$0xff]  }
 0x37d   : > { %8056 = vmatprep.subr.bf16.mxu0 %v11761_v30  ;;  %v11845_v30 = vld [vmem:[%s12313_s27 + $0x1de4] ss:$8 sps:$4 sm:$0xff]  }
 0x37e   : > { %4078 = vmatmul.mubr.bf16.vlgmr.msra.gmra.mrb[0].mxu1 %v8937_v53  ;;  %v11840_v53 = vld [vmem:[%s12313_s27 + $0x5e0] ss:$8 sps:$4 sm:$0xff]  }
 0x37f   : > { %8046 = vmatmul.mubr.bf16.vlgmr.msra.gmra.mrb[0].mxu0 %v10027_v54  ;;  %4089 = vmatpush1.bf16.msra.mxu1 %v11756_v58  ;;  %v11843_v54 = vld [vmem:[%s12313_s27 + $0x1de0] ss:$8 sps:$4 sm:$0xff]   ;;  %v11848_v58 = vld [vmem:[%s12313_s27 + $0x5f4] ss:$8 sps:$4 sm:$0xff]  }
 0x380   : > { %8057 = vmatpush1.bf16.msra.mxu0 %v11759_v59  ;;  %4090 = vmatprep.subr.bf16.mxu1 %v11764_v44  ;;  %v11851_v59 = vld [vmem:[%s12313_s27 + $0x1df4] ss:$8 sps:$4 sm:$0xff]   ;;  %v11846_v44 = vld [vmem:[%s12313_s27 + $0x5f0] ss:$8 sps:$4 sm:$0xff]  }
 0x381   : > { %8058 = vmatprep.subr.bf16.mxu0 %v11767_v28  ;;  %4120 = vmatprep.mubr.bf16.mxu1 %v8940_v48  ;;  %v11849_v28 = vld [vmem:[%s12313_s27 + $0x1df0] ss:$8 sps:$4 sm:$0xff]   ;;  %v11854_v48 = vld [vmem:[%s12313_s27 + $0x604] ss:$8 sps:$4 sm:$0xff]  }
 0x382   : > { %8088 = vmatprep.mubr.bf16.mxu0 %v10030_v49  ;;  %v11857_v49 = vld [vmem:[%s12313_s27 + $0x1e04] ss:$8 sps:$4 sm:$0xff]  }
 0x383   : > { %4091 = vmatpush1.bf16.msra.mxu1 %v11762_v60  ;;  %v13490_v60 = vld [vmem:[%s12373_s30 + $0x30] sm:$0xff] }
 0x384   : > { %8059 = vmatpush1.bf16.msra.mxu0 %v11765_v61  ;;  %4092 = vmatprep.subr.bf16.mxu1 %v11770_v62  ;;  %v8939_v61 = vcombine.low %v13406_v52, %v13413_v38  ;;  %v10029_v62 = vcombine.low %v13416_v56, %v13419_v57  ;;  %v11860_v52 = vld [vmem:[%s12313_s27 + $0x614] ss:$8 sps:$4 sm:$0xff]  }
 0x385   : > { %8060 = vmatprep.subr.bf16.mxu0 %v11773_v31  ;;  %v13497_v31 = vld [vmem:[%s12373_s30 + $0x70] sm:$0xff] }
 0x386   : > { %v11863_v38 = vld [vmem:[%s12313_s27 + $0x1e14] ss:$8 sps:$4 sm:$0xff]   ;;  %v8942_v56 = vcombine.high %v13490_v60, %v13497_v31 }
 0x387   : > { %4093 = vmatpush1.bf16.msra.mxu1 %v11768_v0  ;;  %v13500_v0 = vld [vmem:[%s12373_s30 + $0x230] sm:$0xff] }
 0x388   : > { %8061 = vmatpush1.bf16.msra.mxu0 %v11771_v1  ;;  %4094 = vmatprep.subr.bf16.mxu1 %v11776_v2  ;;  %v13503_v1 = vld [vmem:[%s12373_s30 + $0x270] sm:$0xff]  ;;  %v11852_v2 = vld [vmem:[%s12313_s27 + $0x600] ss:$8 sps:$4 sm:$0xff]  }
 0x389   : > { %8062 = vmatprep.subr.bf16.mxu0 %v11779_v3  ;;  %v11855_v3 = vld [vmem:[%s12313_s27 + $0x1e00] ss:$8 sps:$4 sm:$0xff]   ;;  %v10032_v57 = vcombine.high %v13500_v0, %v13503_v1 }
 0x38b   : > { %4095 = vmatpush1.bf16.msra.mxu1 %v11774_v4  ;;  %v11858_v4 = vld [vmem:[%s12313_s27 + $0x610] ss:$8 sps:$4 sm:$0xff]  }
 0x38c   : > { %8063 = vmatpush1.bf16.msra.mxu0 %v11777_v5  ;;  %4096 = vmatprep.subr.bf16.mxu1 %v11782_v6  ;;  %v11861_v5 = vld [vmem:[%s12313_s27 + $0x1e10] ss:$8 sps:$4 sm:$0xff]   ;;  %v11866_v6 = vld [vmem:[%s12313_s27 + $0x624] ss:$8 sps:$4 sm:$0xff]  }
 0x38d   : > { %8064 = vmatprep.subr.bf16.mxu0 %v11785_v39  ;;  %v11869_v39 = vld [vmem:[%s12313_s27 + $0x1e24] ss:$8 sps:$4 sm:$0xff]  }
 0x38f   : > { %4097 = vmatpush1.bf16.msra.mxu1 %v11780_v8  ;;  %v11864_v8 = vld [vmem:[%s12313_s27 + $0x620] ss:$8 sps:$4 sm:$0xff]  }
 0x390   : > { %8065 = vmatpush1.bf16.msra.mxu0 %v11783_v9  ;;  %4098 = vmatprep.subr.bf16.mxu1 %v11788_v10  ;;  %v11867_v9 = vld [vmem:[%s12313_s27 + $0x1e20] ss:$8 sps:$4 sm:$0xff]   ;;  %v11872_v10 = vld [vmem:[%s12313_s27 + $0x634] ss:$8 sps:$4 sm:$0xff]  }
 0x391   : > { %8066 = vmatprep.subr.bf16.mxu0 %v11791_v11  ;;  %v11875_v11 = vld [vmem:[%s12313_s27 + $0x1e34] ss:$8 sps:$4 sm:$0xff]  }
 0x393   : > { %4099 = vmatpush1.bf16.msra.mxu1 %v11786_v12  ;;  %v11870_v12 = vld [vmem:[%s12313_s27 + $0x630] ss:$8 sps:$4 sm:$0xff]  }
 0x394   : > { %8067 = vmatpush1.bf16.msra.mxu0 %v11789_v13  ;;  %4100 = vmatprep.subr.bf16.mxu1 %v11794_v14  ;;  %v11873_v13 = vld [vmem:[%s12313_s27 + $0x1e30] ss:$8 sps:$4 sm:$0xff]   ;;  %v11878_v14 = vld [vmem:[%s12313_s27 + $0x644] ss:$8 sps:$4 sm:$0xff]  }
 0x395   : > { %8068 = vmatprep.subr.bf16.mxu0 %v11797_v34  ;;  %v11881_v34 = vld [vmem:[%s12313_s27 + $0x1e44] ss:$8 sps:$4 sm:$0xff]  }
 0x397   : > { %4101 = vmatpush1.bf16.msra.mxu1 %v11792_v16  ;;  %v11876_v16 = vld [vmem:[%s12313_s27 + $0x640] ss:$8 sps:$4 sm:$0xff]  }
 0x398   : > { %8069 = vmatpush1.bf16.msra.mxu0 %v11795_v17  ;;  %4102 = vmatprep.subr.bf16.mxu1 %v11800_v18  ;;  %v11879_v17 = vld [vmem:[%s12313_s27 + $0x1e40] ss:$8 sps:$4 sm:$0xff]   ;;  %v11884_v18 = vld [vmem:[%s12313_s27 + $0x654] ss:$8 sps:$4 sm:$0xff]  }
 0x399   : > { %8070 = vmatprep.subr.bf16.mxu0 %v11803_v19  ;;  %v11887_v19 = vld [vmem:[%s12313_s27 + $0x1e54] ss:$8 sps:$4 sm:$0xff]  }
 0x39b   : > { %4103 = vmatpush1.bf16.msra.mxu1 %v11798_v20  ;;  %v11882_v20 = vld [vmem:[%s12313_s27 + $0x650] ss:$8 sps:$4 sm:$0xff]  }
 0x39c   : > { %8071 = vmatpush1.bf16.msra.mxu0 %v11801_v21  ;;  %4104 = vmatprep.subr.bf16.mxu1 %v11806_v22  ;;  %v11885_v21 = vld [vmem:[%s12313_s27 + $0x1e50] ss:$8 sps:$4 sm:$0xff]   ;;  %v11890_v22 = vld [vmem:[%s12313_s27 + $0x664] ss:$8 sps:$4 sm:$0xff]  }
 0x39d   : > { %8072 = vmatprep.subr.bf16.mxu0 %v11809_v42  ;;  %v11893_v42 = vld [vmem:[%s12313_s27 + $0x1e64] ss:$8 sps:$4 sm:$0xff]  }
 0x39f   : > { %4105 = vmatpush1.bf16.msra.mxu1 %v11804_v55  ;;  %v11888_v55 = vld [vmem:[%s12313_s27 + $0x660] ss:$8 sps:$4 sm:$0xff]  }
 0x3a0   : > { %8073 = vmatpush1.bf16.msra.mxu0 %v11807_v7  ;;  %4106 = vmatprep.subr.bf16.mxu1 %v11812_v32  ;;  %v11891_v7 = vld [vmem:[%s12313_s27 + $0x1e60] ss:$8 sps:$4 sm:$0xff]   ;;  %v11896_v32 = vld [vmem:[%s12313_s27 + $0x674] ss:$8 sps:$4 sm:$0xff]  }
 0x3a1   : > { %8074 = vmatprep.subr.bf16.mxu0 %v11815_v33  ;;  %v11899_v33 = vld [vmem:[%s12313_s27 + $0x1e74] ss:$8 sps:$4 sm:$0xff]  }
 0x3a3   : > { %4107 = vmatpush1.bf16.msra.mxu1 %v11810_v35  ;;  %v11894_v35 = vld [vmem:[%s12313_s27 + $0x670] ss:$8 sps:$4 sm:$0xff]  }
 0x3a4   : > { %8075 = vmatpush1.bf16.msra.mxu0 %v11813_v47  ;;  %4108 = vmatprep.subr.bf16.mxu1 %v11818_v63  ;;  %v11897_v47 = vld [vmem:[%s12313_s27 + $0x1e70] ss:$8 sps:$4 sm:$0xff]   ;;  %v11902_v63 = vld [vmem:[%s12313_s27 + $0x684] ss:$8 sps:$4 sm:$0xff]  }
 0x3a5   : > { %8076 = vmatprep.subr.bf16.mxu0 %v11821_v15  ;;  %v11905_v15 = vld [vmem:[%s12313_s27 + $0x1e84] ss:$8 sps:$4 sm:$0xff]  }
 0x3a7   : > { %4109 = vmatpush1.bf16.msra.mxu1 %v11816_v37  ;;  %v11900_v37 = vld [vmem:[%s12313_s27 + $0x680] ss:$8 sps:$4 sm:$0xff]  }
 0x3a8   : > { %8077 = vmatpush1.bf16.msra.mxu0 %v11819_v24  ;;  %4110 = vmatprep.subr.bf16.mxu1 %v11824_v40  ;;  %v11903_v24 = vld [vmem:[%s12313_s27 + $0x1e80] ss:$8 sps:$4 sm:$0xff]   ;;  %v11908_v40 = vld [vmem:[%s12313_s27 + $0x694] ss:$8 sps:$4 sm:$0xff]  }
 0x3a9   : > { %8078 = vmatprep.subr.bf16.mxu0 %v11827_v41  ;;  %v11911_v41 = vld [vmem:[%s12313_s27 + $0x1e94] ss:$8 sps:$4 sm:$0xff]  }
 0x3ab   : > { %4111 = vmatpush1.bf16.msra.mxu1 %v11822_v43  ;;  %v11906_v43 = vld [vmem:[%s12313_s27 + $0x690] ss:$8 sps:$4 sm:$0xff]  }
 0x3ac   : > { %8079 = vmatpush1.bf16.msra.mxu0 %v11825_v23  ;;  %4112 = vmatprep.subr.bf16.mxu1 %v11830_v26  ;;  %v11909_v23 = vld [vmem:[%s12313_s27 + $0x1e90] ss:$8 sps:$4 sm:$0xff]   ;;  %v11914_v26 = vld [vmem:[%s12313_s27 + $0x6a4] ss:$8 sps:$4 sm:$0xff]  }
 0x3ad   : > { %8080 = vmatprep.subr.bf16.mxu0 %v11833_v27  ;;  %v11917_v27 = vld [vmem:[%s12313_s27 + $0x1ea4] ss:$8 sps:$4 sm:$0xff]  }
 0x3af   : > { %4113 = vmatpush1.bf16.msra.mxu1 %v11828_v45  ;;  %v11912_v45 = vld [vmem:[%s12313_s27 + $0x6a0] ss:$8 sps:$4 sm:$0xff]  }
 0x3b0   : > { %8081 = vmatpush1.bf16.msra.mxu0 %v11831_v46  ;;  %4114 = vmatprep.subr.bf16.mxu1 %v11836_v50  ;;  %v11915_v46 = vld [vmem:[%s12313_s27 + $0x1ea0] ss:$8 sps:$4 sm:$0xff]   ;;  %v11920_v50 = vld [vmem:[%s12313_s27 + $0x6b4] ss:$8 sps:$4 sm:$0xff]  }
 0x3b1   : > { %8082 = vmatprep.subr.bf16.mxu0 %v11839_v51  ;;  %v11923_v51 = vld [vmem:[%s12313_s27 + $0x1eb4] ss:$8 sps:$4 sm:$0xff]  }
 0x3b3   : > { %4115 = vmatpush1.bf16.msra.mxu1 %v11834_v36  ;;  %v11918_v36 = vld [vmem:[%s12313_s27 + $0x6b0] ss:$8 sps:$4 sm:$0xff]  }
 0x3b4   : > { %8083 = vmatpush1.bf16.msra.mxu0 %v11837_v25  ;;  %4116 = vmatprep.subr.bf16.mxu1 %v11842_v29  ;;  %v11921_v25 = vld [vmem:[%s12313_s27 + $0x1eb0] ss:$8 sps:$4 sm:$0xff]   ;;  %v11926_v29 = vld [vmem:[%s12313_s27 + $0x6c4] ss:$8 sps:$4 sm:$0xff]  }
 0x3b5   : > { %8084 = vmatprep.subr.bf16.mxu0 %v11845_v30  ;;  %v11929_v30 = vld [vmem:[%s12313_s27 + $0x1ec4] ss:$8 sps:$4 sm:$0xff]  }
 0x3b7   : > { %4117 = vmatpush1.bf16.msra.mxu1 %v11840_v53  ;;  %v11924_v53 = vld [vmem:[%s12313_s27 + $0x6c0] ss:$8 sps:$4 sm:$0xff]  }
 0x3b8   : > { %8085 = vmatpush1.bf16.msra.mxu0 %v11843_v54  ;;  %4118 = vmatprep.subr.bf16.mxu1 %v11848_v58  ;;  %v11927_v54 = vld [vmem:[%s12313_s27 + $0x1ec0] ss:$8 sps:$4 sm:$0xff]   ;;  %v11932_v58 = vld [vmem:[%s12313_s27 + $0x6d4] ss:$8 sps:$4 sm:$0xff]  }
 0x3b9   : > { %8086 = vmatprep.subr.bf16.mxu0 %v11851_v59  ;;  %v11935_v59 = vld [vmem:[%s12313_s27 + $0x1ed4] ss:$8 sps:$4 sm:$0xff]  }
 0x3bb   : > { %4119 = vmatpush1.bf16.msra.mxu1 %v11846_v44  ;;  %v11930_v44 = vld [vmem:[%s12313_s27 + $0x6d0] ss:$8 sps:$4 sm:$0xff]  }
 0x3bc   : > { %8087 = vmatpush1.bf16.msra.mxu0 %v11849_v28  ;;  %4131 = vmatprep.subr.bf16.mxu1 %v11854_v48  ;;  %v11933_v28 = vld [vmem:[%s12313_s27 + $0x1ed0] ss:$8 sps:$4 sm:$0xff]   ;;  %v11938_v48 = vld [vmem:[%s12313_s27 + $0x6e4] ss:$8 sps:$4 sm:$0xff]  }
 0x3bd   : > { %8099 = vmatprep.subr.bf16.mxu0 %v11857_v49  ;;  %v11941_v49 = vld [vmem:[%s12313_s27 + $0x1ee4] ss:$8 sps:$4 sm:$0xff]  }
 0x3be   : > { %4121 = vmatmul.mubr.bf16.vlgmr.msra.gmra.mrb[0].mxu1 %v8939_v61  ;;  %v11936_v61 = vld [vmem:[%s12313_s27 + $0x6e0] ss:$8 sps:$4 sm:$0xff]  }
 0x3bf   : > { %8089 = vmatmul.mubr.bf16.vlgmr.msra.gmra.mrb[0].mxu0 %v10029_v62  ;;  %4132 = vmatpush1.bf16.msra.mxu1 %v11852_v2  ;;  %v11939_v62 = vld [vmem:[%s12313_s27 + $0x1ee0] ss:$8 sps:$4 sm:$0xff]   ;;  %v11944_v2 = vld [vmem:[%s12313_s27 + $0x6f4] ss:$8 sps:$4 sm:$0xff]  }
 0x3c0   : > { %8100 = vmatpush1.bf16.msra.mxu0 %v11855_v3  ;;  %4133 = vmatprep.subr.bf16.mxu1 %v11860_v52  ;;  %v11947_v3 = vld [vmem:[%s12313_s27 + $0x1ef4] ss:$8 sps:$4 sm:$0xff]   ;;  %v11942_v52 = vld [vmem:[%s12313_s27 + $0x6f0] ss:$8 sps:$4 sm:$0xff]  }
 0x3c1   : > { %8101 = vmatprep.subr.bf16.mxu0 %v11863_v38  ;;  %4163 = vmatprep.mubr.bf16.mxu1 %v8942_v56  ;;  %v11945_v38 = vld [vmem:[%s12313_s27 + $0x1ef0] ss:$8 sps:$4 sm:$0xff]   ;;  %v11950_v56 = vld [vmem:[%s12313_s27 + $0x704] ss:$8 sps:$4 sm:$0xff]  }
 0x3c2   : > { %8131 = vmatprep.mubr.bf16.mxu0 %v10032_v57  ;;  %v11953_v57 = vld [vmem:[%s12313_s27 + $0x1f04] ss:$8 sps:$4 sm:$0xff]  }
 0x3c3   : > { %4134 = vmatpush1.bf16.msra.mxu1 %v11858_v4  ;;  %v13574_v4 = vld [vmem:[%s12373_s30 + $0x38] sm:$0xff] }
 0x3c4   : > { %8102 = vmatpush1.bf16.msra.mxu0 %v11861_v5  ;;  %4135 = vmatprep.subr.bf16.mxu1 %v11866_v6  ;;  %v8941_v5 = vcombine.low %v13490_v60, %v13497_v31  ;;  %v10031_v6 = vcombine.low %v13500_v0, %v13503_v1  ;;  %v11956_v60 = vld [vmem:[%s12313_s27 + $0x714] ss:$8 sps:$4 sm:$0xff]  }
 0x3c5   : > { %8103 = vmatprep.subr.bf16.mxu0 %v11869_v39  ;;  %v13581_v39 = vld [vmem:[%s12373_s30 + $0x78] sm:$0xff] }
 0x3c6   : > { %v11959_v31 = vld [vmem:[%s12313_s27 + $0x1f14] ss:$8 sps:$4 sm:$0xff]   ;;  %v8944_v0 = vcombine.high %v13574_v4, %v13581_v39 }
 0x3c7   : > { %4136 = vmatpush1.bf16.msra.mxu1 %v11864_v8  ;;  %v13584_v8 = vld [vmem:[%s12373_s30 + $0x238] sm:$0xff] }
 0x3c8   : > { %8104 = vmatpush1.bf16.msra.mxu0 %v11867_v9  ;;  %4137 = vmatprep.subr.bf16.mxu1 %v11872_v10  ;;  %v13587_v9 = vld [vmem:[%s12373_s30 + $0x278] sm:$0xff]  ;;  %v11948_v10 = vld [vmem:[%s12313_s27 + $0x700] ss:$8 sps:$4 sm:$0xff]  }
 0x3c9   : > { %8105 = vmatprep.subr.bf16.mxu0 %v11875_v11  ;;  %v11951_v11 = vld [vmem:[%s12313_s27 + $0x1f00] ss:$8 sps:$4 sm:$0xff]   ;;  %v10034_v1 = vcombine.high %v13584_v8, %v13587_v9 }
 0x3cb   : > { %4138 = vmatpush1.bf16.msra.mxu1 %v11870_v12  ;;  %v11954_v12 = vld [vmem:[%s12313_s27 + $0x710] ss:$8 sps:$4 sm:$0xff]  }
 0x3cc   : > { %8106 = vmatpush1.bf16.msra.mxu0 %v11873_v13  ;;  %4139 = vmatprep.subr.bf16.mxu1 %v11878_v14  ;;  %v11957_v13 = vld [vmem:[%s12313_s27 + $0x1f10] ss:$8 sps:$4 sm:$0xff]   ;;  %v11962_v14 = vld [vmem:[%s12313_s27 + $0x724] ss:$8 sps:$4 sm:$0xff]  }
 0x3cd   : > { %8107 = vmatprep.subr.bf16.mxu0 %v11881_v34  ;;  %v11965_v34 = vld [vmem:[%s12313_s27 + $0x1f24] ss:$8 sps:$4 sm:$0xff]  }
 0x3cf   : > { %4140 = vmatpush1.bf16.msra.mxu1 %v11876_v16  ;;  %v11960_v16 = vld [vmem:[%s12313_s27 + $0x720] ss:$8 sps:$4 sm:$0xff]  }
 0x3d0   : > { %8108 = vmatpush1.bf16.msra.mxu0 %v11879_v17  ;;  %4141 = vmatprep.subr.bf16.mxu1 %v11884_v18  ;;  %v11963_v17 = vld [vmem:[%s12313_s27 + $0x1f20] ss:$8 sps:$4 sm:$0xff]   ;;  %v11968_v18 = vld [vmem:[%s12313_s27 + $0x734] ss:$8 sps:$4 sm:$0xff]  }
 0x3d1   : > { %8109 = vmatprep.subr.bf16.mxu0 %v11887_v19  ;;  %v11971_v19 = vld [vmem:[%s12313_s27 + $0x1f34] ss:$8 sps:$4 sm:$0xff]  }
 0x3d3   : > { %4142 = vmatpush1.bf16.msra.mxu1 %v11882_v20  ;;  %v11966_v20 = vld [vmem:[%s12313_s27 + $0x730] ss:$8 sps:$4 sm:$0xff]  }
 0x3d4   : > { %8110 = vmatpush1.bf16.msra.mxu0 %v11885_v21  ;;  %4143 = vmatprep.subr.bf16.mxu1 %v11890_v22  ;;  %v11969_v21 = vld [vmem:[%s12313_s27 + $0x1f30] ss:$8 sps:$4 sm:$0xff]   ;;  %v11974_v22 = vld [vmem:[%s12313_s27 + $0x744] ss:$8 sps:$4 sm:$0xff]  }
 0x3d5   : > { %8111 = vmatprep.subr.bf16.mxu0 %v11893_v42  ;;  %v11977_v42 = vld [vmem:[%s12313_s27 + $0x1f44] ss:$8 sps:$4 sm:$0xff]  }
 0x3d7   : > { %4144 = vmatpush1.bf16.msra.mxu1 %v11888_v55  ;;  %v11972_v55 = vld [vmem:[%s12313_s27 + $0x740] ss:$8 sps:$4 sm:$0xff]  }
 0x3d8   : > { %8112 = vmatpush1.bf16.msra.mxu0 %v11891_v7  ;;  %4145 = vmatprep.subr.bf16.mxu1 %v11896_v32  ;;  %v11975_v7 = vld [vmem:[%s12313_s27 + $0x1f40] ss:$8 sps:$4 sm:$0xff]   ;;  %v11980_v32 = vld [vmem:[%s12313_s27 + $0x754] ss:$8 sps:$4 sm:$0xff]  }
 0x3d9   : > { %8113 = vmatprep.subr.bf16.mxu0 %v11899_v33  ;;  %v11983_v33 = vld [vmem:[%s12313_s27 + $0x1f54] ss:$8 sps:$4 sm:$0xff]  }
 0x3db   : > { %4146 = vmatpush1.bf16.msra.mxu1 %v11894_v35  ;;  %v11978_v35 = vld [vmem:[%s12313_s27 + $0x750] ss:$8 sps:$4 sm:$0xff]  }
 0x3dc   : > { %8114 = vmatpush1.bf16.msra.mxu0 %v11897_v47  ;;  %4147 = vmatprep.subr.bf16.mxu1 %v11902_v63  ;;  %v11981_v47 = vld [vmem:[%s12313_s27 + $0x1f50] ss:$8 sps:$4 sm:$0xff]   ;;  %v11986_v63 = vld [vmem:[%s12313_s27 + $0x764] ss:$8 sps:$4 sm:$0xff]  }
 0x3dd   : > { %8115 = vmatprep.subr.bf16.mxu0 %v11905_v15  ;;  %v11989_v15 = vld [vmem:[%s12313_s27 + $0x1f64] ss:$8 sps:$4 sm:$0xff]  }
 0x3df   : > { %4148 = vmatpush1.bf16.msra.mxu1 %v11900_v37  ;;  %v11984_v37 = vld [vmem:[%s12313_s27 + $0x760] ss:$8 sps:$4 sm:$0xff]  }
 0x3e0   : > { %8116 = vmatpush1.bf16.msra.mxu0 %v11903_v24  ;;  %4149 = vmatprep.subr.bf16.mxu1 %v11908_v40  ;;  %v11987_v24 = vld [vmem:[%s12313_s27 + $0x1f60] ss:$8 sps:$4 sm:$0xff]   ;;  %v11992_v40 = vld [vmem:[%s12313_s27 + $0x774] ss:$8 sps:$4 sm:$0xff]  }
 0x3e1   : > { %8117 = vmatprep.subr.bf16.mxu0 %v11911_v41  ;;  %v11995_v41 = vld [vmem:[%s12313_s27 + $0x1f74] ss:$8 sps:$4 sm:$0xff]  }
 0x3e3   : > { %4150 = vmatpush1.bf16.msra.mxu1 %v11906_v43  ;;  %v11990_v43 = vld [vmem:[%s12313_s27 + $0x770] ss:$8 sps:$4 sm:$0xff]  }
 0x3e4   : > { %8118 = vmatpush1.bf16.msra.mxu0 %v11909_v23  ;;  %4151 = vmatprep.subr.bf16.mxu1 %v11914_v26  ;;  %v11993_v23 = vld [vmem:[%s12313_s27 + $0x1f70] ss:$8 sps:$4 sm:$0xff]   ;;  %v11998_v26 = vld [vmem:[%s12313_s27 + $0x784] ss:$8 sps:$4 sm:$0xff]  }
 0x3e5   : > { %8119 = vmatprep.subr.bf16.mxu0 %v11917_v27  ;;  %v12001_v27 = vld [vmem:[%s12313_s27 + $0x1f84] ss:$8 sps:$4 sm:$0xff]  }
 0x3e7   : > { %4152 = vmatpush1.bf16.msra.mxu1 %v11912_v45  ;;  %v11996_v45 = vld [vmem:[%s12313_s27 + $0x780] ss:$8 sps:$4 sm:$0xff]  }
 0x3e8   : > { %8120 = vmatpush1.bf16.msra.mxu0 %v11915_v46  ;;  %4153 = vmatprep.subr.bf16.mxu1 %v11920_v50  ;;  %v11999_v46 = vld [vmem:[%s12313_s27 + $0x1f80] ss:$8 sps:$4 sm:$0xff]   ;;  %v12004_v50 = vld [vmem:[%s12313_s27 + $0x794] ss:$8 sps:$4 sm:$0xff]  }
 0x3e9   : > { %8121 = vmatprep.subr.bf16.mxu0 %v11923_v51  ;;  %v12007_v51 = vld [vmem:[%s12313_s27 + $0x1f94] ss:$8 sps:$4 sm:$0xff]  }
 0x3eb   : > { %4154 = vmatpush1.bf16.msra.mxu1 %v11918_v36  ;;  %v12002_v36 = vld [vmem:[%s12313_s27 + $0x790] ss:$8 sps:$4 sm:$0xff]  }
 0x3ec   : > { %8122 = vmatpush1.bf16.msra.mxu0 %v11921_v25  ;;  %4155 = vmatprep.subr.bf16.mxu1 %v11926_v29  ;;  %v12005_v25 = vld [vmem:[%s12313_s27 + $0x1f90] ss:$8 sps:$4 sm:$0xff]   ;;  %v12010_v29 = vld [vmem:[%s12313_s27 + $0x7a4] ss:$8 sps:$4 sm:$0xff]  }
 0x3ed   : > { %8123 = vmatprep.subr.bf16.mxu0 %v11929_v30  ;;  %v12013_v30 = vld [vmem:[%s12313_s27 + $0x1fa4] ss:$8 sps:$4 sm:$0xff]  }
 0x3ef   : > { %4156 = vmatpush1.bf16.msra.mxu1 %v11924_v53  ;;  %v12008_v53 = vld [vmem:[%s12313_s27 + $0x7a0] ss:$8 sps:$4 sm:$0xff]  }
 0x3f0   : > { %8124 = vmatpush1.bf16.msra.mxu0 %v11927_v54  ;;  %4157 = vmatprep.subr.bf16.mxu1 %v11932_v58  ;;  %v12011_v54 = vld [vmem:[%s12313_s27 + $0x1fa0] ss:$8 sps:$4 sm:$0xff]   ;;  %v12016_v58 = vld [vmem:[%s12313_s27 + $0x7b4] ss:$8 sps:$4 sm:$0xff]  }
 0x3f1   : > { %8125 = vmatprep.subr.bf16.mxu0 %v11935_v59  ;;  %v12019_v59 = vld [vmem:[%s12313_s27 + $0x1fb4] ss:$8 sps:$4 sm:$0xff]  }
 0x3f3   : > { %4158 = vmatpush1.bf16.msra.mxu1 %v11930_v44  ;;  %v12014_v44 = vld [vmem:[%s12313_s27 + $0x7b0] ss:$8 sps:$4 sm:$0xff]  }
 0x3f4   : > { %8126 = vmatpush1.bf16.msra.mxu0 %v11933_v28  ;;  %4159 = vmatprep.subr.bf16.mxu1 %v11938_v48  ;;  %v12017_v28 = vld [vmem:[%s12313_s27 + $0x1fb0] ss:$8 sps:$4 sm:$0xff]   ;;  %v12022_v48 = vld [vmem:[%s12313_s27 + $0x7c4] ss:$8 sps:$4 sm:$0xff]  }
 0x3f5   : > { %8127 = vmatprep.subr.bf16.mxu0 %v11941_v49  ;;  %v12025_v49 = vld [vmem:[%s12313_s27 + $0x1fc4] ss:$8 sps:$4 sm:$0xff]  }
 0x3f7   : > { %4160 = vmatpush1.bf16.msra.mxu1 %v11936_v61  ;;  %v12020_v61 = vld [vmem:[%s12313_s27 + $0x7c0] ss:$8 sps:$4 sm:$0xff]  }
 0x3f8   : > { %8128 = vmatpush1.bf16.msra.mxu0 %v11939_v62  ;;  %4161 = vmatprep.subr.bf16.mxu1 %v11944_v2  ;;  %v12023_v62 = vld [vmem:[%s12313_s27 + $0x1fc0] ss:$8 sps:$4 sm:$0xff]   ;;  %v12028_v2 = vld [vmem:[%s12313_s27 + $0x7d4] ss:$8 sps:$4 sm:$0xff]  }
 0x3f9   : > { %8129 = vmatprep.subr.bf16.mxu0 %v11947_v3  ;;  %v12031_v3 = vld [vmem:[%s12313_s27 + $0x1fd4] ss:$8 sps:$4 sm:$0xff]  }
 0x3fb   : > { %4162 = vmatpush1.bf16.msra.mxu1 %v11942_v52  ;;  %v12026_v52 = vld [vmem:[%s12313_s27 + $0x7d0] ss:$8 sps:$4 sm:$0xff]  }
 0x3fc   : > { %8130 = vmatpush1.bf16.msra.mxu0 %v11945_v38  ;;  %4174 = vmatprep.subr.bf16.mxu1 %v11950_v56  ;;  %v12029_v38 = vld [vmem:[%s12313_s27 + $0x1fd0] ss:$8 sps:$4 sm:$0xff]   ;;  %v12034_v56 = vld [vmem:[%s12313_s27 + $0x7e4] ss:$8 sps:$4 sm:$0xff]  }
 0x3fd   : > { %8142 = vmatprep.subr.bf16.mxu0 %v11953_v57  ;;  %v12037_v57 = vld [vmem:[%s12313_s27 + $0x1fe4] ss:$8 sps:$4 sm:$0xff]  }
 0x3fe   : > { %4164 = vmatmul.mubr.bf16.vlgmr.msra.gmra.mrb[0].mxu1 %v8941_v5  ;;  %v12032_v5 = vld [vmem:[%s12313_s27 + $0x7e0] ss:$8 sps:$4 sm:$0xff]  }
 0x3ff   : > { %8132 = vmatmul.mubr.bf16.vlgmr.msra.gmra.mrb[0].mxu0 %v10031_v6  ;;  %4175 = vmatpush1.bf16.msra.mxu1 %v11948_v10  ;;  %v12035_v6 = vld [vmem:[%s12313_s27 + $0x1fe0] ss:$8 sps:$4 sm:$0xff]   ;;  %v12040_v10 = vld [vmem:[%s12313_s27 + $0x7f4] ss:$8 sps:$4 sm:$0xff]  }
 0x400   : > { %8143 = vmatpush1.bf16.msra.mxu0 %v11951_v11  ;;  %4176 = vmatprep.subr.bf16.mxu1 %v11956_v60  ;;  %v12043_v11 = vld [vmem:[%s12313_s27 + $0x1ff4] ss:$8 sps:$4 sm:$0xff]   ;;  %v12038_v60 = vld [vmem:[%s12313_s27 + $0x7f0] ss:$8 sps:$4 sm:$0xff]  }
 0x401   : > { %8144 = vmatprep.subr.bf16.mxu0 %v11959_v31  ;;  %4206 = vmatprep.mubr.bf16.mxu1 %v8944_v0  ;;  %v12041_v31 = vld [vmem:[%s12313_s27 + $0x1ff0] ss:$8 sps:$4 sm:$0xff]   ;;  %v8943_v0 = vcombine.low %v13574_v4, %v13581_v39  ;;  %v8189_v4 = vld [vmem:[%s13702_s2] sm:$0x3] }
 0x402   : > { %8174 = vmatprep.mubr.bf16.mxu0 %v10034_v1  ;;  %v10033_v1 = vcombine.low %v13584_v8, %v13587_v9 }
 0x403   : > { %4177 = vmatpush1.bf16.msra.mxu1 %v11954_v12  ;;  %v8191_v12 = vlaneseq }
 0x404   : > { %8145 = vmatpush1.bf16.msra.mxu0 %v11957_v13  ;;  %4178 = vmatprep.subr.bf16.mxu1 %v11962_v14 }
 0x405   : > { %8146 = vmatprep.subr.bf16.mxu0 %v11965_v34  ;;  %v8192_v13 = vshrl.u32 %v8191_v12, 7 }
 0x407   : > { %4179 = vmatpush1.bf16.msra.mxu1 %v11960_v16  ;;  %v8193_v14 = vsub.s32 0, %v8192_v13  ;;  %v8197_v39 = vsub.s32 1, %v8192_v13 }
 0x408   : > { %8147 = vmatpush1.bf16.msra.mxu0 %v11963_v17  ;;  %4180 = vmatprep.subr.bf16.mxu1 %v11968_v18 }
 0x409   : > { %8148 = vmatprep.subr.bf16.mxu0 %v11971_v19  ;;  %v8194_v8 = vrot.slane %v8189_v4, %v8193_v14  ;;  %v8198_v16 = vrot.slane %v8189_v4, %v8197_v39 }
 0x40b   : > { %4181 = vmatpush1.bf16.msra.mxu1 %v11966_v20 }
 0x40c   : > { %8149 = vmatpush1.bf16.msra.mxu0 %v11969_v21  ;;  %4182 = vmatprep.subr.bf16.mxu1 %v11974_v22 }
 0x40d   : > { %8150 = vmatprep.subr.bf16.mxu0 %v11977_v42 }
 0x40f   : > { %4183 = vmatpush1.bf16.msra.mxu1 %v11972_v55 }
 0x410   : > { %8151 = vmatpush1.bf16.msra.mxu0 %v11975_v7  ;;  %4184 = vmatprep.subr.bf16.mxu1 %v11980_v32 }
 0x411   : > { %8152 = vmatprep.subr.bf16.mxu0 %v11983_v33 }
 0x413   : > { %4185 = vmatpush1.bf16.msra.mxu1 %v11978_v35 }
 0x414   : > { %8153 = vmatpush1.bf16.msra.mxu0 %v11981_v47  ;;  %4186 = vmatprep.subr.bf16.mxu1 %v11986_v63 }
 0x415   : > { %8154 = vmatprep.subr.bf16.mxu0 %v11989_v15 }
 0x417   : > { %4187 = vmatpush1.bf16.msra.mxu1 %v11984_v37 }
 0x418   : > { %8155 = vmatpush1.bf16.msra.mxu0 %v11987_v24  ;;  %4188 = vmatprep.subr.bf16.mxu1 %v11992_v40 }
 0x419   : > { %8156 = vmatprep.subr.bf16.mxu0 %v11995_v41 }
 0x41b   : > { %4189 = vmatpush1.bf16.msra.mxu1 %v11990_v43 }
 0x41c   : > { %8157 = vmatpush1.bf16.msra.mxu0 %v11993_v23  ;;  %4190 = vmatprep.subr.bf16.mxu1 %v11998_v26 }
 0x41d   : > { %8158 = vmatprep.subr.bf16.mxu0 %v12001_v27 }
 0x41f   : > { %4191 = vmatpush1.bf16.msra.mxu1 %v11996_v45 }
 0x420   : > { %8159 = vmatpush1.bf16.msra.mxu0 %v11999_v46  ;;  %4192 = vmatprep.subr.bf16.mxu1 %v12004_v50 }
 0x421   : > { %8160 = vmatprep.subr.bf16.mxu0 %v12007_v51 }
 0x423   : > { %4193 = vmatpush1.bf16.msra.mxu1 %v12002_v36 }
 0x424   : > { %8161 = vmatpush1.bf16.msra.mxu0 %v12005_v25  ;;  %4194 = vmatprep.subr.bf16.mxu1 %v12010_v29 }
 0x425   : > { %8162 = vmatprep.subr.bf16.mxu0 %v12013_v30 }
 0x427   : > { %4195 = vmatpush1.bf16.msra.mxu1 %v12008_v53 }
 0x428   : > { %8163 = vmatpush1.bf16.msra.mxu0 %v12011_v54  ;;  %4196 = vmatprep.subr.bf16.mxu1 %v12016_v58 }
 0x429   : > { %8164 = vmatprep.subr.bf16.mxu0 %v12019_v59 }
 0x42b   : > { %4197 = vmatpush1.bf16.msra.mxu1 %v12014_v44 }
 0x42c   : > { %8165 = vmatpush1.bf16.msra.mxu0 %v12017_v28  ;;  %4198 = vmatprep.subr.bf16.mxu1 %v12022_v48 }
 0x42d   : > { %8166 = vmatprep.subr.bf16.mxu0 %v12025_v49 }
 0x42f   : > { %4199 = vmatpush1.bf16.msra.mxu1 %v12020_v61 }
 0x430   : > { %8167 = vmatpush1.bf16.msra.mxu0 %v12023_v62  ;;  %4200 = vmatprep.subr.bf16.mxu1 %v12028_v2 }
 0x431   : > { %8168 = vmatprep.subr.bf16.mxu0 %v12031_v3 }
 0x433   : > { %4201 = vmatpush1.bf16.msra.mxu1 %v12026_v52 }
 0x434   : > { %8169 = vmatpush1.bf16.msra.mxu0 %v12029_v38  ;;  %4202 = vmatprep.subr.bf16.mxu1 %v12034_v56 }
 0x435   : > { %8170 = vmatprep.subr.bf16.mxu0 %v12037_v57 }
 0x437   : > { %4203 = vmatpush1.bf16.msra.mxu1 %v12032_v5 }
 0x438   : > { %8171 = vmatpush1.bf16.msra.mxu0 %v12035_v6  ;;  %4204 = vmatprep.subr.bf16.mxu1 %v12040_v10 }
 0x439   : > { %8172 = vmatprep.subr.bf16.mxu0 %v12043_v11 }
 0x43b   : > { %4205 = vmatpush1.bf16.msra.mxu1 %v12038_v60 }
 0x43c   : > { %8173 = vmatpush1.bf16.msra.mxu0 %v12041_v31 }
 0x43e   : > { %4207 = vmatmul.mubr.bf16.vlgmr.msra.gmra.mrb[0].mxu1 %v8943_v0 }
 0x43f   : > { %8175 = vmatmul.mubr.bf16.vlgmr.msra.gmra.mrb[0].mxu0 %v10033_v1 }
 0x511   : > { %v4208_v9 = vpop.f32.mrb[0].mxu1 }
 0x512   : > { %v8176_v34 = vpop.f32.mrb[0].mxu0  ;;  %v4210_v18 = vpop.f32.mrb[1].mxu1 }
 0x513   : > { %v10294_v17 = vadd.f32 %v8176_v34, %v4208_v9  ;;  %v8178_v19 = vpop.f32.mrb[1].mxu0  ;;  %v4212_v21 = vpop.f32.mrb[2].mxu1 }
 0x514   : > { %v10295_v20 = vadd.f32 %v8178_v19, %v4210_v18  ;;  %v8180_v22 = vpop.f32.mrb[2].mxu0  ;;  %v4214_v7 = vpop.f32.mrb[3].mxu1 }
 0x515   : > { %v8201_v42 = vadd.f32 %v10294_v17, %v8194_v8  ;;  %v10296_v55 = vadd.f32 %v8180_v22, %v4212_v21  ;;  %v8182_v32 = vpop.f32.mrb[3].mxu0 }
 0x516   : > { %v8202_v33 = vadd.f32 %v10295_v20, %v8198_v16  ;;  %v10297_v35 = vadd.f32 %v8182_v32, %v4214_v7 }
 0x517   : > { %v8205_v47 = vmax.f32 %v8201_v42, 0.0  ;;  %v8203_v63 = vadd.f32 %v10296_v55, %v8194_v8 }
 0x518   : > { %v8206_v15 = vmax.f32 %v8202_v33, 0.0  ;;  %v8204_v37 = vadd.f32 %v10297_v35, %v8198_v16 }
 0x519   : > { %8209 = vst [vmem:[%s253_s17] sm:$0xff] %v8205_v47  ;;  %v8207_v24 = vmax.f32 %v8203_v63, 0.0 }
 0x51a   : > { %8210 = vst [vmem:[%s253_s17 + $0x8] sm:$0xff] %v8206_v15  ;;  %v8208_v40 = vmax.f32 %v8204_v37, 0.0 }
 0x51b   : > { %8211 = vst [vmem:[%s253_s17 + $0x10] sm:$0xff] %v8207_v24 }
 0x51c   : > { %8212 = vst [vmem:[%s253_s17 + $0x18] sm:$0xff] %v8208_v40 }
 0x51d PF: > { %s16_s21 = sadd.s32 1, %s12156_s21   ;;  %s13713_s27 = smov %s12263_s12 }
 0x51e   : > { %p13_p8 = scmp.ge.s32.totalorder %s16_s21, 10   ;;  %s13714_s15 = sld [smem:[#allocation5_spill]] }
 0x51f   : > { %s13715_s18 = sld [smem:[#allocation6_spill]]  ;;  %s13716_s29 = sld [smem:[#allocation7_spill]] }
 0x520   : > { %s13717_s12 = smov %s12124_s13  ;;  %s13718_s13 = smov %s12128_s14 }
 0x521   : > { %s13719_s14 = smov %s13713_s27  ;;  %s13720_s16 = smov %s12148_s19 }
 0x522   : > { %s13721_s17 = smov %s12152_s20  ;;  %s13723_s20 = smov %s13733_s25 }
 0x523   :  { %15 = sbr.rel (!%p13_p8) target bundleno = 6 (0x6), region = 82 }
 0x525   : > { %s13722_s19 = smov %s13716_s29 }
 0x52a   :  { %8250 = vsyncpa [#allocation3], 1 }
 0x52b   :  { %8252 = vsyncpa [#allocation3 + $0x1], 1 }

// kernel: pose_resnet_forward.5
= control target key start
LH: loop header
LB: loop body
LE: loop exit
PB: predicated region body
PF: predicated region fallthrough
CT: control target
= control target key end

     0   :  { %8 = vsyncpa [#allocation3], 0  ;;  %s2218_s0 = inlined_call_operand.vmem [shape: bf16[512,512], index: 0, kind: input, shape index: {}]   ;;  %s2219_s1 = inlined_call_operand.vmem [shape: bf16[512,17], index: 1, kind: input, shape index: {}]   ;;  %s2220_s2 = inlined_call_operand.vmem [shape: f32[1,17], index: 2, kind: input, shape index: {}]   ;;  %s2221_s3 = inlined_call_operand.hbm [shape: f32[512,17], index: 3, kind: output, shape index: {}]  }
   0x1   :  { %10 = vsyncpa [#allocation3 + $0x1], 0  ;;  %s1846_s12 = smov 0   ;;  %s1848_s13 = smov 0  }
   0x2   :  { %s1850_s14 = smov 0   ;;  %s1852_s15 = smov 0  }
   0x3 LB: > { %s1867_s16 = sadd.s32 4294967295, %s1821_s15   ;;  %s1254_s17 = sadd.s32 4294967294, %s1821_s15   ;;  %s1821_s15 = sphi %s1852_s15, %s2227_s15   ;;  %s1817_s14 = sphi %s1850_s14, %s2226_s14   ;;  %s1813_s13 = sphi %s1848_s13, %s2225_s13   ;;  %s1809_s12 = sphi %s1846_s12, %s2224_s12  }
   0x4   : > { %s1871_s18 = sadd.s32 1, %s1821_s15   ;;  %s91_s19 = sadd.s32 1, %s1817_s14 }
   0x5   : > { %s88_s20 = ssub.s32 %s1821_s15, %s1871_s18  ;;  %p101_p0 = scmp.ne.s32.totalorder %s1817_s14, %s1813_s13 }
   0x6   : > { %p89_p1 = scmp.eq.s32.totalorder %s88_s20, 0  ;;  %p102_p2 = scmp.eq.s32.totalorder %s1867_s16, 1 }
   0x7   : > { %p107_p3 = scmp.ne.s32.totalorder %s1813_s13, %s1809_s12  ;;  %p108_p4 = scmp.eq.s32.totalorder %s1254_s17, 1 }
   0x8   : > { %s1882_s21 = scalar_select %p89_p1, %s1817_s14, %s91_s19  }
   0x9   : > { %p1884_p5 = por %p102_p2, %p101_p0  ;;  %p1888_p6 = por %p108_p4, %p107_p3 }
   0xa   : > { %p1257_p7 = scmp.ge.s32.totalorder %s1821_s15, 1  ;;  %p142_p8 = scmp.lt.s32.totalorder %s1821_s15, 3 }
   0xc   : > { %p143_p9 = pnand %p1257_p7, %p142_p8 }
   0xd   : > { %v1631_v0 = vld [vmem:[%s2219_s1 + $0x40] sm:$0xff] (!%p143_p9)   ;;  %v1635_v4 = vld [vmem:[%s2219_s1 + $0x48] sm:$0xff] (!%p143_p9)   ;;  %v1639_v8 = vld [vmem:[%s2219_s1 + $0x50] sm:$0xff] (!%p143_p9)   ;;  %s1259_s11 = sshll.u32 (!%p143_p9), %s1867_s16, 5  ;;  %s164_s19 = sand.u32 (!%p143_p9), 1, %s1813_s13   ;;  %vm1145_vm0 = vcmask (!%p143_p9), 138240  }
   0xe   : > { %146 = sbr.rel (%p143_p9) target bundleno = 403 (0x193), region = 32  ;;  %v1632_v1 = vld [vmem:[%s2219_s1 + $0xc0] sm:$0xff] (!%p143_p9)   ;;  %1366 = vmatprep.subr.bf16.mxu0 (!%p143_p9), %v1631_v0  ;;  %v1636_v5 = vld [vmem:[%s2219_s1 + $0xc8] sm:$0xff] (!%p143_p9)   ;;  %v1640_v9 = vld [vmem:[%s2219_s1 + $0xd0] sm:$0xff] (!%p143_p9)   ;;  %p168_p10 = scmp.lt.s32.totalorder (!%p143_p9), %s1259_s11, 63 }
   0xf   : > { %v1633_v2 = vld [vmem:[%s2219_s1] sm:$0xff] (!%p143_p9)   ;;  %1478 = vmatprep.subr.bf16.mxu1 (!%p143_p9), %v1632_v1  ;;  %v1637_v6 = vld [vmem:[%s2219_s1 + $0x8] sm:$0xff] (!%p143_p9)   ;;  %v1641_v10 = vld [vmem:[%s2219_s1 + $0x10] sm:$0xff] (!%p143_p9)   ;;  %s1258_s25 = sshll.u32 (!%p143_p9), %s164_s19, 8  ;;  %s1365_s27 = sshll.u32 (!%p143_p9), %s1867_s16, 12 }
  0x10   : > { %v1634_v3 = vld [vmem:[%s2219_s1 + $0x80] sm:$0xff] (!%p143_p9)   ;;  %1367 = vmatpush3.bf16.msra.mxu0 (!%p143_p9), %v1633_v2  ;;  %v1638_v7 = vld [vmem:[%s2219_s1 + $0x88] sm:$0xff] (!%p143_p9)   ;;  %v1642_v11 = vld [vmem:[%s2219_s1 + $0x90] sm:$0xff] (!%p143_p9)   ;;  %s2167_s4 = scalar_lea.hbm (!%p143_p9), %s2221_s3, %s1365_s27  ;;  %s2177_s16 = scalar_lea.sflag (!%p143_p9), [#allocation3], %s164_s19 }
  0x11   : > { %1479 = vmatpush3.bf16.msra.mxu1 (!%p143_p9), %v1634_v3  ;;  %1368 = vmatprep.subr.bf16.mxu0 (!%p143_p9), %v1635_v4  ;;  %v1643_v12 = vld [vmem:[%s2219_s1 + $0x58] sm:$0xff] (!%p143_p9)   ;;  %v1647_v16 = vld [vmem:[%s2219_s1 + $0x60] sm:$0xff] (!%p143_p9)   ;;  %v1651_v20 = vld [vmem:[%s2219_s1 + $0x68] sm:$0xff] (!%p143_p9)   ;;  %s1823_s6 = smov (!%p143_p9), [#allocation2]  }
  0x12   : > { %1480 = vmatprep.subr.bf16.mxu1 (!%p143_p9), %v1636_v5  ;;  %v1644_v13 = vld [vmem:[%s2219_s1 + $0xd8] sm:$0xff] (!%p143_p9)   ;;  %v1648_v17 = vld [vmem:[%s2219_s1 + $0xe0] sm:$0xff] (!%p143_p9)   ;;  %v1652_v21 = vld [vmem:[%s2219_s1 + $0xe8] sm:$0xff] (!%p143_p9)   ;;  %s1763_s7 = sshll.u32 (!%p143_p9), %s1823_s6, 4  ;;  %s1764_s7 = int_to_ptr.vmem [resolvable:$false] %s1763_s7 }
  0x13   : > { %v1645_v14 = vld [vmem:[%s2219_s1 + $0x18] sm:$0xff] (!%p143_p9)   ;;  %v1649_v18 = vld [vmem:[%s2219_s1 + $0x20] sm:$0xff] (!%p143_p9)   ;;  %v1653_v22 = vld [vmem:[%s2219_s1 + $0x28] sm:$0xff] (!%p143_p9)  }
  0x14   : > { %1369 = vmatpush3.bf16.msra.mxu0 (!%p143_p9), %v1637_v6  ;;  %v1646_v15 = vld [vmem:[%s2219_s1 + $0x98] sm:$0xff] (!%p143_p9)   ;;  %v1650_v19 = vld [vmem:[%s2219_s1 + $0xa0] sm:$0xff] (!%p143_p9)   ;;  %v1654_v23 = vld [vmem:[%s2219_s1 + $0xa8] sm:$0xff] (!%p143_p9)  }
  0x15   : > { %1481 = vmatpush3.bf16.msra.mxu1 %v1638_v7  ;;  %1370 = vmatprep.subr.bf16.mxu0 %v1639_v8  ;;  %s2229_s11 = smov (!%p168_p10, %s1259_s11), 63  ;;  %v1655_v24 = vld [vmem:[%s2219_s1 + $0x70] sm:$0xff]   ;;  %v1659_v28 = vld [vmem:[%s2219_s1 + $0x78] sm:$0xff]  }
  0x16   : > { %1482 = vmatprep.subr.bf16.mxu1 %v1640_v9  ;;  %v1656_v25 = vld [vmem:[%s2219_s1 + $0xf0] sm:$0xff]   ;;  %s1364_s26 = sshll.u32 %s2229_s11, 4  ;;  %v1660_v29 = vld [vmem:[%s2219_s1 + $0xf8] sm:$0xff]  }
  0x17   : > { %v1657_v26 = vld [vmem:[%s2219_s1 + $0x30] sm:$0xff]   ;;  %s1988_s8 = scalar_lea.vmem %s2218_s0, %s1364_s26  ;;  %v1661_v30 = vld [vmem:[%s2219_s1 + $0x38] sm:$0xff]   ;;  %s2070_s26 = scalar_lea.vmem [#allocation2], %s1258_s25 }
  0x18   : > { %1371 = vmatpush3.bf16.msra.mxu0 %v1641_v10  ;;  %v1658_v27 = vld [vmem:[%s2219_s1 + $0xb0] sm:$0xff]   ;;  %v1662_v31 = vld [vmem:[%s2219_s1 + $0xb8] sm:$0xff]   ;;  %s1192_s28 = sshll.u32 %s2070_s26, 4  ;;  %s2169_s28 = int_to_ptr.vmem [resolvable:$true] %s1192_s28 }
  0x19   : > { %1483 = vmatpush3.bf16.msra.mxu1 %v1642_v11  ;;  %1372 = vmatprep.subr.bf16.mxu0 %v1643_v12  ;;  %v1663_v32 = vld [vmem:[%s1988_s8] ss:$16 sps:$4 sm:$0xff]   ;;  %v1665_v33 = vld [vmem:[%s1988_s8 + $0x4] ss:$16 sps:$4 sm:$0xff]   ;;  %v1666_v34 = vld [vmem:[%s1988_s8 + $0x8] ss:$16 sps:$4 sm:$0xff]   ;;  %p1766_p0 = scmp.lt.s32.totalorder %s2169_s28, %s1764_s7 }
  0x1a   : > { %1484 = vmatprep.subr.bf16.mxu1 %v1644_v13  ;;  %v1668_v35 = vld [vmem:[%s1988_s8 + $0xc] ss:$16 sps:$4 sm:$0xff]   ;;  %855 = vmatprep.mubr.bf16.mxu0 %v1665_v33  ;;  %v1669_v36 = vld [vmem:[%s1988_s8 + $0x24] ss:$16 sps:$4 sm:$0xff]   ;;  %v1673_v38 = vld [vmem:[%s1988_s8 + $0x20] ss:$16 sps:$4 sm:$0xff]  }
  0x1b   : > { %1016 = vmatprep.mubr.bf16.mxu1 %v1668_v35  ;;  %v1671_v37 = vld [vmem:[%s1988_s8 + $0x2c] ss:$16 sps:$4 sm:$0xff]   ;;  %v1674_v39 = vld [vmem:[%s1988_s8 + $0x28] ss:$16 sps:$4 sm:$0xff]   ;;  %v1675_v40 = vld [vmem:[%s1988_s8 + $0x44] ss:$16 sps:$4 sm:$0xff]  }
  0x1c   : > { %1373 = vmatpush3.bf16.msra.mxu0 %v1645_v14  ;;  %v1677_v41 = vld [vmem:[%s1988_s8 + $0x4c] ss:$16 sps:$4 sm:$0xff]   ;;  %v1679_v42 = vld [vmem:[%s1988_s8 + $0x40] ss:$16 sps:$4 sm:$0xff]   ;;  %v1680_v43 = vld [vmem:[%s1988_s8 + $0x48] ss:$16 sps:$4 sm:$0xff]  }
  0x1d   : > { %1485 = vmatpush3.bf16.msra.mxu1 %v1646_v15  ;;  %1374 = vmatprep.subr.bf16.mxu0 %v1647_v16  ;;  %v1681_v44 = vld [vmem:[%s1988_s8 + $0x64] ss:$16 sps:$4 sm:$0xff]   ;;  %v1683_v45 = vld [vmem:[%s1988_s8 + $0x6c] ss:$16 sps:$4 sm:$0xff]   ;;  %v1685_v46 = vld [vmem:[%s1988_s8 + $0x60] ss:$16 sps:$4 sm:$0xff]  }
  0x1e   : > { %1486 = vmatprep.subr.bf16.mxu1 %v1648_v17  ;;  %v1686_v47 = vld [vmem:[%s1988_s8 + $0x68] ss:$16 sps:$4 sm:$0xff]   ;;  %v1687_v48 = vld [vmem:[%s1988_s8 + $0x84] ss:$16 sps:$4 sm:$0xff]   ;;  %v1689_v49 = vld [vmem:[%s1988_s8 + $0x8c] ss:$16 sps:$4 sm:$0xff]  }
  0x1f   : > { %v1691_v50 = vld [vmem:[%s1988_s8 + $0x80] ss:$16 sps:$4 sm:$0xff]   ;;  %v1692_v51 = vld [vmem:[%s1988_s8 + $0x88] ss:$16 sps:$4 sm:$0xff]   ;;  %v1693_v52 = vld [vmem:[%s1988_s8 + $0xa4] ss:$16 sps:$4 sm:$0xff]  }
  0x20   : > { %1375 = vmatpush3.bf16.msra.mxu0 %v1649_v18  ;;  %v1695_v53 = vld [vmem:[%s1988_s8 + $0xac] ss:$16 sps:$4 sm:$0xff]   ;;  %v1697_v54 = vld [vmem:[%s1988_s8 + $0xa0] ss:$16 sps:$4 sm:$0xff]   ;;  %v1698_v55 = vld [vmem:[%s1988_s8 + $0xa8] ss:$16 sps:$4 sm:$0xff]  }
  0x21   : > { %1487 = vmatpush3.bf16.msra.mxu1 %v1650_v19  ;;  %1376 = vmatprep.subr.bf16.mxu0 %v1651_v20  ;;  %v1699_v56 = vld [vmem:[%s1988_s8 + $0xc4] ss:$16 sps:$4 sm:$0xff]   ;;  %v1701_v57 = vld [vmem:[%s1988_s8 + $0xcc] ss:$16 sps:$4 sm:$0xff]   ;;  %v1703_v58 = vld [vmem:[%s1988_s8 + $0xc0] ss:$16 sps:$4 sm:$0xff]  }
  0x22   : > { %1488 = vmatprep.subr.bf16.mxu1 %v1652_v21  ;;  %v1704_v59 = vld [vmem:[%s1988_s8 + $0xc8] ss:$16 sps:$4 sm:$0xff]   ;;  %v1705_v60 = vld [vmem:[%s1988_s8 + $0xe4] ss:$16 sps:$4 sm:$0xff]   ;;  %v1707_v61 = vld [vmem:[%s1988_s8 + $0xec] ss:$16 sps:$4 sm:$0xff]  }
  0x23   : > { %v1709_v62 = vld [vmem:[%s1988_s8 + $0xe0] ss:$16 sps:$4 sm:$0xff]   ;;  %v1710_v63 = vld [vmem:[%s1988_s8 + $0xe8] ss:$16 sps:$4 sm:$0xff]   ;;  %v1711_v0 = vld [vmem:[%s1988_s8 + $0x104] ss:$16 sps:$4 sm:$0xff]  }
  0x24   : > { %1377 = vmatpush3.bf16.msra.mxu0 %v1653_v22  ;;  %v1713_v1 = vld [vmem:[%s1988_s8 + $0x10c] ss:$16 sps:$4 sm:$0xff]   ;;  %v1715_v2 = vld [vmem:[%s1988_s8 + $0x100] ss:$16 sps:$4 sm:$0xff]   ;;  %v1716_v3 = vld [vmem:[%s1988_s8 + $0x108] ss:$16 sps:$4 sm:$0xff]  }
  0x25   : > { %1489 = vmatpush3.bf16.msra.mxu1 %v1654_v23  ;;  %1378 = vmatprep.subr.bf16.mxu0 %v1655_v24  ;;  %v1717_v4 = vld [vmem:[%s1988_s8 + $0x124] ss:$16 sps:$4 sm:$0xff]   ;;  %v1719_v5 = vld [vmem:[%s1988_s8 + $0x12c] ss:$16 sps:$4 sm:$0xff]   ;;  %v1721_v6 = vld [vmem:[%s1988_s8 + $0x120] ss:$16 sps:$4 sm:$0xff]  }
  0x26   : > { %1490 = vmatprep.subr.bf16.mxu1 %v1656_v25  ;;  %v1722_v7 = vld [vmem:[%s1988_s8 + $0x128] ss:$16 sps:$4 sm:$0xff]   ;;  %v1723_v8 = vld [vmem:[%s1988_s8 + $0x144] ss:$16 sps:$4 sm:$0xff]   ;;  %v1725_v9 = vld [vmem:[%s1988_s8 + $0x14c] ss:$16 sps:$4 sm:$0xff]  }
  0x27   : > { %v1727_v10 = vld [vmem:[%s1988_s8 + $0x140] ss:$16 sps:$4 sm:$0xff]   ;;  %v1728_v11 = vld [vmem:[%s1988_s8 + $0x148] ss:$16 sps:$4 sm:$0xff]   ;;  %v1729_v12 = vld [vmem:[%s1988_s8 + $0x164] ss:$16 sps:$4 sm:$0xff]  }
  0x28   : > { %1379 = vmatpush3.bf16.msra.mxu0 %v1657_v26  ;;  %v1731_v13 = vld [vmem:[%s1988_s8 + $0x16c] ss:$16 sps:$4 sm:$0xff]   ;;  %v1733_v14 = vld [vmem:[%s1988_s8 + $0x160] ss:$16 sps:$4 sm:$0xff]   ;;  %v1734_v15 = vld [vmem:[%s1988_s8 + $0x168] ss:$16 sps:$4 sm:$0xff]  }
  0x29   : > { %1491 = vmatpush3.bf16.msra.mxu1 %v1658_v27  ;;  %1380 = vmatprep.subr.bf16.mxu0 %v1659_v28  ;;  %v1735_v16 = vld [vmem:[%s1988_s8 + $0x184] ss:$16 sps:$4 sm:$0xff]   ;;  %v1737_v17 = vld [vmem:[%s1988_s8 + $0x18c] ss:$16 sps:$4 sm:$0xff]   ;;  %v1739_v18 = vld [vmem:[%s1988_s8 + $0x180] ss:$16 sps:$4 sm:$0xff]  }
  0x2a   : > { %1492 = vmatprep.subr.bf16.mxu1 %v1660_v29  ;;  %v1740_v19 = vld [vmem:[%s1988_s8 + $0x188] ss:$16 sps:$4 sm:$0xff]   ;;  %v1741_v20 = vld [vmem:[%s1988_s8 + $0x1a4] ss:$16 sps:$4 sm:$0xff]   ;;  %v1743_v21 = vld [vmem:[%s1988_s8 + $0x1ac] ss:$16 sps:$4 sm:$0xff]  }
  0x2b   : > { %v1745_v22 = vld [vmem:[%s1988_s8 + $0x1a0] ss:$16 sps:$4 sm:$0xff]   ;;  %v1746_v23 = vld [vmem:[%s1988_s8 + $0x1a8] ss:$16 sps:$4 sm:$0xff]   ;;  %v1747_v24 = vld [vmem:[%s1988_s8 + $0x1c4] ss:$16 sps:$4 sm:$0xff]  }
  0x2c   : > { %1381 = vmatpush3.bf16.msra.mxu0 %v1661_v30  ;;  %v1749_v25 = vld [vmem:[%s1988_s8 + $0x1cc] ss:$16 sps:$4 sm:$0xff]   ;;  %v1751_v26 = vld [vmem:[%s1988_s8 + $0x1c0] ss:$16 sps:$4 sm:$0xff]   ;;  %v1752_v27 = vld [vmem:[%s1988_s8 + $0x1c8] ss:$16 sps:$4 sm:$0xff]  }
  0x2d   : > { %1493 = vmatpush3.bf16.msra.mxu1 %v1662_v31  ;;  %v1753_v28 = vld [vmem:[%s1988_s8 + $0x1e4] ss:$16 sps:$4 sm:$0xff]   ;;  %v1755_v29 = vld [vmem:[%s1988_s8 + $0x1ec] ss:$16 sps:$4 sm:$0xff]   ;;  %v1757_v30 = vld [vmem:[%s1988_s8 + $0x1e0] ss:$16 sps:$4 sm:$0xff]  }
  0x2e   : > { %v1758_v31 = vld [vmem:[%s1988_s8 + $0x1e8] ss:$16 sps:$4 sm:$0xff]   ;;  %s1759_s5 = scalar_lea.vmem %s2169_s28, 4096  ;;  %s1765_s8 = scalar_lea.vmem %s1764_s7, 8192 }
  0x2f   : > { %856 = vmatmul.mubr.bf16.vlgmr.msra.gmra.mrb[0].mxu0 %v1663_v32  ;;  %p1760_p11 = scmp.ne.s32.totalorder %s2169_s28, %s1759_s5  ;;  %p1767_p1 = scmp.lt.s32.totalorder %s1765_s8, %s1759_s5 }
  0x30   : > { %1017 = vmatmul.mubr.bf16.vlgmr.msra.gmra.mrb[0].mxu1 %v1666_v34  ;;  %863 = vmatprep.mubr.bf16.mxu0 %v1669_v36  ;;  %v2064_v34 = vld [vmem:[%s2220_s2] ss:$0 sm:$0xff] }
  0x31   : > { %1024 = vmatprep.mubr.bf16.mxu1 %v1671_v37  ;;  %p1761_p12 = pnand %p1760_p11, %p1884_p5  ;;  %p1768_p2 = por %p1767_p1, %p1766_p0 }
  0x33   : > { %p1762_p13 = pneg %p1761_p12 }
  0x35   : > { %p1769_p3 = pnand %p1768_p2, %p1762_p13 }
  0x37   : > { %864 = vmatmul.mubr.bf16.gmra.mrb[4].mxu0 %v1673_v38 }
  0x38   : > { %1025 = vmatmul.mubr.bf16.gmra.mrb[4].mxu1 %v1674_v39  ;;  %871 = vmatprep.mubr.bf16.mxu0 %v1675_v40 }
  0x39   : > { %1032 = vmatprep.mubr.bf16.mxu1 %v1677_v41 }
  0x3f   : > { %872 = vmatmul.mubr.bf16.gmra.mrb[8].mxu0 %v1679_v42 }
  0x40   : > { %1033 = vmatmul.mubr.bf16.gmra.mrb[8].mxu1 %v1680_v43  ;;  %879 = vmatprep.mubr.bf16.mxu0 %v1681_v44 }
  0x41   : > { %1040 = vmatprep.mubr.bf16.mxu1 %v1683_v45 }
  0x47   : > { %880 = vmatmul.mubr.bf16.gmra.mrb[12].mxu0 %v1685_v46 }
  0x48   : > { %1041 = vmatmul.mubr.bf16.gmra.mrb[12].mxu1 %v1686_v47  ;;  %887 = vmatprep.mubr.bf16.mxu0 %v1687_v48 }
  0x49   : > { %1048 = vmatprep.mubr.bf16.mxu1 %v1689_v49 }
  0x4f   : > { %888 = vmatmul.mubr.bf16.gmra.mrb[16].mxu0 %v1691_v50 }
  0x50   : > { %1049 = vmatmul.mubr.bf16.gmra.mrb[16].mxu1 %v1692_v51  ;;  %895 = vmatprep.mubr.bf16.mxu0 %v1693_v52 }
  0x51   : > { %1056 = vmatprep.mubr.bf16.mxu1 %v1695_v53 }
  0x57   : > { %896 = vmatmul.mubr.bf16.gmra.mrb[20].mxu0 %v1697_v54 }
  0x58   : > { %1057 = vmatmul.mubr.bf16.gmra.mrb[20].mxu1 %v1698_v55  ;;  %903 = vmatprep.mubr.bf16.mxu0 %v1699_v56 }
  0x59   : > { %1064 = vmatprep.mubr.bf16.mxu1 %v1701_v57 }
  0x5f   : > { %904 = vmatmul.mubr.bf16.gmra.mrb[24].mxu0 %v1703_v58 }
  0x60   : > { %1065 = vmatmul.mubr.bf16.gmra.mrb[24].mxu1 %v1704_v59  ;;  %911 = vmatprep.mubr.bf16.mxu0 %v1705_v60 }
  0x61   : > { %1072 = vmatprep.mubr.bf16.mxu1 %v1707_v61 }
  0x67   : > { %912 = vmatmul.mubr.bf16.gmra.mrb[28].mxu0 %v1709_v62 }
  0x68   : > { %1073 = vmatmul.mubr.bf16.gmra.mrb[28].mxu1 %v1710_v63  ;;  %919 = vmatprep.mubr.bf16.mxu0 %v1711_v0 }
  0x69   : > { %1080 = vmatprep.mubr.bf16.mxu1 %v1713_v1 }
  0x6f   : > { %920 = vmatmul.mubr.bf16.gmra.mrb[32].mxu0 %v1715_v2 }
  0x70   : > { %1081 = vmatmul.mubr.bf16.gmra.mrb[32].mxu1 %v1716_v3  ;;  %927 = vmatprep.mubr.bf16.mxu0 %v1717_v4 }
  0x71   : > { %1088 = vmatprep.mubr.bf16.mxu1 %v1719_v5 }
  0x77   : > { %928 = vmatmul.mubr.bf16.gmra.mrb[36].mxu0 %v1721_v6 }
  0x78   : > { %1089 = vmatmul.mubr.bf16.gmra.mrb[36].mxu1 %v1722_v7  ;;  %935 = vmatprep.mubr.bf16.mxu0 %v1723_v8 }
  0x79   : > { %1096 = vmatprep.mubr.bf16.mxu1 %v1725_v9 }
  0x7f   : > { %936 = vmatmul.mubr.bf16.gmra.mrb[40].mxu0 %v1727_v10 }
  0x80   : > { %1097 = vmatmul.mubr.bf16.gmra.mrb[40].mxu1 %v1728_v11  ;;  %943 = vmatprep.mubr.bf16.mxu0 %v1729_v12 }
  0x81   : > { %1104 = vmatprep.mubr.bf16.mxu1 %v1731_v13 }
  0x87   : > { %944 = vmatmul.mubr.bf16.gmra.mrb[44].mxu0 %v1733_v14 }
  0x88   : > { %1105 = vmatmul.mubr.bf16.gmra.mrb[44].mxu1 %v1734_v15  ;;  %951 = vmatprep.mubr.bf16.mxu0 %v1735_v16 }
  0x89   : > { %1112 = vmatprep.mubr.bf16.mxu1 %v1737_v17 }
  0x8f   : > { %952 = vmatmul.mubr.bf16.gmra.mrb[48].mxu0 %v1739_v18 }
  0x90   : > { %1113 = vmatmul.mubr.bf16.gmra.mrb[48].mxu1 %v1740_v19  ;;  %959 = vmatprep.mubr.bf16.mxu0 %v1741_v20 }
  0x91   : > { %1120 = vmatprep.mubr.bf16.mxu1 %v1743_v21 }
  0x97   : > { %960 = vmatmul.mubr.bf16.gmra.mrb[52].mxu0 %v1745_v22 }
  0x98   : > { %1121 = vmatmul.mubr.bf16.gmra.mrb[52].mxu1 %v1746_v23  ;;  %967 = vmatprep.mubr.bf16.mxu0 %v1747_v24 }
  0x99   : > { %1128 = vmatprep.mubr.bf16.mxu1 %v1749_v25 }
  0x9f   : > { %968 = vmatmul.mubr.bf16.gmra.mrb[56].mxu0 %v1751_v26 }
  0xa0   : > { %1129 = vmatmul.mubr.bf16.gmra.mrb[56].mxu1 %v1752_v27  ;;  %975 = vmatprep.mubr.bf16.mxu0 %v1753_v28 }
  0xa1   : > { %1136 = vmatprep.mubr.bf16.mxu1 %v1755_v29 }
  0xa7   : > { %976 = vmatmul.mubr.bf16.gmra.mrb[60].mxu0 %v1757_v30 }
  0xa8   : > { %1137 = vmatmul.mubr.bf16.gmra.mrb[60].mxu1 %v1758_v31 }
 0x102   : > { %v1382_v32 = vpop.f32.mrb[0].mxu0 }
 0x103   : > { %v1494_v33 = vpop.f32.mrb[0].mxu1  ;;  %v1383_v35 = vpop.f32.mrb[1].mxu0 }
 0x104   : > { %v1384_v36 = vadd.f32 %v1383_v35, %v1382_v32  ;;  %v1495_v37 = vpop.f32.mrb[1].mxu1  ;;  %v1385_v38 = vpop.f32.mrb[2].mxu0 }
 0x105   : > { %v1496_v39 = vadd.f32 %v1495_v37, %v1494_v33  ;;  %v1497_v40 = vpop.f32.mrb[2].mxu1  ;;  %v1386_v41 = vpop.f32.mrb[3].mxu0 }
 0x106   : > { %v858_v42 = vadd.f32 %v1384_v36, %v2064_v34  ;;  %v1387_v43 = vadd.f32 %v1386_v41, %v1385_v38  ;;  %v1498_v44 = vpop.f32.mrb[3].mxu1 }
 0x107   : > { %v1499_v45 = vadd.f32 %v1498_v44, %v1497_v40 }
 0x108   : > { %v1019_v46 = vadd.f32 %v1496_v39, %v858_v42  ;;  %v861_v47 = vadd.f32 %v1387_v43, %v2064_v34 }
 0x10a   : > { %1146 = vst.msk [vmem:[%s2070_s26] sm:$0xff] %vm1145_vm0, %v1019_v46  ;;  %v1022_v48 = vadd.f32 %v1499_v45, %v861_v47  ;;  %v1388_v49 = vpop.f32.mrb[4].mxu0 }
 0x10b   : > { %v1500_v50 = vpop.f32.mrb[4].mxu1  ;;  %v1389_v51 = vpop.f32.mrb[5].mxu0 }
 0x10c   : > { %1147 = vst.msk [vmem:[%s2070_s26 + $0x8] sm:$0xff] %vm1145_vm0, %v1022_v48  ;;  %v1390_v52 = vadd.f32 %v1389_v51, %v1388_v49  ;;  %v1501_v53 = vpop.f32.mrb[5].mxu1  ;;  %v1391_v54 = vpop.f32.mrb[6].mxu0 }
 0x10d   : > { %v1502_v55 = vadd.f32 %v1501_v53, %v1500_v50  ;;  %v1503_v56 = vpop.f32.mrb[6].mxu1  ;;  %v1392_v57 = vpop.f32.mrb[7].mxu0 }
 0x10e   : > { %v866_v58 = vadd.f32 %v1390_v52, %v2064_v34  ;;  %v1393_v59 = vadd.f32 %v1392_v57, %v1391_v54  ;;  %v1504_v60 = vpop.f32.mrb[7].mxu1 }
 0x10f   : > { %v1505_v61 = vadd.f32 %v1504_v60, %v1503_v56 }
 0x110   : > { %v1027_v62 = vadd.f32 %v1502_v55, %v866_v58  ;;  %v869_v63 = vadd.f32 %v1393_v59, %v2064_v34 }
 0x112   : > { %1148 = vst.msk [vmem:[%s2070_s26 + $0x10] sm:$0xff] %vm1145_vm0, %v1027_v62  ;;  %v1030_v0 = vadd.f32 %v1505_v61, %v869_v63  ;;  %v1394_v1 = vpop.f32.mrb[8].mxu0 }
 0x113   : > { %v1506_v2 = vpop.f32.mrb[8].mxu1  ;;  %v1395_v3 = vpop.f32.mrb[9].mxu0 }
 0x114   : > { %1149 = vst.msk [vmem:[%s2070_s26 + $0x18] sm:$0xff] %vm1145_vm0, %v1030_v0  ;;  %v1396_v4 = vadd.f32 %v1395_v3, %v1394_v1  ;;  %v1507_v5 = vpop.f32.mrb[9].mxu1  ;;  %v1397_v6 = vpop.f32.mrb[10].mxu0 }
 0x115   : > { %v1508_v7 = vadd.f32 %v1507_v5, %v1506_v2  ;;  %v1509_v8 = vpop.f32.mrb[10].mxu1  ;;  %v1398_v9 = vpop.f32.mrb[11].mxu0 }
 0x116   : > { %v874_v10 = vadd.f32 %v1396_v4, %v2064_v34  ;;  %v1399_v11 = vadd.f32 %v1398_v9, %v1397_v6  ;;  %v1510_v12 = vpop.f32.mrb[11].mxu1 }
 0x117   : > { %v1511_v13 = vadd.f32 %v1510_v12, %v1509_v8 }
 0x118   : > { %v1035_v14 = vadd.f32 %v1508_v7, %v874_v10  ;;  %v877_v15 = vadd.f32 %v1399_v11, %v2064_v34 }
 0x11a   : > { %1150 = vst.msk [vmem:[%s2070_s26 + $0x20] sm:$0xff] %vm1145_vm0, %v1035_v14  ;;  %v1038_v16 = vadd.f32 %v1511_v13, %v877_v15  ;;  %v1400_v17 = vpop.f32.mrb[12].mxu0 }
 0x11b   : > { %v1512_v18 = vpop.f32.mrb[12].mxu1  ;;  %v1401_v19 = vpop.f32.mrb[13].mxu0 }
 0x11c   : > { %1151 = vst.msk [vmem:[%s2070_s26 + $0x28] sm:$0xff] %vm1145_vm0, %v1038_v16  ;;  %v1402_v20 = vadd.f32 %v1401_v19, %v1400_v17  ;;  %v1513_v21 = vpop.f32.mrb[13].mxu1  ;;  %v1403_v22 = vpop.f32.mrb[14].mxu0 }
 0x11d   : > { %v1514_v23 = vadd.f32 %v1513_v21, %v1512_v18  ;;  %v1515_v24 = vpop.f32.mrb[14].mxu1  ;;  %v1404_v25 = vpop.f32.mrb[15].mxu0 }
 0x11e   : > { %v882_v26 = vadd.f32 %v1402_v20, %v2064_v34  ;;  %v1405_v27 = vadd.f32 %v1404_v25, %v1403_v22  ;;  %v1516_v28 = vpop.f32.mrb[15].mxu1 }
 0x11f   : > { %v1517_v29 = vadd.f32 %v1516_v28, %v1515_v24 }
 0x120   : > { %v1043_v30 = vadd.f32 %v1514_v23, %v882_v26  ;;  %v885_v31 = vadd.f32 %v1405_v27, %v2064_v34 }
 0x122   : > { %1152 = vst.msk [vmem:[%s2070_s26 + $0x30] sm:$0xff] %vm1145_vm0, %v1043_v30  ;;  %v1046_v32 = vadd.f32 %v1517_v29, %v885_v31  ;;  %v1406_v33 = vpop.f32.mrb[16].mxu0 }
 0x123   : > { %v1518_v35 = vpop.f32.mrb[16].mxu1  ;;  %v1407_v36 = vpop.f32.mrb[17].mxu0 }
 0x124   : > { %1153 = vst.msk [vmem:[%s2070_s26 + $0x38] sm:$0xff] %vm1145_vm0, %v1046_v32  ;;  %v1408_v37 = vadd.f32 %v1407_v36, %v1406_v33  ;;  %v1519_v38 = vpop.f32.mrb[17].mxu1  ;;  %v1409_v39 = vpop.f32.mrb[18].mxu0 }
 0x125   : > { %v1520_v40 = vadd.f32 %v1519_v38, %v1518_v35  ;;  %v1521_v41 = vpop.f32.mrb[18].mxu1  ;;  %v1410_v42 = vpop.f32.mrb[19].mxu0 }
 0x126   : > { %v890_v43 = vadd.f32 %v1408_v37, %v2064_v34  ;;  %v1411_v44 = vadd.f32 %v1410_v42, %v1409_v39  ;;  %v1522_v45 = vpop.f32.mrb[19].mxu1 }
 0x127   : > { %v1523_v46 = vadd.f32 %v1522_v45, %v1521_v41 }
 0x128   : > { %v1051_v47 = vadd.f32 %v1520_v40, %v890_v43  ;;  %v893_v48 = vadd.f32 %v1411_v44, %v2064_v34 }
 0x12a   : > { %1154 = vst.msk [vmem:[%s2070_s26 + $0x40] sm:$0xff] %vm1145_vm0, %v1051_v47  ;;  %v1054_v49 = vadd.f32 %v1523_v46, %v893_v48  ;;  %v1412_v50 = vpop.f32.mrb[20].mxu0 }
 0x12b   : > { %v1524_v51 = vpop.f32.mrb[20].mxu1  ;;  %v1413_v52 = vpop.f32.mrb[21].mxu0 }
 0x12c   : > { %1155 = vst.msk [vmem:[%s2070_s26 + $0x48] sm:$0xff] %vm1145_vm0, %v1054_v49  ;;  %v1414_v53 = vadd.f32 %v1413_v52, %v1412_v50  ;;  %v1525_v54 = vpop.f32.mrb[21].mxu1  ;;  %v1415_v55 = vpop.f32.mrb[22].mxu0 }
 0x12d   : > { %v1526_v56 = vadd.f32 %v1525_v54, %v1524_v51  ;;  %v1527_v57 = vpop.f32.mrb[22].mxu1  ;;  %v1416_v58 = vpop.f32.mrb[23].mxu0 }
 0x12e   : > { %v898_v59 = vadd.f32 %v1414_v53, %v2064_v34  ;;  %v1417_v60 = vadd.f32 %v1416_v58, %v1415_v55  ;;  %v1528_v61 = vpop.f32.mrb[23].mxu1 }
 0x12f   : > { %v1529_v62 = vadd.f32 %v1528_v61, %v1527_v57 }
 0x130   : > { %v1059_v63 = vadd.f32 %v1526_v56, %v898_v59  ;;  %v901_v0 = vadd.f32 %v1417_v60, %v2064_v34 }
 0x132   : > { %1156 = vst.msk [vmem:[%s2070_s26 + $0x50] sm:$0xff] %vm1145_vm0, %v1059_v63  ;;  %v1062_v1 = vadd.f32 %v1529_v62, %v901_v0  ;;  %v1418_v2 = vpop.f32.mrb[24].mxu0 }
 0x133   : > { %v1530_v3 = vpop.f32.mrb[24].mxu1  ;;  %v1419_v4 = vpop.f32.mrb[25].mxu0 }
 0x134   : > { %1157 = vst.msk [vmem:[%s2070_s26 + $0x58] sm:$0xff] %vm1145_vm0, %v1062_v1  ;;  %v1420_v5 = vadd.f32 %v1419_v4, %v1418_v2  ;;  %v1531_v6 = vpop.f32.mrb[25].mxu1  ;;  %v1421_v7 = vpop.f32.mrb[26].mxu0 }
 0x135   : > { %v1532_v8 = vadd.f32 %v1531_v6, %v1530_v3  ;;  %v1533_v9 = vpop.f32.mrb[26].mxu1  ;;  %v1422_v10 = vpop.f32.mrb[27].mxu0 }
 0x136   : > { %v906_v11 = vadd.f32 %v1420_v5, %v2064_v34  ;;  %v1423_v12 = vadd.f32 %v1422_v10, %v1421_v7  ;;  %v1534_v13 = vpop.f32.mrb[27].mxu1 }
 0x137   : > { %v1535_v14 = vadd.f32 %v1534_v13, %v1533_v9 }
 0x138   : > { %v1067_v15 = vadd.f32 %v1532_v8, %v906_v11  ;;  %v909_v16 = vadd.f32 %v1423_v12, %v2064_v34 }
 0x13a   : > { %1158 = vst.msk [vmem:[%s2070_s26 + $0x60] sm:$0xff] %vm1145_vm0, %v1067_v15  ;;  %v1070_v17 = vadd.f32 %v1535_v14, %v909_v16  ;;  %v1424_v18 = vpop.f32.mrb[28].mxu0 }
 0x13b   : > { %v1536_v19 = vpop.f32.mrb[28].mxu1  ;;  %v1425_v20 = vpop.f32.mrb[29].mxu0 }
 0x13c   : > { %1159 = vst.msk [vmem:[%s2070_s26 + $0x68] sm:$0xff] %vm1145_vm0, %v1070_v17  ;;  %v1426_v21 = vadd.f32 %v1425_v20, %v1424_v18  ;;  %v1537_v22 = vpop.f32.mrb[29].mxu1  ;;  %v1427_v23 = vpop.f32.mrb[30].mxu0 }
 0x13d   : > { %v1538_v24 = vadd.f32 %v1537_v22, %v1536_v19  ;;  %v1539_v25 = vpop.f32.mrb[30].mxu1  ;;  %v1428_v26 = vpop.f32.mrb[31].mxu0 }
 0x13e   : > { %v914_v27 = vadd.f32 %v1426_v21, %v2064_v34  ;;  %v1429_v28 = vadd.f32 %v1428_v26, %v1427_v23  ;;  %v1540_v29 = vpop.f32.mrb[31].mxu1 }
 0x13f   : > { %v1541_v30 = vadd.f32 %v1540_v29, %v1539_v25 }
 0x140   : > { %v1075_v31 = vadd.f32 %v1538_v24, %v914_v27  ;;  %v917_v32 = vadd.f32 %v1429_v28, %v2064_v34 }
 0x142   : > { %1160 = vst.msk [vmem:[%s2070_s26 + $0x70] sm:$0xff] %vm1145_vm0, %v1075_v31  ;;  %v1078_v33 = vadd.f32 %v1541_v30, %v917_v32  ;;  %v1430_v35 = vpop.f32.mrb[32].mxu0 }
 0x143   : > { %v1542_v36 = vpop.f32.mrb[32].mxu1  ;;  %v1431_v37 = vpop.f32.mrb[33].mxu0 }
 0x144   : > { %1161 = vst.msk [vmem:[%s2070_s26 + $0x78] sm:$0xff] %vm1145_vm0, %v1078_v33  ;;  %v1432_v38 = vadd.f32 %v1431_v37, %v1430_v35  ;;  %v1543_v39 = vpop.f32.mrb[33].mxu1  ;;  %v1433_v40 = vpop.f32.mrb[34].mxu0 }
 0x145   : > { %v1544_v41 = vadd.f32 %v1543_v39, %v1542_v36  ;;  %v1545_v42 = vpop.f32.mrb[34].mxu1  ;;  %v1434_v43 = vpop.f32.mrb[35].mxu0 }
 0x146   : > { %v922_v44 = vadd.f32 %v1432_v38, %v2064_v34  ;;  %v1435_v45 = vadd.f32 %v1434_v43, %v1433_v40  ;;  %v1546_v46 = vpop.f32.mrb[35].mxu1 }
 0x147   : > { %v1547_v47 = vadd.f32 %v1546_v46, %v1545_v42 }
 0x148   : > { %v1083_v48 = vadd.f32 %v1544_v41, %v922_v44  ;;  %v925_v49 = vadd.f32 %v1435_v45, %v2064_v34 }
 0x14a   : > { %1162 = vst.msk [vmem:[%s2070_s26 + $0x80] sm:$0xff] %vm1145_vm0, %v1083_v48  ;;  %v1086_v50 = vadd.f32 %v1547_v47, %v925_v49  ;;  %v1436_v51 = vpop.f32.mrb[36].mxu0 }
 0x14b   : > { %v1548_v52 = vpop.f32.mrb[36].mxu1  ;;  %v1437_v53 = vpop.f32.mrb[37].mxu0 }
 0x14c   : > { %1163 = vst.msk [vmem:[%s2070_s26 + $0x88] sm:$0xff] %vm1145_vm0, %v1086_v50  ;;  %v1438_v54 = vadd.f32 %v1437_v53, %v1436_v51  ;;  %v1549_v55 = vpop.f32.mrb[37].mxu1  ;;  %v1439_v56 = vpop.f32.mrb[38].mxu0 }
 0x14d   : > { %v1550_v57 = vadd.f32 %v1549_v55, %v1548_v52  ;;  %v1551_v58 = vpop.f32.mrb[38].mxu1  ;;  %v1440_v59 = vpop.f32.mrb[39].mxu0 }
 0x14e   : > { %v930_v60 = vadd.f32 %v1438_v54, %v2064_v34  ;;  %v1441_v61 = vadd.f32 %v1440_v59, %v1439_v56  ;;  %v1552_v62 = vpop.f32.mrb[39].mxu1 }
 0x14f   : > { %v1553_v63 = vadd.f32 %v1552_v62, %v1551_v58 }
 0x150   : > { %v1091_v0 = vadd.f32 %v1550_v57, %v930_v60  ;;  %v933_v1 = vadd.f32 %v1441_v61, %v2064_v34 }
 0x152   : > { %1164 = vst.msk [vmem:[%s2070_s26 + $0x90] sm:$0xff] %vm1145_vm0, %v1091_v0  ;;  %v1094_v2 = vadd.f32 %v1553_v63, %v933_v1  ;;  %v1442_v3 = vpop.f32.mrb[40].mxu0 }
 0x153   : > { %v1554_v4 = vpop.f32.mrb[40].mxu1  ;;  %v1443_v5 = vpop.f32.mrb[41].mxu0 }
 0x154   : > { %1165 = vst.msk [vmem:[%s2070_s26 + $0x98] sm:$0xff] %vm1145_vm0, %v1094_v2  ;;  %v1444_v6 = vadd.f32 %v1443_v5, %v1442_v3  ;;  %v1555_v7 = vpop.f32.mrb[41].mxu1  ;;  %v1445_v8 = vpop.f32.mrb[42].mxu0 }
 0x155   : > { %v1556_v9 = vadd.f32 %v1555_v7, %v1554_v4  ;;  %v1557_v10 = vpop.f32.mrb[42].mxu1  ;;  %v1446_v11 = vpop.f32.mrb[43].mxu0 }
 0x156   : > { %v938_v12 = vadd.f32 %v1444_v6, %v2064_v34  ;;  %v1447_v13 = vadd.f32 %v1446_v11, %v1445_v8  ;;  %v1558_v14 = vpop.f32.mrb[43].mxu1 }
 0x157   : > { %v1559_v15 = vadd.f32 %v1558_v14, %v1557_v10 }
 0x158   : > { %v1099_v16 = vadd.f32 %v1556_v9, %v938_v12  ;;  %v941_v17 = vadd.f32 %v1447_v13, %v2064_v34 }
 0x15a   : > { %1166 = vst.msk [vmem:[%s2070_s26 + $0xa0] sm:$0xff] %vm1145_vm0, %v1099_v16  ;;  %v1102_v18 = vadd.f32 %v1559_v15, %v941_v17  ;;  %v1448_v19 = vpop.f32.mrb[44].mxu0 }
 0x15b   : > { %v1560_v20 = vpop.f32.mrb[44].mxu1  ;;  %v1449_v21 = vpop.f32.mrb[45].mxu0 }
 0x15c   : > { %1167 = vst.msk [vmem:[%s2070_s26 + $0xa8] sm:$0xff] %vm1145_vm0, %v1102_v18  ;;  %v1450_v22 = vadd.f32 %v1449_v21, %v1448_v19  ;;  %v1561_v23 = vpop.f32.mrb[45].mxu1  ;;  %v1451_v24 = vpop.f32.mrb[46].mxu0 }
 0x15d   : > { %v1562_v25 = vadd.f32 %v1561_v23, %v1560_v20  ;;  %v1563_v26 = vpop.f32.mrb[46].mxu1  ;;  %v1452_v27 = vpop.f32.mrb[47].mxu0 }
 0x15e   : > { %v946_v28 = vadd.f32 %v1450_v22, %v2064_v34  ;;  %v1453_v29 = vadd.f32 %v1452_v27, %v1451_v24  ;;  %v1564_v30 = vpop.f32.mrb[47].mxu1 }
 0x15f   : > { %v1565_v31 = vadd.f32 %v1564_v30, %v1563_v26 }
 0x160   : > { %v1107_v32 = vadd.f32 %v1562_v25, %v946_v28  ;;  %v949_v33 = vadd.f32 %v1453_v29, %v2064_v34 }
 0x162   : > { %1168 = vst.msk [vmem:[%s2070_s26 + $0xb0] sm:$0xff] %vm1145_vm0, %v1107_v32  ;;  %v1110_v35 = vadd.f32 %v1565_v31, %v949_v33  ;;  %v1454_v36 = vpop.f32.mrb[48].mxu0 }
 0x163   : > { %v1566_v37 = vpop.f32.mrb[48].mxu1  ;;  %v1455_v38 = vpop.f32.mrb[49].mxu0 }
 0x164   : > { %1169 = vst.msk [vmem:[%s2070_s26 + $0xb8] sm:$0xff] %vm1145_vm0, %v1110_v35  ;;  %v1456_v39 = vadd.f32 %v1455_v38, %v1454_v36  ;;  %v1567_v40 = vpop.f32.mrb[49].mxu1  ;;  %v1457_v41 = vpop.f32.mrb[50].mxu0 }
 0x165   : > { %v1568_v42 = vadd.f32 %v1567_v40, %v1566_v37  ;;  %v1569_v43 = vpop.f32.mrb[50].mxu1  ;;  %v1458_v44 = vpop.f32.mrb[51].mxu0 }
 0x166   : > { %v954_v45 = vadd.f32 %v1456_v39, %v2064_v34  ;;  %v1459_v46 = vadd.f32 %v1458_v44, %v1457_v41  ;;  %v1570_v47 = vpop.f32.mrb[51].mxu1 }
 0x167   : > { %v1571_v48 = vadd.f32 %v1570_v47, %v1569_v43 }
 0x168   : > { %v1115_v49 = vadd.f32 %v1568_v42, %v954_v45  ;;  %v957_v50 = vadd.f32 %v1459_v46, %v2064_v34 }
 0x16a   : > { %1170 = vst.msk [vmem:[%s2070_s26 + $0xc0] sm:$0xff] %vm1145_vm0, %v1115_v49  ;;  %v1118_v51 = vadd.f32 %v1571_v48, %v957_v50  ;;  %v1460_v52 = vpop.f32.mrb[52].mxu0 }
 0x16b   : > { %v1572_v53 = vpop.f32.mrb[52].mxu1  ;;  %v1461_v54 = vpop.f32.mrb[53].mxu0 }
 0x16c   : > { %1171 = vst.msk [vmem:[%s2070_s26 + $0xc8] sm:$0xff] %vm1145_vm0, %v1118_v51  ;;  %v1462_v55 = vadd.f32 %v1461_v54, %v1460_v52  ;;  %v1573_v56 = vpop.f32.mrb[53].mxu1  ;;  %v1463_v57 = vpop.f32.mrb[54].mxu0 }
 0x16d   : > { %v1574_v58 = vadd.f32 %v1573_v56, %v1572_v53  ;;  %v1575_v59 = vpop.f32.mrb[54].mxu1  ;;  %v1464_v60 = vpop.f32.mrb[55].mxu0 }
 0x16e   : > { %v962_v61 = vadd.f32 %v1462_v55, %v2064_v34  ;;  %v1465_v62 = vadd.f32 %v1464_v60, %v1463_v57  ;;  %v1576_v63 = vpop.f32.mrb[55].mxu1 }
 0x16f   : > { %v1577_v0 = vadd.f32 %v1576_v63, %v1575_v59 }
 0x170   : > { %v1123_v1 = vadd.f32 %v1574_v58, %v962_v61  ;;  %v965_v2 = vadd.f32 %v1465_v62, %v2064_v34 }
 0x172   : > { %1172 = vst.msk [vmem:[%s2070_s26 + $0xd0] sm:$0xff] %vm1145_vm0, %v1123_v1  ;;  %v1126_v3 = vadd.f32 %v1577_v0, %v965_v2  ;;  %v1466_v4 = vpop.f32.mrb[56].mxu0 }
 0x173   : > { %v1578_v5 = vpop.f32.mrb[56].mxu1  ;;  %v1467_v6 = vpop.f32.mrb[57].mxu0 }
 0x174   : > { %1173 = vst.msk [vmem:[%s2070_s26 + $0xd8] sm:$0xff] %vm1145_vm0, %v1126_v3  ;;  %v1468_v7 = vadd.f32 %v1467_v6, %v1466_v4  ;;  %v1579_v8 = vpop.f32.mrb[57].mxu1  ;;  %v1469_v9 = vpop.f32.mrb[58].mxu0 }
 0x175   : > { %v1580_v10 = vadd.f32 %v1579_v8, %v1578_v5  ;;  %v1581_v11 = vpop.f32.mrb[58].mxu1  ;;  %v1470_v12 = vpop.f32.mrb[59].mxu0 }
 0x176   : > { %v970_v13 = vadd.f32 %v1468_v7, %v2064_v34  ;;  %v1471_v14 = vadd.f32 %v1470_v12, %v1469_v9  ;;  %v1582_v15 = vpop.f32.mrb[59].mxu1 }
 0x177   : > { %v1583_v16 = vadd.f32 %v1582_v15, %v1581_v11 }
 0x178   : > { %v1131_v17 = vadd.f32 %v1580_v10, %v970_v13  ;;  %v973_v18 = vadd.f32 %v1471_v14, %v2064_v34 }
 0x17a   : > { %1174 = vst.msk [vmem:[%s2070_s26 + $0xe0] sm:$0xff] %vm1145_vm0, %v1131_v17  ;;  %v1134_v19 = vadd.f32 %v1583_v16, %v973_v18  ;;  %v1472_v20 = vpop.f32.mrb[60].mxu0 }
 0x17b   : > { %v1584_v21 = vpop.f32.mrb[60].mxu1  ;;  %v1473_v22 = vpop.f32.mrb[61].mxu0 }
 0x17c   : > { %1175 = vst.msk [vmem:[%s2070_s26 + $0xe8] sm:$0xff] %vm1145_vm0, %v1134_v19  ;;  %v1474_v23 = vadd.f32 %v1473_v22, %v1472_v20  ;;  %v1585_v24 = vpop.f32.mrb[61].mxu1  ;;  %v1475_v25 = vpop.f32.mrb[62].mxu0 }
 0x17d   : > { %v1586_v26 = vadd.f32 %v1585_v24, %v1584_v21  ;;  %v1587_v27 = vpop.f32.mrb[62].mxu1  ;;  %v1476_v28 = vpop.f32.mrb[63].mxu0 }
 0x17e   : > { %v978_v29 = vadd.f32 %v1474_v23, %v2064_v34  ;;  %v1477_v30 = vadd.f32 %v1476_v28, %v1475_v25  ;;  %v1588_v31 = vpop.f32.mrb[63].mxu1 }
 0x17f   : > { %v1589_v32 = vadd.f32 %v1588_v31, %v1587_v27 }
 0x180   : > { %v1139_v33 = vadd.f32 %v1586_v26, %v978_v29  ;;  %v981_v35 = vadd.f32 %v1477_v30, %v2064_v34 }
 0x182   : > { %1176 = vst.msk [vmem:[%s2070_s26 + $0xf0] sm:$0xff] %vm1145_vm0, %v1139_v33  ;;  %v1142_v36 = vadd.f32 %v1589_v32, %v981_v35 }
 0x184   : > { %1177 = vst.msk [vmem:[%s2070_s26 + $0xf8] sm:$0xff] %vm1145_vm0, %v1142_v36 }
 0x185   : > { %1772 = shalt.err (!%p1769_p3)
}
 0x186   : > { %s1773_s11 = scalar_lea.hbm %s2167_s4, 4096  ;;  %s1777_s17 = scalar_lea.hbm %s2221_s3, 8192 }
 0x187   : > { %p1774_p4 = scmp.ne.s32.totalorder %s2167_s4, %s1773_s11  ;;  %p1778_p9 = scmp.lt.u32.totalorder %s2167_s4, %s2221_s3 }
 0x188   : > { %p1779_p10 = scmp.lt.u32.totalorder %s1777_s17, %s1773_s11  ;;  %p1781_p12 = scmp.lt.u32.totalorder %s1773_s11, %s2167_s4 }
 0x189   : > { %p1775_p7 = pnand %p1774_p4, %p1884_p5 }
 0x18a   : > { %p1780_p11 = por %p1779_p10, %p1778_p9 }
 0x18b   : > { %p1776_p8 = pneg %p1775_p7 }
 0x18c   : > { %p1782_p13 = por %p1781_p12, %p1780_p11 }
 0x18e   : > { %p1783_p0 = pnand %p1782_p13, %p1776_p8 }
 0x190   : > { %1786 = shalt.err (!%p1783_p0)
}
 0x191   : > { %s1824_s24 = smov 128   ;;  %s1825_s25 = smov 8  }
 0x192   : > { %1590 = dma.vmem_to_hbm [thread:$0]  (%p1884_p5), %s2169_s28, 4096, %s2167_s4, %s2177_s16, %s1824_s24, %s1824_s24, %s1825_s25  }
 0x193 PF: > { %p1596_p1 = scmp.ge.s32.totalorder %s1821_s15, 2  ;;  %s1207_s26 = sand.u32 1, %s1809_s12  }
 0x194   : > { %s1208_s27 = scalar_lea.sflag [#allocation3], %s1207_s26 }
 0x195   : > { %p1593_p2 = pnand %p1596_p1, %p1888_p6 }
 0x197   : > { %1804 = dma.done.wait (!%p1593_p2), %s1208_s27, 4096  }
 0x198   : > { %1806 = vsyncadd (!%p1593_p2), %s1208_s27, 4294963200  ;;  %p13_p3 = scmp.ge.s32.totalorder %s1871_s18, 4   ;;  %s2224_s12 = smov %s1813_s13 }
 0x199   : > { %s2225_s13 = smov %s1817_s14  ;;  %s2226_s14 = smov %s1882_s21 }
 0x19a   : > { %s2227_s15 = smov %s1871_s18  ;;  %15 = sbr.rel (!%p13_p3) target bundleno = 3 (0x3), region = 67 }
 0x1a1   :  { %1213 = vsyncpa [#allocation3], 1 }
 0x1a2   :  { %1215 = vsyncpa [#allocation3 + $0x1], 1 }

</bundles_post_ra>
